<compile_context>
chip_gen: v6e
topology: v6e:2x2x1
jax: 0.10.0
libtpu: 0.0.40
codegen_flags: <defaults>
</compile_context>

<pallas_src>
import functools

import numpy as np

import jax
import jax.numpy as jnp
from jax.experimental import pallas as pl
from jax.experimental.pallas import tpu as pltpu


# ----------------------------------------------------------------------------- config
IN_CHANNELS = 8
OUT_CHANNELS = 1
KERNEL_SIZE = 7
CHANNELS = 32
UPSAMPLE_SCALES = [2, 2, 2, 2]
STACK_KERNEL_SIZE = 3
STACKS = 3
NEG_SLOPE = 0.2

_prod = 1
for _s in UPSAMPLE_SCALES:
    _prod *= _s
assert CHANNELS >= _prod
assert CHANNELS % (2 ** len(UPSAMPLE_SCALES)) == 0
assert (KERNEL_SIZE - 1) % 2 == 0

ACT_DTYPE = jnp.bfloat16   # inter-stage activation storage dtype (HBM traffic /2)
VPU_MAX_COUT = 4           # stages with C_out <= this use the VPU conv path
SEL_CHUNK = 128            # interleave selector chunk width (input lanes)
USE_IM2COL = True          # set False on v7x (MRB accumulates in place)

_VMEM_LIMIT_CACHE = None


def _vmem_limit_bytes():
    """Half of physical VMEM, capped at 64 MiB; 32 MiB fallback if unqueryable."""
    global _VMEM_LIMIT_CACHE
    if _VMEM_LIMIT_CACHE is None:
        limit = 32 * 1024 * 1024
        try:
            cap = int(pltpu.get_tpu_info().vmem_capacity_bytes)
            limit = min(cap // 2, 64 * 1024 * 1024)
        except Exception:  # pragma: no cover - conservative fallback
            pass
        _VMEM_LIMIT_CACHE = limit
    return _VMEM_LIMIT_CACHE


# ----------------------------------------------------------------------------- helpers usable inside kernels
def _leaky(x, slope):
    return jnp.where(x >= 0, x, slope * x)


def _phase_taps(s):
    """ConvTranspose1d(kernel=2s, stride=s, pad=s//2+s%2) polyphase taps.

    For each output phase p: list of (flipped-kernel tap k, input offset off)
    so that y[:, q*s+p] = sum_j Wf_k_j @ x[:, q + off_j].
    """
    Kt = 2 * s
    P = s // 2 + s % 2
    L = Kt - 1 - P
    taps = []
    for p in range(s):
        tp = [(k, (p + k - L) // s) for k in range(Kt) if (p + k - L) % s == 0]
        taps.append(tp)
    return taps


def _reflect_pad_lanes(x, p):
    """Reflection pad along the lane (time) axis of a (C, T) tile.

    Uses p static single-column slices per side + one lane concat (VPU/vst
    only); no reverse-identity matmuls.
    """
    if p == 0:
        return x
    T = x.shape[1]
    left = [x[:, p - i:p - i + 1] for i in range(p)]
    right = [x[:, T - 2 - i:T - 1 - i] for i in range(p)]
    return jnp.concatenate(left + [x] + right, axis=1)


def _apply_conv(xsrc, w, starts, span, cin, cout, *, vpu):
    """y = sum_j W_j @ xsrc[:, starts[j] : starts[j]+span].

    MXU path: w is (cout, J*cin); one im2col matmul when cin % 8 == 0 (and
    USE_IM2COL), else per-tap matmuls summed (preferred on v7x / MRB).
    VPU path: w is pre-transposed (J*cin, cout); per output row broadcast
    multiply + sublane reduce -- no MXU pushes, no im2col copy.
    """
    if vpu:
        rows = []
        for o in range(cout):
            acc = None
            for j, st in enumerate(starts):
                col = w[j * cin:(j + 1) * cin, o:o + 1]           # (cin, 1)
                t = jnp.sum(col * xsrc[:, st:st + span], axis=0, keepdims=True)
                acc = t if acc is None else acc + t
            rows.append(acc)
        return rows[0] if cout == 1 else jnp.concatenate(rows, axis=0)
    if cin % 8 == 0 and USE_IM2COL:
        xs = jnp.concatenate([xsrc[:, st:st + span] for st in starts], axis=0)
        return jnp.dot(w, xs, preferred_element_type=jnp.float32)
    acc = None
    for j, st in enumerate(starts):
        t = jnp.dot(w[:, j * cin:(j + 1) * cin], xsrc[:, st:st + span],
                    preferred_element_type=jnp.float32)
        acc = t if acc is None else acc + t
    return acc


def _dual_conv(a, b, w, c, *, vpu):
    """Fused residual 1x1 conv (on a) + skip 1x1 conv (on b)."""
    if vpu:
        cout = w.shape[1]                                         # w: (2c, cout)
        rows = []
        for o in range(cout):
            t = (jnp.sum(w[:c, o:o + 1] * a, axis=0, keepdims=True)
                 + jnp.sum(w[c:, o:o + 1] * b, axis=0, keepdims=True))
            rows.append(t)
        return rows[0] if cout == 1 else jnp.concatenate(rows, axis=0)
    if c % 8 == 0:
        z = jnp.concatenate([a, b], axis=0)
        return jnp.dot(w, z, preferred_element_type=jnp.float32)
    return (jnp.dot(w[:, :c], a, preferred_element_type=jnp.float32)
            + jnp.dot(w[:, c:], b, preferred_element_type=jnp.float32))


def _interleave_phases(phases, T, s, sel):
    """Interleave s (C, T) phases -> (C, T*s) using a chunked 0/1 selector.

    sel is (s, W, W*s) with W <= 128 -> linear in T, bounded VMEM.
    """
    if s == 1:
        return phases[0]
    W = sel.shape[1]
    outs = []
    for c in range(T // W):
        acc = None
        for p, yp in enumerate(phases):
            t = jnp.dot(yp[:, c * W:(c + 1) * W], sel[p],
                        preferred_element_type=jnp.float32)
            acc = t if acc is None else acc + t
        outs.append(acc)
    return outs[0] if len(outs) == 1 else jnp.concatenate(outs, axis=1)


def _build_selector(T_in, s, dtype=jnp.float32):
    w = T_in if T_in <= SEL_CHUNK else SEL_CHUNK
    assert T_in % w == 0, "time length must be a multiple of the selector chunk"
    t = np.arange(w)[:, None]
    n = np.arange(w * s)[None, :]
    sel = np.stack([(n == s * t + p).astype(np.float32) for p in range(s)], 0)
    return jnp.asarray(sel, dtype)


# ----------------------------------------------------------------------------- fused stage kernel
def _stage_kernel(*refs, cfg):
    """One fully fused upsample stage, (C, T) lane-dense layout, per batch row:

      [optional init ReflectionPad+Conv1d]
      -> LeakyReLU -> polyphase ConvTranspose1d -> chunked phase interleave
      -> `stacks` ResidualStacks (reflect pad + dilated conv + LeakyReLU
         + fused (1x1 | skip-1x1))
      [optional final LeakyReLU + ReflectionPad + Conv1d + Tanh]
    """
    s, T_in = cfg["s"], cfg["T_in"]
    C_in, C_out = cfg["c_in"], cfg["c_out"]
    K, stacks, dil, slope = cfg["K"], cfg["stacks"], cfg["dil"], cfg["slope"]
    vpu = cfg["vpu"]

    i = 0
    x_ref = refs[i]; i += 1
    if cfg["pre"]:
        prew_ref, preb_ref = refs[i], refs[i + 1]; i += 2
    upw_ref, upb_ref = refs[i], refs[i + 1]; i += 2
    rw1_ref, rb1_ref, rwc_ref, rbc_ref = refs[i:i + 4]; i += 4
    sel_ref = refs[i]; i += 1
    if cfg["post"]:
        postw_ref, postb_ref = refs[i], refs[i + 1]; i += 2
    o_ref = refs[i]

    x = x_ref[0].astype(jnp.float32)                        # (c_raw, T_in)

    if cfg["pre"]:                                          # fused init conv
        xp = _reflect_pad_lanes(x, cfg["pre_pad"])
        x = _apply_conv(xp, prew_ref[...].astype(jnp.float32),
                        list(range(cfg["pre_K"])), T_in, cfg["pre_cin"], C_in,
                        vpu=False)
        x = x + preb_ref[...].astype(jnp.float32)

    # -- LeakyReLU + polyphase transposed conv (offsets in {-1,0,1} -> zero halo)
    h = _leaky(x, slope)
    zcol = jnp.zeros((C_in, 1), jnp.float32)
    hz = jnp.concatenate([zcol, h, zcol], axis=1)
    b_up = upb_ref[...].astype(jnp.float32)
    phases = []
    for p in range(s):
        wp = upw_ref[p].astype(jnp.float32)
        yp = _apply_conv(hz, wp, list(cfg["phase_starts"][p]), T_in, C_in,
                         C_out, vpu=vpu)
        phases.append(yp + b_up)
    y = _interleave_phases(phases, T_in, s, sel_ref[...].astype(jnp.float32))
    T_out = T_in * s

    # -- residual stacks (reflect pad commutes with the pointwise LeakyReLU)
    for j in range(stacks):
        d = dil[j]
        pr = (K - 1) // 2 * d
        hp = _leaky(_reflect_pad_lanes(y, pr), slope)
        a = _apply_conv(hp, rw1_ref[j].astype(jnp.float32),
                        [k * d for k in range(K)], T_out, C_out, C_out, vpu=vpu)
        a = _leaky(a + rb1_ref[j].astype(jnp.float32), slope)
        y = (_dual_conv(a, y, rwc_ref[j].astype(jnp.float32), C_out, vpu=vpu)
             + rbc_ref[j].astype(jnp.float32))

    if cfg["post"]:                                         # fused final conv
        hp = _reflect_pad_lanes(_leaky(y, slope), cfg["post_pad"])
        out = _apply_conv(hp, postw_ref[...].astype(jnp.float32),
                          list(range(cfg["post_K"])), T_out, C_out,
                          cfg["post_cout"], vpu=True)
        out = jnp.tanh(out + postb_ref[...].astype(jnp.float32))
        o_ref[0] = out.astype(o_ref.dtype)
    else:
        o_ref[0] = y.astype(o_ref.dtype)


def _stage_static(i):
    n = len(UPSAMPLE_SCALES)
    c_out = CHANNELS // (2 ** (i + 1))
    return dict(
        s=UPSAMPLE_SCALES[i],
        c_in=CHANNELS // (2 ** i),
        c_out=c_out,
        vpu=(c_out <= VPU_MAX_COUT),
        pre=(i == 0),
        post=(i == n - 1),
        pre_cin=IN_CHANNELS, pre_K=KERNEL_SIZE, pre_pad=(KERNEL_SIZE - 1) // 2,
        post_cout=OUT_CHANNELS, post_K=KERNEL_SIZE,
        post_pad=(KERNEL_SIZE - 1) // 2,
    )


def stage_pallas(x, arrs, st, *, s, K, stacks, dilations, slope, out_dtype):
    B, c_raw, T_in = x.shape
    c_out = st["c_out"]
    T_out = T_in * s
    out_c = st["post_cout"] if st["post"] else c_out

    taps = _phase_taps(s)
    assert all(-1 <= off <= 1 for tp in taps for (_k, off) in tp)
    phase_starts = tuple(tuple(1 + off for (_k, off) in tp) for tp in taps)
    sel = _build_selector(T_in, s)

    cfg = dict(st)
    cfg.update(s=s, T_in=T_in, c_raw=c_raw, K=K, stacks=stacks,
               dil=tuple(dilations), slope=slope, phase_starts=phase_starts)

    extra = []
    if st["pre"]:
        extra += [arrs["pre_w"], arrs["pre_b"]]
    extra += [arrs["up_w"], arrs["up_b"], arrs["r_w1"], arrs["r_b1"],
              arrs["r_wc"], arrs["r_bc"], sel]
    if st["post"]:
        extra += [arrs["post_w"], arrs["post_b"]]

    def _full_spec(a):
        nd = a.ndim
        return pl.BlockSpec(a.shape, lambda bi, _nd=nd: (0,) * _nd)

    in_specs = [pl.BlockSpec((1, c_raw, T_in), lambda bi: (bi, 0, 0))]
    in_specs += [_full_spec(a) for a in extra]

    kernel = functools.partial(_stage_kernel, cfg=cfg)
    return pl.pallas_call(
        kernel,
        out_shape=jax.ShapeDtypeStruct((B, out_c, T_out), out_dtype),
        grid=(B,),
        in_specs=in_specs,
        out_specs=pl.BlockSpec((1, out_c, T_out), lambda bi: (bi, 0, 0)),
        compiler_params=pltpu.CompilerParams(
            dimension_semantics=("parallel",),
            vmem_limit_bytes=_vmem_limit_bytes()),
    )(x, *extra)


# ----------------------------------------------------------------------------- parameters
def init_raw_params(key):
    """Synthetic parameters in PyTorch layout, normal(0, 0.02) per reset_parameters."""
    raw = {}
    keys = iter(jax.random.split(key, 256))

    def nrm(shape):
        return 0.02 * jax.random.normal(next(keys), shape, jnp.float32)

    raw["init_w"] = nrm((CHANNELS, IN_CHANNELS, KERNEL_SIZE))   # Conv1d (O, I, K)
    raw["init_b"] = nrm((CHANNELS,))
    c_in = CHANNELS
    for i, s in enumerate(UPSAMPLE_SCALES):
        c_out = CHANNELS // (2 ** (i + 1))
        raw[f"up{i}_w"] = nrm((c_in, c_out, 2 * s))             # ConvT (I, O, K)
        raw[f"up{i}_b"] = nrm((c_out,))
        for j in range(STACKS):
            raw[f"res{i}_{j}_w1"] = nrm((c_out, c_out, STACK_KERNEL_SIZE))
            raw[f"res{i}_{j}_b1"] = nrm((c_out,))
            raw[f"res{i}_{j}_w2"] = nrm((c_out, c_out, 1))
            raw[f"res{i}_{j}_b2"] = nrm((c_out,))
            raw[f"res{i}_{j}_ws"] = nrm((c_out, c_out, 1))
            raw[f"res{i}_{j}_bs"] = nrm((c_out,))
        c_in = c_out
    raw["final_w"] = nrm((OUT_CHANNELS, c_in, KERNEL_SIZE))
    raw["final_b"] = nrm((OUT_CHANNELS,))
    return raw


def prepare_params(raw):
    """Fold PyTorch-layout weights into kernel layouts (im2col / per-phase /
    transposed-for-VPU); 1x1 + skip 1x1 fused; weight_norm folded."""
    p = {"stages": []}
    for i, s in enumerate(UPSAMPLE_SCALES):
        st = _stage_static(i)
        c_out = st["c_out"]
        small = st["vpu"]
        sp = {}
        if st["pre"]:
            sp["pre_w"] = jnp.transpose(raw["init_w"], (0, 2, 1)).reshape(
                CHANNELS, KERNEL_SIZE * IN_CHANNELS)
            sp["pre_b"] = raw["init_b"].reshape(CHANNELS, 1)

        Kt = 2 * s
        wt = raw[f"up{i}_w"]                                    # (c_in, c_out, Kt)
        blocks = []
        for tp in _phase_taps(s):
            cols = [jnp.transpose(wt[:, :, Kt - 1 - k]) for (k, _off) in tp]
            blocks.append(jnp.concatenate(cols, axis=1))        # (c_out, taps*c_in)
        up_w = jnp.stack(blocks, axis=0)                        # (s, c_out, taps*c_in)
        sp["up_w"] = jnp.transpose(up_w, (0, 2, 1)) if small else up_w
        sp["up_b"] = raw[f"up{i}_b"].reshape(c_out, 1)

        w1s, b1s, wcs, bcs = [], [], [], []
        for j in range(STACKS):
            w1 = jnp.transpose(raw[f"res{i}_{j}_w1"], (0, 2, 1)).reshape(
                c_out, STACK_KERNEL_SIZE * c_out)
            wc = jnp.concatenate([raw[f"res{i}_{j}_w2"][:, :, 0],
                                  raw[f"res{i}_{j}_ws"][:, :, 0]], axis=1)
            if small:
                w1 = jnp.transpose(w1)
                wc = jnp.transpose(wc)
            w1s.append(w1)
            wcs.append(wc)
            b1s.append(raw[f"res{i}_{j}_b1"].reshape(c_out, 1))
            bcs.append((raw[f"res{i}_{j}_b2"]
                        + raw[f"res{i}_{j}_bs"]).reshape(c_out, 1))
        sp["r_w1"] = jnp.stack(w1s, 0)
        sp["r_b1"] = jnp.stack(b1s, 0)
        sp["r_wc"] = jnp.stack(wcs, 0)
        sp["r_bc"] = jnp.stack(bcs, 0)

        if st["post"]:
            fw = jnp.transpose(raw["final_w"], (0, 2, 1)).reshape(
                OUT_CHANNELS, KERNEL_SIZE * c_out)
            sp["post_w"] = jnp.transpose(fw)                    # (K*c_out, 1) VPU layout
            sp["post_b"] = raw["final_b"].reshape(OUT_CHANNELS, 1)
        p["stages"].append(sp)
    return p


# ----------------------------------------------------------------------------- forward
def melgan_forward(params, c):
    """c: (B, in_channels, T) -> (B, out_channels, T * prod(upsample_scales))."""
    x = c
    dil = tuple(STACK_KERNEL_SIZE ** j for j in range(STACKS))
    for i, s in enumerate(UPSAMPLE_SCALES):
        st = _stage_static(i)
        out_dtype = jnp.float32 if st["post"] else ACT_DTYPE
        x = stage_pallas(x, params["stages"][i], st, s=s,
                         K=STACK_KERNEL_SIZE, stacks=STACKS, dilations=dil,
                         slope=NEG_SLOPE, out_dtype=out_dtype)
    return x


# ----------------------------------------------------------------------------- pure-JAX reference (parity check)
def ref_forward(raw, c):
    hp = jax.lax.Precision.HIGHEST

    def conv1d(x, w, b, d=1):
        y = jax.lax.conv_general_dilated(
            x, w, window_strides=(1,), padding="VALID", rhs_dilation=(d,),
            dimension_numbers=("NCH", "OIH", "NCH"), precision=hp)
        return y + b[None, :, None]

    def rpad(x, p):
        return jnp.pad(x, ((0, 0), (0, 0), (p, p)), mode="reflect")

    pad = (KERNEL_SIZE - 1) // 2
    x = conv1d(rpad(c, pad), raw["init_w"], raw["init_b"])
    for i, s in enumerate(UPSAMPLE_SCALES):
        Kt, P, op = 2 * s, s // 2 + s % 2, s % 2
        wt = raw[f"up{i}_w"]
        wc = jnp.transpose(jnp.flip(wt, axis=2), (1, 0, 2))      # (O, I, Kt)
        h = _leaky(x, NEG_SLOPE)
        B, C, T = h.shape
        xu = jnp.zeros((B, C, (T - 1) * s + 1), h.dtype).at[:, :, ::s].set(h)
        xu = jnp.pad(xu, ((0, 0), (0, 0), (Kt - 1 - P, Kt - 1 - P + op)))
        x = conv1d(xu, wc, raw[f"up{i}_b"])
        for j in range(STACKS):
            d = STACK_KERNEL_SIZE ** j
            pr = (STACK_KERNEL_SIZE - 1) // 2 * d
            y = conv1d(rpad(_leaky(x, NEG_SLOPE), pr),
                       raw[f"res{i}_{j}_w1"], raw[f"res{i}_{j}_b1"], d=d)
            y = conv1d(_leaky(y, NEG_SLOPE),
                       raw[f"res{i}_{j}_w2"], raw[f"res{i}_{j}_b2"])
            sk = conv1d(x, raw[f"res{i}_{j}_ws"], raw[f"res{i}_{j}_bs"])
            x = y + sk
    x = conv1d(rpad(_leaky(x, NEG_SLOPE), pad), raw["final_w"], raw["final_b"])
    return jnp.tanh(x)


# ----------------------------------------------------------------------------- main
if __name__ == "__main__":
    key = jax.random.PRNGKey(0)
    k_param, k_input = jax.random.split(key)

    raw = init_raw_params(k_param)
    params = prepare_params(raw)

    B, T_in = 2, 8
    c = jax.random.normal(k_input, (B, IN_CHANNELS, T_in), jnp.float32)

    fwd = jax.jit(melgan_forward)
    out = jax.block_until_ready(fwd(params, c))

    upsample_factor = 1
    for s in UPSAMPLE_SCALES:
        upsample_factor *= s
    expected = (B, OUT_CHANNELS, T_in * upsample_factor)
    assert out.shape == expected, (out.shape, expected)
    assert out.dtype == jnp.float32
    assert bool(jnp.all(jnp.isfinite(out)))
    assert bool(jnp.all(jnp.abs(out) <= 1.0))                 # tanh output range

    # Parity vs pure-JAX reference of the PyTorch module.
    # Tolerance derivation: the previous all-f32-storage version passed at
    # 2e-2 relative; bf16 storage of the 3 inter-stage activations adds at most
    # ~3 * 2^-8 relative error on the signal path.
    ref = jax.block_until_ready(jax.jit(ref_forward)(raw, c))
    err = float(jnp.max(jnp.abs(out - ref)))
    scale = float(jnp.max(jnp.abs(ref))) + 1e-30
    tol = 2e-2 + 3 * 2.0 ** -8
    assert err <= tol * scale, ("parity mismatch", err, scale)

    print("KERNEL_OK")
</pallas_src>

<mosaic_0001>
module attributes {stable_mosaic.version = 11 : i64} {
  func.func @_stage_kernel(%arg0: i32, %arg1: memref<1x8x8xf32, #tpu.memory_space<vmem>>, %arg2: memref<32x56xf32, #tpu.memory_space<vmem>>, %arg3: memref<32x1xf32, #tpu.memory_space<vmem>>, %arg4: memref<2x16x64xf32, #tpu.memory_space<vmem>>, %arg5: memref<16x1xf32, #tpu.memory_space<vmem>>, %arg6: memref<3x16x48xf32, #tpu.memory_space<vmem>>, %arg7: memref<3x16x1xf32, #tpu.memory_space<vmem>>, %arg8: memref<3x16x32xf32, #tpu.memory_space<vmem>>, %arg9: memref<3x16x1xf32, #tpu.memory_space<vmem>>, %arg10: memref<2x8x16xf32, #tpu.memory_space<vmem>>, %arg11: memref<1x16x16xbf16, #tpu.memory_space<vmem>>) attributes {dimension_semantics = [#tpu.dimension_semantics<parallel>], iteration_bounds = array<i64: 2>, scalar_prefetch = 0 : i64, scratch_operands = 0 : i64, tpu.core_type = #tpu.core_type<tc>, window_params = [{transform_indices = @transform_0, window_bounds = array<i64: 1, 8, 8>}, {pipeline_mode = #tpu.pipeline_mode<synchronous>, transform_indices = @transform_1, window_bounds = array<i64: 32, 56>}, {pipeline_mode = #tpu.pipeline_mode<synchronous>, transform_indices = @transform_2, window_bounds = array<i64: 32, 1>}, {pipeline_mode = #tpu.pipeline_mode<synchronous>, transform_indices = @transform_3, window_bounds = array<i64: 2, 16, 64>}, {pipeline_mode = #tpu.pipeline_mode<synchronous>, transform_indices = @transform_4, window_bounds = array<i64: 16, 1>}, {pipeline_mode = #tpu.pipeline_mode<synchronous>, transform_indices = @transform_5, window_bounds = array<i64: 3, 16, 48>}, {pipeline_mode = #tpu.pipeline_mode<synchronous>, transform_indices = @transform_6, window_bounds = array<i64: 3, 16, 1>}, {pipeline_mode = #tpu.pipeline_mode<synchronous>, transform_indices = @transform_7, window_bounds = array<i64: 3, 16, 32>}, {pipeline_mode = #tpu.pipeline_mode<synchronous>, transform_indices = @transform_8, window_bounds = array<i64: 3, 16, 1>}, {pipeline_mode = #tpu.pipeline_mode<synchronous>, transform_indices = @transform_9, window_bounds = array<i64: 2, 8, 16>}, {transform_indices = @transform_10, window_bounds = array<i64: 1, 16, 16>}]} {
    %c0 = arith.constant 0 : index
    %c0_0 = arith.constant 0 : index
    %c0_1 = arith.constant 0 : index
    %0 = vector.load %arg1[%c0, %c0_0, %c0_1] : memref<1x8x8xf32, #tpu.memory_space<vmem>>, vector<1x8x8xf32>
    %1 = vector.shape_cast %0 : vector<1x8x8xf32> to vector<8x8xf32>
    %2 = vector.extract_strided_slice %1 {offsets = [0, 3], sizes = [8, 1], strides = [1, 1]} : vector<8x8xf32> to vector<8x1xf32>
    %3 = vector.extract_strided_slice %1 {offsets = [0, 2], sizes = [8, 1], strides = [1, 1]} : vector<8x8xf32> to vector<8x1xf32>
    %4 = vector.extract_strided_slice %1 {offsets = [0, 1], sizes = [8, 1], strides = [1, 1]} : vector<8x8xf32> to vector<8x1xf32>
    %5 = vector.extract_strided_slice %1 {offsets = [0, 6], sizes = [8, 1], strides = [1, 1]} : vector<8x8xf32> to vector<8x1xf32>
    %6 = vector.extract_strided_slice %1 {offsets = [0, 5], sizes = [8, 1], strides = [1, 1]} : vector<8x8xf32> to vector<8x1xf32>
    %7 = vector.extract_strided_slice %1 {offsets = [0, 4], sizes = [8, 1], strides = [1, 1]} : vector<8x8xf32> to vector<8x1xf32>
    %8 = tpu.concatenate %2, %3, %4, %1, %5, %6, %7 in 1 : vector<8x1xf32>, vector<8x1xf32>, vector<8x1xf32>, vector<8x8xf32>, vector<8x1xf32>, vector<8x1xf32>, vector<8x1xf32> -> vector<8x14xf32>
    %c0_2 = arith.constant 0 : index
    %c0_3 = arith.constant 0 : index
    %9 = vector.load %arg2[%c0_2, %c0_3] : memref<32x56xf32, #tpu.memory_space<vmem>>, vector<32x56xf32>
    %10 = vector.extract_strided_slice %8 {offsets = [0, 0], sizes = [8, 8], strides = [1, 1]} : vector<8x14xf32> to vector<8x8xf32>
    %11 = vector.extract_strided_slice %8 {offsets = [0, 1], sizes = [8, 8], strides = [1, 1]} : vector<8x14xf32> to vector<8x8xf32>
    %12 = vector.extract_strided_slice %8 {offsets = [0, 2], sizes = [8, 8], strides = [1, 1]} : vector<8x14xf32> to vector<8x8xf32>
    %13 = vector.extract_strided_slice %8 {offsets = [0, 3], sizes = [8, 8], strides = [1, 1]} : vector<8x14xf32> to vector<8x8xf32>
    %14 = vector.extract_strided_slice %8 {offsets = [0, 4], sizes = [8, 8], strides = [1, 1]} : vector<8x14xf32> to vector<8x8xf32>
    %15 = vector.extract_strided_slice %8 {offsets = [0, 5], sizes = [8, 8], strides = [1, 1]} : vector<8x14xf32> to vector<8x8xf32>
    %16 = vector.extract_strided_slice %8 {offsets = [0, 6], sizes = [8, 8], strides = [1, 1]} : vector<8x14xf32> to vector<8x8xf32>
    %17 = tpu.concatenate %10, %11, %12, %13, %14, %15, %16 in 0 : vector<8x8xf32>, vector<8x8xf32>, vector<8x8xf32>, vector<8x8xf32>, vector<8x8xf32>, vector<8x8xf32>, vector<8x8xf32> -> vector<56x8xf32>
    %cst = arith.constant dense<0.000000e+00> : vector<32x8xf32>
    %18 = tpu.matmul %9, %17, %cst {dimension_numbers = #tpu.dot_dimension_numbers<[1], [0], [0], [1], [0, 0, 1, 1], [], []>} : vector<32x56xf32>, vector<56x8xf32>, vector<32x8xf32> -> vector<32x8xf32>
    %c0_4 = arith.constant 0 : index
    %c0_5 = arith.constant 0 : index
    %19 = vector.load %arg3[%c0_4, %c0_5] : memref<32x1xf32, #tpu.memory_space<vmem>>, vector<32x1xf32>
    %20 = vector.broadcast %19 : vector<32x1xf32> to vector<32x8xf32>
    %21 = arith.addf %18, %20 : vector<32x8xf32>
    %cst_6 = arith.constant 0.000000e+00 : f32
    %22 = vector.broadcast %cst_6 : f32 to vector<32x8xf32>
    %23 = arith.cmpf oge, %21, %22 : vector<32x8xf32>
    %cst_7 = arith.constant 2.000000e-01 : f32
    %24 = vector.broadcast %cst_7 : f32 to vector<32x8xf32>
    %25 = arith.mulf %24, %21 : vector<32x8xf32>
    %26 = arith.select %23, %21, %25 : vector<32x8xi1>, vector<32x8xf32>
    %cst_8 = arith.constant 0.000000e+00 : f32
    %27 = vector.broadcast %cst_8 : f32 to vector<32x1xf32>
    %28 = tpu.concatenate %27, %26, %27 in 1 : vector<32x1xf32>, vector<32x8xf32>, vector<32x1xf32> -> vector<32x10xf32>
    %c0_9 = arith.constant 0 : index
    %c0_10 = arith.constant 0 : index
    %29 = vector.load %arg5[%c0_9, %c0_10] : memref<16x1xf32, #tpu.memory_space<vmem>>, vector<16x1xf32>
    %c0_11 = arith.constant 0 : index
    %c0_12 = arith.constant 0 : index
    %c0_13 = arith.constant 0 : index
    %30 = vector.load %arg4[%c0_11, %c0_12, %c0_13] : memref<2x16x64xf32, #tpu.memory_space<vmem>>, vector<1x16x64xf32>
    %31 = vector.shape_cast %30 : vector<1x16x64xf32> to vector<16x64xf32>
    %32 = vector.extract_strided_slice %28 {offsets = [0, 0], sizes = [32, 8], strides = [1, 1]} : vector<32x10xf32> to vector<32x8xf32>
    %33 = vector.extract_strided_slice %28 {offsets = [0, 1], sizes = [32, 8], strides = [1, 1]} : vector<32x10xf32> to vector<32x8xf32>
    %34 = tpu.concatenate %32, %33 in 0 : vector<32x8xf32>, vector<32x8xf32> -> vector<64x8xf32>
    %cst_14 = arith.constant dense<0.000000e+00> : vector<16x8xf32>
    %35 = tpu.matmul %31, %34, %cst_14 {dimension_numbers = #tpu.dot_dimension_numbers<[1], [0], [0], [1], [0, 0, 1, 1], [], []>} : vector<16x64xf32>, vector<64x8xf32>, vector<16x8xf32> -> vector<16x8xf32>
    %36 = vector.broadcast %29 : vector<16x1xf32> to vector<16x8xf32>
    %37 = arith.addf %35, %36 : vector<16x8xf32>
    %c1 = arith.constant 1 : index
    %c0_15 = arith.constant 0 : index
    %c0_16 = arith.constant 0 : index
    %38 = vector.load %arg4[%c1, %c0_15, %c0_16] : memref<2x16x64xf32, #tpu.memory_space<vmem>>, vector<1x16x64xf32>
    %39 = vector.shape_cast %38 : vector<1x16x64xf32> to vector<16x64xf32>
    %40 = vector.extract_strided_slice %28 {offsets = [0, 1], sizes = [32, 8], strides = [1, 1]} : vector<32x10xf32> to vector<32x8xf32>
    %41 = vector.extract_strided_slice %28 {offsets = [0, 2], sizes = [32, 8], strides = [1, 1]} : vector<32x10xf32> to vector<32x8xf32>
    %42 = tpu.concatenate %40, %41 in 0 : vector<32x8xf32>, vector<32x8xf32> -> vector<64x8xf32>
    %cst_17 = arith.constant dense<0.000000e+00> : vector<16x8xf32>
    %43 = tpu.matmul %39, %42, %cst_17 {dimension_numbers = #tpu.dot_dimension_numbers<[1], [0], [0], [1], [0, 0, 1, 1], [], []>} : vector<16x64xf32>, vector<64x8xf32>, vector<16x8xf32> -> vector<16x8xf32>
    %44 = vector.broadcast %29 : vector<16x1xf32> to vector<16x8xf32>
    %45 = arith.addf %43, %44 : vector<16x8xf32>
    %c0_18 = arith.constant 0 : index
    %c0_19 = arith.constant 0 : index
    %c0_20 = arith.constant 0 : index
    %46 = vector.load %arg10[%c0_18, %c0_19, %c0_20] : memref<2x8x16xf32, #tpu.memory_space<vmem>>, vector<2x8x16xf32>
    %47 = vector.extract_strided_slice %46 {offsets = [0, 0, 0], sizes = [1, 8, 16], strides = [1, 1, 1]} : vector<2x8x16xf32> to vector<1x8x16xf32>
    %48 = vector.shape_cast %47 : vector<1x8x16xf32> to vector<8x16xf32>
    %cst_21 = arith.constant dense<0.000000e+00> : vector<16x16xf32>
    %49 = tpu.matmul %37, %48, %cst_21 {dimension_numbers = #tpu.dot_dimension_numbers<[1], [0], [0], [1], [0, 0, 1, 1], [], []>} : vector<16x8xf32>, vector<8x16xf32>, vector<16x16xf32> -> vector<16x16xf32>
    %50 = vector.extract_strided_slice %46 {offsets = [1, 0, 0], sizes = [1, 8, 16], strides = [1, 1, 1]} : vector<2x8x16xf32> to vector<1x8x16xf32>
    %51 = vector.shape_cast %50 : vector<1x8x16xf32> to vector<8x16xf32>
    %cst_22 = arith.constant dense<0.000000e+00> : vector<16x16xf32>
    %52 = tpu.matmul %45, %51, %cst_22 {dimension_numbers = #tpu.dot_dimension_numbers<[1], [0], [0], [1], [0, 0, 1, 1], [], []>} : vector<16x8xf32>, vector<8x16xf32>, vector<16x16xf32> -> vector<16x16xf32>
    %53 = arith.addf %49, %52 : vector<16x16xf32>
    %54 = vector.extract_strided_slice %53 {offsets = [0, 1], sizes = [16, 1], strides = [1, 1]} : vector<16x16xf32> to vector<16x1xf32>
    %55 = vector.extract_strided_slice %53 {offsets = [0, 14], sizes = [16, 1], strides = [1, 1]} : vector<16x16xf32> to vector<16x1xf32>
    %56 = tpu.concatenate %54, %53, %55 in 1 : vector<16x1xf32>, vector<16x16xf32>, vector<16x1xf32> -> vector<16x18xf32>
    %cst_23 = arith.constant 0.000000e+00 : f32
    %57 = vector.broadcast %cst_23 : f32 to vector<16x18xf32>
    %58 = arith.cmpf oge, %56, %57 : vector<16x18xf32>
    %cst_24 = arith.constant 2.000000e-01 : f32
    %59 = vector.broadcast %cst_24 : f32 to vector<16x18xf32>
    %60 = arith.mulf %59, %56 : vector<16x18xf32>
    %61 = arith.select %58, %56, %60 : vector<16x18xi1>, vector<16x18xf32>
    %c0_25 = arith.constant 0 : index
    %c0_26 = arith.constant 0 : index
    %c0_27 = arith.constant 0 : index
    %62 = vector.load %arg6[%c0_25, %c0_26, %c0_27] : memref<3x16x48xf32, #tpu.memory_space<vmem>>, vector<1x16x48xf32>
    %63 = vector.shape_cast %62 : vector<1x16x48xf32> to vector<16x48xf32>
    %64 = vector.extract_strided_slice %61 {offsets = [0, 0], sizes = [16, 16], strides = [1, 1]} : vector<16x18xf32> to vector<16x16xf32>
    %65 = vector.extract_strided_slice %61 {offsets = [0, 1], sizes = [16, 16], strides = [1, 1]} : vector<16x18xf32> to vector<16x16xf32>
    %66 = vector.extract_strided_slice %61 {offsets = [0, 2], sizes = [16, 16], strides = [1, 1]} : vector<16x18xf32> to vector<16x16xf32>
    %67 = tpu.concatenate %64, %65, %66 in 0 : vector<16x16xf32>, vector<16x16xf32>, vector<16x16xf32> -> vector<48x16xf32>
    %cst_28 = arith.constant dense<0.000000e+00> : vector<16x16xf32>
    %68 = tpu.matmul %63, %67, %cst_28 {dimension_numbers = #tpu.dot_dimension_numbers<[1], [0], [0], [1], [0, 0, 1, 1], [], []>} : vector<16x48xf32>, vector<48x16xf32>, vector<16x16xf32> -> vector<16x16xf32>
    %c0_29 = arith.constant 0 : index
    %c0_30 = arith.constant 0 : index
    %c0_31 = arith.constant 0 : index
    %69 = vector.load %arg7[%c0_29, %c0_30, %c0_31] : memref<3x16x1xf32, #tpu.memory_space<vmem>>, vector<1x16x1xf32>
    %70 = vector.shape_cast %69 : vector<1x16x1xf32> to vector<16x1xf32>
    %71 = vector.broadcast %70 : vector<16x1xf32> to vector<16x16xf32>
    %72 = arith.addf %68, %71 : vector<16x16xf32>
    %cst_32 = arith.constant 0.000000e+00 : f32
    %73 = vector.broadcast %cst_32 : f32 to vector<16x16xf32>
    %74 = arith.cmpf oge, %72, %73 : vector<16x16xf32>
    %cst_33 = arith.constant 2.000000e-01 : f32
    %75 = vector.broadcast %cst_33 : f32 to vector<16x16xf32>
    %76 = arith.mulf %75, %72 : vector<16x16xf32>
    %77 = arith.select %74, %72, %76 : vector<16x16xi1>, vector<16x16xf32>
    %c0_34 = arith.constant 0 : index
    %c0_35 = arith.constant 0 : index
    %c0_36 = arith.constant 0 : index
    %78 = vector.load %arg8[%c0_34, %c0_35, %c0_36] : memref<3x16x32xf32, #tpu.memory_space<vmem>>, vector<1x16x32xf32>
    %79 = vector.shape_cast %78 : vector<1x16x32xf32> to vector<16x32xf32>
    %80 = tpu.concatenate %77, %53 in 0 : vector<16x16xf32>, vector<16x16xf32> -> vector<32x16xf32>
    %cst_37 = arith.constant dense<0.000000e+00> : vector<16x16xf32>
    %81 = tpu.matmul %79, %80, %cst_37 {dimension_numbers = #tpu.dot_dimension_numbers<[1], [0], [0], [1], [0, 0, 1, 1], [], []>} : vector<16x32xf32>, vector<32x16xf32>, vector<16x16xf32> -> vector<16x16xf32>
    %c0_38 = arith.constant 0 : index
    %c0_39 = arith.constant 0 : index
    %c0_40 = arith.constant 0 : index
    %82 = vector.load %arg9[%c0_38, %c0_39, %c0_40] : memref<3x16x1xf32, #tpu.memory_space<vmem>>, vector<1x16x1xf32>
    %83 = vector.shape_cast %82 : vector<1x16x1xf32> to vector<16x1xf32>
    %84 = vector.broadcast %83 : vector<16x1xf32> to vector<16x16xf32>
    %85 = arith.addf %81, %84 : vector<16x16xf32>
    %86 = vector.extract_strided_slice %85 {offsets = [0, 3], sizes = [16, 1], strides = [1, 1]} : vector<16x16xf32> to vector<16x1xf32>
    %87 = vector.extract_strided_slice %85 {offsets = [0, 2], sizes = [16, 1], strides = [1, 1]} : vector<16x16xf32> to vector<16x1xf32>
    %88 = vector.extract_strided_slice %85 {offsets = [0, 1], sizes = [16, 1], strides = [1, 1]} : vector<16x16xf32> to vector<16x1xf32>
    %89 = vector.extract_strided_slice %85 {offsets = [0, 14], sizes = [16, 1], strides = [1, 1]} : vector<16x16xf32> to vector<16x1xf32>
    %90 = vector.extract_strided_slice %85 {offsets = [0, 13], sizes = [16, 1], strides = [1, 1]} : vector<16x16xf32> to vector<16x1xf32>
    %91 = vector.extract_strided_slice %85 {offsets = [0, 12], sizes = [16, 1], strides = [1, 1]} : vector<16x16xf32> to vector<16x1xf32>
    %92 = tpu.concatenate %86, %87, %88, %85, %89, %90, %91 in 1 : vector<16x1xf32>, vector<16x1xf32>, vector<16x1xf32>, vector<16x16xf32>, vector<16x1xf32>, vector<16x1xf32>, vector<16x1xf32> -> vector<16x22xf32>
    %cst_41 = arith.constant 0.000000e+00 : f32
    %93 = vector.broadcast %cst_41 : f32 to vector<16x22xf32>
    %94 = arith.cmpf oge, %92, %93 : vector<16x22xf32>
    %cst_42 = arith.constant 2.000000e-01 : f32
    %95 = vector.broadcast %cst_42 : f32 to vector<16x22xf32>
    %96 = arith.mulf %95, %92 : vector<16x22xf32>
    %97 = arith.select %94, %92, %96 : vector<16x22xi1>, vector<16x22xf32>
    %c1_43 = arith.constant 1 : index
    %c0_44 = arith.constant 0 : index
    %c0_45 = arith.constant 0 : index
    %98 = vector.load %arg6[%c1_43, %c0_44, %c0_45] : memref<3x16x48xf32, #tpu.memory_space<vmem>>, vector<1x16x48xf32>
    %99 = vector.shape_cast %98 : vector<1x16x48xf32> to vector<16x48xf32>
    %100 = vector.extract_strided_slice %97 {offsets = [0, 0], sizes = [16, 16], strides = [1, 1]} : vector<16x22xf32> to vector<16x16xf32>
    %101 = vector.extract_strided_slice %97 {offsets = [0, 3], sizes = [16, 16], strides = [1, 1]} : vector<16x22xf32> to vector<16x16xf32>
    %102 = vector.extract_strided_slice %97 {offsets = [0, 6], sizes = [16, 16], strides = [1, 1]} : vector<16x22xf32> to vector<16x16xf32>
    %103 = tpu.concatenate %100, %101, %102 in 0 : vector<16x16xf32>, vector<16x16xf32>, vector<16x16xf32> -> vector<48x16xf32>
    %cst_46 = arith.constant dense<0.000000e+00> : vector<16x16xf32>
    %104 = tpu.matmul %99, %103, %cst_46 {dimension_numbers = #tpu.dot_dimension_numbers<[1], [0], [0], [1], [0, 0, 1, 1], [], []>} : vector<16x48xf32>, vector<48x16xf32>, vector<16x16xf32> -> vector<16x16xf32>
    %c1_47 = arith.constant 1 : index
    %c0_48 = arith.constant 0 : index
    %c0_49 = arith.constant 0 : index
    %105 = vector.load %arg7[%c1_47, %c0_48, %c0_49] : memref<3x16x1xf32, #tpu.memory_space<vmem>>, vector<1x16x1xf32>
    %106 = vector.shape_cast %105 : vector<1x16x1xf32> to vector<16x1xf32>
    %107 = vector.broadcast %106 : vector<16x1xf32> to vector<16x16xf32>
    %108 = arith.addf %104, %107 : vector<16x16xf32>
    %cst_50 = arith.constant 0.000000e+00 : f32
    %109 = vector.broadcast %cst_50 : f32 to vector<16x16xf32>
    %110 = arith.cmpf oge, %108, %109 : vector<16x16xf32>
    %cst_51 = arith.constant 2.000000e-01 : f32
    %111 = vector.broadcast %cst_51 : f32 to vector<16x16xf32>
    %112 = arith.mulf %111, %108 : vector<16x16xf32>
    %113 = arith.select %110, %108, %112 : vector<16x16xi1>, vector<16x16xf32>
    %c1_52 = arith.constant 1 : index
    %c0_53 = arith.constant 0 : index
    %c0_54 = arith.constant 0 : index
    %114 = vector.load %arg8[%c1_52, %c0_53, %c0_54] : memref<3x16x32xf32, #tpu.memory_space<vmem>>, vector<1x16x32xf32>
    %115 = vector.shape_cast %114 : vector<1x16x32xf32> to vector<16x32xf32>
    %116 = tpu.concatenate %113, %85 in 0 : vector<16x16xf32>, vector<16x16xf32> -> vector<32x16xf32>
    %cst_55 = arith.constant dense<0.000000e+00> : vector<16x16xf32>
    %117 = tpu.matmul %115, %116, %cst_55 {dimension_numbers = #tpu.dot_dimension_numbers<[1], [0], [0], [1], [0, 0, 1, 1], [], []>} : vector<16x32xf32>, vector<32x16xf32>, vector<16x16xf32> -> vector<16x16xf32>
    %c1_56 = arith.constant 1 : index
    %c0_57 = arith.constant 0 : index
    %c0_58 = arith.constant 0 : index
    %118 = vector.load %arg9[%c1_56, %c0_57, %c0_58] : memref<3x16x1xf32, #tpu.memory_space<vmem>>, vector<1x16x1xf32>
    %119 = vector.shape_cast %118 : vector<1x16x1xf32> to vector<16x1xf32>
    %120 = vector.broadcast %119 : vector<16x1xf32> to vector<16x16xf32>
    %121 = arith.addf %117, %120 : vector<16x16xf32>
    %122 = vector.extract_strided_slice %121 {offsets = [0, 9], sizes = [16, 1], strides = [1, 1]} : vector<16x16xf32> to vector<16x1xf32>
    %123 = vector.extract_strided_slice %121 {offsets = [0, 8], sizes = [16, 1], strides = [1, 1]} : vector<16x16xf32> to vector<16x1xf32>
    %124 = vector.extract_strided_slice %121 {offsets = [0, 7], sizes = [16, 1], strides = [1, 1]} : vector<16x16xf32> to vector<16x1xf32>
    %125 = vector.extract_strided_slice %121 {offsets = [0, 6], sizes = [16, 1], strides = [1, 1]} : vector<16x16xf32> to vector<16x1xf32>
    %126 = vector.extract_strided_slice %121 {offsets = [0, 5], sizes = [16, 1], strides = [1, 1]} : vector<16x16xf32> to vector<16x1xf32>
    %127 = vector.extract_strided_slice %121 {offsets = [0, 4], sizes = [16, 1], strides = [1, 1]} : vector<16x16xf32> to vector<16x1xf32>
    %128 = vector.extract_strided_slice %121 {offsets = [0, 3], sizes = [16, 1], strides = [1, 1]} : vector<16x16xf32> to vector<16x1xf32>
    %129 = vector.extract_strided_slice %121 {offsets = [0, 2], sizes = [16, 1], strides = [1, 1]} : vector<16x16xf32> to vector<16x1xf32>
    %130 = vector.extract_strided_slice %121 {offsets = [0, 1], sizes = [16, 1], strides = [1, 1]} : vector<16x16xf32> to vector<16x1xf32>
    %131 = vector.extract_strided_slice %121 {offsets = [0, 14], sizes = [16, 1], strides = [1, 1]} : vector<16x16xf32> to vector<16x1xf32>
    %132 = vector.extract_strided_slice %121 {offsets = [0, 13], sizes = [16, 1], strides = [1, 1]} : vector<16x16xf32> to vector<16x1xf32>
    %133 = vector.extract_strided_slice %121 {offsets = [0, 12], sizes = [16, 1], strides = [1, 1]} : vector<16x16xf32> to vector<16x1xf32>
    %134 = vector.extract_strided_slice %121 {offsets = [0, 11], sizes = [16, 1], strides = [1, 1]} : vector<16x16xf32> to vector<16x1xf32>
    %135 = vector.extract_strided_slice %121 {offsets = [0, 10], sizes = [16, 1], strides = [1, 1]} : vector<16x16xf32> to vector<16x1xf32>
    %136 = vector.extract_strided_slice %121 {offsets = [0, 9], sizes = [16, 1], strides = [1, 1]} : vector<16x16xf32> to vector<16x1xf32>
    %137 = vector.extract_strided_slice %121 {offsets = [0, 8], sizes = [16, 1], strides = [1, 1]} : vector<16x16xf32> to vector<16x1xf32>
    %138 = vector.extract_strided_slice %121 {offsets = [0, 7], sizes = [16, 1], strides = [1, 1]} : vector<16x16xf32> to vector<16x1xf32>
    %139 = vector.extract_strided_slice %121 {offsets = [0, 6], sizes = [16, 1], strides = [1, 1]} : vector<16x16xf32> to vector<16x1xf32>
    %140 = tpu.concatenate %122, %123, %124, %125, %126, %127, %128, %129, %130, %121, %131, %132, %133, %134, %135, %136 in 1 : vector<16x1xf32>, vector<16x1xf32>, vector<16x1xf32>, vector<16x1xf32>, vector<16x1xf32>, vector<16x1xf32>, vector<16x1xf32>, vector<16x1xf32>, vector<16x1xf32>, vector<16x16xf32>, vector<16x1xf32>, vector<16x1xf32>, vector<16x1xf32>, vector<16x1xf32>, vector<16x1xf32>, vector<16x1xf32> -> vector<16x31xf32>
    %141 = tpu.concatenate %137, %138, %139 in 1 : vector<16x1xf32>, vector<16x1xf32>, vector<16x1xf32> -> vector<16x3xf32>
    %142 = tpu.concatenate %140, %141 in 1 : vector<16x31xf32>, vector<16x3xf32> -> vector<16x34xf32>
    %cst_59 = arith.constant 0.000000e+00 : f32
    %143 = vector.broadcast %cst_59 : f32 to vector<16x34xf32>
    %144 = arith.cmpf oge, %142, %143 : vector<16x34xf32>
    %cst_60 = arith.constant 2.000000e-01 : f32
    %145 = vector.broadcast %cst_60 : f32 to vector<16x34xf32>
    %146 = arith.mulf %145, %142 : vector<16x34xf32>
    %147 = arith.select %144, %142, %146 : vector<16x34xi1>, vector<16x34xf32>
    %c2 = arith.constant 2 : index
    %c0_61 = arith.constant 0 : index
    %c0_62 = arith.constant 0 : index
    %148 = vector.load %arg6[%c2, %c0_61, %c0_62] : memref<3x16x48xf32, #tpu.memory_space<vmem>>, vector<1x16x48xf32>
    %149 = vector.shape_cast %148 : vector<1x16x48xf32> to vector<16x48xf32>
    %150 = vector.extract_strided_slice %147 {offsets = [0, 0], sizes = [16, 16], strides = [1, 1]} : vector<16x34xf32> to vector<16x16xf32>
    %151 = vector.extract_strided_slice %147 {offsets = [0, 9], sizes = [16, 16], strides = [1, 1]} : vector<16x34xf32> to vector<16x16xf32>
    %152 = vector.extract_strided_slice %147 {offsets = [0, 18], sizes = [16, 16], strides = [1, 1]} : vector<16x34xf32> to vector<16x16xf32>
    %153 = tpu.concatenate %150, %151, %152 in 0 : vector<16x16xf32>, vector<16x16xf32>, vector<16x16xf32> -> vector<48x16xf32>
    %cst_63 = arith.constant dense<0.000000e+00> : vector<16x16xf32>
    %154 = tpu.matmul %149, %153, %cst_63 {dimension_numbers = #tpu.dot_dimension_numbers<[1], [0], [0], [1], [0, 0, 1, 1], [], []>} : vector<16x48xf32>, vector<48x16xf32>, vector<16x16xf32> -> vector<16x16xf32>
    %c2_64 = arith.constant 2 : index
    %c0_65 = arith.constant 0 : index
    %c0_66 = arith.constant 0 : index
    %155 = vector.load %arg7[%c2_64, %c0_65, %c0_66] : memref<3x16x1xf32, #tpu.memory_space<vmem>>, vector<1x16x1xf32>
    %156 = vector.shape_cast %155 : vector<1x16x1xf32> to vector<16x1xf32>
    %157 = vector.broadcast %156 : vector<16x1xf32> to vector<16x16xf32>
    %158 = arith.addf %154, %157 : vector<16x16xf32>
    %cst_67 = arith.constant 0.000000e+00 : f32
    %159 = vector.broadcast %cst_67 : f32 to vector<16x16xf32>
    %160 = arith.cmpf oge, %158, %159 : vector<16x16xf32>
    %cst_68 = arith.constant 2.000000e-01 : f32
    %161 = vector.broadcast %cst_68 : f32 to vector<16x16xf32>
    %162 = arith.mulf %161, %158 : vector<16x16xf32>
    %163 = arith.select %160, %158, %162 : vector<16x16xi1>, vector<16x16xf32>
    %c2_69 = arith.constant 2 : index
    %c0_70 = arith.constant 0 : index
    %c0_71 = arith.constant 0 : index
    %164 = vector.load %arg8[%c2_69, %c0_70, %c0_71] : memref<3x16x32xf32, #tpu.memory_space<vmem>>, vector<1x16x32xf32>
    %165 = vector.shape_cast %164 : vector<1x16x32xf32> to vector<16x32xf32>
    %166 = tpu.concatenate %163, %121 in 0 : vector<16x16xf32>, vector<16x16xf32> -> vector<32x16xf32>
    %cst_72 = arith.constant dense<0.000000e+00> : vector<16x16xf32>
    %167 = tpu.matmul %165, %166, %cst_72 {dimension_numbers = #tpu.dot_dimension_numbers<[1], [0], [0], [1], [0, 0, 1, 1], [], []>} : vector<16x32xf32>, vector<32x16xf32>, vector<16x16xf32> -> vector<16x16xf32>
    %c2_73 = arith.constant 2 : index
    %c0_74 = arith.constant 0 : index
    %c0_75 = arith.constant 0 : index
    %168 = vector.load %arg9[%c2_73, %c0_74, %c0_75] : memref<3x16x1xf32, #tpu.memory_space<vmem>>, vector<1x16x1xf32>
    %169 = vector.shape_cast %168 : vector<1x16x1xf32> to vector<16x1xf32>
    %170 = vector.broadcast %169 : vector<16x1xf32> to vector<16x16xf32>
    %171 = arith.addf %167, %170 : vector<16x16xf32>
    %172 = arith.truncf %171 : vector<16x16xf32> to vector<16x16xbf16>
    %c0_76 = arith.constant 0 : index
    %c0_77 = arith.constant 0 : index
    %c0_78 = arith.constant 0 : index
    %173 = vector.load %arg11[%c0_76, %c0_77, %c0_78] : memref<1x16x16xbf16, #tpu.memory_space<vmem>>, vector<1x16x16xbf16>
    %174 = vector.shape_cast %173 : vector<1x16x16xbf16> to vector<16x16xbf16>
    %175 = vector.shape_cast %172 : vector<16x16xbf16> to vector<1x16x16xbf16>
    tpu.vector_store %arg11[%c0_76, %c0_77, %c0_78], %175 {strides = array<i32>} : memref<1x16x16xbf16, #tpu.memory_space<vmem>>, vector<1x16x16xbf16>,
    return
  }
  func.func @transform_0(%arg0: i32) -> (i32, i32, i32) {
    %c0_i32 = arith.constant 0 : i32
    %c0_i32_0 = arith.constant 0 : i32
    %c0_i32_1 = arith.constant 0 : i32
    return %arg0, %c0_i32, %c0_i32_0 : i32, i32, i32
  }
  func.func @transform_1(%arg0: i32) -> (i32, i32) {
    %c0_i32 = arith.constant 0 : i32
    %c0_i32_0 = arith.constant 0 : i32
    %c0_i32_1 = arith.constant 0 : i32
    return %c0_i32, %c0_i32_0 : i32, i32
  }
  func.func @transform_2(%arg0: i32) -> (i32, i32) {
    %c0_i32 = arith.constant 0 : i32
    %c0_i32_0 = arith.constant 0 : i32
    %c0_i32_1 = arith.constant 0 : i32
    return %c0_i32, %c0_i32_0 : i32, i32
  }
  func.func @transform_3(%arg0: i32) -> (i32, i32, i32) {
    %c0_i32 = arith.constant 0 : i32
    %c0_i32_0 = arith.constant 0 : i32
    %c0_i32_1 = arith.constant 0 : i32
    %c0_i32_2 = arith.constant 0 : i32
    return %c0_i32, %c0_i32_0, %c0_i32_1 : i32, i32, i32
  }
  func.func @transform_4(%arg0: i32) -> (i32, i32) {
    %c0_i32 = arith.constant 0 : i32
    %c0_i32_0 = arith.constant 0 : i32
    %c0_i32_1 = arith.constant 0 : i32
    return %c0_i32, %c0_i32_0 : i32, i32
  }
  func.func @transform_5(%arg0: i32) -> (i32, i32, i32) {
    %c0_i32 = arith.constant 0 : i32
    %c0_i32_0 = arith.constant 0 : i32
    %c0_i32_1 = arith.constant 0 : i32
    %c0_i32_2 = arith.constant 0 : i32
    return %c0_i32, %c0_i32_0, %c0_i32_1 : i32, i32, i32
  }
  func.func @transform_6(%arg0: i32) -> (i32, i32, i32) {
    %c0_i32 = arith.constant 0 : i32
    %c0_i32_0 = arith.constant 0 : i32
    %c0_i32_1 = arith.constant 0 : i32
    %c0_i32_2 = arith.constant 0 : i32
    return %c0_i32, %c0_i32_0, %c0_i32_1 : i32, i32, i32
  }
  func.func @transform_7(%arg0: i32) -> (i32, i32, i32) {
    %c0_i32 = arith.constant 0 : i32
    %c0_i32_0 = arith.constant 0 : i32
    %c0_i32_1 = arith.constant 0 : i32
    %c0_i32_2 = arith.constant 0 : i32
    return %c0_i32, %c0_i32_0, %c0_i32_1 : i32, i32, i32
  }
  func.func @transform_8(%arg0: i32) -> (i32, i32, i32) {
    %c0_i32 = arith.constant 0 : i32
    %c0_i32_0 = arith.constant 0 : i32
    %c0_i32_1 = arith.constant 0 : i32
    %c0_i32_2 = arith.constant 0 : i32
    return %c0_i32, %c0_i32_0, %c0_i32_1 : i32, i32, i32
  }
  func.func @transform_9(%arg0: i32) -> (i32, i32, i32) {
    %c0_i32 = arith.constant 0 : i32
    %c0_i32_0 = arith.constant 0 : i32
    %c0_i32_1 = arith.constant 0 : i32
    %c0_i32_2 = arith.constant 0 : i32
    return %c0_i32, %c0_i32_0, %c0_i32_1 : i32, i32, i32
  }
  func.func @transform_10(%arg0: i32) -> (i32, i32, i32) {
    %c0_i32 = arith.constant 0 : i32
    %c0_i32_0 = arith.constant 0 : i32
    %c0_i32_1 = arith.constant 0 : i32
    return %arg0, %c0_i32, %c0_i32_0 : i32, i32, i32
  }
}

module attributes {stable_mosaic.version = 11 : i64} {
  func.func @_stage_kernel(%arg0: i32, %arg1: memref<1x16x16xbf16, #tpu.memory_space<vmem>>, %arg2: memref<2x8x32xf32, #tpu.memory_space<vmem>>, %arg3: memref<8x1xf32, #tpu.memory_space<vmem>>, %arg4: memref<3x8x24xf32, #tpu.memory_space<vmem>>, %arg5: memref<3x8x1xf32, #tpu.memory_space<vmem>>, %arg6: memref<3x8x16xf32, #tpu.memory_space<vmem>>, %arg7: memref<3x8x1xf32, #tpu.memory_space<vmem>>, %arg8: memref<2x16x32xf32, #tpu.memory_space<vmem>>, %arg9: memref<1x8x32xbf16, #tpu.memory_space<vmem>>) attributes {dimension_semantics = [#tpu.dimension_semantics<parallel>], iteration_bounds = array<i64: 2>, scalar_prefetch = 0 : i64, scratch_operands = 0 : i64, tpu.core_type = #tpu.core_type<tc>, window_params = [{transform_indices = @transform_0, window_bounds = array<i64: 1, 16, 16>}, {pipeline_mode = #tpu.pipeline_mode<synchronous>, transform_indices = @transform_1, window_bounds = array<i64: 2, 8, 32>}, {pipeline_mode = #tpu.pipeline_mode<synchronous>, transform_indices = @transform_2, window_bounds = array<i64: 8, 1>}, {pipeline_mode = #tpu.pipeline_mode<synchronous>, transform_indices = @transform_3, window_bounds = array<i64: 3, 8, 24>}, {pipeline_mode = #tpu.pipeline_mode<synchronous>, transform_indices = @transform_4, window_bounds = array<i64: 3, 8, 1>}, {pipeline_mode = #tpu.pipeline_mode<synchronous>, transform_indices = @transform_5, window_bounds = array<i64: 3, 8, 16>}, {pipeline_mode = #tpu.pipeline_mode<synchronous>, transform_indices = @transform_6, window_bounds = array<i64: 3, 8, 1>}, {pipeline_mode = #tpu.pipeline_mode<synchronous>, transform_indices = @transform_7, window_bounds = array<i64: 2, 16, 32>}, {transform_indices = @transform_8, window_bounds = array<i64: 1, 8, 32>}]} {
    %c0 = arith.constant 0 : index
    %c0_0 = arith.constant 0 : index
    %c0_1 = arith.constant 0 : index
    %0 = vector.load %arg1[%c0, %c0_0, %c0_1] : memref<1x16x16xbf16, #tpu.memory_space<vmem>>, vector<1x16x16xbf16>
    %1 = vector.shape_cast %0 : vector<1x16x16xbf16> to vector<16x16xbf16>
    %2 = arith.extf %1 : vector<16x16xbf16> to vector<16x16xf32>
    %cst = arith.constant 0.000000e+00 : f32
    %3 = vector.broadcast %cst : f32 to vector<16x16xf32>
    %4 = arith.cmpf oge, %2, %3 : vector<16x16xf32>
    %cst_2 = arith.constant 2.000000e-01 : f32
    %5 = vector.broadcast %cst_2 : f32 to vector<16x16xf32>
    %6 = arith.mulf %5, %2 : vector<16x16xf32>
    %7 = arith.select %4, %2, %6 : vector<16x16xi1>, vector<16x16xf32>
    %cst_3 = arith.constant 0.000000e+00 : f32
    %8 = vector.broadcast %cst_3 : f32 to vector<16x1xf32>
    %9 = tpu.concatenate %8, %7, %8 in 1 : vector<16x1xf32>, vector<16x16xf32>, vector<16x1xf32> -> vector<16x18xf32>
    %c0_4 = arith.constant 0 : index
    %c0_5 = arith.constant 0 : index
    %10 = vector.load %arg3[%c0_4, %c0_5] : memref<8x1xf32, #tpu.memory_space<vmem>>, vector<8x1xf32>
    %c0_6 = arith.constant 0 : index
    %c0_7 = arith.constant 0 : index
    %c0_8 = arith.constant 0 : index
    %11 = vector.load %arg2[%c0_6, %c0_7, %c0_8] : memref<2x8x32xf32, #tpu.memory_space<vmem>>, vector<1x8x32xf32>
    %12 = vector.shape_cast %11 : vector<1x8x32xf32> to vector<8x32xf32>
    %13 = vector.extract_strided_slice %9 {offsets = [0, 0], sizes = [16, 16], strides = [1, 1]} : vector<16x18xf32> to vector<16x16xf32>
    %14 = vector.extract_strided_slice %9 {offsets = [0, 1], sizes = [16, 16], strides = [1, 1]} : vector<16x18xf32> to vector<16x16xf32>
    %15 = tpu.concatenate %13, %14 in 0 : vector<16x16xf32>, vector<16x16xf32> -> vector<32x16xf32>
    %cst_9 = arith.constant dense<0.000000e+00> : vector<8x16xf32>
    %16 = tpu.matmul %12, %15, %cst_9 {dimension_numbers = #tpu.dot_dimension_numbers<[1], [0], [0], [1], [0, 0, 1, 1], [], []>} : vector<8x32xf32>, vector<32x16xf32>, vector<8x16xf32> -> vector<8x16xf32>
    %17 = vector.broadcast %10 : vector<8x1xf32> to vector<8x16xf32>
    %18 = arith.addf %16, %17 : vector<8x16xf32>
    %c1 = arith.constant 1 : index
    %c0_10 = arith.constant 0 : index
    %c0_11 = arith.constant 0 : index
    %19 = vector.load %arg2[%c1, %c0_10, %c0_11] : memref<2x8x32xf32, #tpu.memory_space<vmem>>, vector<1x8x32xf32>
    %20 = vector.shape_cast %19 : vector<1x8x32xf32> to vector<8x32xf32>
    %21 = vector.extract_strided_slice %9 {offsets = [0, 1], sizes = [16, 16], strides = [1, 1]} : vector<16x18xf32> to vector<16x16xf32>
    %22 = vector.extract_strided_slice %9 {offsets = [0, 2], sizes = [16, 16], strides = [1, 1]} : vector<16x18xf32> to vector<16x16xf32>
    %23 = tpu.concatenate %21, %22 in 0 : vector<16x16xf32>, vector<16x16xf32> -> vector<32x16xf32>
    %cst_12 = arith.constant dense<0.000000e+00> : vector<8x16xf32>
    %24 = tpu.matmul %20, %23, %cst_12 {dimension_numbers = #tpu.dot_dimension_numbers<[1], [0], [0], [1], [0, 0, 1, 1], [], []>} : vector<8x32xf32>, vector<32x16xf32>, vector<8x16xf32> -> vector<8x16xf32>
    %25 = vector.broadcast %10 : vector<8x1xf32> to vector<8x16xf32>
    %26 = arith.addf %24, %25 : vector<8x16xf32>
    %c0_13 = arith.constant 0 : index
    %c0_14 = arith.constant 0 : index
    %c0_15 = arith.constant 0 : index
    %27 = vector.load %arg8[%c0_13, %c0_14, %c0_15] : memref<2x16x32xf32, #tpu.memory_space<vmem>>, vector<2x16x32xf32>
    %28 = vector.extract_strided_slice %27 {offsets = [0, 0, 0], sizes = [1, 16, 32], strides = [1, 1, 1]} : vector<2x16x32xf32> to vector<1x16x32xf32>
    %29 = vector.shape_cast %28 : vector<1x16x32xf32> to vector<16x32xf32>
    %cst_16 = arith.constant dense<0.000000e+00> : vector<8x32xf32>
    %30 = tpu.matmul %18, %29, %cst_16 {dimension_numbers = #tpu.dot_dimension_numbers<[1], [0], [0], [1], [0, 0, 1, 1], [], []>} : vector<8x16xf32>, vector<16x32xf32>, vector<8x32xf32> -> vector<8x32xf32>
    %31 = vector.extract_strided_slice %27 {offsets = [1, 0, 0], sizes = [1, 16, 32], strides = [1, 1, 1]} : vector<2x16x32xf32> to vector<1x16x32xf32>
    %32 = vector.shape_cast %31 : vector<1x16x32xf32> to vector<16x32xf32>
    %cst_17 = arith.constant dense<0.000000e+00> : vector<8x32xf32>
    %33 = tpu.matmul %26, %32, %cst_17 {dimension_numbers = #tpu.dot_dimension_numbers<[1], [0], [0], [1], [0, 0, 1, 1], [], []>} : vector<8x16xf32>, vector<16x32xf32>, vector<8x32xf32> -> vector<8x32xf32>
    %34 = arith.addf %30, %33 : vector<8x32xf32>
    %35 = vector.extract_strided_slice %34 {offsets = [0, 1], sizes = [8, 1], strides = [1, 1]} : vector<8x32xf32> to vector<8x1xf32>
    %36 = vector.extract_strided_slice %34 {offsets = [0, 30], sizes = [8, 1], strides = [1, 1]} : vector<8x32xf32> to vector<8x1xf32>
    %37 = tpu.concatenate %35, %34, %36 in 1 : vector<8x1xf32>, vector<8x32xf32>, vector<8x1xf32> -> vector<8x34xf32>
    %cst_18 = arith.constant 0.000000e+00 : f32
    %38 = vector.broadcast %cst_18 : f32 to vector<8x34xf32>
    %39 = arith.cmpf oge, %37, %38 : vector<8x34xf32>
    %cst_19 = arith.constant 2.000000e-01 : f32
    %40 = vector.broadcast %cst_19 : f32 to vector<8x34xf32>
    %41 = arith.mulf %40, %37 : vector<8x34xf32>
    %42 = arith.select %39, %37, %41 : vector<8x34xi1>, vector<8x34xf32>
    %c0_20 = arith.constant 0 : index
    %c0_21 = arith.constant 0 : index
    %c0_22 = arith.constant 0 : index
    %43 = vector.load %arg4[%c0_20, %c0_21, %c0_22] : memref<3x8x24xf32, #tpu.memory_space<vmem>>, vector<1x8x24xf32>
    %44 = vector.shape_cast %43 : vector<1x8x24xf32> to vector<8x24xf32>
    %45 = vector.extract_strided_slice %42 {offsets = [0, 0], sizes = [8, 32], strides = [1, 1]} : vector<8x34xf32> to vector<8x32xf32>
    %46 = vector.extract_strided_slice %42 {offsets = [0, 1], sizes = [8, 32], strides = [1, 1]} : vector<8x34xf32> to vector<8x32xf32>
    %47 = vector.extract_strided_slice %42 {offsets = [0, 2], sizes = [8, 32], strides = [1, 1]} : vector<8x34xf32> to vector<8x32xf32>
    %48 = tpu.concatenate %45, %46, %47 in 0 : vector<8x32xf32>, vector<8x32xf32>, vector<8x32xf32> -> vector<24x32xf32>
    %cst_23 = arith.constant dense<0.000000e+00> : vector<8x32xf32>
    %49 = tpu.matmul %44, %48, %cst_23 {dimension_numbers = #tpu.dot_dimension_numbers<[1], [0], [0], [1], [0, 0, 1, 1], [], []>} : vector<8x24xf32>, vector<24x32xf32>, vector<8x32xf32> -> vector<8x32xf32>
    %c0_24 = arith.constant 0 : index
    %c0_25 = arith.constant 0 : index
    %c0_26 = arith.constant 0 : index
    %50 = vector.load %arg5[%c0_24, %c0_25, %c0_26] : memref<3x8x1xf32, #tpu.memory_space<vmem>>, vector<1x8x1xf32>
    %51 = vector.shape_cast %50 : vector<1x8x1xf32> to vector<8x1xf32>
    %52 = vector.broadcast %51 : vector<8x1xf32> to vector<8x32xf32>
    %53 = arith.addf %49, %52 : vector<8x32xf32>
    %cst_27 = arith.constant 0.000000e+00 : f32
    %54 = vector.broadcast %cst_27 : f32 to vector<8x32xf32>
    %55 = arith.cmpf oge, %53, %54 : vector<8x32xf32>
    %cst_28 = arith.constant 2.000000e-01 : f32
    %56 = vector.broadcast %cst_28 : f32 to vector<8x32xf32>
    %57 = arith.mulf %56, %53 : vector<8x32xf32>
    %58 = arith.select %55, %53, %57 : vector<8x32xi1>, vector<8x32xf32>
    %c0_29 = arith.constant 0 : index
    %c0_30 = arith.constant 0 : index
    %c0_31 = arith.constant 0 : index
    %59 = vector.load %arg6[%c0_29, %c0_30, %c0_31] : memref<3x8x16xf32, #tpu.memory_space<vmem>>, vector<1x8x16xf32>
    %60 = vector.shape_cast %59 : vector<1x8x16xf32> to vector<8x16xf32>
    %61 = tpu.concatenate %58, %34 in 0 : vector<8x32xf32>, vector<8x32xf32> -> vector<16x32xf32>
    %cst_32 = arith.constant dense<0.000000e+00> : vector<8x32xf32>
    %62 = tpu.matmul %60, %61, %cst_32 {dimension_numbers = #tpu.dot_dimension_numbers<[1], [0], [0], [1], [0, 0, 1, 1], [], []>} : vector<8x16xf32>, vector<16x32xf32>, vector<8x32xf32> -> vector<8x32xf32>
    %c0_33 = arith.constant 0 : index
    %c0_34 = arith.constant 0 : index
    %c0_35 = arith.constant 0 : index
    %63 = vector.load %arg7[%c0_33, %c0_34, %c0_35] : memref<3x8x1xf32, #tpu.memory_space<vmem>>, vector<1x8x1xf32>
    %64 = vector.shape_cast %63 : vector<1x8x1xf32> to vector<8x1xf32>
    %65 = vector.broadcast %64 : vector<8x1xf32> to vector<8x32xf32>
    %66 = arith.addf %62, %65 : vector<8x32xf32>
    %67 = vector.extract_strided_slice %66 {offsets = [0, 3], sizes = [8, 1], strides = [1, 1]} : vector<8x32xf32> to vector<8x1xf32>
    %68 = vector.extract_strided_slice %66 {offsets = [0, 2], sizes = [8, 1], strides = [1, 1]} : vector<8x32xf32> to vector<8x1xf32>
    %69 = vector.extract_strided_slice %66 {offsets = [0, 1], sizes = [8, 1], strides = [1, 1]} : vector<8x32xf32> to vector<8x1xf32>
    %70 = vector.extract_strided_slice %66 {offsets = [0, 30], sizes = [8, 1], strides = [1, 1]} : vector<8x32xf32> to vector<8x1xf32>
    %71 = vector.extract_strided_slice %66 {offsets = [0, 29], sizes = [8, 1], strides = [1, 1]} : vector<8x32xf32> to vector<8x1xf32>
    %72 = vector.extract_strided_slice %66 {offsets = [0, 28], sizes = [8, 1], strides = [1, 1]} : vector<8x32xf32> to vector<8x1xf32>
    %73 = tpu.concatenate %67, %68, %69, %66, %70, %71, %72 in 1 : vector<8x1xf32>, vector<8x1xf32>, vector<8x1xf32>, vector<8x32xf32>, vector<8x1xf32>, vector<8x1xf32>, vector<8x1xf32> -> vector<8x38xf32>
    %cst_36 = arith.constant 0.000000e+00 : f32
    %74 = vector.broadcast %cst_36 : f32 to vector<8x38xf32>
    %75 = arith.cmpf oge, %73, %74 : vector<8x38xf32>
    %cst_37 = arith.constant 2.000000e-01 : f32
    %76 = vector.broadcast %cst_37 : f32 to vector<8x38xf32>
    %77 = arith.mulf %76, %73 : vector<8x38xf32>
    %78 = arith.select %75, %73, %77 : vector<8x38xi1>, vector<8x38xf32>
    %c1_38 = arith.constant 1 : index
    %c0_39 = arith.constant 0 : index
    %c0_40 = arith.constant 0 : index
    %79 = vector.load %arg4[%c1_38, %c0_39, %c0_40] : memref<3x8x24xf32, #tpu.memory_space<vmem>>, vector<1x8x24xf32>
    %80 = vector.shape_cast %79 : vector<1x8x24xf32> to vector<8x24xf32>
    %81 = vector.extract_strided_slice %78 {offsets = [0, 0], sizes = [8, 32], strides = [1, 1]} : vector<8x38xf32> to vector<8x32xf32>
    %82 = vector.extract_strided_slice %78 {offsets = [0, 3], sizes = [8, 32], strides = [1, 1]} : vector<8x38xf32> to vector<8x32xf32>
    %83 = vector.extract_strided_slice %78 {offsets = [0, 6], sizes = [8, 32], strides = [1, 1]} : vector<8x38xf32> to vector<8x32xf32>
    %84 = tpu.concatenate %81, %82, %83 in 0 : vector<8x32xf32>, vector<8x32xf32>, vector<8x32xf32> -> vector<24x32xf32>
    %cst_41 = arith.constant dense<0.000000e+00> : vector<8x32xf32>
    %85 = tpu.matmul %80, %84, %cst_41 {dimension_numbers = #tpu.dot_dimension_numbers<[1], [0], [0], [1], [0, 0, 1, 1], [], []>} : vector<8x24xf32>, vector<24x32xf32>, vector<8x32xf32> -> vector<8x32xf32>
    %c1_42 = arith.constant 1 : index
    %c0_43 = arith.constant 0 : index
    %c0_44 = arith.constant 0 : index
    %86 = vector.load %arg5[%c1_42, %c0_43, %c0_44] : memref<3x8x1xf32, #tpu.memory_space<vmem>>, vector<1x8x1xf32>
    %87 = vector.shape_cast %86 : vector<1x8x1xf32> to vector<8x1xf32>
    %88 = vector.broadcast %87 : vector<8x1xf32> to vector<8x32xf32>
    %89 = arith.addf %85, %88 : vector<8x32xf32>
    %cst_45 = arith.constant 0.000000e+00 : f32
    %90 = vector.broadcast %cst_45 : f32 to vector<8x32xf32>
    %91 = arith.cmpf oge, %89, %90 : vector<8x32xf32>
    %cst_46 = arith.constant 2.000000e-01 : f32
    %92 = vector.broadcast %cst_46 : f32 to vector<8x32xf32>
    %93 = arith.mulf %92, %89 : vector<8x32xf32>
    %94 = arith.select %91, %89, %93 : vector<8x32xi1>, vector<8x32xf32>
    %c1_47 = arith.constant 1 : index
    %c0_48 = arith.constant 0 : index
    %c0_49 = arith.constant 0 : index
    %95 = vector.load %arg6[%c1_47, %c0_48, %c0_49] : memref<3x8x16xf32, #tpu.memory_space<vmem>>, vector<1x8x16xf32>
    %96 = vector.shape_cast %95 : vector<1x8x16xf32> to vector<8x16xf32>
    %97 = tpu.concatenate %94, %66 in 0 : vector<8x32xf32>, vector<8x32xf32> -> vector<16x32xf32>
    %cst_50 = arith.constant dense<0.000000e+00> : vector<8x32xf32>
    %98 = tpu.matmul %96, %97, %cst_50 {dimension_numbers = #tpu.dot_dimension_numbers<[1], [0], [0], [1], [0, 0, 1, 1], [], []>} : vector<8x16xf32>, vector<16x32xf32>, vector<8x32xf32> -> vector<8x32xf32>
    %c1_51 = arith.constant 1 : index
    %c0_52 = arith.constant 0 : index
    %c0_53 = arith.constant 0 : index
    %99 = vector.load %arg7[%c1_51, %c0_52, %c0_53] : memref<3x8x1xf32, #tpu.memory_space<vmem>>, vector<1x8x1xf32>
    %100 = vector.shape_cast %99 : vector<1x8x1xf32> to vector<8x1xf32>
    %101 = vector.broadcast %100 : vector<8x1xf32> to vector<8x32xf32>
    %102 = arith.addf %98, %101 : vector<8x32xf32>
    %103 = vector.extract_strided_slice %102 {offsets = [0, 9], sizes = [8, 1], strides = [1, 1]} : vector<8x32xf32> to vector<8x1xf32>
    %104 = vector.extract_strided_slice %102 {offsets = [0, 8], sizes = [8, 1], strides = [1, 1]} : vector<8x32xf32> to vector<8x1xf32>
    %105 = vector.extract_strided_slice %102 {offsets = [0, 7], sizes = [8, 1], strides = [1, 1]} : vector<8x32xf32> to vector<8x1xf32>
    %106 = vector.extract_strided_slice %102 {offsets = [0, 6], sizes = [8, 1], strides = [1, 1]} : vector<8x32xf32> to vector<8x1xf32>
    %107 = vector.extract_strided_slice %102 {offsets = [0, 5], sizes = [8, 1], strides = [1, 1]} : vector<8x32xf32> to vector<8x1xf32>
    %108 = vector.extract_strided_slice %102 {offsets = [0, 4], sizes = [8, 1], strides = [1, 1]} : vector<8x32xf32> to vector<8x1xf32>
    %109 = vector.extract_strided_slice %102 {offsets = [0, 3], sizes = [8, 1], strides = [1, 1]} : vector<8x32xf32> to vector<8x1xf32>
    %110 = vector.extract_strided_slice %102 {offsets = [0, 2], sizes = [8, 1], strides = [1, 1]} : vector<8x32xf32> to vector<8x1xf32>
    %111 = vector.extract_strided_slice %102 {offsets = [0, 1], sizes = [8, 1], strides = [1, 1]} : vector<8x32xf32> to vector<8x1xf32>
    %112 = vector.extract_strided_slice %102 {offsets = [0, 30], sizes = [8, 1], strides = [1, 1]} : vector<8x32xf32> to vector<8x1xf32>
    %113 = vector.extract_strided_slice %102 {offsets = [0, 29], sizes = [8, 1], strides = [1, 1]} : vector<8x32xf32> to vector<8x1xf32>
    %114 = vector.extract_strided_slice %102 {offsets = [0, 28], sizes = [8, 1], strides = [1, 1]} : vector<8x32xf32> to vector<8x1xf32>
    %115 = vector.extract_strided_slice %102 {offsets = [0, 27], sizes = [8, 1], strides = [1, 1]} : vector<8x32xf32> to vector<8x1xf32>
    %116 = vector.extract_strided_slice %102 {offsets = [0, 26], sizes = [8, 1], strides = [1, 1]} : vector<8x32xf32> to vector<8x1xf32>
    %117 = vector.extract_strided_slice %102 {offsets = [0, 25], sizes = [8, 1], strides = [1, 1]} : vector<8x32xf32> to vector<8x1xf32>
    %118 = vector.extract_strided_slice %102 {offsets = [0, 24], sizes = [8, 1], strides = [1, 1]} : vector<8x32xf32> to vector<8x1xf32>
    %119 = vector.extract_strided_slice %102 {offsets = [0, 23], sizes = [8, 1], strides = [1, 1]} : vector<8x32xf32> to vector<8x1xf32>
    %120 = vector.extract_strided_slice %102 {offsets = [0, 22], sizes = [8, 1], strides = [1, 1]} : vector<8x32xf32> to vector<8x1xf32>
    %121 = tpu.concatenate %103, %104, %105, %106, %107, %108, %109, %110, %111, %102, %112, %113, %114, %115, %116, %117 in 1 : vector<8x1xf32>, vector<8x1xf32>, vector<8x1xf32>, vector<8x1xf32>, vector<8x1xf32>, vector<8x1xf32>, vector<8x1xf32>, vector<8x1xf32>, vector<8x1xf32>, vector<8x32xf32>, vector<8x1xf32>, vector<8x1xf32>, vector<8x1xf32>, vector<8x1xf32>, vector<8x1xf32>, vector<8x1xf32> -> vector<8x47xf32>
    %122 = tpu.concatenate %118, %119, %120 in 1 : vector<8x1xf32>, vector<8x1xf32>, vector<8x1xf32> -> vector<8x3xf32>
    %123 = tpu.concatenate %121, %122 in 1 : vector<8x47xf32>, vector<8x3xf32> -> vector<8x50xf32>
    %cst_54 = arith.constant 0.000000e+00 : f32
    %124 = vector.broadcast %cst_54 : f32 to vector<8x50xf32>
    %125 = arith.cmpf oge, %123, %124 : vector<8x50xf32>
    %cst_55 = arith.constant 2.000000e-01 : f32
    %126 = vector.broadcast %cst_55 : f32 to vector<8x50xf32>
    %127 = arith.mulf %126, %123 : vector<8x50xf32>
    %128 = arith.select %125, %123, %127 : vector<8x50xi1>, vector<8x50xf32>
    %c2 = arith.constant 2 : index
    %c0_56 = arith.constant 0 : index
    %c0_57 = arith.constant 0 : index
    %129 = vector.load %arg4[%c2, %c0_56, %c0_57] : memref<3x8x24xf32, #tpu.memory_space<vmem>>, vector<1x8x24xf32>
    %130 = vector.shape_cast %129 : vector<1x8x24xf32> to vector<8x24xf32>
    %131 = vector.extract_strided_slice %128 {offsets = [0, 0], sizes = [8, 32], strides = [1, 1]} : vector<8x50xf32> to vector<8x32xf32>
    %132 = vector.extract_strided_slice %128 {offsets = [0, 9], sizes = [8, 32], strides = [1, 1]} : vector<8x50xf32> to vector<8x32xf32>
    %133 = vector.extract_strided_slice %128 {offsets = [0, 18], sizes = [8, 32], strides = [1, 1]} : vector<8x50xf32> to vector<8x32xf32>
    %134 = tpu.concatenate %131, %132, %133 in 0 : vector<8x32xf32>, vector<8x32xf32>, vector<8x32xf32> -> vector<24x32xf32>
    %cst_58 = arith.constant dense<0.000000e+00> : vector<8x32xf32>
    %135 = tpu.matmul %130, %134, %cst_58 {dimension_numbers = #tpu.dot_dimension_numbers<[1], [0], [0], [1], [0, 0, 1, 1], [], []>} : vector<8x24xf32>, vector<24x32xf32>, vector<8x32xf32> -> vector<8x32xf32>
    %c2_59 = arith.constant 2 : index
    %c0_60 = arith.constant 0 : index
    %c0_61 = arith.constant 0 : index
    %136 = vector.load %arg5[%c2_59, %c0_60, %c0_61] : memref<3x8x1xf32, #tpu.memory_space<vmem>>, vector<1x8x1xf32>
    %137 = vector.shape_cast %136 : vector<1x8x1xf32> to vector<8x1xf32>
    %138 = vector.broadcast %137 : vector<8x1xf32> to vector<8x32xf32>
    %139 = arith.addf %135, %138 : vector<8x32xf32>
    %cst_62 = arith.constant 0.000000e+00 : f32
    %140 = vector.broadcast %cst_62 : f32 to vector<8x32xf32>
    %141 = arith.cmpf oge, %139, %140 : vector<8x32xf32>
    %cst_63 = arith.constant 2.000000e-01 : f32
    %142 = vector.broadcast %cst_63 : f32 to vector<8x32xf32>
    %143 = arith.mulf %142, %139 : vector<8x32xf32>
    %144 = arith.select %141, %139, %143 : vector<8x32xi1>, vector<8x32xf32>
    %c2_64 = arith.constant 2 : index
    %c0_65 = arith.constant 0 : index
    %c0_66 = arith.constant 0 : index
    %145 = vector.load %arg6[%c2_64, %c0_65, %c0_66] : memref<3x8x16xf32, #tpu.memory_space<vmem>>, vector<1x8x16xf32>
    %146 = vector.shape_cast %145 : vector<1x8x16xf32> to vector<8x16xf32>
    %147 = tpu.concatenate %144, %102 in 0 : vector<8x32xf32>, vector<8x32xf32> -> vector<16x32xf32>
    %cst_67 = arith.constant dense<0.000000e+00> : vector<8x32xf32>
    %148 = tpu.matmul %146, %147, %cst_67 {dimension_numbers = #tpu.dot_dimension_numbers<[1], [0], [0], [1], [0, 0, 1, 1], [], []>} : vector<8x16xf32>, vector<16x32xf32>, vector<8x32xf32> -> vector<8x32xf32>
    %c2_68 = arith.constant 2 : index
    %c0_69 = arith.constant 0 : index
    %c0_70 = arith.constant 0 : index
    %149 = vector.load %arg7[%c2_68, %c0_69, %c0_70] : memref<3x8x1xf32, #tpu.memory_space<vmem>>, vector<1x8x1xf32>
    %150 = vector.shape_cast %149 : vector<1x8x1xf32> to vector<8x1xf32>
    %151 = vector.broadcast %150 : vector<8x1xf32> to vector<8x32xf32>
    %152 = arith.addf %148, %151 : vector<8x32xf32>
    %153 = arith.truncf %152 : vector<8x32xf32> to vector<8x32xbf16>
    %c0_71 = arith.constant 0 : index
    %c0_72 = arith.constant 0 : index
    %c0_73 = arith.constant 0 : index
    %154 = vector.load %arg9[%c0_71, %c0_72, %c0_73] : memref<1x8x32xbf16, #tpu.memory_space<vmem>>, vector<1x8x32xbf16>
    %155 = vector.shape_cast %154 : vector<1x8x32xbf16> to vector<8x32xbf16>
    %156 = vector.shape_cast %153 : vector<8x32xbf16> to vector<1x8x32xbf16>
    tpu.vector_store %arg9[%c0_71, %c0_72, %c0_73], %156 {strides = array<i32>} : memref<1x8x32xbf16, #tpu.memory_space<vmem>>, vector<1x8x32xbf16>,
    return
  }
  func.func @transform_0(%arg0: i32) -> (i32, i32, i32) {
    %c0_i32 = arith.constant 0 : i32
    %c0_i32_0 = arith.constant 0 : i32
    %c0_i32_1 = arith.constant 0 : i32
    return %arg0, %c0_i32, %c0_i32_0 : i32, i32, i32
  }
  func.func @transform_1(%arg0: i32) -> (i32, i32, i32) {
    %c0_i32 = arith.constant 0 : i32
    %c0_i32_0 = arith.constant 0 : i32
    %c0_i32_1 = arith.constant 0 : i32
    %c0_i32_2 = arith.constant 0 : i32
    return %c0_i32, %c0_i32_0, %c0_i32_1 : i32, i32, i32
  }
  func.func @transform_2(%arg0: i32) -> (i32, i32) {
    %c0_i32 = arith.constant 0 : i32
    %c0_i32_0 = arith.constant 0 : i32
    %c0_i32_1 = arith.constant 0 : i32
    return %c0_i32, %c0_i32_0 : i32, i32
  }
  func.func @transform_3(%arg0: i32) -> (i32, i32, i32) {
    %c0_i32 = arith.constant 0 : i32
    %c0_i32_0 = arith.constant 0 : i32
    %c0_i32_1 = arith.constant 0 : i32
    %c0_i32_2 = arith.constant 0 : i32
    return %c0_i32, %c0_i32_0, %c0_i32_1 : i32, i32, i32
  }
  func.func @transform_4(%arg0: i32) -> (i32, i32, i32) {
    %c0_i32 = arith.constant 0 : i32
    %c0_i32_0 = arith.constant 0 : i32
    %c0_i32_1 = arith.constant 0 : i32
    %c0_i32_2 = arith.constant 0 : i32
    return %c0_i32, %c0_i32_0, %c0_i32_1 : i32, i32, i32
  }
  func.func @transform_5(%arg0: i32) -> (i32, i32, i32) {
    %c0_i32 = arith.constant 0 : i32
    %c0_i32_0 = arith.constant 0 : i32
    %c0_i32_1 = arith.constant 0 : i32
    %c0_i32_2 = arith.constant 0 : i32
    return %c0_i32, %c0_i32_0, %c0_i32_1 : i32, i32, i32
  }
  func.func @transform_6(%arg0: i32) -> (i32, i32, i32) {
    %c0_i32 = arith.constant 0 : i32
    %c0_i32_0 = arith.constant 0 : i32
    %c0_i32_1 = arith.constant 0 : i32
    %c0_i32_2 = arith.constant 0 : i32
    return %c0_i32, %c0_i32_0, %c0_i32_1 : i32, i32, i32
  }
  func.func @transform_7(%arg0: i32) -> (i32, i32, i32) {
    %c0_i32 = arith.constant 0 : i32
    %c0_i32_0 = arith.constant 0 : i32
    %c0_i32_1 = arith.constant 0 : i32
    %c0_i32_2 = arith.constant 0 : i32
    return %c0_i32, %c0_i32_0, %c0_i32_1 : i32, i32, i32
  }
  func.func @transform_8(%arg0: i32) -> (i32, i32, i32) {
    %c0_i32 = arith.constant 0 : i32
    %c0_i32_0 = arith.constant 0 : i32
    %c0_i32_1 = arith.constant 0 : i32
    return %arg0, %c0_i32, %c0_i32_0 : i32, i32, i32
  }
}

module attributes {stable_mosaic.version = 11 : i64} {
  func.func @_stage_kernel(%arg0: i32, %arg1: memref<1x8x32xbf16, #tpu.memory_space<vmem>>, %arg2: memref<2x16x4xf32, #tpu.memory_space<vmem>>, %arg3: memref<4x1xf32, #tpu.memory_space<vmem>>, %arg4: memref<3x12x4xf32, #tpu.memory_space<vmem>>, %arg5: memref<3x4x1xf32, #tpu.memory_space<vmem>>, %arg6: memref<3x8x4xf32, #tpu.memory_space<vmem>>, %arg7: memref<3x4x1xf32, #tpu.memory_space<vmem>>, %arg8: memref<2x32x64xf32, #tpu.memory_space<vmem>>, %arg9: memref<1x4x64xbf16, #tpu.memory_space<vmem>>) attributes {dimension_semantics = [#tpu.dimension_semantics<parallel>], iteration_bounds = array<i64: 2>, scalar_prefetch = 0 : i64, scratch_operands = 0 : i64, tpu.core_type = #tpu.core_type<tc>, window_params = [{transform_indices = @transform_0, window_bounds = array<i64: 1, 8, 32>}, {pipeline_mode = #tpu.pipeline_mode<synchronous>, transform_indices = @transform_1, window_bounds = array<i64: 2, 16, 4>}, {pipeline_mode = #tpu.pipeline_mode<synchronous>, transform_indices = @transform_2, window_bounds = array<i64: 4, 1>}, {pipeline_mode = #tpu.pipeline_mode<synchronous>, transform_indices = @transform_3, window_bounds = array<i64: 3, 12, 4>}, {pipeline_mode = #tpu.pipeline_mode<synchronous>, transform_indices = @transform_4, window_bounds = array<i64: 3, 4, 1>}, {pipeline_mode = #tpu.pipeline_mode<synchronous>, transform_indices = @transform_5, window_bounds = array<i64: 3, 8, 4>}, {pipeline_mode = #tpu.pipeline_mode<synchronous>, transform_indices = @transform_6, window_bounds = array<i64: 3, 4, 1>}, {pipeline_mode = #tpu.pipeline_mode<synchronous>, transform_indices = @transform_7, window_bounds = array<i64: 2, 32, 64>}, {transform_indices = @transform_8, window_bounds = array<i64: 1, 4, 64>}]} {
    %c0 = arith.constant 0 : index
    %c0_0 = arith.constant 0 : index
    %c0_1 = arith.constant 0 : index
    %0 = vector.load %arg1[%c0, %c0_0, %c0_1] : memref<1x8x32xbf16, #tpu.memory_space<vmem>>, vector<1x8x32xbf16>
    %1 = vector.shape_cast %0 : vector<1x8x32xbf16> to vector<8x32xbf16>
    %2 = arith.extf %1 : vector<8x32xbf16> to vector<8x32xf32>
    %cst = arith.constant 0.000000e+00 : f32
    %3 = vector.broadcast %cst : f32 to vector<8x32xf32>
    %4 = arith.cmpf oge, %2, %3 : vector<8x32xf32>
    %cst_2 = arith.constant 2.000000e-01 : f32
    %5 = vector.broadcast %cst_2 : f32 to vector<8x32xf32>
    %6 = arith.mulf %5, %2 : vector<8x32xf32>
    %7 = arith.select %4, %2, %6 : vector<8x32xi1>, vector<8x32xf32>
    %cst_3 = arith.constant 0.000000e+00 : f32
    %8 = vector.broadcast %cst_3 : f32 to vector<8x1xf32>
    %9 = tpu.concatenate %8, %7, %8 in 1 : vector<8x1xf32>, vector<8x32xf32>, vector<8x1xf32> -> vector<8x34xf32>
    %c0_4 = arith.constant 0 : index
    %c0_5 = arith.constant 0 : index
    %10 = vector.load %arg3[%c0_4, %c0_5] : memref<4x1xf32, #tpu.memory_space<vmem>>, vector<4x1xf32>
    %c0_6 = arith.constant 0 : index
    %c0_7 = arith.constant 0 : index
    %c0_8 = arith.constant 0 : index
    %11 = vector.load %arg2[%c0_6, %c0_7, %c0_8] : memref<2x16x4xf32, #tpu.memory_space<vmem>>, vector<1x16x4xf32>
    %12 = vector.shape_cast %11 : vector<1x16x4xf32> to vector<16x4xf32>
    %13 = vector.extract_strided_slice %12 {offsets = [0, 0], sizes = [8, 1], strides = [1, 1]} : vector<16x4xf32> to vector<8x1xf32>
    %14 = vector.extract_strided_slice %9 {offsets = [0, 0], sizes = [8, 32], strides = [1, 1]} : vector<8x34xf32> to vector<8x32xf32>
    %15 = vector.broadcast %13 : vector<8x1xf32> to vector<8x32xf32>
    %16 = arith.mulf %15, %14 : vector<8x32xf32>
    %cst_9 = arith.constant dense<0.000000e+00> : vector<32xf32>
    %17 = vector.multi_reduction <add>, %16, %cst_9 [0] : vector<8x32xf32> to vector<32xf32>
    %18 = vector.shape_cast %17 : vector<32xf32> to vector<1x32xf32>
    %19 = vector.extract_strided_slice %12 {offsets = [8, 0], sizes = [8, 1], strides = [1, 1]} : vector<16x4xf32> to vector<8x1xf32>
    %20 = vector.extract_strided_slice %9 {offsets = [0, 1], sizes = [8, 32], strides = [1, 1]} : vector<8x34xf32> to vector<8x32xf32>
    %21 = vector.broadcast %19 : vector<8x1xf32> to vector<8x32xf32>
    %22 = arith.mulf %21, %20 : vector<8x32xf32>
    %cst_10 = arith.constant dense<0.000000e+00> : vector<32xf32>
    %23 = vector.multi_reduction <add>, %22, %cst_10 [0] : vector<8x32xf32> to vector<32xf32>
    %24 = vector.shape_cast %23 : vector<32xf32> to vector<1x32xf32>
    %25 = arith.addf %18, %24 : vector<1x32xf32>
    %26 = vector.extract_strided_slice %12 {offsets = [0, 1], sizes = [8, 1], strides = [1, 1]} : vector<16x4xf32> to vector<8x1xf32>
    %27 = vector.extract_strided_slice %9 {offsets = [0, 0], sizes = [8, 32], strides = [1, 1]} : vector<8x34xf32> to vector<8x32xf32>
    %28 = vector.broadcast %26 : vector<8x1xf32> to vector<8x32xf32>
    %29 = arith.mulf %28, %27 : vector<8x32xf32>
    %cst_11 = arith.constant dense<0.000000e+00> : vector<32xf32>
    %30 = vector.multi_reduction <add>, %29, %cst_11 [0] : vector<8x32xf32> to vector<32xf32>
    %31 = vector.shape_cast %30 : vector<32xf32> to vector<1x32xf32>
    %32 = vector.extract_strided_slice %12 {offsets = [8, 1], sizes = [8, 1], strides = [1, 1]} : vector<16x4xf32> to vector<8x1xf32>
    %33 = vector.extract_strided_slice %9 {offsets = [0, 1], sizes = [8, 32], strides = [1, 1]} : vector<8x34xf32> to vector<8x32xf32>
    %34 = vector.broadcast %32 : vector<8x1xf32> to vector<8x32xf32>
    %35 = arith.mulf %34, %33 : vector<8x32xf32>
    %cst_12 = arith.constant dense<0.000000e+00> : vector<32xf32>
    %36 = vector.multi_reduction <add>, %35, %cst_12 [0] : vector<8x32xf32> to vector<32xf32>
    %37 = vector.shape_cast %36 : vector<32xf32> to vector<1x32xf32>
    %38 = arith.addf %31, %37 : vector<1x32xf32>
    %39 = vector.extract_strided_slice %12 {offsets = [0, 2], sizes = [8, 1], strides = [1, 1]} : vector<16x4xf32> to vector<8x1xf32>
    %40 = vector.extract_strided_slice %9 {offsets = [0, 0], sizes = [8, 32], strides = [1, 1]} : vector<8x34xf32> to vector<8x32xf32>
    %41 = vector.broadcast %39 : vector<8x1xf32> to vector<8x32xf32>
    %42 = arith.mulf %41, %40 : vector<8x32xf32>
    %cst_13 = arith.constant dense<0.000000e+00> : vector<32xf32>
    %43 = vector.multi_reduction <add>, %42, %cst_13 [0] : vector<8x32xf32> to vector<32xf32>
    %44 = vector.shape_cast %43 : vector<32xf32> to vector<1x32xf32>
    %45 = vector.extract_strided_slice %12 {offsets = [8, 2], sizes = [8, 1], strides = [1, 1]} : vector<16x4xf32> to vector<8x1xf32>
    %46 = vector.extract_strided_slice %9 {offsets = [0, 1], sizes = [8, 32], strides = [1, 1]} : vector<8x34xf32> to vector<8x32xf32>
    %47 = vector.broadcast %45 : vector<8x1xf32> to vector<8x32xf32>
    %48 = arith.mulf %47, %46 : vector<8x32xf32>
    %cst_14 = arith.constant dense<0.000000e+00> : vector<32xf32>
    %49 = vector.multi_reduction <add>, %48, %cst_14 [0] : vector<8x32xf32> to vector<32xf32>
    %50 = vector.shape_cast %49 : vector<32xf32> to vector<1x32xf32>
    %51 = arith.addf %44, %50 : vector<1x32xf32>
    %52 = vector.extract_strided_slice %12 {offsets = [0, 3], sizes = [8, 1], strides = [1, 1]} : vector<16x4xf32> to vector<8x1xf32>
    %53 = vector.extract_strided_slice %9 {offsets = [0, 0], sizes = [8, 32], strides = [1, 1]} : vector<8x34xf32> to vector<8x32xf32>
    %54 = vector.broadcast %52 : vector<8x1xf32> to vector<8x32xf32>
    %55 = arith.mulf %54, %53 : vector<8x32xf32>
    %cst_15 = arith.constant dense<0.000000e+00> : vector<32xf32>
    %56 = vector.multi_reduction <add>, %55, %cst_15 [0] : vector<8x32xf32> to vector<32xf32>
    %57 = vector.shape_cast %56 : vector<32xf32> to vector<1x32xf32>
    %58 = vector.extract_strided_slice %12 {offsets = [8, 3], sizes = [8, 1], strides = [1, 1]} : vector<16x4xf32> to vector<8x1xf32>
    %59 = vector.extract_strided_slice %9 {offsets = [0, 1], sizes = [8, 32], strides = [1, 1]} : vector<8x34xf32> to vector<8x32xf32>
    %60 = vector.broadcast %58 : vector<8x1xf32> to vector<8x32xf32>
    %61 = arith.mulf %60, %59 : vector<8x32xf32>
    %cst_16 = arith.constant dense<0.000000e+00> : vector<32xf32>
    %62 = vector.multi_reduction <add>, %61, %cst_16 [0] : vector<8x32xf32> to vector<32xf32>
    %63 = vector.shape_cast %62 : vector<32xf32> to vector<1x32xf32>
    %64 = arith.addf %57, %63 : vector<1x32xf32>
    %65 = tpu.concatenate %25, %38, %51, %64 in 0 : vector<1x32xf32>, vector<1x32xf32>, vector<1x32xf32>, vector<1x32xf32> -> vector<4x32xf32>
    %66 = vector.broadcast %10 : vector<4x1xf32> to vector<4x32xf32>
    %67 = arith.addf %65, %66 : vector<4x32xf32>
    %c1 = arith.constant 1 : index
    %c0_17 = arith.constant 0 : index
    %c0_18 = arith.constant 0 : index
    %68 = vector.load %arg2[%c1, %c0_17, %c0_18] : memref<2x16x4xf32, #tpu.memory_space<vmem>>, vector<1x16x4xf32>
    %69 = vector.shape_cast %68 : vector<1x16x4xf32> to vector<16x4xf32>
    %70 = vector.extract_strided_slice %69 {offsets = [0, 0], sizes = [8, 1], strides = [1, 1]} : vector<16x4xf32> to vector<8x1xf32>
    %71 = vector.extract_strided_slice %9 {offsets = [0, 1], sizes = [8, 32], strides = [1, 1]} : vector<8x34xf32> to vector<8x32xf32>
    %72 = vector.broadcast %70 : vector<8x1xf32> to vector<8x32xf32>
    %73 = arith.mulf %72, %71 : vector<8x32xf32>
    %cst_19 = arith.constant dense<0.000000e+00> : vector<32xf32>
    %74 = vector.multi_reduction <add>, %73, %cst_19 [0] : vector<8x32xf32> to vector<32xf32>
    %75 = vector.shape_cast %74 : vector<32xf32> to vector<1x32xf32>
    %76 = vector.extract_strided_slice %69 {offsets = [8, 0], sizes = [8, 1], strides = [1, 1]} : vector<16x4xf32> to vector<8x1xf32>
    %77 = vector.extract_strided_slice %9 {offsets = [0, 2], sizes = [8, 32], strides = [1, 1]} : vector<8x34xf32> to vector<8x32xf32>
    %78 = vector.broadcast %76 : vector<8x1xf32> to vector<8x32xf32>
    %79 = arith.mulf %78, %77 : vector<8x32xf32>
    %cst_20 = arith.constant dense<0.000000e+00> : vector<32xf32>
    %80 = vector.multi_reduction <add>, %79, %cst_20 [0] : vector<8x32xf32> to vector<32xf32>
    %81 = vector.shape_cast %80 : vector<32xf32> to vector<1x32xf32>
    %82 = arith.addf %75, %81 : vector<1x32xf32>
    %83 = vector.extract_strided_slice %69 {offsets = [0, 1], sizes = [8, 1], strides = [1, 1]} : vector<16x4xf32> to vector<8x1xf32>
    %84 = vector.extract_strided_slice %9 {offsets = [0, 1], sizes = [8, 32], strides = [1, 1]} : vector<8x34xf32> to vector<8x32xf32>
    %85 = vector.broadcast %83 : vector<8x1xf32> to vector<8x32xf32>
    %86 = arith.mulf %85, %84 : vector<8x32xf32>
    %cst_21 = arith.constant dense<0.000000e+00> : vector<32xf32>
    %87 = vector.multi_reduction <add>, %86, %cst_21 [0] : vector<8x32xf32> to vector<32xf32>
    %88 = vector.shape_cast %87 : vector<32xf32> to vector<1x32xf32>
    %89 = vector.extract_strided_slice %69 {offsets = [8, 1], sizes = [8, 1], strides = [1, 1]} : vector<16x4xf32> to vector<8x1xf32>
    %90 = vector.extract_strided_slice %9 {offsets = [0, 2], sizes = [8, 32], strides = [1, 1]} : vector<8x34xf32> to vector<8x32xf32>
    %91 = vector.broadcast %89 : vector<8x1xf32> to vector<8x32xf32>
    %92 = arith.mulf %91, %90 : vector<8x32xf32>
    %cst_22 = arith.constant dense<0.000000e+00> : vector<32xf32>
    %93 = vector.multi_reduction <add>, %92, %cst_22 [0] : vector<8x32xf32> to vector<32xf32>
    %94 = vector.shape_cast %93 : vector<32xf32> to vector<1x32xf32>
    %95 = arith.addf %88, %94 : vector<1x32xf32>
    %96 = vector.extract_strided_slice %69 {offsets = [0, 2], sizes = [8, 1], strides = [1, 1]} : vector<16x4xf32> to vector<8x1xf32>
    %97 = vector.extract_strided_slice %9 {offsets = [0, 1], sizes = [8, 32], strides = [1, 1]} : vector<8x34xf32> to vector<8x32xf32>
    %98 = vector.broadcast %96 : vector<8x1xf32> to vector<8x32xf32>
    %99 = arith.mulf %98, %97 : vector<8x32xf32>
    %cst_23 = arith.constant dense<0.000000e+00> : vector<32xf32>
    %100 = vector.multi_reduction <add>, %99, %cst_23 [0] : vector<8x32xf32> to vector<32xf32>
    %101 = vector.shape_cast %100 : vector<32xf32> to vector<1x32xf32>
    %102 = vector.extract_strided_slice %69 {offsets = [8, 2], sizes = [8, 1], strides = [1, 1]} : vector<16x4xf32> to vector<8x1xf32>
    %103 = vector.extract_strided_slice %9 {offsets = [0, 2], sizes = [8, 32], strides = [1, 1]} : vector<8x34xf32> to vector<8x32xf32>
    %104 = vector.broadcast %102 : vector<8x1xf32> to vector<8x32xf32>
    %105 = arith.mulf %104, %103 : vector<8x32xf32>
    %cst_24 = arith.constant dense<0.000000e+00> : vector<32xf32>
    %106 = vector.multi_reduction <add>, %105, %cst_24 [0] : vector<8x32xf32> to vector<32xf32>
    %107 = vector.shape_cast %106 : vector<32xf32> to vector<1x32xf32>
    %108 = arith.addf %101, %107 : vector<1x32xf32>
    %109 = vector.extract_strided_slice %69 {offsets = [0, 3], sizes = [8, 1], strides = [1, 1]} : vector<16x4xf32> to vector<8x1xf32>
    %110 = vector.extract_strided_slice %9 {offsets = [0, 1], sizes = [8, 32], strides = [1, 1]} : vector<8x34xf32> to vector<8x32xf32>
    %111 = vector.broadcast %109 : vector<8x1xf32> to vector<8x32xf32>
    %112 = arith.mulf %111, %110 : vector<8x32xf32>
    %cst_25 = arith.constant dense<0.000000e+00> : vector<32xf32>
    %113 = vector.multi_reduction <add>, %112, %cst_25 [0] : vector<8x32xf32> to vector<32xf32>
    %114 = vector.shape_cast %113 : vector<32xf32> to vector<1x32xf32>
    %115 = vector.extract_strided_slice %69 {offsets = [8, 3], sizes = [8, 1], strides = [1, 1]} : vector<16x4xf32> to vector<8x1xf32>
    %116 = vector.extract_strided_slice %9 {offsets = [0, 2], sizes = [8, 32], strides = [1, 1]} : vector<8x34xf32> to vector<8x32xf32>
    %117 = vector.broadcast %115 : vector<8x1xf32> to vector<8x32xf32>
    %118 = arith.mulf %117, %116 : vector<8x32xf32>
    %cst_26 = arith.constant dense<0.000000e+00> : vector<32xf32>
    %119 = vector.multi_reduction <add>, %118, %cst_26 [0] : vector<8x32xf32> to vector<32xf32>
    %120 = vector.shape_cast %119 : vector<32xf32> to vector<1x32xf32>
    %121 = arith.addf %114, %120 : vector<1x32xf32>
    %122 = tpu.concatenate %82, %95, %108, %121 in 0 : vector<1x32xf32>, vector<1x32xf32>, vector<1x32xf32>, vector<1x32xf32> -> vector<4x32xf32>
    %123 = vector.broadcast %10 : vector<4x1xf32> to vector<4x32xf32>
    %124 = arith.addf %122, %123 : vector<4x32xf32>
    %c0_27 = arith.constant 0 : index
    %c0_28 = arith.constant 0 : index
    %c0_29 = arith.constant 0 : index
    %125 = vector.load %arg8[%c0_27, %c0_28, %c0_29] : memref<2x32x64xf32, #tpu.memory_space<vmem>>, vector<2x32x64xf32>
    %126 = vector.extract_strided_slice %125 {offsets = [0, 0, 0], sizes = [1, 32, 64], strides = [1, 1, 1]} : vector<2x32x64xf32> to vector<1x32x64xf32>
    %127 = vector.shape_cast %126 : vector<1x32x64xf32> to vector<32x64xf32>
    %cst_30 = arith.constant dense<0.000000e+00> : vector<4x64xf32>
    %128 = tpu.matmul %67, %127, %cst_30 {dimension_numbers = #tpu.dot_dimension_numbers<[1], [0], [0], [1], [0, 0, 1, 1], [], []>} : vector<4x32xf32>, vector<32x64xf32>, vector<4x64xf32> -> vector<4x64xf32>
    %129 = vector.extract_strided_slice %125 {offsets = [1, 0, 0], sizes = [1, 32, 64], strides = [1, 1, 1]} : vector<2x32x64xf32> to vector<1x32x64xf32>
    %130 = vector.shape_cast %129 : vector<1x32x64xf32> to vector<32x64xf32>
    %cst_31 = arith.constant dense<0.000000e+00> : vector<4x64xf32>
    %131 = tpu.matmul %124, %130, %cst_31 {dimension_numbers = #tpu.dot_dimension_numbers<[1], [0], [0], [1], [0, 0, 1, 1], [], []>} : vector<4x32xf32>, vector<32x64xf32>, vector<4x64xf32> -> vector<4x64xf32>
    %132 = arith.addf %128, %131 : vector<4x64xf32>
    %133 = vector.extract_strided_slice %132 {offsets = [0, 1], sizes = [4, 1], strides = [1, 1]} : vector<4x64xf32> to vector<4x1xf32>
    %134 = vector.extract_strided_slice %132 {offsets = [0, 62], sizes = [4, 1], strides = [1, 1]} : vector<4x64xf32> to vector<4x1xf32>
    %135 = tpu.concatenate %133, %132, %134 in 1 : vector<4x1xf32>, vector<4x64xf32>, vector<4x1xf32> -> vector<4x66xf32>
    %cst_32 = arith.constant 0.000000e+00 : f32
    %136 = vector.broadcast %cst_32 : f32 to vector<4x66xf32>
    %137 = arith.cmpf oge, %135, %136 : vector<4x66xf32>
    %cst_33 = arith.constant 2.000000e-01 : f32
    %138 = vector.broadcast %cst_33 : f32 to vector<4x66xf32>
    %139 = arith.mulf %138, %135 : vector<4x66xf32>
    %140 = arith.select %137, %135, %139 : vector<4x66xi1>, vector<4x66xf32>
    %c0_34 = arith.constant 0 : index
    %c0_35 = arith.constant 0 : index
    %c0_36 = arith.constant 0 : index
    %141 = vector.load %arg4[%c0_34, %c0_35, %c0_36] : memref<3x12x4xf32, #tpu.memory_space<vmem>>, vector<1x12x4xf32>
    %142 = vector.shape_cast %141 : vector<1x12x4xf32> to vector<12x4xf32>
    %143 = vector.extract_strided_slice %142 {offsets = [0, 0], sizes = [4, 1], strides = [1, 1]} : vector<12x4xf32> to vector<4x1xf32>
    %144 = vector.extract_strided_slice %140 {offsets = [0, 0], sizes = [4, 64], strides = [1, 1]} : vector<4x66xf32> to vector<4x64xf32>
    %145 = vector.broadcast %143 : vector<4x1xf32> to vector<4x64xf32>
    %146 = arith.mulf %145, %144 : vector<4x64xf32>
    %cst_37 = arith.constant dense<0.000000e+00> : vector<64xf32>
    %147 = vector.multi_reduction <add>, %146, %cst_37 [0] : vector<4x64xf32> to vector<64xf32>
    %148 = vector.shape_cast %147 : vector<64xf32> to vector<1x64xf32>
    %149 = vector.extract_strided_slice %142 {offsets = [4, 0], sizes = [4, 1], strides = [1, 1]} : vector<12x4xf32> to vector<4x1xf32>
    %150 = vector.extract_strided_slice %140 {offsets = [0, 1], sizes = [4, 64], strides = [1, 1]} : vector<4x66xf32> to vector<4x64xf32>
    %151 = vector.broadcast %149 : vector<4x1xf32> to vector<4x64xf32>
    %152 = arith.mulf %151, %150 : vector<4x64xf32>
    %cst_38 = arith.constant dense<0.000000e+00> : vector<64xf32>
    %153 = vector.multi_reduction <add>, %152, %cst_38 [0] : vector<4x64xf32> to vector<64xf32>
    %154 = vector.shape_cast %153 : vector<64xf32> to vector<1x64xf32>
    %155 = arith.addf %148, %154 : vector<1x64xf32>
    %156 = vector.extract_strided_slice %142 {offsets = [8, 0], sizes = [4, 1], strides = [1, 1]} : vector<12x4xf32> to vector<4x1xf32>
    %157 = vector.extract_strided_slice %140 {offsets = [0, 2], sizes = [4, 64], strides = [1, 1]} : vector<4x66xf32> to vector<4x64xf32>
    %158 = vector.broadcast %156 : vector<4x1xf32> to vector<4x64xf32>
    %159 = arith.mulf %158, %157 : vector<4x64xf32>
    %cst_39 = arith.constant dense<0.000000e+00> : vector<64xf32>
    %160 = vector.multi_reduction <add>, %159, %cst_39 [0] : vector<4x64xf32> to vector<64xf32>
    %161 = vector.shape_cast %160 : vector<64xf32> to vector<1x64xf32>
    %162 = arith.addf %155, %161 : vector<1x64xf32>
    %163 = vector.extract_strided_slice %142 {offsets = [0, 1], sizes = [4, 1], strides = [1, 1]} : vector<12x4xf32> to vector<4x1xf32>
    %164 = vector.extract_strided_slice %140 {offsets = [0, 0], sizes = [4, 64], strides = [1, 1]} : vector<4x66xf32> to vector<4x64xf32>
    %165 = vector.broadcast %163 : vector<4x1xf32> to vector<4x64xf32>
    %166 = arith.mulf %165, %164 : vector<4x64xf32>
    %cst_40 = arith.constant dense<0.000000e+00> : vector<64xf32>
    %167 = vector.multi_reduction <add>, %166, %cst_40 [0] : vector<4x64xf32> to vector<64xf32>
    %168 = vector.shape_cast %167 : vector<64xf32> to vector<1x64xf32>
    %169 = vector.extract_strided_slice %142 {offsets = [4, 1], sizes = [4, 1], strides = [1, 1]} : vector<12x4xf32> to vector<4x1xf32>
    %170 = vector.extract_strided_slice %140 {offsets = [0, 1], sizes = [4, 64], strides = [1, 1]} : vector<4x66xf32> to vector<4x64xf32>
    %171 = vector.broadcast %169 : vector<4x1xf32> to vector<4x64xf32>
    %172 = arith.mulf %171, %170 : vector<4x64xf32>
    %cst_41 = arith.constant dense<0.000000e+00> : vector<64xf32>
    %173 = vector.multi_reduction <add>, %172, %cst_41 [0] : vector<4x64xf32> to vector<64xf32>
    %174 = vector.shape_cast %173 : vector<64xf32> to vector<1x64xf32>
    %175 = arith.addf %168, %174 : vector<1x64xf32>
    %176 = vector.extract_strided_slice %142 {offsets = [8, 1], sizes = [4, 1], strides = [1, 1]} : vector<12x4xf32> to vector<4x1xf32>
    %177 = vector.extract_strided_slice %140 {offsets = [0, 2], sizes = [4, 64], strides = [1, 1]} : vector<4x66xf32> to vector<4x64xf32>
    %178 = vector.broadcast %176 : vector<4x1xf32> to vector<4x64xf32>
    %179 = arith.mulf %178, %177 : vector<4x64xf32>
    %cst_42 = arith.constant dense<0.000000e+00> : vector<64xf32>
    %180 = vector.multi_reduction <add>, %179, %cst_42 [0] : vector<4x64xf32> to vector<64xf32>
    %181 = vector.shape_cast %180 : vector<64xf32> to vector<1x64xf32>
    %182 = arith.addf %175, %181 : vector<1x64xf32>
    %183 = vector.extract_strided_slice %142 {offsets = [0, 2], sizes = [4, 1], strides = [1, 1]} : vector<12x4xf32> to vector<4x1xf32>
    %184 = vector.extract_strided_slice %140 {offsets = [0, 0], sizes = [4, 64], strides = [1, 1]} : vector<4x66xf32> to vector<4x64xf32>
    %185 = vector.broadcast %183 : vector<4x1xf32> to vector<4x64xf32>
    %186 = arith.mulf %185, %184 : vector<4x64xf32>
    %cst_43 = arith.constant dense<0.000000e+00> : vector<64xf32>
    %187 = vector.multi_reduction <add>, %186, %cst_43 [0] : vector<4x64xf32> to vector<64xf32>
    %188 = vector.shape_cast %187 : vector<64xf32> to vector<1x64xf32>
    %189 = vector.extract_strided_slice %142 {offsets = [4, 2], sizes = [4, 1], strides = [1, 1]} : vector<12x4xf32> to vector<4x1xf32>
    %190 = vector.extract_strided_slice %140 {offsets = [0, 1], sizes = [4, 64], strides = [1, 1]} : vector<4x66xf32> to vector<4x64xf32>
    %191 = vector.broadcast %189 : vector<4x1xf32> to vector<4x64xf32>
    %192 = arith.mulf %191, %190 : vector<4x64xf32>
    %cst_44 = arith.constant dense<0.000000e+00> : vector<64xf32>
    %193 = vector.multi_reduction <add>, %192, %cst_44 [0] : vector<4x64xf32> to vector<64xf32>
    %194 = vector.shape_cast %193 : vector<64xf32> to vector<1x64xf32>
    %195 = arith.addf %188, %194 : vector<1x64xf32>
    %196 = vector.extract_strided_slice %142 {offsets = [8, 2], sizes = [4, 1], strides = [1, 1]} : vector<12x4xf32> to vector<4x1xf32>
    %197 = vector.extract_strided_slice %140 {offsets = [0, 2], sizes = [4, 64], strides = [1, 1]} : vector<4x66xf32> to vector<4x64xf32>
    %198 = vector.broadcast %196 : vector<4x1xf32> to vector<4x64xf32>
    %199 = arith.mulf %198, %197 : vector<4x64xf32>
    %cst_45 = arith.constant dense<0.000000e+00> : vector<64xf32>
    %200 = vector.multi_reduction <add>, %199, %cst_45 [0] : vector<4x64xf32> to vector<64xf32>
    %201 = vector.shape_cast %200 : vector<64xf32> to vector<1x64xf32>
    %202 = arith.addf %195, %201 : vector<1x64xf32>
    %203 = vector.extract_strided_slice %142 {offsets = [0, 3], sizes = [4, 1], strides = [1, 1]} : vector<12x4xf32> to vector<4x1xf32>
    %204 = vector.extract_strided_slice %140 {offsets = [0, 0], sizes = [4, 64], strides = [1, 1]} : vector<4x66xf32> to vector<4x64xf32>
    %205 = vector.broadcast %203 : vector<4x1xf32> to vector<4x64xf32>
    %206 = arith.mulf %205, %204 : vector<4x64xf32>
    %cst_46 = arith.constant dense<0.000000e+00> : vector<64xf32>
    %207 = vector.multi_reduction <add>, %206, %cst_46 [0] : vector<4x64xf32> to vector<64xf32>
    %208 = vector.shape_cast %207 : vector<64xf32> to vector<1x64xf32>
    %209 = vector.extract_strided_slice %142 {offsets = [4, 3], sizes = [4, 1], strides = [1, 1]} : vector<12x4xf32> to vector<4x1xf32>
    %210 = vector.extract_strided_slice %140 {offsets = [0, 1], sizes = [4, 64], strides = [1, 1]} : vector<4x66xf32> to vector<4x64xf32>
    %211 = vector.broadcast %209 : vector<4x1xf32> to vector<4x64xf32>
    %212 = arith.mulf %211, %210 : vector<4x64xf32>
    %cst_47 = arith.constant dense<0.000000e+00> : vector<64xf32>
    %213 = vector.multi_reduction <add>, %212, %cst_47 [0] : vector<4x64xf32> to vector<64xf32>
    %214 = vector.shape_cast %213 : vector<64xf32> to vector<1x64xf32>
    %215 = arith.addf %208, %214 : vector<1x64xf32>
    %216 = vector.extract_strided_slice %142 {offsets = [8, 3], sizes = [4, 1], strides = [1, 1]} : vector<12x4xf32> to vector<4x1xf32>
    %217 = vector.extract_strided_slice %140 {offsets = [0, 2], sizes = [4, 64], strides = [1, 1]} : vector<4x66xf32> to vector<4x64xf32>
    %218 = vector.broadcast %216 : vector<4x1xf32> to vector<4x64xf32>
    %219 = arith.mulf %218, %217 : vector<4x64xf32>
    %cst_48 = arith.constant dense<0.000000e+00> : vector<64xf32>
    %220 = vector.multi_reduction <add>, %219, %cst_48 [0] : vector<4x64xf32> to vector<64xf32>
    %221 = vector.shape_cast %220 : vector<64xf32> to vector<1x64xf32>
    %222 = arith.addf %215, %221 : vector<1x64xf32>
    %223 = tpu.concatenate %162, %182, %202, %222 in 0 : vector<1x64xf32>, vector<1x64xf32>, vector<1x64xf32>, vector<1x64xf32> -> vector<4x64xf32>
    %c0_49 = arith.constant 0 : index
    %c0_50 = arith.constant 0 : index
    %c0_51 = arith.constant 0 : index
    %224 = vector.load %arg5[%c0_49, %c0_50, %c0_51] : memref<3x4x1xf32, #tpu.memory_space<vmem>>, vector<1x4x1xf32>
    %225 = vector.shape_cast %224 : vector<1x4x1xf32> to vector<4x1xf32>
    %226 = vector.broadcast %225 : vector<4x1xf32> to vector<4x64xf32>
    %227 = arith.addf %223, %226 : vector<4x64xf32>
    %cst_52 = arith.constant 0.000000e+00 : f32
    %228 = vector.broadcast %cst_52 : f32 to vector<4x64xf32>
    %229 = arith.cmpf oge, %227, %228 : vector<4x64xf32>
    %cst_53 = arith.constant 2.000000e-01 : f32
    %230 = vector.broadcast %cst_53 : f32 to vector<4x64xf32>
    %231 = arith.mulf %230, %227 : vector<4x64xf32>
    %232 = arith.select %229, %227, %231 : vector<4x64xi1>, vector<4x64xf32>
    %c0_54 = arith.constant 0 : index
    %c0_55 = arith.constant 0 : index
    %c0_56 = arith.constant 0 : index
    %233 = vector.load %arg6[%c0_54, %c0_55, %c0_56] : memref<3x8x4xf32, #tpu.memory_space<vmem>>, vector<1x8x4xf32>
    %234 = vector.shape_cast %233 : vector<1x8x4xf32> to vector<8x4xf32>
    %235 = vector.extract_strided_slice %234 {offsets = [0, 0], sizes = [4, 1], strides = [1, 1]} : vector<8x4xf32> to vector<4x1xf32>
    %236 = vector.broadcast %235 : vector<4x1xf32> to vector<4x64xf32>
    %237 = arith.mulf %236, %232 : vector<4x64xf32>
    %cst_57 = arith.constant dense<0.000000e+00> : vector<64xf32>
    %238 = vector.multi_reduction <add>, %237, %cst_57 [0] : vector<4x64xf32> to vector<64xf32>
    %239 = vector.shape_cast %238 : vector<64xf32> to vector<1x64xf32>
    %240 = vector.extract_strided_slice %234 {offsets = [4, 0], sizes = [4, 1], strides = [1, 1]} : vector<8x4xf32> to vector<4x1xf32>
    %241 = vector.broadcast %240 : vector<4x1xf32> to vector<4x64xf32>
    %242 = arith.mulf %241, %132 : vector<4x64xf32>
    %cst_58 = arith.constant dense<0.000000e+00> : vector<64xf32>
    %243 = vector.multi_reduction <add>, %242, %cst_58 [0] : vector<4x64xf32> to vector<64xf32>
    %244 = vector.shape_cast %243 : vector<64xf32> to vector<1x64xf32>
    %245 = arith.addf %239, %244 : vector<1x64xf32>
    %246 = vector.extract_strided_slice %234 {offsets = [0, 1], sizes = [4, 1], strides = [1, 1]} : vector<8x4xf32> to vector<4x1xf32>
    %247 = vector.broadcast %246 : vector<4x1xf32> to vector<4x64xf32>
    %248 = arith.mulf %247, %232 : vector<4x64xf32>
    %cst_59 = arith.constant dense<0.000000e+00> : vector<64xf32>
    %249 = vector.multi_reduction <add>, %248, %cst_59 [0] : vector<4x64xf32> to vector<64xf32>
    %250 = vector.shape_cast %249 : vector<64xf32> to vector<1x64xf32>
    %251 = vector.extract_strided_slice %234 {offsets = [4, 1], sizes = [4, 1], strides = [1, 1]} : vector<8x4xf32> to vector<4x1xf32>
    %252 = vector.broadcast %251 : vector<4x1xf32> to vector<4x64xf32>
    %253 = arith.mulf %252, %132 : vector<4x64xf32>
    %cst_60 = arith.constant dense<0.000000e+00> : vector<64xf32>
    %254 = vector.multi_reduction <add>, %253, %cst_60 [0] : vector<4x64xf32> to vector<64xf32>
    %255 = vector.shape_cast %254 : vector<64xf32> to vector<1x64xf32>
    %256 = arith.addf %250, %255 : vector<1x64xf32>
    %257 = vector.extract_strided_slice %234 {offsets = [0, 2], sizes = [4, 1], strides = [1, 1]} : vector<8x4xf32> to vector<4x1xf32>
    %258 = vector.broadcast %257 : vector<4x1xf32> to vector<4x64xf32>
    %259 = arith.mulf %258, %232 : vector<4x64xf32>
    %cst_61 = arith.constant dense<0.000000e+00> : vector<64xf32>
    %260 = vector.multi_reduction <add>, %259, %cst_61 [0] : vector<4x64xf32> to vector<64xf32>
    %261 = vector.shape_cast %260 : vector<64xf32> to vector<1x64xf32>
    %262 = vector.extract_strided_slice %234 {offsets = [4, 2], sizes = [4, 1], strides = [1, 1]} : vector<8x4xf32> to vector<4x1xf32>
    %263 = vector.broadcast %262 : vector<4x1xf32> to vector<4x64xf32>
    %264 = arith.mulf %263, %132 : vector<4x64xf32>
    %cst_62 = arith.constant dense<0.000000e+00> : vector<64xf32>
    %265 = vector.multi_reduction <add>, %264, %cst_62 [0] : vector<4x64xf32> to vector<64xf32>
    %266 = vector.shape_cast %265 : vector<64xf32> to vector<1x64xf32>
    %267 = arith.addf %261, %266 : vector<1x64xf32>
    %268 = vector.extract_strided_slice %234 {offsets = [0, 3], sizes = [4, 1], strides = [1, 1]} : vector<8x4xf32> to vector<4x1xf32>
    %269 = vector.broadcast %268 : vector<4x1xf32> to vector<4x64xf32>
    %270 = arith.mulf %269, %232 : vector<4x64xf32>
    %cst_63 = arith.constant dense<0.000000e+00> : vector<64xf32>
    %271 = vector.multi_reduction <add>, %270, %cst_63 [0] : vector<4x64xf32> to vector<64xf32>
    %272 = vector.shape_cast %271 : vector<64xf32> to vector<1x64xf32>
    %273 = vector.extract_strided_slice %234 {offsets = [4, 3], sizes = [4, 1], strides = [1, 1]} : vector<8x4xf32> to vector<4x1xf32>
    %274 = vector.broadcast %273 : vector<4x1xf32> to vector<4x64xf32>
    %275 = arith.mulf %274, %132 : vector<4x64xf32>
    %cst_64 = arith.constant dense<0.000000e+00> : vector<64xf32>
    %276 = vector.multi_reduction <add>, %275, %cst_64 [0] : vector<4x64xf32> to vector<64xf32>
    %277 = vector.shape_cast %276 : vector<64xf32> to vector<1x64xf32>
    %278 = arith.addf %272, %277 : vector<1x64xf32>
    %279 = tpu.concatenate %245, %256, %267, %278 in 0 : vector<1x64xf32>, vector<1x64xf32>, vector<1x64xf32>, vector<1x64xf32> -> vector<4x64xf32>
    %c0_65 = arith.constant 0 : index
    %c0_66 = arith.constant 0 : index
    %c0_67 = arith.constant 0 : index
    %280 = vector.load %arg7[%c0_65, %c0_66, %c0_67] : memref<3x4x1xf32, #tpu.memory_space<vmem>>, vector<1x4x1xf32>
    %281 = vector.shape_cast %280 : vector<1x4x1xf32> to vector<4x1xf32>
    %282 = vector.broadcast %281 : vector<4x1xf32> to vector<4x64xf32>
    %283 = arith.addf %279, %282 : vector<4x64xf32>
    %284 = vector.extract_strided_slice %283 {offsets = [0, 3], sizes = [4, 1], strides = [1, 1]} : vector<4x64xf32> to vector<4x1xf32>
    %285 = vector.extract_strided_slice %283 {offsets = [0, 2], sizes = [4, 1], strides = [1, 1]} : vector<4x64xf32> to vector<4x1xf32>
    %286 = vector.extract_strided_slice %283 {offsets = [0, 1], sizes = [4, 1], strides = [1, 1]} : vector<4x64xf32> to vector<4x1xf32>
    %287 = vector.extract_strided_slice %283 {offsets = [0, 62], sizes = [4, 1], strides = [1, 1]} : vector<4x64xf32> to vector<4x1xf32>
    %288 = vector.extract_strided_slice %283 {offsets = [0, 61], sizes = [4, 1], strides = [1, 1]} : vector<4x64xf32> to vector<4x1xf32>
    %289 = vector.extract_strided_slice %283 {offsets = [0, 60], sizes = [4, 1], strides = [1, 1]} : vector<4x64xf32> to vector<4x1xf32>
    %290 = tpu.concatenate %284, %285, %286, %283, %287, %288, %289 in 1 : vector<4x1xf32>, vector<4x1xf32>, vector<4x1xf32>, vector<4x64xf32>, vector<4x1xf32>, vector<4x1xf32>, vector<4x1xf32> -> vector<4x70xf32>
    %cst_68 = arith.constant 0.000000e+00 : f32
    %291 = vector.broadcast %cst_68 : f32 to vector<4x70xf32>
    %292 = arith.cmpf oge, %290, %291 : vector<4x70xf32>
    %cst_69 = arith.constant 2.000000e-01 : f32
    %293 = vector.broadcast %cst_69 : f32 to vector<4x70xf32>
    %294 = arith.mulf %293, %290 : vector<4x70xf32>
    %295 = arith.select %292, %290, %294 : vector<4x70xi1>, vector<4x70xf32>
    %c1_70 = arith.constant 1 : index
    %c0_71 = arith.constant 0 : index
    %c0_72 = arith.constant 0 : index
    %296 = vector.load %arg4[%c1_70, %c0_71, %c0_72] : memref<3x12x4xf32, #tpu.memory_space<vmem>>, vector<1x12x4xf32>
    %297 = vector.shape_cast %296 : vector<1x12x4xf32> to vector<12x4xf32>
    %298 = vector.extract_strided_slice %297 {offsets = [0, 0], sizes = [4, 1], strides = [1, 1]} : vector<12x4xf32> to vector<4x1xf32>
    %299 = vector.extract_strided_slice %295 {offsets = [0, 0], sizes = [4, 64], strides = [1, 1]} : vector<4x70xf32> to vector<4x64xf32>
    %300 = vector.broadcast %298 : vector<4x1xf32> to vector<4x64xf32>
    %301 = arith.mulf %300, %299 : vector<4x64xf32>
    %cst_73 = arith.constant dense<0.000000e+00> : vector<64xf32>
    %302 = vector.multi_reduction <add>, %301, %cst_73 [0] : vector<4x64xf32> to vector<64xf32>
    %303 = vector.shape_cast %302 : vector<64xf32> to vector<1x64xf32>
    %304 = vector.extract_strided_slice %297 {offsets = [4, 0], sizes = [4, 1], strides = [1, 1]} : vector<12x4xf32> to vector<4x1xf32>
    %305 = vector.extract_strided_slice %295 {offsets = [0, 3], sizes = [4, 64], strides = [1, 1]} : vector<4x70xf32> to vector<4x64xf32>
    %306 = vector.broadcast %304 : vector<4x1xf32> to vector<4x64xf32>
    %307 = arith.mulf %306, %305 : vector<4x64xf32>
    %cst_74 = arith.constant dense<0.000000e+00> : vector<64xf32>
    %308 = vector.multi_reduction <add>, %307, %cst_74 [0] : vector<4x64xf32> to vector<64xf32>
    %309 = vector.shape_cast %308 : vector<64xf32> to vector<1x64xf32>
    %310 = arith.addf %303, %309 : vector<1x64xf32>
    %311 = vector.extract_strided_slice %297 {offsets = [8, 0], sizes = [4, 1], strides = [1, 1]} : vector<12x4xf32> to vector<4x1xf32>
    %312 = vector.extract_strided_slice %295 {offsets = [0, 6], sizes = [4, 64], strides = [1, 1]} : vector<4x70xf32> to vector<4x64xf32>
    %313 = vector.broadcast %311 : vector<4x1xf32> to vector<4x64xf32>
    %314 = arith.mulf %313, %312 : vector<4x64xf32>
    %cst_75 = arith.constant dense<0.000000e+00> : vector<64xf32>
    %315 = vector.multi_reduction <add>, %314, %cst_75 [0] : vector<4x64xf32> to vector<64xf32>
    %316 = vector.shape_cast %315 : vector<64xf32> to vector<1x64xf32>
    %317 = arith.addf %310, %316 : vector<1x64xf32>
    %318 = vector.extract_strided_slice %297 {offsets = [0, 1], sizes = [4, 1], strides = [1, 1]} : vector<12x4xf32> to vector<4x1xf32>
    %319 = vector.extract_strided_slice %295 {offsets = [0, 0], sizes = [4, 64], strides = [1, 1]} : vector<4x70xf32> to vector<4x64xf32>
    %320 = vector.broadcast %318 : vector<4x1xf32> to vector<4x64xf32>
    %321 = arith.mulf %320, %319 : vector<4x64xf32>
    %cst_76 = arith.constant dense<0.000000e+00> : vector<64xf32>
    %322 = vector.multi_reduction <add>, %321, %cst_76 [0] : vector<4x64xf32> to vector<64xf32>
    %323 = vector.shape_cast %322 : vector<64xf32> to vector<1x64xf32>
    %324 = vector.extract_strided_slice %297 {offsets = [4, 1], sizes = [4, 1], strides = [1, 1]} : vector<12x4xf32> to vector<4x1xf32>
    %325 = vector.extract_strided_slice %295 {offsets = [0, 3], sizes = [4, 64], strides = [1, 1]} : vector<4x70xf32> to vector<4x64xf32>
    %326 = vector.broadcast %324 : vector<4x1xf32> to vector<4x64xf32>
    %327 = arith.mulf %326, %325 : vector<4x64xf32>
    %cst_77 = arith.constant dense<0.000000e+00> : vector<64xf32>
    %328 = vector.multi_reduction <add>, %327, %cst_77 [0] : vector<4x64xf32> to vector<64xf32>
    %329 = vector.shape_cast %328 : vector<64xf32> to vector<1x64xf32>
    %330 = arith.addf %323, %329 : vector<1x64xf32>
    %331 = vector.extract_strided_slice %297 {offsets = [8, 1], sizes = [4, 1], strides = [1, 1]} : vector<12x4xf32> to vector<4x1xf32>
    %332 = vector.extract_strided_slice %295 {offsets = [0, 6], sizes = [4, 64], strides = [1, 1]} : vector<4x70xf32> to vector<4x64xf32>
    %333 = vector.broadcast %331 : vector<4x1xf32> to vector<4x64xf32>
    %334 = arith.mulf %333, %332 : vector<4x64xf32>
    %cst_78 = arith.constant dense<0.000000e+00> : vector<64xf32>
    %335 = vector.multi_reduction <add>, %334, %cst_78 [0] : vector<4x64xf32> to vector<64xf32>
    %336 = vector.shape_cast %335 : vector<64xf32> to vector<1x64xf32>
    %337 = arith.addf %330, %336 : vector<1x64xf32>
    %338 = vector.extract_strided_slice %297 {offsets = [0, 2], sizes = [4, 1], strides = [1, 1]} : vector<12x4xf32> to vector<4x1xf32>
    %339 = vector.extract_strided_slice %295 {offsets = [0, 0], sizes = [4, 64], strides = [1, 1]} : vector<4x70xf32> to vector<4x64xf32>
    %340 = vector.broadcast %338 : vector<4x1xf32> to vector<4x64xf32>
    %341 = arith.mulf %340, %339 : vector<4x64xf32>
    %cst_79 = arith.constant dense<0.000000e+00> : vector<64xf32>
    %342 = vector.multi_reduction <add>, %341, %cst_79 [0] : vector<4x64xf32> to vector<64xf32>
    %343 = vector.shape_cast %342 : vector<64xf32> to vector<1x64xf32>
    %344 = vector.extract_strided_slice %297 {offsets = [4, 2], sizes = [4, 1], strides = [1, 1]} : vector<12x4xf32> to vector<4x1xf32>
    %345 = vector.extract_strided_slice %295 {offsets = [0, 3], sizes = [4, 64], strides = [1, 1]} : vector<4x70xf32> to vector<4x64xf32>
    %346 = vector.broadcast %344 : vector<4x1xf32> to vector<4x64xf32>
    %347 = arith.mulf %346, %345 : vector<4x64xf32>
    %cst_80 = arith.constant dense<0.000000e+00> : vector<64xf32>
    %348 = vector.multi_reduction <add>, %347, %cst_80 [0] : vector<4x64xf32> to vector<64xf32>
    %349 = vector.shape_cast %348 : vector<64xf32> to vector<1x64xf32>
    %350 = arith.addf %343, %349 : vector<1x64xf32>
    %351 = vector.extract_strided_slice %297 {offsets = [8, 2], sizes = [4, 1], strides = [1, 1]} : vector<12x4xf32> to vector<4x1xf32>
    %352 = vector.extract_strided_slice %295 {offsets = [0, 6], sizes = [4, 64], strides = [1, 1]} : vector<4x70xf32> to vector<4x64xf32>
    %353 = vector.broadcast %351 : vector<4x1xf32> to vector<4x64xf32>
    %354 = arith.mulf %353, %352 : vector<4x64xf32>
    %cst_81 = arith.constant dense<0.000000e+00> : vector<64xf32>
    %355 = vector.multi_reduction <add>, %354, %cst_81 [0] : vector<4x64xf32> to vector<64xf32>
    %356 = vector.shape_cast %355 : vector<64xf32> to vector<1x64xf32>
    %357 = arith.addf %350, %356 : vector<1x64xf32>
    %358 = vector.extract_strided_slice %297 {offsets = [0, 3], sizes = [4, 1], strides = [1, 1]} : vector<12x4xf32> to vector<4x1xf32>
    %359 = vector.extract_strided_slice %295 {offsets = [0, 0], sizes = [4, 64], strides = [1, 1]} : vector<4x70xf32> to vector<4x64xf32>
    %360 = vector.broadcast %358 : vector<4x1xf32> to vector<4x64xf32>
    %361 = arith.mulf %360, %359 : vector<4x64xf32>
    %cst_82 = arith.constant dense<0.000000e+00> : vector<64xf32>
    %362 = vector.multi_reduction <add>, %361, %cst_82 [0] : vector<4x64xf32> to vector<64xf32>
    %363 = vector.shape_cast %362 : vector<64xf32> to vector<1x64xf32>
    %364 = vector.extract_strided_slice %297 {offsets = [4, 3], sizes = [4, 1], strides = [1, 1]} : vector<12x4xf32> to vector<4x1xf32>
    %365 = vector.extract_strided_slice %295 {offsets = [0, 3], sizes = [4, 64], strides = [1, 1]} : vector<4x70xf32> to vector<4x64xf32>
    %366 = vector.broadcast %364 : vector<4x1xf32> to vector<4x64xf32>
    %367 = arith.mulf %366, %365 : vector<4x64xf32>
    %cst_83 = arith.constant dense<0.000000e+00> : vector<64xf32>
    %368 = vector.multi_reduction <add>, %367, %cst_83 [0] : vector<4x64xf32> to vector<64xf32>
    %369 = vector.shape_cast %368 : vector<64xf32> to vector<1x64xf32>
    %370 = arith.addf %363, %369 : vector<1x64xf32>
    %371 = vector.extract_strided_slice %297 {offsets = [8, 3], sizes = [4, 1], strides = [1, 1]} : vector<12x4xf32> to vector<4x1xf32>
    %372 = vector.extract_strided_slice %295 {offsets = [0, 6], sizes = [4, 64], strides = [1, 1]} : vector<4x70xf32> to vector<4x64xf32>
    %373 = vector.broadcast %371 : vector<4x1xf32> to vector<4x64xf32>
    %374 = arith.mulf %373, %372 : vector<4x64xf32>
    %cst_84 = arith.constant dense<0.000000e+00> : vector<64xf32>
    %375 = vector.multi_reduction <add>, %374, %cst_84 [0] : vector<4x64xf32> to vector<64xf32>
    %376 = vector.shape_cast %375 : vector<64xf32> to vector<1x64xf32>
    %377 = arith.addf %370, %376 : vector<1x64xf32>
    %378 = tpu.concatenate %317, %337, %357, %377 in 0 : vector<1x64xf32>, vector<1x64xf32>, vector<1x64xf32>, vector<1x64xf32> -> vector<4x64xf32>
    %c1_85 = arith.constant 1 : index
    %c0_86 = arith.constant 0 : index
    %c0_87 = arith.constant 0 : index
    %379 = vector.load %arg5[%c1_85, %c0_86, %c0_87] : memref<3x4x1xf32, #tpu.memory_space<vmem>>, vector<1x4x1xf32>
    %380 = vector.shape_cast %379 : vector<1x4x1xf32> to vector<4x1xf32>
    %381 = vector.broadcast %380 : vector<4x1xf32> to vector<4x64xf32>
    %382 = arith.addf %378, %381 : vector<4x64xf32>
    %cst_88 = arith.constant 0.000000e+00 : f32
    %383 = vector.broadcast %cst_88 : f32 to vector<4x64xf32>
    %384 = arith.cmpf oge, %382, %383 : vector<4x64xf32>
    %cst_89 = arith.constant 2.000000e-01 : f32
    %385 = vector.broadcast %cst_89 : f32 to vector<4x64xf32>
    %386 = arith.mulf %385, %382 : vector<4x64xf32>
    %387 = arith.select %384, %382, %386 : vector<4x64xi1>, vector<4x64xf32>
    %c1_90 = arith.constant 1 : index
    %c0_91 = arith.constant 0 : index
    %c0_92 = arith.constant 0 : index
    %388 = vector.load %arg6[%c1_90, %c0_91, %c0_92] : memref<3x8x4xf32, #tpu.memory_space<vmem>>, vector<1x8x4xf32>
    %389 = vector.shape_cast %388 : vector<1x8x4xf32> to vector<8x4xf32>
    %390 = vector.extract_strided_slice %389 {offsets = [0, 0], sizes = [4, 1], strides = [1, 1]} : vector<8x4xf32> to vector<4x1xf32>
    %391 = vector.broadcast %390 : vector<4x1xf32> to vector<4x64xf32>
    %392 = arith.mulf %391, %387 : vector<4x64xf32>
    %cst_93 = arith.constant dense<0.000000e+00> : vector<64xf32>
    %393 = vector.multi_reduction <add>, %392, %cst_93 [0] : vector<4x64xf32> to vector<64xf32>
    %394 = vector.shape_cast %393 : vector<64xf32> to vector<1x64xf32>
    %395 = vector.extract_strided_slice %389 {offsets = [4, 0], sizes = [4, 1], strides = [1, 1]} : vector<8x4xf32> to vector<4x1xf32>
    %396 = vector.broadcast %395 : vector<4x1xf32> to vector<4x64xf32>
    %397 = arith.mulf %396, %283 : vector<4x64xf32>
    %cst_94 = arith.constant dense<0.000000e+00> : vector<64xf32>
    %398 = vector.multi_reduction <add>, %397, %cst_94 [0] : vector<4x64xf32> to vector<64xf32>
    %399 = vector.shape_cast %398 : vector<64xf32> to vector<1x64xf32>
    %400 = arith.addf %394, %399 : vector<1x64xf32>
    %401 = vector.extract_strided_slice %389 {offsets = [0, 1], sizes = [4, 1], strides = [1, 1]} : vector<8x4xf32> to vector<4x1xf32>
    %402 = vector.broadcast %401 : vector<4x1xf32> to vector<4x64xf32>
    %403 = arith.mulf %402, %387 : vector<4x64xf32>
    %cst_95 = arith.constant dense<0.000000e+00> : vector<64xf32>
    %404 = vector.multi_reduction <add>, %403, %cst_95 [0] : vector<4x64xf32> to vector<64xf32>
    %405 = vector.shape_cast %404 : vector<64xf32> to vector<1x64xf32>
    %406 = vector.extract_strided_slice %389 {offsets = [4, 1], sizes = [4, 1], strides = [1, 1]} : vector<8x4xf32> to vector<4x1xf32>
    %407 = vector.broadcast %406 : vector<4x1xf32> to vector<4x64xf32>
    %408 = arith.mulf %407, %283 : vector<4x64xf32>
    %cst_96 = arith.constant dense<0.000000e+00> : vector<64xf32>
    %409 = vector.multi_reduction <add>, %408, %cst_96 [0] : vector<4x64xf32> to vector<64xf32>
    %410 = vector.shape_cast %409 : vector<64xf32> to vector<1x64xf32>
    %411 = arith.addf %405, %410 : vector<1x64xf32>
    %412 = vector.extract_strided_slice %389 {offsets = [0, 2], sizes = [4, 1], strides = [1, 1]} : vector<8x4xf32> to vector<4x1xf32>
    %413 = vector.broadcast %412 : vector<4x1xf32> to vector<4x64xf32>
    %414 = arith.mulf %413, %387 : vector<4x64xf32>
    %cst_97 = arith.constant dense<0.000000e+00> : vector<64xf32>
    %415 = vector.multi_reduction <add>, %414, %cst_97 [0] : vector<4x64xf32> to vector<64xf32>
    %416 = vector.shape_cast %415 : vector<64xf32> to vector<1x64xf32>
    %417 = vector.extract_strided_slice %389 {offsets = [4, 2], sizes = [4, 1], strides = [1, 1]} : vector<8x4xf32> to vector<4x1xf32>
    %418 = vector.broadcast %417 : vector<4x1xf32> to vector<4x64xf32>
    %419 = arith.mulf %418, %283 : vector<4x64xf32>
    %cst_98 = arith.constant dense<0.000000e+00> : vector<64xf32>
    %420 = vector.multi_reduction <add>, %419, %cst_98 [0] : vector<4x64xf32> to vector<64xf32>
    %421 = vector.shape_cast %420 : vector<64xf32> to vector<1x64xf32>
    %422 = arith.addf %416, %421 : vector<1x64xf32>
    %423 = vector.extract_strided_slice %389 {offsets = [0, 3], sizes = [4, 1], strides = [1, 1]} : vector<8x4xf32> to vector<4x1xf32>
    %424 = vector.broadcast %423 : vector<4x1xf32> to vector<4x64xf32>
    %425 = arith.mulf %424, %387 : vector<4x64xf32>
    %cst_99 = arith.constant dense<0.000000e+00> : vector<64xf32>
    %426 = vector.multi_reduction <add>, %425, %cst_99 [0] : vector<4x64xf32> to vector<64xf32>
    %427 = vector.shape_cast %426 : vector<64xf32> to vector<1x64xf32>
    %428 = vector.extract_strided_slice %389 {offsets = [4, 3], sizes = [4, 1], strides = [1, 1]} : vector<8x4xf32> to vector<4x1xf32>
    %429 = vector.broadcast %428 : vector<4x1xf32> to vector<4x64xf32>
    %430 = arith.mulf %429, %283 : vector<4x64xf32>
    %cst_100 = arith.constant dense<0.000000e+00> : vector<64xf32>
    %431 = vector.multi_reduction <add>, %430, %cst_100 [0] : vector<4x64xf32> to vector<64xf32>
    %432 = vector.shape_cast %431 : vector<64xf32> to vector<1x64xf32>
    %433 = arith.addf %427, %432 : vector<1x64xf32>
    %434 = tpu.concatenate %400, %411, %422, %433 in 0 : vector<1x64xf32>, vector<1x64xf32>, vector<1x64xf32>, vector<1x64xf32> -> vector<4x64xf32>
    %c1_101 = arith.constant 1 : index
    %c0_102 = arith.constant 0 : index
    %c0_103 = arith.constant 0 : index
    %435 = vector.load %arg7[%c1_101, %c0_102, %c0_103] : memref<3x4x1xf32, #tpu.memory_space<vmem>>, vector<1x4x1xf32>
    %436 = vector.shape_cast %435 : vector<1x4x1xf32> to vector<4x1xf32>
    %437 = vector.broadcast %436 : vector<4x1xf32> to vector<4x64xf32>
    %438 = arith.addf %434, %437 : vector<4x64xf32>
    %439 = vector.extract_strided_slice %438 {offsets = [0, 9], sizes = [4, 1], strides = [1, 1]} : vector<4x64xf32> to vector<4x1xf32>
    %440 = vector.extract_strided_slice %438 {offsets = [0, 8], sizes = [4, 1], strides = [1, 1]} : vector<4x64xf32> to vector<4x1xf32>
    %441 = vector.extract_strided_slice %438 {offsets = [0, 7], sizes = [4, 1], strides = [1, 1]} : vector<4x64xf32> to vector<4x1xf32>
    %442 = vector.extract_strided_slice %438 {offsets = [0, 6], sizes = [4, 1], strides = [1, 1]} : vector<4x64xf32> to vector<4x1xf32>
    %443 = vector.extract_strided_slice %438 {offsets = [0, 5], sizes = [4, 1], strides = [1, 1]} : vector<4x64xf32> to vector<4x1xf32>
    %444 = vector.extract_strided_slice %438 {offsets = [0, 4], sizes = [4, 1], strides = [1, 1]} : vector<4x64xf32> to vector<4x1xf32>
    %445 = vector.extract_strided_slice %438 {offsets = [0, 3], sizes = [4, 1], strides = [1, 1]} : vector<4x64xf32> to vector<4x1xf32>
    %446 = vector.extract_strided_slice %438 {offsets = [0, 2], sizes = [4, 1], strides = [1, 1]} : vector<4x64xf32> to vector<4x1xf32>
    %447 = vector.extract_strided_slice %438 {offsets = [0, 1], sizes = [4, 1], strides = [1, 1]} : vector<4x64xf32> to vector<4x1xf32>
    %448 = vector.extract_strided_slice %438 {offsets = [0, 62], sizes = [4, 1], strides = [1, 1]} : vector<4x64xf32> to vector<4x1xf32>
    %449 = vector.extract_strided_slice %438 {offsets = [0, 61], sizes = [4, 1], strides = [1, 1]} : vector<4x64xf32> to vector<4x1xf32>
    %450 = vector.extract_strided_slice %438 {offsets = [0, 60], sizes = [4, 1], strides = [1, 1]} : vector<4x64xf32> to vector<4x1xf32>
    %451 = vector.extract_strided_slice %438 {offsets = [0, 59], sizes = [4, 1], strides = [1, 1]} : vector<4x64xf32> to vector<4x1xf32>
    %452 = vector.extract_strided_slice %438 {offsets = [0, 58], sizes = [4, 1], strides = [1, 1]} : vector<4x64xf32> to vector<4x1xf32>
    %453 = vector.extract_strided_slice %438 {offsets = [0, 57], sizes = [4, 1], strides = [1, 1]} : vector<4x64xf32> to vector<4x1xf32>
    %454 = vector.extract_strided_slice %438 {offsets = [0, 56], sizes = [4, 1], strides = [1, 1]} : vector<4x64xf32> to vector<4x1xf32>
    %455 = vector.extract_strided_slice %438 {offsets = [0, 55], sizes = [4, 1], strides = [1, 1]} : vector<4x64xf32> to vector<4x1xf32>
    %456 = vector.extract_strided_slice %438 {offsets = [0, 54], sizes = [4, 1], strides = [1, 1]} : vector<4x64xf32> to vector<4x1xf32>
    %457 = tpu.concatenate %439, %440, %441, %442, %443, %444, %445, %446, %447, %438, %448, %449, %450, %451, %452, %453 in 1 : vector<4x1xf32>, vector<4x1xf32>, vector<4x1xf32>, vector<4x1xf32>, vector<4x1xf32>, vector<4x1xf32>, vector<4x1xf32>, vector<4x1xf32>, vector<4x1xf32>, vector<4x64xf32>, vector<4x1xf32>, vector<4x1xf32>, vector<4x1xf32>, vector<4x1xf32>, vector<4x1xf32>, vector<4x1xf32> -> vector<4x79xf32>
    %458 = tpu.concatenate %454, %455, %456 in 1 : vector<4x1xf32>, vector<4x1xf32>, vector<4x1xf32> -> vector<4x3xf32>
    %459 = tpu.concatenate %457, %458 in 1 : vector<4x79xf32>, vector<4x3xf32> -> vector<4x82xf32>
    %cst_104 = arith.constant 0.000000e+00 : f32
    %460 = vector.broadcast %cst_104 : f32 to vector<4x82xf32>
    %461 = arith.cmpf oge, %459, %460 : vector<4x82xf32>
    %cst_105 = arith.constant 2.000000e-01 : f32
    %462 = vector.broadcast %cst_105 : f32 to vector<4x82xf32>
    %463 = arith.mulf %462, %459 : vector<4x82xf32>
    %464 = arith.select %461, %459, %463 : vector<4x82xi1>, vector<4x82xf32>
    %c2 = arith.constant 2 : index
    %c0_106 = arith.constant 0 : index
    %c0_107 = arith.constant 0 : index
    %465 = vector.load %arg4[%c2, %c0_106, %c0_107] : memref<3x12x4xf32, #tpu.memory_space<vmem>>, vector<1x12x4xf32>
    %466 = vector.shape_cast %465 : vector<1x12x4xf32> to vector<12x4xf32>
    %467 = vector.extract_strided_slice %466 {offsets = [0, 0], sizes = [4, 1], strides = [1, 1]} : vector<12x4xf32> to vector<4x1xf32>
    %468 = vector.extract_strided_slice %464 {offsets = [0, 0], sizes = [4, 64], strides = [1, 1]} : vector<4x82xf32> to vector<4x64xf32>
    %469 = vector.broadcast %467 : vector<4x1xf32> to vector<4x64xf32>
    %470 = arith.mulf %469, %468 : vector<4x64xf32>
    %cst_108 = arith.constant dense<0.000000e+00> : vector<64xf32>
    %471 = vector.multi_reduction <add>, %470, %cst_108 [0] : vector<4x64xf32> to vector<64xf32>
    %472 = vector.shape_cast %471 : vector<64xf32> to vector<1x64xf32>
    %473 = vector.extract_strided_slice %466 {offsets = [4, 0], sizes = [4, 1], strides = [1, 1]} : vector<12x4xf32> to vector<4x1xf32>
    %474 = vector.extract_strided_slice %464 {offsets = [0, 9], sizes = [4, 64], strides = [1, 1]} : vector<4x82xf32> to vector<4x64xf32>
    %475 = vector.broadcast %473 : vector<4x1xf32> to vector<4x64xf32>
    %476 = arith.mulf %475, %474 : vector<4x64xf32>
    %cst_109 = arith.constant dense<0.000000e+00> : vector<64xf32>
    %477 = vector.multi_reduction <add>, %476, %cst_109 [0] : vector<4x64xf32> to vector<64xf32>
    %478 = vector.shape_cast %477 : vector<64xf32> to vector<1x64xf32>
    %479 = arith.addf %472, %478 : vector<1x64xf32>
    %480 = vector.extract_strided_slice %466 {offsets = [8, 0], sizes = [4, 1], strides = [1, 1]} : vector<12x4xf32> to vector<4x1xf32>
    %481 = vector.extract_strided_slice %464 {offsets = [0, 18], sizes = [4, 64], strides = [1, 1]} : vector<4x82xf32> to vector<4x64xf32>
    %482 = vector.broadcast %480 : vector<4x1xf32> to vector<4x64xf32>
    %483 = arith.mulf %482, %481 : vector<4x64xf32>
    %cst_110 = arith.constant dense<0.000000e+00> : vector<64xf32>
    %484 = vector.multi_reduction <add>, %483, %cst_110 [0] : vector<4x64xf32> to vector<64xf32>
    %485 = vector.shape_cast %484 : vector<64xf32> to vector<1x64xf32>
    %486 = arith.addf %479, %485 : vector<1x64xf32>
    %487 = vector.extract_strided_slice %466 {offsets = [0, 1], sizes = [4, 1], strides = [1, 1]} : vector<12x4xf32> to vector<4x1xf32>
    %488 = vector.extract_strided_slice %464 {offsets = [0, 0], sizes = [4, 64], strides = [1, 1]} : vector<4x82xf32> to vector<4x64xf32>
    %489 = vector.broadcast %487 : vector<4x1xf32> to vector<4x64xf32>
    %490 = arith.mulf %489, %488 : vector<4x64xf32>
    %cst_111 = arith.constant dense<0.000000e+00> : vector<64xf32>
    %491 = vector.multi_reduction <add>, %490, %cst_111 [0] : vector<4x64xf32> to vector<64xf32>
    %492 = vector.shape_cast %491 : vector<64xf32> to vector<1x64xf32>
    %493 = vector.extract_strided_slice %466 {offsets = [4, 1], sizes = [4, 1], strides = [1, 1]} : vector<12x4xf32> to vector<4x1xf32>
    %494 = vector.extract_strided_slice %464 {offsets = [0, 9], sizes = [4, 64], strides = [1, 1]} : vector<4x82xf32> to vector<4x64xf32>
    %495 = vector.broadcast %493 : vector<4x1xf32> to vector<4x64xf32>
    %496 = arith.mulf %495, %494 : vector<4x64xf32>
    %cst_112 = arith.constant dense<0.000000e+00> : vector<64xf32>
    %497 = vector.multi_reduction <add>, %496, %cst_112 [0] : vector<4x64xf32> to vector<64xf32>
    %498 = vector.shape_cast %497 : vector<64xf32> to vector<1x64xf32>
    %499 = arith.addf %492, %498 : vector<1x64xf32>
    %500 = vector.extract_strided_slice %466 {offsets = [8, 1], sizes = [4, 1], strides = [1, 1]} : vector<12x4xf32> to vector<4x1xf32>
    %501 = vector.extract_strided_slice %464 {offsets = [0, 18], sizes = [4, 64], strides = [1, 1]} : vector<4x82xf32> to vector<4x64xf32>
    %502 = vector.broadcast %500 : vector<4x1xf32> to vector<4x64xf32>
    %503 = arith.mulf %502, %501 : vector<4x64xf32>
    %cst_113 = arith.constant dense<0.000000e+00> : vector<64xf32>
    %504 = vector.multi_reduction <add>, %503, %cst_113 [0] : vector<4x64xf32> to vector<64xf32>
    %505 = vector.shape_cast %504 : vector<64xf32> to vector<1x64xf32>
    %506 = arith.addf %499, %505 : vector<1x64xf32>
    %507 = vector.extract_strided_slice %466 {offsets = [0, 2], sizes = [4, 1], strides = [1, 1]} : vector<12x4xf32> to vector<4x1xf32>
    %508 = vector.extract_strided_slice %464 {offsets = [0, 0], sizes = [4, 64], strides = [1, 1]} : vector<4x82xf32> to vector<4x64xf32>
    %509 = vector.broadcast %507 : vector<4x1xf32> to vector<4x64xf32>
    %510 = arith.mulf %509, %508 : vector<4x64xf32>
    %cst_114 = arith.constant dense<0.000000e+00> : vector<64xf32>
    %511 = vector.multi_reduction <add>, %510, %cst_114 [0] : vector<4x64xf32> to vector<64xf32>
    %512 = vector.shape_cast %511 : vector<64xf32> to vector<1x64xf32>
    %513 = vector.extract_strided_slice %466 {offsets = [4, 2], sizes = [4, 1], strides = [1, 1]} : vector<12x4xf32> to vector<4x1xf32>
    %514 = vector.extract_strided_slice %464 {offsets = [0, 9], sizes = [4, 64], strides = [1, 1]} : vector<4x82xf32> to vector<4x64xf32>
    %515 = vector.broadcast %513 : vector<4x1xf32> to vector<4x64xf32>
    %516 = arith.mulf %515, %514 : vector<4x64xf32>
    %cst_115 = arith.constant dense<0.000000e+00> : vector<64xf32>
    %517 = vector.multi_reduction <add>, %516, %cst_115 [0] : vector<4x64xf32> to vector<64xf32>
    %518 = vector.shape_cast %517 : vector<64xf32> to vector<1x64xf32>
    %519 = arith.addf %512, %518 : vector<1x64xf32>
    %520 = vector.extract_strided_slice %466 {offsets = [8, 2], sizes = [4, 1], strides = [1, 1]} : vector<12x4xf32> to vector<4x1xf32>
    %521 = vector.extract_strided_slice %464 {offsets = [0, 18], sizes = [4, 64], strides = [1, 1]} : vector<4x82xf32> to vector<4x64xf32>
    %522 = vector.broadcast %520 : vector<4x1xf32> to vector<4x64xf32>
    %523 = arith.mulf %522, %521 : vector<4x64xf32>
    %cst_116 = arith.constant dense<0.000000e+00> : vector<64xf32>
    %524 = vector.multi_reduction <add>, %523, %cst_116 [0] : vector<4x64xf32> to vector<64xf32>
    %525 = vector.shape_cast %524 : vector<64xf32> to vector<1x64xf32>
    %526 = arith.addf %519, %525 : vector<1x64xf32>
    %527 = vector.extract_strided_slice %466 {offsets = [0, 3], sizes = [4, 1], strides = [1, 1]} : vector<12x4xf32> to vector<4x1xf32>
    %528 = vector.extract_strided_slice %464 {offsets = [0, 0], sizes = [4, 64], strides = [1, 1]} : vector<4x82xf32> to vector<4x64xf32>
    %529 = vector.broadcast %527 : vector<4x1xf32> to vector<4x64xf32>
    %530 = arith.mulf %529, %528 : vector<4x64xf32>
    %cst_117 = arith.constant dense<0.000000e+00> : vector<64xf32>
    %531 = vector.multi_reduction <add>, %530, %cst_117 [0] : vector<4x64xf32> to vector<64xf32>
    %532 = vector.shape_cast %531 : vector<64xf32> to vector<1x64xf32>
    %533 = vector.extract_strided_slice %466 {offsets = [4, 3], sizes = [4, 1], strides = [1, 1]} : vector<12x4xf32> to vector<4x1xf32>
    %534 = vector.extract_strided_slice %464 {offsets = [0, 9], sizes = [4, 64], strides = [1, 1]} : vector<4x82xf32> to vector<4x64xf32>
    %535 = vector.broadcast %533 : vector<4x1xf32> to vector<4x64xf32>
    %536 = arith.mulf %535, %534 : vector<4x64xf32>
    %cst_118 = arith.constant dense<0.000000e+00> : vector<64xf32>
    %537 = vector.multi_reduction <add>, %536, %cst_118 [0] : vector<4x64xf32> to vector<64xf32>
    %538 = vector.shape_cast %537 : vector<64xf32> to vector<1x64xf32>
    %539 = arith.addf %532, %538 : vector<1x64xf32>
    %540 = vector.extract_strided_slice %466 {offsets = [8, 3], sizes = [4, 1], strides = [1, 1]} : vector<12x4xf32> to vector<4x1xf32>
    %541 = vector.extract_strided_slice %464 {offsets = [0, 18], sizes = [4, 64], strides = [1, 1]} : vector<4x82xf32> to vector<4x64xf32>
    %542 = vector.broadcast %540 : vector<4x1xf32> to vector<4x64xf32>
    %543 = arith.mulf %542, %541 : vector<4x64xf32>
    %cst_119 = arith.constant dense<0.000000e+00> : vector<64xf32>
    %544 = vector.multi_reduction <add>, %543, %cst_119 [0] : vector<4x64xf32> to vector<64xf32>
    %545 = vector.shape_cast %544 : vector<64xf32> to vector<1x64xf32>
    %546 = arith.addf %539, %545 : vector<1x64xf32>
    %547 = tpu.concatenate %486, %506, %526, %546 in 0 : vector<1x64xf32>, vector<1x64xf32>, vector<1x64xf32>, vector<1x64xf32> -> vector<4x64xf32>
    %c2_120 = arith.constant 2 : index
    %c0_121 = arith.constant 0 : index
    %c0_122 = arith.constant 0 : index
    %548 = vector.load %arg5[%c2_120, %c0_121, %c0_122] : memref<3x4x1xf32, #tpu.memory_space<vmem>>, vector<1x4x1xf32>
    %549 = vector.shape_cast %548 : vector<1x4x1xf32> to vector<4x1xf32>
    %550 = vector.broadcast %549 : vector<4x1xf32> to vector<4x64xf32>
    %551 = arith.addf %547, %550 : vector<4x64xf32>
    %cst_123 = arith.constant 0.000000e+00 : f32
    %552 = vector.broadcast %cst_123 : f32 to vector<4x64xf32>
    %553 = arith.cmpf oge, %551, %552 : vector<4x64xf32>
    %cst_124 = arith.constant 2.000000e-01 : f32
    %554 = vector.broadcast %cst_124 : f32 to vector<4x64xf32>
    %555 = arith.mulf %554, %551 : vector<4x64xf32>
    %556 = arith.select %553, %551, %555 : vector<4x64xi1>, vector<4x64xf32>
    %c2_125 = arith.constant 2 : index
    %c0_126 = arith.constant 0 : index
    %c0_127 = arith.constant 0 : index
    %557 = vector.load %arg6[%c2_125, %c0_126, %c0_127] : memref<3x8x4xf32, #tpu.memory_space<vmem>>, vector<1x8x4xf32>
    %558 = vector.shape_cast %557 : vector<1x8x4xf32> to vector<8x4xf32>
    %559 = vector.extract_strided_slice %558 {offsets = [0, 0], sizes = [4, 1], strides = [1, 1]} : vector<8x4xf32> to vector<4x1xf32>
    %560 = vector.broadcast %559 : vector<4x1xf32> to vector<4x64xf32>
    %561 = arith.mulf %560, %556 : vector<4x64xf32>
    %cst_128 = arith.constant dense<0.000000e+00> : vector<64xf32>
    %562 = vector.multi_reduction <add>, %561, %cst_128 [0] : vector<4x64xf32> to vector<64xf32>
    %563 = vector.shape_cast %562 : vector<64xf32> to vector<1x64xf32>
    %564 = vector.extract_strided_slice %558 {offsets = [4, 0], sizes = [4, 1], strides = [1, 1]} : vector<8x4xf32> to vector<4x1xf32>
    %565 = vector.broadcast %564 : vector<4x1xf32> to vector<4x64xf32>
    %566 = arith.mulf %565, %438 : vector<4x64xf32>
    %cst_129 = arith.constant dense<0.000000e+00> : vector<64xf32>
    %567 = vector.multi_reduction <add>, %566, %cst_129 [0] : vector<4x64xf32> to vector<64xf32>
    %568 = vector.shape_cast %567 : vector<64xf32> to vector<1x64xf32>
    %569 = arith.addf %563, %568 : vector<1x64xf32>
    %570 = vector.extract_strided_slice %558 {offsets = [0, 1], sizes = [4, 1], strides = [1, 1]} : vector<8x4xf32> to vector<4x1xf32>
    %571 = vector.broadcast %570 : vector<4x1xf32> to vector<4x64xf32>
    %572 = arith.mulf %571, %556 : vector<4x64xf32>
    %cst_130 = arith.constant dense<0.000000e+00> : vector<64xf32>
    %573 = vector.multi_reduction <add>, %572, %cst_130 [0] : vector<4x64xf32> to vector<64xf32>
    %574 = vector.shape_cast %573 : vector<64xf32> to vector<1x64xf32>
    %575 = vector.extract_strided_slice %558 {offsets = [4, 1], sizes = [4, 1], strides = [1, 1]} : vector<8x4xf32> to vector<4x1xf32>
    %576 = vector.broadcast %575 : vector<4x1xf32> to vector<4x64xf32>
    %577 = arith.mulf %576, %438 : vector<4x64xf32>
    %cst_131 = arith.constant dense<0.000000e+00> : vector<64xf32>
    %578 = vector.multi_reduction <add>, %577, %cst_131 [0] : vector<4x64xf32> to vector<64xf32>
    %579 = vector.shape_cast %578 : vector<64xf32> to vector<1x64xf32>
    %580 = arith.addf %574, %579 : vector<1x64xf32>
    %581 = vector.extract_strided_slice %558 {offsets = [0, 2], sizes = [4, 1], strides = [1, 1]} : vector<8x4xf32> to vector<4x1xf32>
    %582 = vector.broadcast %581 : vector<4x1xf32> to vector<4x64xf32>
    %583 = arith.mulf %582, %556 : vector<4x64xf32>
    %cst_132 = arith.constant dense<0.000000e+00> : vector<64xf32>
    %584 = vector.multi_reduction <add>, %583, %cst_132 [0] : vector<4x64xf32> to vector<64xf32>
    %585 = vector.shape_cast %584 : vector<64xf32> to vector<1x64xf32>
    %586 = vector.extract_strided_slice %558 {offsets = [4, 2], sizes = [4, 1], strides = [1, 1]} : vector<8x4xf32> to vector<4x1xf32>
    %587 = vector.broadcast %586 : vector<4x1xf32> to vector<4x64xf32>
    %588 = arith.mulf %587, %438 : vector<4x64xf32>
    %cst_133 = arith.constant dense<0.000000e+00> : vector<64xf32>
    %589 = vector.multi_reduction <add>, %588, %cst_133 [0] : vector<4x64xf32> to vector<64xf32>
    %590 = vector.shape_cast %589 : vector<64xf32> to vector<1x64xf32>
    %591 = arith.addf %585, %590 : vector<1x64xf32>
    %592 = vector.extract_strided_slice %558 {offsets = [0, 3], sizes = [4, 1], strides = [1, 1]} : vector<8x4xf32> to vector<4x1xf32>
    %593 = vector.broadcast %592 : vector<4x1xf32> to vector<4x64xf32>
    %594 = arith.mulf %593, %556 : vector<4x64xf32>
    %cst_134 = arith.constant dense<0.000000e+00> : vector<64xf32>
    %595 = vector.multi_reduction <add>, %594, %cst_134 [0] : vector<4x64xf32> to vector<64xf32>
    %596 = vector.shape_cast %595 : vector<64xf32> to vector<1x64xf32>
    %597 = vector.extract_strided_slice %558 {offsets = [4, 3], sizes = [4, 1], strides = [1, 1]} : vector<8x4xf32> to vector<4x1xf32>
    %598 = vector.broadcast %597 : vector<4x1xf32> to vector<4x64xf32>
    %599 = arith.mulf %598, %438 : vector<4x64xf32>
    %cst_135 = arith.constant dense<0.000000e+00> : vector<64xf32>
    %600 = vector.multi_reduction <add>, %599, %cst_135 [0] : vector<4x64xf32> to vector<64xf32>
    %601 = vector.shape_cast %600 : vector<64xf32> to vector<1x64xf32>
    %602 = arith.addf %596, %601 : vector<1x64xf32>
    %603 = tpu.concatenate %569, %580, %591, %602 in 0 : vector<1x64xf32>, vector<1x64xf32>, vector<1x64xf32>, vector<1x64xf32> -> vector<4x64xf32>
    %c2_136 = arith.constant 2 : index
    %c0_137 = arith.constant 0 : index
    %c0_138 = arith.constant 0 : index
    %604 = vector.load %arg7[%c2_136, %c0_137, %c0_138] : memref<3x4x1xf32, #tpu.memory_space<vmem>>, vector<1x4x1xf32>
    %605 = vector.shape_cast %604 : vector<1x4x1xf32> to vector<4x1xf32>
    %606 = vector.broadcast %605 : vector<4x1xf32> to vector<4x64xf32>
    %607 = arith.addf %603, %606 : vector<4x64xf32>
    %608 = arith.truncf %607 : vector<4x64xf32> to vector<4x64xbf16>
    %c0_139 = arith.constant 0 : index
    %c0_140 = arith.constant 0 : index
    %c0_141 = arith.constant 0 : index
    %609 = vector.load %arg9[%c0_139, %c0_140, %c0_141] : memref<1x4x64xbf16, #tpu.memory_space<vmem>>, vector<1x4x64xbf16>
    %610 = vector.shape_cast %609 : vector<1x4x64xbf16> to vector<4x64xbf16>
    %611 = vector.shape_cast %608 : vector<4x64xbf16> to vector<1x4x64xbf16>
    tpu.vector_store %arg9[%c0_139, %c0_140, %c0_141], %611 {strides = array<i32>} : memref<1x4x64xbf16, #tpu.memory_space<vmem>>, vector<1x4x64xbf16>,
    return
  }
  func.func @transform_0(%arg0: i32) -> (i32, i32, i32) {
    %c0_i32 = arith.constant 0 : i32
    %c0_i32_0 = arith.constant 0 : i32
    %c0_i32_1 = arith.constant 0 : i32
    return %arg0, %c0_i32, %c0_i32_0 : i32, i32, i32
  }
  func.func @transform_1(%arg0: i32) -> (i32, i32, i32) {
    %c0_i32 = arith.constant 0 : i32
    %c0_i32_0 = arith.constant 0 : i32
    %c0_i32_1 = arith.constant 0 : i32
    %c0_i32_2 = arith.constant 0 : i32
    return %c0_i32, %c0_i32_0, %c0_i32_1 : i32, i32, i32
  }
  func.func @transform_2(%arg0: i32) -> (i32, i32) {
    %c0_i32 = arith.constant 0 : i32
    %c0_i32_0 = arith.constant 0 : i32
    %c0_i32_1 = arith.constant 0 : i32
    return %c0_i32, %c0_i32_0 : i32, i32
  }
  func.func @transform_3(%arg0: i32) -> (i32, i32, i32) {
    %c0_i32 = arith.constant 0 : i32
    %c0_i32_0 = arith.constant 0 : i32
    %c0_i32_1 = arith.constant 0 : i32
    %c0_i32_2 = arith.constant 0 : i32
    return %c0_i32, %c0_i32_0, %c0_i32_1 : i32, i32, i32
  }
  func.func @transform_4(%arg0: i32) -> (i32, i32, i32) {
    %c0_i32 = arith.constant 0 : i32
    %c0_i32_0 = arith.constant 0 : i32
    %c0_i32_1 = arith.constant 0 : i32
    %c0_i32_2 = arith.constant 0 : i32
    return %c0_i32, %c0_i32_0, %c0_i32_1 : i32, i32, i32
  }
  func.func @transform_5(%arg0: i32) -> (i32, i32, i32) {
    %c0_i32 = arith.constant 0 : i32
    %c0_i32_0 = arith.constant 0 : i32
    %c0_i32_1 = arith.constant 0 : i32
    %c0_i32_2 = arith.constant 0 : i32
    return %c0_i32, %c0_i32_0, %c0_i32_1 : i32, i32, i32
  }
  func.func @transform_6(%arg0: i32) -> (i32, i32, i32) {
    %c0_i32 = arith.constant 0 : i32
    %c0_i32_0 = arith.constant 0 : i32
    %c0_i32_1 = arith.constant 0 : i32
    %c0_i32_2 = arith.constant 0 : i32
    return %c0_i32, %c0_i32_0, %c0_i32_1 : i32, i32, i32
  }
  func.func @transform_7(%arg0: i32) -> (i32, i32, i32) {
    %c0_i32 = arith.constant 0 : i32
    %c0_i32_0 = arith.constant 0 : i32
    %c0_i32_1 = arith.constant 0 : i32
    %c0_i32_2 = arith.constant 0 : i32
    return %c0_i32, %c0_i32_0, %c0_i32_1 : i32, i32, i32
  }
  func.func @transform_8(%arg0: i32) -> (i32, i32, i32) {
    %c0_i32 = arith.constant 0 : i32
    %c0_i32_0 = arith.constant 0 : i32
    %c0_i32_1 = arith.constant 0 : i32
    return %arg0, %c0_i32, %c0_i32_0 : i32, i32, i32
  }
}

module attributes {stable_mosaic.version = 11 : i64} {
  func.func @_stage_kernel(%arg0: i32, %arg1: memref<1x4x64xbf16, #tpu.memory_space<vmem>>, %arg2: memref<2x8x2xf32, #tpu.memory_space<vmem>>, %arg3: memref<2x1xf32, #tpu.memory_space<vmem>>, %arg4: memref<3x6x2xf32, #tpu.memory_space<vmem>>, %arg5: memref<3x2x1xf32, #tpu.memory_space<vmem>>, %arg6: memref<3x4x2xf32, #tpu.memory_space<vmem>>, %arg7: memref<3x2x1xf32, #tpu.memory_space<vmem>>, %arg8: memref<2x64x128xf32, #tpu.memory_space<vmem>>, %arg9: memref<14x1xf32, #tpu.memory_space<vmem>>, %arg10: memref<1x1xf32, #tpu.memory_space<vmem>>, %arg11: memref<1x1x128xf32, #tpu.memory_space<vmem>>) attributes {dimension_semantics = [#tpu.dimension_semantics<parallel>], iteration_bounds = array<i64: 2>, scalar_prefetch = 0 : i64, scratch_operands = 0 : i64, tpu.core_type = #tpu.core_type<tc>, window_params = [{transform_indices = @transform_0, window_bounds = array<i64: 1, 4, 64>}, {pipeline_mode = #tpu.pipeline_mode<synchronous>, transform_indices = @transform_1, window_bounds = array<i64: 2, 8, 2>}, {pipeline_mode = #tpu.pipeline_mode<synchronous>, transform_indices = @transform_2, window_bounds = array<i64: 2, 1>}, {pipeline_mode = #tpu.pipeline_mode<synchronous>, transform_indices = @transform_3, window_bounds = array<i64: 3, 6, 2>}, {pipeline_mode = #tpu.pipeline_mode<synchronous>, transform_indices = @transform_4, window_bounds = array<i64: 3, 2, 1>}, {pipeline_mode = #tpu.pipeline_mode<synchronous>, transform_indices = @transform_5, window_bounds = array<i64: 3, 4, 2>}, {pipeline_mode = #tpu.pipeline_mode<synchronous>, transform_indices = @transform_6, window_bounds = array<i64: 3, 2, 1>}, {pipeline_mode = #tpu.pipeline_mode<synchronous>, transform_indices = @transform_7, window_bounds = array<i64: 2, 64, 128>}, {pipeline_mode = #tpu.pipeline_mode<synchronous>, transform_indices = @transform_8, window_bounds = array<i64: 14, 1>}, {pipeline_mode = #tpu.pipeline_mode<synchronous>, transform_indices = @transform_9, window_bounds = array<i64: 1, 1>}, {transform_indices = @transform_10, window_bounds = array<i64: 1, 1, 128>}]} {
    %c0 = arith.constant 0 : index
    %c0_0 = arith.constant 0 : index
    %c0_1 = arith.constant 0 : index
    %0 = vector.load %arg1[%c0, %c0_0, %c0_1] : memref<1x4x64xbf16, #tpu.memory_space<vmem>>, vector<1x4x64xbf16>
    %1 = vector.shape_cast %0 : vector<1x4x64xbf16> to vector<4x64xbf16>
    %2 = arith.extf %1 : vector<4x64xbf16> to vector<4x64xf32>
    %cst = arith.constant 0.000000e+00 : f32
    %3 = vector.broadcast %cst : f32 to vector<4x64xf32>
    %4 = arith.cmpf oge, %2, %3 : vector<4x64xf32>
    %cst_2 = arith.constant 2.000000e-01 : f32
    %5 = vector.broadcast %cst_2 : f32 to vector<4x64xf32>
    %6 = arith.mulf %5, %2 : vector<4x64xf32>
    %7 = arith.select %4, %2, %6 : vector<4x64xi1>, vector<4x64xf32>
    %cst_3 = arith.constant 0.000000e+00 : f32
    %8 = vector.broadcast %cst_3 : f32 to vector<4x1xf32>
    %9 = tpu.concatenate %8, %7, %8 in 1 : vector<4x1xf32>, vector<4x64xf32>, vector<4x1xf32> -> vector<4x66xf32>
    %c0_4 = arith.constant 0 : index
    %c0_5 = arith.constant 0 : index
    %10 = vector.load %arg3[%c0_4, %c0_5] : memref<2x1xf32, #tpu.memory_space<vmem>>, vector<2x1xf32>
    %c0_6 = arith.constant 0 : index
    %c0_7 = arith.constant 0 : index
    %c0_8 = arith.constant 0 : index
    %11 = vector.load %arg2[%c0_6, %c0_7, %c0_8] : memref<2x8x2xf32, #tpu.memory_space<vmem>>, vector<1x8x2xf32>
    %12 = vector.shape_cast %11 : vector<1x8x2xf32> to vector<8x2xf32>
    %13 = vector.extract_strided_slice %12 {offsets = [0, 0], sizes = [4, 1], strides = [1, 1]} : vector<8x2xf32> to vector<4x1xf32>
    %14 = vector.extract_strided_slice %9 {offsets = [0, 0], sizes = [4, 64], strides = [1, 1]} : vector<4x66xf32> to vector<4x64xf32>
    %15 = vector.broadcast %13 : vector<4x1xf32> to vector<4x64xf32>
    %16 = arith.mulf %15, %14 : vector<4x64xf32>
    %cst_9 = arith.constant dense<0.000000e+00> : vector<64xf32>
    %17 = vector.multi_reduction <add>, %16, %cst_9 [0] : vector<4x64xf32> to vector<64xf32>
    %18 = vector.shape_cast %17 : vector<64xf32> to vector<1x64xf32>
    %19 = vector.extract_strided_slice %12 {offsets = [4, 0], sizes = [4, 1], strides = [1, 1]} : vector<8x2xf32> to vector<4x1xf32>
    %20 = vector.extract_strided_slice %9 {offsets = [0, 1], sizes = [4, 64], strides = [1, 1]} : vector<4x66xf32> to vector<4x64xf32>
    %21 = vector.broadcast %19 : vector<4x1xf32> to vector<4x64xf32>
    %22 = arith.mulf %21, %20 : vector<4x64xf32>
    %cst_10 = arith.constant dense<0.000000e+00> : vector<64xf32>
    %23 = vector.multi_reduction <add>, %22, %cst_10 [0] : vector<4x64xf32> to vector<64xf32>
    %24 = vector.shape_cast %23 : vector<64xf32> to vector<1x64xf32>
    %25 = arith.addf %18, %24 : vector<1x64xf32>
    %26 = vector.extract_strided_slice %12 {offsets = [0, 1], sizes = [4, 1], strides = [1, 1]} : vector<8x2xf32> to vector<4x1xf32>
    %27 = vector.extract_strided_slice %9 {offsets = [0, 0], sizes = [4, 64], strides = [1, 1]} : vector<4x66xf32> to vector<4x64xf32>
    %28 = vector.broadcast %26 : vector<4x1xf32> to vector<4x64xf32>
    %29 = arith.mulf %28, %27 : vector<4x64xf32>
    %cst_11 = arith.constant dense<0.000000e+00> : vector<64xf32>
    %30 = vector.multi_reduction <add>, %29, %cst_11 [0] : vector<4x64xf32> to vector<64xf32>
    %31 = vector.shape_cast %30 : vector<64xf32> to vector<1x64xf32>
    %32 = vector.extract_strided_slice %12 {offsets = [4, 1], sizes = [4, 1], strides = [1, 1]} : vector<8x2xf32> to vector<4x1xf32>
    %33 = vector.extract_strided_slice %9 {offsets = [0, 1], sizes = [4, 64], strides = [1, 1]} : vector<4x66xf32> to vector<4x64xf32>
    %34 = vector.broadcast %32 : vector<4x1xf32> to vector<4x64xf32>
    %35 = arith.mulf %34, %33 : vector<4x64xf32>
    %cst_12 = arith.constant dense<0.000000e+00> : vector<64xf32>
    %36 = vector.multi_reduction <add>, %35, %cst_12 [0] : vector<4x64xf32> to vector<64xf32>
    %37 = vector.shape_cast %36 : vector<64xf32> to vector<1x64xf32>
    %38 = arith.addf %31, %37 : vector<1x64xf32>
    %39 = tpu.concatenate %25, %38 in 0 : vector<1x64xf32>, vector<1x64xf32> -> vector<2x64xf32>
    %40 = vector.broadcast %10 : vector<2x1xf32> to vector<2x64xf32>
    %41 = arith.addf %39, %40 : vector<2x64xf32>
    %c1 = arith.constant 1 : index
    %c0_13 = arith.constant 0 : index
    %c0_14 = arith.constant 0 : index
    %42 = vector.load %arg2[%c1, %c0_13, %c0_14] : memref<2x8x2xf32, #tpu.memory_space<vmem>>, vector<1x8x2xf32>
    %43 = vector.shape_cast %42 : vector<1x8x2xf32> to vector<8x2xf32>
    %44 = vector.extract_strided_slice %43 {offsets = [0, 0], sizes = [4, 1], strides = [1, 1]} : vector<8x2xf32> to vector<4x1xf32>
    %45 = vector.extract_strided_slice %9 {offsets = [0, 1], sizes = [4, 64], strides = [1, 1]} : vector<4x66xf32> to vector<4x64xf32>
    %46 = vector.broadcast %44 : vector<4x1xf32> to vector<4x64xf32>
    %47 = arith.mulf %46, %45 : vector<4x64xf32>
    %cst_15 = arith.constant dense<0.000000e+00> : vector<64xf32>
    %48 = vector.multi_reduction <add>, %47, %cst_15 [0] : vector<4x64xf32> to vector<64xf32>
    %49 = vector.shape_cast %48 : vector<64xf32> to vector<1x64xf32>
    %50 = vector.extract_strided_slice %43 {offsets = [4, 0], sizes = [4, 1], strides = [1, 1]} : vector<8x2xf32> to vector<4x1xf32>
    %51 = vector.extract_strided_slice %9 {offsets = [0, 2], sizes = [4, 64], strides = [1, 1]} : vector<4x66xf32> to vector<4x64xf32>
    %52 = vector.broadcast %50 : vector<4x1xf32> to vector<4x64xf32>
    %53 = arith.mulf %52, %51 : vector<4x64xf32>
    %cst_16 = arith.constant dense<0.000000e+00> : vector<64xf32>
    %54 = vector.multi_reduction <add>, %53, %cst_16 [0] : vector<4x64xf32> to vector<64xf32>
    %55 = vector.shape_cast %54 : vector<64xf32> to vector<1x64xf32>
    %56 = arith.addf %49, %55 : vector<1x64xf32>
    %57 = vector.extract_strided_slice %43 {offsets = [0, 1], sizes = [4, 1], strides = [1, 1]} : vector<8x2xf32> to vector<4x1xf32>
    %58 = vector.extract_strided_slice %9 {offsets = [0, 1], sizes = [4, 64], strides = [1, 1]} : vector<4x66xf32> to vector<4x64xf32>
    %59 = vector.broadcast %57 : vector<4x1xf32> to vector<4x64xf32>
    %60 = arith.mulf %59, %58 : vector<4x64xf32>
    %cst_17 = arith.constant dense<0.000000e+00> : vector<64xf32>
    %61 = vector.multi_reduction <add>, %60, %cst_17 [0] : vector<4x64xf32> to vector<64xf32>
    %62 = vector.shape_cast %61 : vector<64xf32> to vector<1x64xf32>
    %63 = vector.extract_strided_slice %43 {offsets = [4, 1], sizes = [4, 1], strides = [1, 1]} : vector<8x2xf32> to vector<4x1xf32>
    %64 = vector.extract_strided_slice %9 {offsets = [0, 2], sizes = [4, 64], strides = [1, 1]} : vector<4x66xf32> to vector<4x64xf32>
    %65 = vector.broadcast %63 : vector<4x1xf32> to vector<4x64xf32>
    %66 = arith.mulf %65, %64 : vector<4x64xf32>
    %cst_18 = arith.constant dense<0.000000e+00> : vector<64xf32>
    %67 = vector.multi_reduction <add>, %66, %cst_18 [0] : vector<4x64xf32> to vector<64xf32>
    %68 = vector.shape_cast %67 : vector<64xf32> to vector<1x64xf32>
    %69 = arith.addf %62, %68 : vector<1x64xf32>
    %70 = tpu.concatenate %56, %69 in 0 : vector<1x64xf32>, vector<1x64xf32> -> vector<2x64xf32>
    %71 = vector.broadcast %10 : vector<2x1xf32> to vector<2x64xf32>
    %72 = arith.addf %70, %71 : vector<2x64xf32>
    %c0_19 = arith.constant 0 : index
    %c0_20 = arith.constant 0 : index
    %c0_21 = arith.constant 0 : index
    %73 = vector.load %arg8[%c0_19, %c0_20, %c0_21] : memref<2x64x128xf32, #tpu.memory_space<vmem>>, vector<2x64x128xf32>
    %74 = vector.extract_strided_slice %73 {offsets = [0, 0, 0], sizes = [1, 64, 128], strides = [1, 1, 1]} : vector<2x64x128xf32> to vector<1x64x128xf32>
    %75 = vector.shape_cast %74 : vector<1x64x128xf32> to vector<64x128xf32>
    %cst_22 = arith.constant dense<0.000000e+00> : vector<2x128xf32>
    %76 = tpu.matmul %41, %75, %cst_22 {dimension_numbers = #tpu.dot_dimension_numbers<[1], [0], [0], [1], [0, 0, 1, 1], [], []>} : vector<2x64xf32>, vector<64x128xf32>, vector<2x128xf32> -> vector<2x128xf32>
    %77 = vector.extract_strided_slice %73 {offsets = [1, 0, 0], sizes = [1, 64, 128], strides = [1, 1, 1]} : vector<2x64x128xf32> to vector<1x64x128xf32>
    %78 = vector.shape_cast %77 : vector<1x64x128xf32> to vector<64x128xf32>
    %cst_23 = arith.constant dense<0.000000e+00> : vector<2x128xf32>
    %79 = tpu.matmul %72, %78, %cst_23 {dimension_numbers = #tpu.dot_dimension_numbers<[1], [0], [0], [1], [0, 0, 1, 1], [], []>} : vector<2x64xf32>, vector<64x128xf32>, vector<2x128xf32> -> vector<2x128xf32>
    %80 = arith.addf %76, %79 : vector<2x128xf32>
    %81 = vector.extract_strided_slice %80 {offsets = [0, 1], sizes = [2, 1], strides = [1, 1]} : vector<2x128xf32> to vector<2x1xf32>
    %82 = vector.extract_strided_slice %80 {offsets = [0, 126], sizes = [2, 1], strides = [1, 1]} : vector<2x128xf32> to vector<2x1xf32>
    %83 = tpu.concatenate %81, %80, %82 in 1 : vector<2x1xf32>, vector<2x128xf32>, vector<2x1xf32> -> vector<2x130xf32>
    %cst_24 = arith.constant 0.000000e+00 : f32
    %84 = vector.broadcast %cst_24 : f32 to vector<2x130xf32>
    %85 = arith.cmpf oge, %83, %84 : vector<2x130xf32>
    %cst_25 = arith.constant 2.000000e-01 : f32
    %86 = vector.broadcast %cst_25 : f32 to vector<2x130xf32>
    %87 = arith.mulf %86, %83 : vector<2x130xf32>
    %88 = arith.select %85, %83, %87 : vector<2x130xi1>, vector<2x130xf32>
    %c0_26 = arith.constant 0 : index
    %c0_27 = arith.constant 0 : index
    %c0_28 = arith.constant 0 : index
    %89 = vector.load %arg4[%c0_26, %c0_27, %c0_28] : memref<3x6x2xf32, #tpu.memory_space<vmem>>, vector<1x6x2xf32>
    %90 = vector.shape_cast %89 : vector<1x6x2xf32> to vector<6x2xf32>
    %91 = vector.extract_strided_slice %90 {offsets = [0, 0], sizes = [2, 1], strides = [1, 1]} : vector<6x2xf32> to vector<2x1xf32>
    %92 = vector.extract_strided_slice %88 {offsets = [0, 0], sizes = [2, 128], strides = [1, 1]} : vector<2x130xf32> to vector<2x128xf32>
    %93 = vector.broadcast %91 : vector<2x1xf32> to vector<2x128xf32>
    %94 = arith.mulf %93, %92 : vector<2x128xf32>
    %cst_29 = arith.constant dense<0.000000e+00> : vector<128xf32>
    %95 = vector.multi_reduction <add>, %94, %cst_29 [0] : vector<2x128xf32> to vector<128xf32>
    %96 = vector.shape_cast %95 : vector<128xf32> to vector<1x128xf32>
    %97 = vector.extract_strided_slice %90 {offsets = [2, 0], sizes = [2, 1], strides = [1, 1]} : vector<6x2xf32> to vector<2x1xf32>
    %98 = vector.extract_strided_slice %88 {offsets = [0, 1], sizes = [2, 128], strides = [1, 1]} : vector<2x130xf32> to vector<2x128xf32>
    %99 = vector.broadcast %97 : vector<2x1xf32> to vector<2x128xf32>
    %100 = arith.mulf %99, %98 : vector<2x128xf32>
    %cst_30 = arith.constant dense<0.000000e+00> : vector<128xf32>
    %101 = vector.multi_reduction <add>, %100, %cst_30 [0] : vector<2x128xf32> to vector<128xf32>
    %102 = vector.shape_cast %101 : vector<128xf32> to vector<1x128xf32>
    %103 = arith.addf %96, %102 : vector<1x128xf32>
    %104 = vector.extract_strided_slice %90 {offsets = [4, 0], sizes = [2, 1], strides = [1, 1]} : vector<6x2xf32> to vector<2x1xf32>
    %105 = vector.extract_strided_slice %88 {offsets = [0, 2], sizes = [2, 128], strides = [1, 1]} : vector<2x130xf32> to vector<2x128xf32>
    %106 = vector.broadcast %104 : vector<2x1xf32> to vector<2x128xf32>
    %107 = arith.mulf %106, %105 : vector<2x128xf32>
    %cst_31 = arith.constant dense<0.000000e+00> : vector<128xf32>
    %108 = vector.multi_reduction <add>, %107, %cst_31 [0] : vector<2x128xf32> to vector<128xf32>
    %109 = vector.shape_cast %108 : vector<128xf32> to vector<1x128xf32>
    %110 = arith.addf %103, %109 : vector<1x128xf32>
    %111 = vector.extract_strided_slice %90 {offsets = [0, 1], sizes = [2, 1], strides = [1, 1]} : vector<6x2xf32> to vector<2x1xf32>
    %112 = vector.extract_strided_slice %88 {offsets = [0, 0], sizes = [2, 128], strides = [1, 1]} : vector<2x130xf32> to vector<2x128xf32>
    %113 = vector.broadcast %111 : vector<2x1xf32> to vector<2x128xf32>
    %114 = arith.mulf %113, %112 : vector<2x128xf32>
    %cst_32 = arith.constant dense<0.000000e+00> : vector<128xf32>
    %115 = vector.multi_reduction <add>, %114, %cst_32 [0] : vector<2x128xf32> to vector<128xf32>
    %116 = vector.shape_cast %115 : vector<128xf32> to vector<1x128xf32>
    %117 = vector.extract_strided_slice %90 {offsets = [2, 1], sizes = [2, 1], strides = [1, 1]} : vector<6x2xf32> to vector<2x1xf32>
    %118 = vector.extract_strided_slice %88 {offsets = [0, 1], sizes = [2, 128], strides = [1, 1]} : vector<2x130xf32> to vector<2x128xf32>
    %119 = vector.broadcast %117 : vector<2x1xf32> to vector<2x128xf32>
    %120 = arith.mulf %119, %118 : vector<2x128xf32>
    %cst_33 = arith.constant dense<0.000000e+00> : vector<128xf32>
    %121 = vector.multi_reduction <add>, %120, %cst_33 [0] : vector<2x128xf32> to vector<128xf32>
    %122 = vector.shape_cast %121 : vector<128xf32> to vector<1x128xf32>
    %123 = arith.addf %116, %122 : vector<1x128xf32>
    %124 = vector.extract_strided_slice %90 {offsets = [4, 1], sizes = [2, 1], strides = [1, 1]} : vector<6x2xf32> to vector<2x1xf32>
    %125 = vector.extract_strided_slice %88 {offsets = [0, 2], sizes = [2, 128], strides = [1, 1]} : vector<2x130xf32> to vector<2x128xf32>
    %126 = vector.broadcast %124 : vector<2x1xf32> to vector<2x128xf32>
    %127 = arith.mulf %126, %125 : vector<2x128xf32>
    %cst_34 = arith.constant dense<0.000000e+00> : vector<128xf32>
    %128 = vector.multi_reduction <add>, %127, %cst_34 [0] : vector<2x128xf32> to vector<128xf32>
    %129 = vector.shape_cast %128 : vector<128xf32> to vector<1x128xf32>
    %130 = arith.addf %123, %129 : vector<1x128xf32>
    %131 = tpu.concatenate %110, %130 in 0 : vector<1x128xf32>, vector<1x128xf32> -> vector<2x128xf32>
    %c0_35 = arith.constant 0 : index
    %c0_36 = arith.constant 0 : index
    %c0_37 = arith.constant 0 : index
    %132 = vector.load %arg5[%c0_35, %c0_36, %c0_37] : memref<3x2x1xf32, #tpu.memory_space<vmem>>, vector<1x2x1xf32>
    %133 = vector.shape_cast %132 : vector<1x2x1xf32> to vector<2x1xf32>
    %134 = vector.broadcast %133 : vector<2x1xf32> to vector<2x128xf32>
    %135 = arith.addf %131, %134 : vector<2x128xf32>
    %cst_38 = arith.constant 0.000000e+00 : f32
    %136 = vector.broadcast %cst_38 : f32 to vector<2x128xf32>
    %137 = arith.cmpf oge, %135, %136 : vector<2x128xf32>
    %cst_39 = arith.constant 2.000000e-01 : f32
    %138 = vector.broadcast %cst_39 : f32 to vector<2x128xf32>
    %139 = arith.mulf %138, %135 : vector<2x128xf32>
    %140 = arith.select %137, %135, %139 : vector<2x128xi1>, vector<2x128xf32>
    %c0_40 = arith.constant 0 : index
    %c0_41 = arith.constant 0 : index
    %c0_42 = arith.constant 0 : index
    %141 = vector.load %arg6[%c0_40, %c0_41, %c0_42] : memref<3x4x2xf32, #tpu.memory_space<vmem>>, vector<1x4x2xf32>
    %142 = vector.shape_cast %141 : vector<1x4x2xf32> to vector<4x2xf32>
    %143 = vector.extract_strided_slice %142 {offsets = [0, 0], sizes = [2, 1], strides = [1, 1]} : vector<4x2xf32> to vector<2x1xf32>
    %144 = vector.broadcast %143 : vector<2x1xf32> to vector<2x128xf32>
    %145 = arith.mulf %144, %140 : vector<2x128xf32>
    %cst_43 = arith.constant dense<0.000000e+00> : vector<128xf32>
    %146 = vector.multi_reduction <add>, %145, %cst_43 [0] : vector<2x128xf32> to vector<128xf32>
    %147 = vector.shape_cast %146 : vector<128xf32> to vector<1x128xf32>
    %148 = vector.extract_strided_slice %142 {offsets = [2, 0], sizes = [2, 1], strides = [1, 1]} : vector<4x2xf32> to vector<2x1xf32>
    %149 = vector.broadcast %148 : vector<2x1xf32> to vector<2x128xf32>
    %150 = arith.mulf %149, %80 : vector<2x128xf32>
    %cst_44 = arith.constant dense<0.000000e+00> : vector<128xf32>
    %151 = vector.multi_reduction <add>, %150, %cst_44 [0] : vector<2x128xf32> to vector<128xf32>
    %152 = vector.shape_cast %151 : vector<128xf32> to vector<1x128xf32>
    %153 = arith.addf %147, %152 : vector<1x128xf32>
    %154 = vector.extract_strided_slice %142 {offsets = [0, 1], sizes = [2, 1], strides = [1, 1]} : vector<4x2xf32> to vector<2x1xf32>
    %155 = vector.broadcast %154 : vector<2x1xf32> to vector<2x128xf32>
    %156 = arith.mulf %155, %140 : vector<2x128xf32>
    %cst_45 = arith.constant dense<0.000000e+00> : vector<128xf32>
    %157 = vector.multi_reduction <add>, %156, %cst_45 [0] : vector<2x128xf32> to vector<128xf32>
    %158 = vector.shape_cast %157 : vector<128xf32> to vector<1x128xf32>
    %159 = vector.extract_strided_slice %142 {offsets = [2, 1], sizes = [2, 1], strides = [1, 1]} : vector<4x2xf32> to vector<2x1xf32>
    %160 = vector.broadcast %159 : vector<2x1xf32> to vector<2x128xf32>
    %161 = arith.mulf %160, %80 : vector<2x128xf32>
    %cst_46 = arith.constant dense<0.000000e+00> : vector<128xf32>
    %162 = vector.multi_reduction <add>, %161, %cst_46 [0] : vector<2x128xf32> to vector<128xf32>
    %163 = vector.shape_cast %162 : vector<128xf32> to vector<1x128xf32>
    %164 = arith.addf %158, %163 : vector<1x128xf32>
    %165 = tpu.concatenate %153, %164 in 0 : vector<1x128xf32>, vector<1x128xf32> -> vector<2x128xf32>
    %c0_47 = arith.constant 0 : index
    %c0_48 = arith.constant 0 : index
    %c0_49 = arith.constant 0 : index
    %166 = vector.load %arg7[%c0_47, %c0_48, %c0_49] : memref<3x2x1xf32, #tpu.memory_space<vmem>>, vector<1x2x1xf32>
    %167 = vector.shape_cast %166 : vector<1x2x1xf32> to vector<2x1xf32>
    %168 = vector.broadcast %167 : vector<2x1xf32> to vector<2x128xf32>
    %169 = arith.addf %165, %168 : vector<2x128xf32>
    %170 = vector.extract_strided_slice %169 {offsets = [0, 3], sizes = [2, 1], strides = [1, 1]} : vector<2x128xf32> to vector<2x1xf32>
    %171 = vector.extract_strided_slice %169 {offsets = [0, 2], sizes = [2, 1], strides = [1, 1]} : vector<2x128xf32> to vector<2x1xf32>
    %172 = vector.extract_strided_slice %169 {offsets = [0, 1], sizes = [2, 1], strides = [1, 1]} : vector<2x128xf32> to vector<2x1xf32>
    %173 = vector.extract_strided_slice %169 {offsets = [0, 126], sizes = [2, 1], strides = [1, 1]} : vector<2x128xf32> to vector<2x1xf32>
    %174 = vector.extract_strided_slice %169 {offsets = [0, 125], sizes = [2, 1], strides = [1, 1]} : vector<2x128xf32> to vector<2x1xf32>
    %175 = vector.extract_strided_slice %169 {offsets = [0, 124], sizes = [2, 1], strides = [1, 1]} : vector<2x128xf32> to vector<2x1xf32>
    %176 = tpu.concatenate %170, %171, %172, %169, %173, %174, %175 in 1 : vector<2x1xf32>, vector<2x1xf32>, vector<2x1xf32>, vector<2x128xf32>, vector<2x1xf32>, vector<2x1xf32>, vector<2x1xf32> -> vector<2x134xf32>
    %cst_50 = arith.constant 0.000000e+00 : f32
    %177 = vector.broadcast %cst_50 : f32 to vector<2x134xf32>
    %178 = arith.cmpf oge, %176, %177 : vector<2x134xf32>
    %cst_51 = arith.constant 2.000000e-01 : f32
    %179 = vector.broadcast %cst_51 : f32 to vector<2x134xf32>
    %180 = arith.mulf %179, %176 : vector<2x134xf32>
    %181 = arith.select %178, %176, %180 : vector<2x134xi1>, vector<2x134xf32>
    %c1_52 = arith.constant 1 : index
    %c0_53 = arith.constant 0 : index
    %c0_54 = arith.constant 0 : index
    %182 = vector.load %arg4[%c1_52, %c0_53, %c0_54] : memref<3x6x2xf32, #tpu.memory_space<vmem>>, vector<1x6x2xf32>
    %183 = vector.shape_cast %182 : vector<1x6x2xf32> to vector<6x2xf32>
    %184 = vector.extract_strided_slice %183 {offsets = [0, 0], sizes = [2, 1], strides = [1, 1]} : vector<6x2xf32> to vector<2x1xf32>
    %185 = vector.extract_strided_slice %181 {offsets = [0, 0], sizes = [2, 128], strides = [1, 1]} : vector<2x134xf32> to vector<2x128xf32>
    %186 = vector.broadcast %184 : vector<2x1xf32> to vector<2x128xf32>
    %187 = arith.mulf %186, %185 : vector<2x128xf32>
    %cst_55 = arith.constant dense<0.000000e+00> : vector<128xf32>
    %188 = vector.multi_reduction <add>, %187, %cst_55 [0] : vector<2x128xf32> to vector<128xf32>
    %189 = vector.shape_cast %188 : vector<128xf32> to vector<1x128xf32>
    %190 = vector.extract_strided_slice %183 {offsets = [2, 0], sizes = [2, 1], strides = [1, 1]} : vector<6x2xf32> to vector<2x1xf32>
    %191 = vector.extract_strided_slice %181 {offsets = [0, 3], sizes = [2, 128], strides = [1, 1]} : vector<2x134xf32> to vector<2x128xf32>
    %192 = vector.broadcast %190 : vector<2x1xf32> to vector<2x128xf32>
    %193 = arith.mulf %192, %191 : vector<2x128xf32>
    %cst_56 = arith.constant dense<0.000000e+00> : vector<128xf32>
    %194 = vector.multi_reduction <add>, %193, %cst_56 [0] : vector<2x128xf32> to vector<128xf32>
    %195 = vector.shape_cast %194 : vector<128xf32> to vector<1x128xf32>
    %196 = arith.addf %189, %195 : vector<1x128xf32>
    %197 = vector.extract_strided_slice %183 {offsets = [4, 0], sizes = [2, 1], strides = [1, 1]} : vector<6x2xf32> to vector<2x1xf32>
    %198 = vector.extract_strided_slice %181 {offsets = [0, 6], sizes = [2, 128], strides = [1, 1]} : vector<2x134xf32> to vector<2x128xf32>
    %199 = vector.broadcast %197 : vector<2x1xf32> to vector<2x128xf32>
    %200 = arith.mulf %199, %198 : vector<2x128xf32>
    %cst_57 = arith.constant dense<0.000000e+00> : vector<128xf32>
    %201 = vector.multi_reduction <add>, %200, %cst_57 [0] : vector<2x128xf32> to vector<128xf32>
    %202 = vector.shape_cast %201 : vector<128xf32> to vector<1x128xf32>
    %203 = arith.addf %196, %202 : vector<1x128xf32>
    %204 = vector.extract_strided_slice %183 {offsets = [0, 1], sizes = [2, 1], strides = [1, 1]} : vector<6x2xf32> to vector<2x1xf32>
    %205 = vector.extract_strided_slice %181 {offsets = [0, 0], sizes = [2, 128], strides = [1, 1]} : vector<2x134xf32> to vector<2x128xf32>
    %206 = vector.broadcast %204 : vector<2x1xf32> to vector<2x128xf32>
    %207 = arith.mulf %206, %205 : vector<2x128xf32>
    %cst_58 = arith.constant dense<0.000000e+00> : vector<128xf32>
    %208 = vector.multi_reduction <add>, %207, %cst_58 [0] : vector<2x128xf32> to vector<128xf32>
    %209 = vector.shape_cast %208 : vector<128xf32> to vector<1x128xf32>
    %210 = vector.extract_strided_slice %183 {offsets = [2, 1], sizes = [2, 1], strides = [1, 1]} : vector<6x2xf32> to vector<2x1xf32>
    %211 = vector.extract_strided_slice %181 {offsets = [0, 3], sizes = [2, 128], strides = [1, 1]} : vector<2x134xf32> to vector<2x128xf32>
    %212 = vector.broadcast %210 : vector<2x1xf32> to vector<2x128xf32>
    %213 = arith.mulf %212, %211 : vector<2x128xf32>
    %cst_59 = arith.constant dense<0.000000e+00> : vector<128xf32>
    %214 = vector.multi_reduction <add>, %213, %cst_59 [0] : vector<2x128xf32> to vector<128xf32>
    %215 = vector.shape_cast %214 : vector<128xf32> to vector<1x128xf32>
    %216 = arith.addf %209, %215 : vector<1x128xf32>
    %217 = vector.extract_strided_slice %183 {offsets = [4, 1], sizes = [2, 1], strides = [1, 1]} : vector<6x2xf32> to vector<2x1xf32>
    %218 = vector.extract_strided_slice %181 {offsets = [0, 6], sizes = [2, 128], strides = [1, 1]} : vector<2x134xf32> to vector<2x128xf32>
    %219 = vector.broadcast %217 : vector<2x1xf32> to vector<2x128xf32>
    %220 = arith.mulf %219, %218 : vector<2x128xf32>
    %cst_60 = arith.constant dense<0.000000e+00> : vector<128xf32>
    %221 = vector.multi_reduction <add>, %220, %cst_60 [0] : vector<2x128xf32> to vector<128xf32>
    %222 = vector.shape_cast %221 : vector<128xf32> to vector<1x128xf32>
    %223 = arith.addf %216, %222 : vector<1x128xf32>
    %224 = tpu.concatenate %203, %223 in 0 : vector<1x128xf32>, vector<1x128xf32> -> vector<2x128xf32>
    %c1_61 = arith.constant 1 : index
    %c0_62 = arith.constant 0 : index
    %c0_63 = arith.constant 0 : index
    %225 = vector.load %arg5[%c1_61, %c0_62, %c0_63] : memref<3x2x1xf32, #tpu.memory_space<vmem>>, vector<1x2x1xf32>
    %226 = vector.shape_cast %225 : vector<1x2x1xf32> to vector<2x1xf32>
    %227 = vector.broadcast %226 : vector<2x1xf32> to vector<2x128xf32>
    %228 = arith.addf %224, %227 : vector<2x128xf32>
    %cst_64 = arith.constant 0.000000e+00 : f32
    %229 = vector.broadcast %cst_64 : f32 to vector<2x128xf32>
    %230 = arith.cmpf oge, %228, %229 : vector<2x128xf32>
    %cst_65 = arith.constant 2.000000e-01 : f32
    %231 = vector.broadcast %cst_65 : f32 to vector<2x128xf32>
    %232 = arith.mulf %231, %228 : vector<2x128xf32>
    %233 = arith.select %230, %228, %232 : vector<2x128xi1>, vector<2x128xf32>
    %c1_66 = arith.constant 1 : index
    %c0_67 = arith.constant 0 : index
    %c0_68 = arith.constant 0 : index
    %234 = vector.load %arg6[%c1_66, %c0_67, %c0_68] : memref<3x4x2xf32, #tpu.memory_space<vmem>>, vector<1x4x2xf32>
    %235 = vector.shape_cast %234 : vector<1x4x2xf32> to vector<4x2xf32>
    %236 = vector.extract_strided_slice %235 {offsets = [0, 0], sizes = [2, 1], strides = [1, 1]} : vector<4x2xf32> to vector<2x1xf32>
    %237 = vector.broadcast %236 : vector<2x1xf32> to vector<2x128xf32>
    %238 = arith.mulf %237, %233 : vector<2x128xf32>
    %cst_69 = arith.constant dense<0.000000e+00> : vector<128xf32>
    %239 = vector.multi_reduction <add>, %238, %cst_69 [0] : vector<2x128xf32> to vector<128xf32>
    %240 = vector.shape_cast %239 : vector<128xf32> to vector<1x128xf32>
    %241 = vector.extract_strided_slice %235 {offsets = [2, 0], sizes = [2, 1], strides = [1, 1]} : vector<4x2xf32> to vector<2x1xf32>
    %242 = vector.broadcast %241 : vector<2x1xf32> to vector<2x128xf32>
    %243 = arith.mulf %242, %169 : vector<2x128xf32>
    %cst_70 = arith.constant dense<0.000000e+00> : vector<128xf32>
    %244 = vector.multi_reduction <add>, %243, %cst_70 [0] : vector<2x128xf32> to vector<128xf32>
    %245 = vector.shape_cast %244 : vector<128xf32> to vector<1x128xf32>
    %246 = arith.addf %240, %245 : vector<1x128xf32>
    %247 = vector.extract_strided_slice %235 {offsets = [0, 1], sizes = [2, 1], strides = [1, 1]} : vector<4x2xf32> to vector<2x1xf32>
    %248 = vector.broadcast %247 : vector<2x1xf32> to vector<2x128xf32>
    %249 = arith.mulf %248, %233 : vector<2x128xf32>
    %cst_71 = arith.constant dense<0.000000e+00> : vector<128xf32>
    %250 = vector.multi_reduction <add>, %249, %cst_71 [0] : vector<2x128xf32> to vector<128xf32>
    %251 = vector.shape_cast %250 : vector<128xf32> to vector<1x128xf32>
    %252 = vector.extract_strided_slice %235 {offsets = [2, 1], sizes = [2, 1], strides = [1, 1]} : vector<4x2xf32> to vector<2x1xf32>
    %253 = vector.broadcast %252 : vector<2x1xf32> to vector<2x128xf32>
    %254 = arith.mulf %253, %169 : vector<2x128xf32>
    %cst_72 = arith.constant dense<0.000000e+00> : vector<128xf32>
    %255 = vector.multi_reduction <add>, %254, %cst_72 [0] : vector<2x128xf32> to vector<128xf32>
    %256 = vector.shape_cast %255 : vector<128xf32> to vector<1x128xf32>
    %257 = arith.addf %251, %256 : vector<1x128xf32>
    %258 = tpu.concatenate %246, %257 in 0 : vector<1x128xf32>, vector<1x128xf32> -> vector<2x128xf32>
    %c1_73 = arith.constant 1 : index
    %c0_74 = arith.constant 0 : index
    %c0_75 = arith.constant 0 : index
    %259 = vector.load %arg7[%c1_73, %c0_74, %c0_75] : memref<3x2x1xf32, #tpu.memory_space<vmem>>, vector<1x2x1xf32>
    %260 = vector.shape_cast %259 : vector<1x2x1xf32> to vector<2x1xf32>
    %261 = vector.broadcast %260 : vector<2x1xf32> to vector<2x128xf32>
    %262 = arith.addf %258, %261 : vector<2x128xf32>
    %263 = vector.extract_strided_slice %262 {offsets = [0, 9], sizes = [2, 1], strides = [1, 1]} : vector<2x128xf32> to vector<2x1xf32>
    %264 = vector.extract_strided_slice %262 {offsets = [0, 8], sizes = [2, 1], strides = [1, 1]} : vector<2x128xf32> to vector<2x1xf32>
    %265 = vector.extract_strided_slice %262 {offsets = [0, 7], sizes = [2, 1], strides = [1, 1]} : vector<2x128xf32> to vector<2x1xf32>
    %266 = vector.extract_strided_slice %262 {offsets = [0, 6], sizes = [2, 1], strides = [1, 1]} : vector<2x128xf32> to vector<2x1xf32>
    %267 = vector.extract_strided_slice %262 {offsets = [0, 5], sizes = [2, 1], strides = [1, 1]} : vector<2x128xf32> to vector<2x1xf32>
    %268 = vector.extract_strided_slice %262 {offsets = [0, 4], sizes = [2, 1], strides = [1, 1]} : vector<2x128xf32> to vector<2x1xf32>
    %269 = vector.extract_strided_slice %262 {offsets = [0, 3], sizes = [2, 1], strides = [1, 1]} : vector<2x128xf32> to vector<2x1xf32>
    %270 = vector.extract_strided_slice %262 {offsets = [0, 2], sizes = [2, 1], strides = [1, 1]} : vector<2x128xf32> to vector<2x1xf32>
    %271 = vector.extract_strided_slice %262 {offsets = [0, 1], sizes = [2, 1], strides = [1, 1]} : vector<2x128xf32> to vector<2x1xf32>
    %272 = vector.extract_strided_slice %262 {offsets = [0, 126], sizes = [2, 1], strides = [1, 1]} : vector<2x128xf32> to vector<2x1xf32>
    %273 = vector.extract_strided_slice %262 {offsets = [0, 125], sizes = [2, 1], strides = [1, 1]} : vector<2x128xf32> to vector<2x1xf32>
    %274 = vector.extract_strided_slice %262 {offsets = [0, 124], sizes = [2, 1], strides = [1, 1]} : vector<2x128xf32> to vector<2x1xf32>
    %275 = vector.extract_strided_slice %262 {offsets = [0, 123], sizes = [2, 1], strides = [1, 1]} : vector<2x128xf32> to vector<2x1xf32>
    %276 = vector.extract_strided_slice %262 {offsets = [0, 122], sizes = [2, 1], strides = [1, 1]} : vector<2x128xf32> to vector<2x1xf32>
    %277 = vector.extract_strided_slice %262 {offsets = [0, 121], sizes = [2, 1], strides = [1, 1]} : vector<2x128xf32> to vector<2x1xf32>
    %278 = vector.extract_strided_slice %262 {offsets = [0, 120], sizes = [2, 1], strides = [1, 1]} : vector<2x128xf32> to vector<2x1xf32>
    %279 = vector.extract_strided_slice %262 {offsets = [0, 119], sizes = [2, 1], strides = [1, 1]} : vector<2x128xf32> to vector<2x1xf32>
    %280 = vector.extract_strided_slice %262 {offsets = [0, 118], sizes = [2, 1], strides = [1, 1]} : vector<2x128xf32> to vector<2x1xf32>
    %281 = tpu.concatenate %263, %264, %265, %266, %267, %268, %269, %270, %271, %262, %272, %273, %274, %275, %276, %277 in 1 : vector<2x1xf32>, vector<2x1xf32>, vector<2x1xf32>, vector<2x1xf32>, vector<2x1xf32>, vector<2x1xf32>, vector<2x1xf32>, vector<2x1xf32>, vector<2x1xf32>, vector<2x128xf32>, vector<2x1xf32>, vector<2x1xf32>, vector<2x1xf32>, vector<2x1xf32>, vector<2x1xf32>, vector<2x1xf32> -> vector<2x143xf32>
    %282 = tpu.concatenate %278, %279, %280 in 1 : vector<2x1xf32>, vector<2x1xf32>, vector<2x1xf32> -> vector<2x3xf32>
    %283 = tpu.concatenate %281, %282 in 1 : vector<2x143xf32>, vector<2x3xf32> -> vector<2x146xf32>
    %cst_76 = arith.constant 0.000000e+00 : f32
    %284 = vector.broadcast %cst_76 : f32 to vector<2x146xf32>
    %285 = arith.cmpf oge, %283, %284 : vector<2x146xf32>
    %cst_77 = arith.constant 2.000000e-01 : f32
    %286 = vector.broadcast %cst_77 : f32 to vector<2x146xf32>
    %287 = arith.mulf %286, %283 : vector<2x146xf32>
    %288 = arith.select %285, %283, %287 : vector<2x146xi1>, vector<2x146xf32>
    %c2 = arith.constant 2 : index
    %c0_78 = arith.constant 0 : index
    %c0_79 = arith.constant 0 : index
    %289 = vector.load %arg4[%c2, %c0_78, %c0_79] : memref<3x6x2xf32, #tpu.memory_space<vmem>>, vector<1x6x2xf32>
    %290 = vector.shape_cast %289 : vector<1x6x2xf32> to vector<6x2xf32>
    %291 = vector.extract_strided_slice %290 {offsets = [0, 0], sizes = [2, 1], strides = [1, 1]} : vector<6x2xf32> to vector<2x1xf32>
    %292 = vector.extract_strided_slice %288 {offsets = [0, 0], sizes = [2, 128], strides = [1, 1]} : vector<2x146xf32> to vector<2x128xf32>
    %293 = vector.broadcast %291 : vector<2x1xf32> to vector<2x128xf32>
    %294 = arith.mulf %293, %292 : vector<2x128xf32>
    %cst_80 = arith.constant dense<0.000000e+00> : vector<128xf32>
    %295 = vector.multi_reduction <add>, %294, %cst_80 [0] : vector<2x128xf32> to vector<128xf32>
    %296 = vector.shape_cast %295 : vector<128xf32> to vector<1x128xf32>
    %297 = vector.extract_strided_slice %290 {offsets = [2, 0], sizes = [2, 1], strides = [1, 1]} : vector<6x2xf32> to vector<2x1xf32>
    %298 = vector.extract_strided_slice %288 {offsets = [0, 9], sizes = [2, 128], strides = [1, 1]} : vector<2x146xf32> to vector<2x128xf32>
    %299 = vector.broadcast %297 : vector<2x1xf32> to vector<2x128xf32>
    %300 = arith.mulf %299, %298 : vector<2x128xf32>
    %cst_81 = arith.constant dense<0.000000e+00> : vector<128xf32>
    %301 = vector.multi_reduction <add>, %300, %cst_81 [0] : vector<2x128xf32> to vector<128xf32>
    %302 = vector.shape_cast %301 : vector<128xf32> to vector<1x128xf32>
    %303 = arith.addf %296, %302 : vector<1x128xf32>
    %304 = vector.extract_strided_slice %290 {offsets = [4, 0], sizes = [2, 1], strides = [1, 1]} : vector<6x2xf32> to vector<2x1xf32>
    %305 = vector.extract_strided_slice %288 {offsets = [0, 18], sizes = [2, 128], strides = [1, 1]} : vector<2x146xf32> to vector<2x128xf32>
    %306 = vector.broadcast %304 : vector<2x1xf32> to vector<2x128xf32>
    %307 = arith.mulf %306, %305 : vector<2x128xf32>
    %cst_82 = arith.constant dense<0.000000e+00> : vector<128xf32>
    %308 = vector.multi_reduction <add>, %307, %cst_82 [0] : vector<2x128xf32> to vector<128xf32>
    %309 = vector.shape_cast %308 : vector<128xf32> to vector<1x128xf32>
    %310 = arith.addf %303, %309 : vector<1x128xf32>
    %311 = vector.extract_strided_slice %290 {offsets = [0, 1], sizes = [2, 1], strides = [1, 1]} : vector<6x2xf32> to vector<2x1xf32>
    %312 = vector.extract_strided_slice %288 {offsets = [0, 0], sizes = [2, 128], strides = [1, 1]} : vector<2x146xf32> to vector<2x128xf32>
    %313 = vector.broadcast %311 : vector<2x1xf32> to vector<2x128xf32>
    %314 = arith.mulf %313, %312 : vector<2x128xf32>
    %cst_83 = arith.constant dense<0.000000e+00> : vector<128xf32>
    %315 = vector.multi_reduction <add>, %314, %cst_83 [0] : vector<2x128xf32> to vector<128xf32>
    %316 = vector.shape_cast %315 : vector<128xf32> to vector<1x128xf32>
    %317 = vector.extract_strided_slice %290 {offsets = [2, 1], sizes = [2, 1], strides = [1, 1]} : vector<6x2xf32> to vector<2x1xf32>
    %318 = vector.extract_strided_slice %288 {offsets = [0, 9], sizes = [2, 128], strides = [1, 1]} : vector<2x146xf32> to vector<2x128xf32>
    %319 = vector.broadcast %317 : vector<2x1xf32> to vector<2x128xf32>
    %320 = arith.mulf %319, %318 : vector<2x128xf32>
    %cst_84 = arith.constant dense<0.000000e+00> : vector<128xf32>
    %321 = vector.multi_reduction <add>, %320, %cst_84 [0] : vector<2x128xf32> to vector<128xf32>
    %322 = vector.shape_cast %321 : vector<128xf32> to vector<1x128xf32>
    %323 = arith.addf %316, %322 : vector<1x128xf32>
    %324 = vector.extract_strided_slice %290 {offsets = [4, 1], sizes = [2, 1], strides = [1, 1]} : vector<6x2xf32> to vector<2x1xf32>
    %325 = vector.extract_strided_slice %288 {offsets = [0, 18], sizes = [2, 128], strides = [1, 1]} : vector<2x146xf32> to vector<2x128xf32>
    %326 = vector.broadcast %324 : vector<2x1xf32> to vector<2x128xf32>
    %327 = arith.mulf %326, %325 : vector<2x128xf32>
    %cst_85 = arith.constant dense<0.000000e+00> : vector<128xf32>
    %328 = vector.multi_reduction <add>, %327, %cst_85 [0] : vector<2x128xf32> to vector<128xf32>
    %329 = vector.shape_cast %328 : vector<128xf32> to vector<1x128xf32>
    %330 = arith.addf %323, %329 : vector<1x128xf32>
    %331 = tpu.concatenate %310, %330 in 0 : vector<1x128xf32>, vector<1x128xf32> -> vector<2x128xf32>
    %c2_86 = arith.constant 2 : index
    %c0_87 = arith.constant 0 : index
    %c0_88 = arith.constant 0 : index
    %332 = vector.load %arg5[%c2_86, %c0_87, %c0_88] : memref<3x2x1xf32, #tpu.memory_space<vmem>>, vector<1x2x1xf32>
    %333 = vector.shape_cast %332 : vector<1x2x1xf32> to vector<2x1xf32>
    %334 = vector.broadcast %333 : vector<2x1xf32> to vector<2x128xf32>
    %335 = arith.addf %331, %334 : vector<2x128xf32>
    %cst_89 = arith.constant 0.000000e+00 : f32
    %336 = vector.broadcast %cst_89 : f32 to vector<2x128xf32>
    %337 = arith.cmpf oge, %335, %336 : vector<2x128xf32>
    %cst_90 = arith.constant 2.000000e-01 : f32
    %338 = vector.broadcast %cst_90 : f32 to vector<2x128xf32>
    %339 = arith.mulf %338, %335 : vector<2x128xf32>
    %340 = arith.select %337, %335, %339 : vector<2x128xi1>, vector<2x128xf32>
    %c2_91 = arith.constant 2 : index
    %c0_92 = arith.constant 0 : index
    %c0_93 = arith.constant 0 : index
    %341 = vector.load %arg6[%c2_91, %c0_92, %c0_93] : memref<3x4x2xf32, #tpu.memory_space<vmem>>, vector<1x4x2xf32>
    %342 = vector.shape_cast %341 : vector<1x4x2xf32> to vector<4x2xf32>
    %343 = vector.extract_strided_slice %342 {offsets = [0, 0], sizes = [2, 1], strides = [1, 1]} : vector<4x2xf32> to vector<2x1xf32>
    %344 = vector.broadcast %343 : vector<2x1xf32> to vector<2x128xf32>
    %345 = arith.mulf %344, %340 : vector<2x128xf32>
    %cst_94 = arith.constant dense<0.000000e+00> : vector<128xf32>
    %346 = vector.multi_reduction <add>, %345, %cst_94 [0] : vector<2x128xf32> to vector<128xf32>
    %347 = vector.shape_cast %346 : vector<128xf32> to vector<1x128xf32>
    %348 = vector.extract_strided_slice %342 {offsets = [2, 0], sizes = [2, 1], strides = [1, 1]} : vector<4x2xf32> to vector<2x1xf32>
    %349 = vector.broadcast %348 : vector<2x1xf32> to vector<2x128xf32>
    %350 = arith.mulf %349, %262 : vector<2x128xf32>
    %cst_95 = arith.constant dense<0.000000e+00> : vector<128xf32>
    %351 = vector.multi_reduction <add>, %350, %cst_95 [0] : vector<2x128xf32> to vector<128xf32>
    %352 = vector.shape_cast %351 : vector<128xf32> to vector<1x128xf32>
    %353 = arith.addf %347, %352 : vector<1x128xf32>
    %354 = vector.extract_strided_slice %342 {offsets = [0, 1], sizes = [2, 1], strides = [1, 1]} : vector<4x2xf32> to vector<2x1xf32>
    %355 = vector.broadcast %354 : vector<2x1xf32> to vector<2x128xf32>
    %356 = arith.mulf %355, %340 : vector<2x128xf32>
    %cst_96 = arith.constant dense<0.000000e+00> : vector<128xf32>
    %357 = vector.multi_reduction <add>, %356, %cst_96 [0] : vector<2x128xf32> to vector<128xf32>
    %358 = vector.shape_cast %357 : vector<128xf32> to vector<1x128xf32>
    %359 = vector.extract_strided_slice %342 {offsets = [2, 1], sizes = [2, 1], strides = [1, 1]} : vector<4x2xf32> to vector<2x1xf32>
    %360 = vector.broadcast %359 : vector<2x1xf32> to vector<2x128xf32>
    %361 = arith.mulf %360, %262 : vector<2x128xf32>
    %cst_97 = arith.constant dense<0.000000e+00> : vector<128xf32>
    %362 = vector.multi_reduction <add>, %361, %cst_97 [0] : vector<2x128xf32> to vector<128xf32>
    %363 = vector.shape_cast %362 : vector<128xf32> to vector<1x128xf32>
    %364 = arith.addf %358, %363 : vector<1x128xf32>
    %365 = tpu.concatenate %353, %364 in 0 : vector<1x128xf32>, vector<1x128xf32> -> vector<2x128xf32>
    %c2_98 = arith.constant 2 : index
    %c0_99 = arith.constant 0 : index
    %c0_100 = arith.constant 0 : index
    %366 = vector.load %arg7[%c2_98, %c0_99, %c0_100] : memref<3x2x1xf32, #tpu.memory_space<vmem>>, vector<1x2x1xf32>
    %367 = vector.shape_cast %366 : vector<1x2x1xf32> to vector<2x1xf32>
    %368 = vector.broadcast %367 : vector<2x1xf32> to vector<2x128xf32>
    %369 = arith.addf %365, %368 : vector<2x128xf32>
    %cst_101 = arith.constant 0.000000e+00 : f32
    %370 = vector.broadcast %cst_101 : f32 to vector<2x128xf32>
    %371 = arith.cmpf oge, %369, %370 : vector<2x128xf32>
    %cst_102 = arith.constant 2.000000e-01 : f32
    %372 = vector.broadcast %cst_102 : f32 to vector<2x128xf32>
    %373 = arith.mulf %372, %369 : vector<2x128xf32>
    %374 = arith.select %371, %369, %373 : vector<2x128xi1>, vector<2x128xf32>
    %375 = vector.extract_strided_slice %374 {offsets = [0, 3], sizes = [2, 1], strides = [1, 1]} : vector<2x128xf32> to vector<2x1xf32>
    %376 = vector.extract_strided_slice %374 {offsets = [0, 2], sizes = [2, 1], strides = [1, 1]} : vector<2x128xf32> to vector<2x1xf32>
    %377 = vector.extract_strided_slice %374 {offsets = [0, 1], sizes = [2, 1], strides = [1, 1]} : vector<2x128xf32> to vector<2x1xf32>
    %378 = vector.extract_strided_slice %374 {offsets = [0, 126], sizes = [2, 1], strides = [1, 1]} : vector<2x128xf32> to vector<2x1xf32>
    %379 = vector.extract_strided_slice %374 {offsets = [0, 125], sizes = [2, 1], strides = [1, 1]} : vector<2x128xf32> to vector<2x1xf32>
    %380 = vector.extract_strided_slice %374 {offsets = [0, 124], sizes = [2, 1], strides = [1, 1]} : vector<2x128xf32> to vector<2x1xf32>
    %381 = tpu.concatenate %375, %376, %377, %374, %378, %379, %380 in 1 : vector<2x1xf32>, vector<2x1xf32>, vector<2x1xf32>, vector<2x128xf32>, vector<2x1xf32>, vector<2x1xf32>, vector<2x1xf32> -> vector<2x134xf32>
    %c0_103 = arith.constant 0 : index
    %c0_104 = arith.constant 0 : index
    %382 = vector.load %arg9[%c0_103, %c0_104] : memref<14x1xf32, #tpu.memory_space<vmem>>, vector<14x1xf32>
    %383 = vector.extract_strided_slice %382 {offsets = [0, 0], sizes = [2, 1], strides = [1, 1]} : vector<14x1xf32> to vector<2x1xf32>
    %384 = vector.extract_strided_slice %381 {offsets = [0, 0], sizes = [2, 128], strides = [1, 1]} : vector<2x134xf32> to vector<2x128xf32>
    %385 = vector.broadcast %383 : vector<2x1xf32> to vector<2x128xf32>
    %386 = arith.mulf %385, %384 : vector<2x128xf32>
    %cst_105 = arith.constant dense<0.000000e+00> : vector<128xf32>
    %387 = vector.multi_reduction <add>, %386, %cst_105 [0] : vector<2x128xf32> to vector<128xf32>
    %388 = vector.shape_cast %387 : vector<128xf32> to vector<1x128xf32>
    %389 = vector.extract_strided_slice %382 {offsets = [2, 0], sizes = [2, 1], strides = [1, 1]} : vector<14x1xf32> to vector<2x1xf32>
    %390 = vector.extract_strided_slice %381 {offsets = [0, 1], sizes = [2, 128], strides = [1, 1]} : vector<2x134xf32> to vector<2x128xf32>
    %391 = vector.broadcast %389 : vector<2x1xf32> to vector<2x128xf32>
    %392 = arith.mulf %391, %390 : vector<2x128xf32>
    %cst_106 = arith.constant dense<0.000000e+00> : vector<128xf32>
    %393 = vector.multi_reduction <add>, %392, %cst_106 [0] : vector<2x128xf32> to vector<128xf32>
    %394 = vector.shape_cast %393 : vector<128xf32> to vector<1x128xf32>
    %395 = arith.addf %388, %394 : vector<1x128xf32>
    %396 = vector.extract_strided_slice %382 {offsets = [4, 0], sizes = [2, 1], strides = [1, 1]} : vector<14x1xf32> to vector<2x1xf32>
    %397 = vector.extract_strided_slice %381 {offsets = [0, 2], sizes = [2, 128], strides = [1, 1]} : vector<2x134xf32> to vector<2x128xf32>
    %398 = vector.broadcast %396 : vector<2x1xf32> to vector<2x128xf32>
    %399 = arith.mulf %398, %397 : vector<2x128xf32>
    %cst_107 = arith.constant dense<0.000000e+00> : vector<128xf32>
    %400 = vector.multi_reduction <add>, %399, %cst_107 [0] : vector<2x128xf32> to vector<128xf32>
    %401 = vector.shape_cast %400 : vector<128xf32> to vector<1x128xf32>
    %402 = arith.addf %395, %401 : vector<1x128xf32>
    %403 = vector.extract_strided_slice %382 {offsets = [6, 0], sizes = [2, 1], strides = [1, 1]} : vector<14x1xf32> to vector<2x1xf32>
    %404 = vector.extract_strided_slice %381 {offsets = [0, 3], sizes = [2, 128], strides = [1, 1]} : vector<2x134xf32> to vector<2x128xf32>
    %405 = vector.broadcast %403 : vector<2x1xf32> to vector<2x128xf32>
    %406 = arith.mulf %405, %404 : vector<2x128xf32>
    %cst_108 = arith.constant dense<0.000000e+00> : vector<128xf32>
    %407 = vector.multi_reduction <add>, %406, %cst_108 [0] : vector<2x128xf32> to vector<128xf32>
    %408 = vector.shape_cast %407 : vector<128xf32> to vector<1x128xf32>
    %409 = arith.addf %402, %408 : vector<1x128xf32>
    %410 = vector.extract_strided_slice %382 {offsets = [8, 0], sizes = [2, 1], strides = [1, 1]} : vector<14x1xf32> to vector<2x1xf32>
    %411 = vector.extract_strided_slice %381 {offsets = [0, 4], sizes = [2, 128], strides = [1, 1]} : vector<2x134xf32> to vector<2x128xf32>
    %412 = vector.broadcast %410 : vector<2x1xf32> to vector<2x128xf32>
    %413 = arith.mulf %412, %411 : vector<2x128xf32>
    %cst_109 = arith.constant dense<0.000000e+00> : vector<128xf32>
    %414 = vector.multi_reduction <add>, %413, %cst_109 [0] : vector<2x128xf32> to vector<128xf32>
    %415 = vector.shape_cast %414 : vector<128xf32> to vector<1x128xf32>
    %416 = arith.addf %409, %415 : vector<1x128xf32>
    %417 = vector.extract_strided_slice %382 {offsets = [10, 0], sizes = [2, 1], strides = [1, 1]} : vector<14x1xf32> to vector<2x1xf32>
    %418 = vector.extract_strided_slice %381 {offsets = [0, 5], sizes = [2, 128], strides = [1, 1]} : vector<2x134xf32> to vector<2x128xf32>
    %419 = vector.broadcast %417 : vector<2x1xf32> to vector<2x128xf32>
    %420 = arith.mulf %419, %418 : vector<2x128xf32>
    %cst_110 = arith.constant dense<0.000000e+00> : vector<128xf32>
    %421 = vector.multi_reduction <add>, %420, %cst_110 [0] : vector<2x128xf32> to vector<128xf32>
    %422 = vector.shape_cast %421 : vector<128xf32> to vector<1x128xf32>
    %423 = arith.addf %416, %422 : vector<1x128xf32>
    %424 = vector.extract_strided_slice %382 {offsets = [12, 0], sizes = [2, 1], strides = [1, 1]} : vector<14x1xf32> to vector<2x1xf32>
    %425 = vector.extract_strided_slice %381 {offsets = [0, 6], sizes = [2, 128], strides = [1, 1]} : vector<2x134xf32> to vector<2x128xf32>
    %426 = vector.broadcast %424 : vector<2x1xf32> to vector<2x128xf32>
    %427 = arith.mulf %426, %425 : vector<2x128xf32>
    %cst_111 = arith.constant dense<0.000000e+00> : vector<128xf32>
    %428 = vector.multi_reduction <add>, %427, %cst_111 [0] : vector<2x128xf32> to vector<128xf32>
    %429 = vector.shape_cast %428 : vector<128xf32> to vector<1x128xf32>
    %430 = arith.addf %423, %429 : vector<1x128xf32>
    %c0_112 = arith.constant 0 : index
    %c0_113 = arith.constant 0 : index
    %431 = vector.load %arg10[%c0_112, %c0_113] : memref<1x1xf32, #tpu.memory_space<vmem>>, vector<1x1xf32>
    %432 = vector.broadcast %431 : vector<1x1xf32> to vector<1x128xf32>
    %433 = arith.addf %430, %432 : vector<1x128xf32>
    %434 = math.tanh %433 : vector<1x128xf32>
    %c0_114 = arith.constant 0 : index
    %c0_115 = arith.constant 0 : index
    %c0_116 = arith.constant 0 : index
    %435 = vector.load %arg11[%c0_114, %c0_115, %c0_116] : memref<1x1x128xf32, #tpu.memory_space<vmem>>, vector<1x1x128xf32>
    %436 = vector.shape_cast %435 : vector<1x1x128xf32> to vector<1x128xf32>
    %437 = vector.shape_cast %434 : vector<1x128xf32> to vector<1x1x128xf32>
    tpu.vector_store %arg11[%c0_114, %c0_115, %c0_116], %437 {strides = array<i32>} : memref<1x1x128xf32, #tpu.memory_space<vmem>>, vector<1x1x128xf32>,
    return
  }
  func.func @transform_0(%arg0: i32) -> (i32, i32, i32) {
    %c0_i32 = arith.constant 0 : i32
    %c0_i32_0 = arith.constant 0 : i32
    %c0_i32_1 = arith.constant 0 : i32
    return %arg0, %c0_i32, %c0_i32_0 : i32, i32, i32
  }
  func.func @transform_1(%arg0: i32) -> (i32, i32, i32) {
    %c0_i32 = arith.constant 0 : i32
    %c0_i32_0 = arith.constant 0 : i32
    %c0_i32_1 = arith.constant 0 : i32
    %c0_i32_2 = arith.constant 0 : i32
    return %c0_i32, %c0_i32_0, %c0_i32_1 : i32, i32, i32
  }
  func.func @transform_2(%arg0: i32) -> (i32, i32) {
    %c0_i32 = arith.constant 0 : i32
    %c0_i32_0 = arith.constant 0 : i32
    %c0_i32_1 = arith.constant 0 : i32
    return %c0_i32, %c0_i32_0 : i32, i32
  }
  func.func @transform_3(%arg0: i32) -> (i32, i32, i32) {
    %c0_i32 = arith.constant 0 : i32
    %c0_i32_0 = arith.constant 0 : i32
    %c0_i32_1 = arith.constant 0 : i32
    %c0_i32_2 = arith.constant 0 : i32
    return %c0_i32, %c0_i32_0, %c0_i32_1 : i32, i32, i32
  }
  func.func @transform_4(%arg0: i32) -> (i32, i32, i32) {
    %c0_i32 = arith.constant 0 : i32
    %c0_i32_0 = arith.constant 0 : i32
    %c0_i32_1 = arith.constant 0 : i32
    %c0_i32_2 = arith.constant 0 : i32
    return %c0_i32, %c0_i32_0, %c0_i32_1 : i32, i32, i32
  }
  func.func @transform_5(%arg0: i32) -> (i32, i32, i32) {
    %c0_i32 = arith.constant 0 : i32
    %c0_i32_0 = arith.constant 0 : i32
    %c0_i32_1 = arith.constant 0 : i32
    %c0_i32_2 = arith.constant 0 : i32
    return %c0_i32, %c0_i32_0, %c0_i32_1 : i32, i32, i32
  }
  func.func @transform_6(%arg0: i32) -> (i32, i32, i32) {
    %c0_i32 = arith.constant 0 : i32
    %c0_i32_0 = arith.constant 0 : i32
    %c0_i32_1 = arith.constant 0 : i32
    %c0_i32_2 = arith.constant 0 : i32
    return %c0_i32, %c0_i32_0, %c0_i32_1 : i32, i32, i32
  }
  func.func @transform_7(%arg0: i32) -> (i32, i32, i32) {
    %c0_i32 = arith.constant 0 : i32
    %c0_i32_0 = arith.constant 0 : i32
    %c0_i32_1 = arith.constant 0 : i32
    %c0_i32_2 = arith.constant 0 : i32
    return %c0_i32, %c0_i32_0, %c0_i32_1 : i32, i32, i32
  }
  func.func @transform_8(%arg0: i32) -> (i32, i32) {
    %c0_i32 = arith.constant 0 : i32
    %c0_i32_0 = arith.constant 0 : i32
    %c0_i32_1 = arith.constant 0 : i32
    return %c0_i32, %c0_i32_0 : i32, i32
  }
  func.func @transform_9(%arg0: i32) -> (i32, i32) {
    %c0_i32 = arith.constant 0 : i32
    %c0_i32_0 = arith.constant 0 : i32
    %c0_i32_1 = arith.constant 0 : i32
    return %c0_i32, %c0_i32_0 : i32, i32
  }
  func.func @transform_10(%arg0: i32) -> (i32, i32, i32) {
    %c0_i32 = arith.constant 0 : i32
    %c0_i32_0 = arith.constant 0 : i32
    %c0_i32_1 = arith.constant 0 : i32
    return %arg0, %c0_i32, %c0_i32_0 : i32, i32, i32
  }
}

</mosaic_0001>

<bundles_post_ra>
// kernel: melgan_forward.5
= control target key start
LH: loop header
LB: loop body
LE: loop exit
PB: predicated region body
PF: predicated region fallthrough
CT: control target
= control target key end

     0   :  { %s1644_s27 = smov 0   ;;  %s1821_s0 = inlined_call_operand.vmem [shape: bf16[2,16,16], index: 0, kind: input, shape index: {}]   ;;  %s1822_s1 = inlined_call_operand.vmem [shape: f32[2,8,32], index: 1, kind: input, shape index: {}]   ;;  %s1823_s2 = inlined_call_operand.vmem [shape: f32[8,1], index: 2, kind: input, shape index: {}]   ;;  %s1824_s3 = inlined_call_operand.vmem [shape: f32[3,8,24], index: 3, kind: input, shape index: {}]   ;;  %s1825_s4 = inlined_call_operand.vmem [shape: f32[3,8,1], index: 4, kind: input, shape index: {}]   ;;  %s1826_s5 = inlined_call_operand.vmem [shape: f32[3,8,16], index: 5, kind: input, shape index: {}]   ;;  %s1827_s6 = inlined_call_operand.vmem [shape: f32[3,8,1], index: 6, kind: input, shape index: {}]   ;;  %s1828_s7 = inlined_call_operand.vmem [shape: f32[2,16,32], index: 7, kind: input, shape index: {}]   ;;  %s1829_s8 = inlined_call_operand.vmem [shape: bf16[2,8,32], index: 8, kind: output, shape index: {}]  }
   0x1 LB: > { %s1372_s28 = sadd.s32 4294967295, %s1571_s27   ;;  %p1376_p0 = scmp.ge.s32.totalorder %s1571_s27, 1  ;;  %s1571_s27 = sphi %s1644_s27, %s18_s27  }
   0x2   : > { %p262_p1 = scmp.lt.s32.totalorder %s1571_s27, 3 }
   0x4   : > { %p263_p2 = pnand %p1376_p0, %p262_p1 }
   0x5   : > { %p295_p3 = scmp.lt.s32.totalorder (!%p263_p2), %s1372_s28, 1  ;;  %s1574_s11 = smov (!%p263_p2), 1  }
   0x6   : > { %266 = sbr.rel (%p263_p2) target bundleno = 2805 (0xaf5), region = 52  ;;  %s1575_s12 = smov (!%p263_p2), 127  }
   0x7   : > { %s1579_s30 = smov (!%p263_p2), 126   ;;  %s1580_s19 = smov (!%p263_p2), 125  }
   0x8   : > { %s1581_s20 = smov (!%p263_p2), 7   ;;  %s1582_s21 = smov (!%p263_p2), 5  }
   0x9   : > { %s1583_s22 = smov (!%p263_p2), 9   ;;  %s1584_s23 = smov (!%p263_p2), 122  }
   0xa   : > { %s1585_s15 = smov (!%p263_p2), 106   ;;  %s1586_s16 = smov (!%p263_p2), 104  }
   0xb   : > { %s1831_s28 = smov (!%p295_p3, %s1372_s28), 1  ;;  %v1573_v1 = vmov 0.0   ;;  %vm322_vm2 = vcmask 7168   ;;  %vm325_vm3 = vcmask 138240   ;;  %vm1576_vm4 = vmmov 0   ;;  %v328_v16 = vld [vmem:[%s1823_s2] sm:$0xff] }
   0xc   : > { %s1403_s29 = sshll.u32 %s1831_s28, 3  ;;  %1445 = vmatprep.subr.mxu0 %v1573_v1  ;;  %1456 = vmatprep.subr.mxu1 %v1573_v1  ;;  %v1577_v14 = vmov 0   ;;  %v329_v18 = vld [vmem:[%s1822_s1] sm:$0xff]  ;;  %vm343_vm5 = vcmask 261120   ;;  %v1383_v21 = vld [vmem:[%s1822_s1 + $0x8] sm:$0xff]  ;;  %v501_v23 = vld [vmem:[%s1828_s7 + $0x18] sm:$0xff] }
   0xd   : > { %s299_s10 = scalar_lea.vmem %s1821_s0, %s1403_s29  ;;  %1453 = vmatprep.mubr.msk.f32.mxu0 %vm1576_vm4, %v1573_v1  ;;  %1464 = vmatprep.mubr.msk.f32.mxu1 %vm1576_vm4, %v1573_v1  ;;  %v499_v22 = vld [vmem:[%s1828_s7 + $0x8] sm:$0xff]  ;;  %v498_v24 = vld [vmem:[%s1828_s7] sm:$0xff]  ;;  %v500_v25 = vld [vmem:[%s1828_s7 + $0x10] sm:$0xff]  ;;  %vm502_vm6 = vcmask 130048   ;;  %s1578_s29 = smov 3   ;;  %vm660_vm7 = vcmask 269312  }
   0xe   : > { %v1405_v0 = vld [vmem:[%s299_s10] sm:$0xff]   ;;  %1563 = vset.pattern.permute.xlu0 %v1577_v14  ;;  %1564 = vset.pattern.permute.xlu1 %v1577_v14  ;;  %vm679_vm9 = vcmask 195584   ;;  %vm859_vm11 = vcmask 15360   ;;  %vm861_vm12 = vcmask 23552   ;;  %vm863_vm13 = vcmask 285696   ;;  %v1390_v14 = vld [vmem:[%s1825_s4 + $0x8] sm:$0xff] }
   0xf   : > { %v1407_v2 = vunpack.c.h.bf16 %v1405_v0  ;;  %v1406_v3 = vunpack.c.l.bf16 %v1405_v0  ;;  %v757_v45 = vld [vmem:[%s1827_s6] sm:$0xff]  ;;  %vm865_vm14 = vcmask 293888   ;;  %vm867_vm15 = vcmask 302080   ;;  %s1587_s17 = smov 119   ;;  %s1588_s18 = smov 108  }
  0x10   : > { %v673_v46 = vld [vmem:[%s1825_s4] sm:$0xff]  ;;  %s1590_s24 = smov 121   ;;  %s1591_s25 = smov 11  }
  0x11   : > { %vm309_vm0 = vcmp.ge.f32.partialorder %v1407_v2, 0.0  ;;  %v311_v4 = vmul.f32 0.2, %v1407_v2  ;;  %v310_v5 = vmul.f32 0.2, %v1406_v3  ;;  %vm308_vm1 = vcmp.ge.f32.partialorder %v1406_v3, 0.0 }
  0x12   : > { %v665_v49 = vld [vmem:[%s1824_s3] sm:$0xff]  ;;  %s1592_s26 = smov 15   ;;  %s1594_s9 = smov 19  }
  0x13   : > { %v313_v6 = vsel %vm309_vm0, %v1407_v2, %v311_v4  ;;  %v312_v7 = vsel %vm308_vm1, %v1406_v3, %v310_v5  ;;  %v756_v55 = vld [vmem:[%s1826_s5] sm:$0xff] }
  0x14   : > { %318 = vrot.lane.b32.xlu0 %v313_v6, %s1574_s11 }
  0x18   : > { %316 = vrot.lane.b32.xlu0 %v312_v7, %s1574_s11 }
  0x86   : > { %v319_v8 = vpop.permute.xlu0 %318 }
  0x87   : > { %v324_v9 = vsel %vm322_vm2, 0.0, %v319_v8 }
  0x88   : > { %v327_v10 = vsel %vm325_vm3, %v324_v9, 0.0 }
  0x89   : > { %334 = vrot.lane.b32.xlu1 %v327_v10, %s1575_s12 }
  0x8a   : > { %v317_v11 = vpop.permute.xlu0 %316 }
  0x8b   : > { %v323_v12 = vsel %vm322_vm2, 0.0, %v317_v11 }
  0x8c   : > { %v326_v13 = vsel %vm325_vm3, %v323_v12, 0.0 }
  0x8d   : > { %332 = vrot.lane.b32.xlu1 %v326_v13, %s1575_s12  ;;  %v1393_v13 = vld [vmem:[%s1827_s6 + $0x8] sm:$0xff] }
  0xfb   : > { %v335_v15 = vpop.permute.xlu1 %334 }
  0xfc   : > { %1446 = vmatpush3.msra.mxu0 %v335_v15  ;;  %421 = vrot.lane.b32.xlu0 %v335_v15, %s1575_s12 }
  0xfd   : > { %1447 = vmatprep.subr.mxu0 %v1573_v1 }
  0xff   : > { %v333_v17 = vpop.permute.xlu1 %332 }
 0x100   : > { %1448 = vmatpush3.msra.mxu0 %v333_v17  ;;  %419 = vrot.lane.b32.xlu1 %v333_v17, %s1575_s12 }
 0x101   : > { %1449 = vmatprep.subr.mxu0 %v1573_v1  ;;  %340 = vperm.xlu0 %1563, %v328_v16  }
 0x102   : > { %1450 = vmatpush3.msk.msra.mxu0 %vm325_vm3, %v324_v9 }
 0x103   : > { %1451 = vmatprep.subr.mxu0 %v1573_v1 }
 0x104   : > { %1452 = vmatpush3.msk.msra.mxu0 %vm325_vm3, %v323_v12  ;;  %vm1098_vm3 = vcmask 31744  }
 0x105   : > { %1454 = vmatmul.mubr.msk.f32.vlgmr.msra.gmra.mxu0 %vm343_vm5, %v329_v18  ;;  %1467 = vmatprep.subr.mxu0 %v1573_v1 }
 0x106   : > { %1471 = vmatprep.mubr.msk.f32.mxu0 %vm1576_vm4, %v1573_v1  ;;  %1468 = vmatpush3.msra.mxu0 %v501_v23  ;;  %v1392_v23 = vld [vmem:[%s1826_s5 + $0x8] sm:$0xff] }
 0x107   : > { %1469 = vmatprep.subr.mxu0 %v1573_v1 }
 0x108   : > { %1470 = vmatpush3.msra.mxu0 %v500_v25 }
 0x109   : > { %1481 = vmatprep.subr.mxu0 %v1573_v1 }
 0x16e   : > { %v422_v19 = vpop.permute.xlu0 %421 }
 0x16f   : > { %1457 = vmatpush3.msra.mxu1 %v422_v19 }
 0x170   : > { %1458 = vmatprep.subr.mxu1 %v1573_v1 }
 0x172   : > { %v420_v20 = vpop.permute.xlu1 %419 }
 0x173   : > { %1459 = vmatpush3.msra.mxu1 %v420_v20 }
 0x174   : > { %1460 = vmatprep.subr.mxu1 %v1573_v1 }
 0x175   : > { %1461 = vmatpush3.msra.mxu1 %v335_v15 }
 0x176   : > { %1462 = vmatprep.subr.mxu1 %v1573_v1 }
 0x177   : > { %1463 = vmatpush3.msra.mxu1 %v333_v17  ;;  %v1389_v17 = vld [vmem:[%s1824_s3 + $0x8] sm:$0xff] }
 0x178   : > { %1465 = vmatmul.mubr.msk.f32.vlgmr.msra.gmra.mxu1 %vm343_vm5, %v1383_v21  ;;  %1474 = vmatprep.subr.mxu1 %v1573_v1  ;;  %vm1102_vm5 = vcmask 48128  }
 0x179   : > { %1475 = vmatpush3.msra.mxu1 %v499_v22  ;;  %1478 = vmatprep.mubr.msk.f32.mxu1 %vm1576_vm4, %v1573_v1 }
 0x17a   : > { %1476 = vmatprep.subr.mxu1 %v1573_v1 }
 0x17b   : > { %1477 = vmatpush3.msra.mxu1 %v498_v24 }
 0x17c   : > { %1490 = vmatprep.subr.mxu1 %v1573_v1  ;;  %v341_v26 = vpop.permute.xlu0 %340 }
 0x1c5   : > { %v413_v27 = vpop.f32.mrf.mxu0 }
 0x1c6   : > { %v414_v28 = vadd.f32 %v413_v27, %v341_v26 }
 0x1c7   : > { %v1455_v29 = vpop.f32.mrf.mxu0 }
 0x1c8   : > { %1479 = vmatmul.mubr.msk.f32.vlgmr.msra.gmra.mxu1 %vm502_vm6, %v414_v28 }
 0x1c9   : > { %1494 = vmatprep.mubr.msk.f32.mxu1 %vm1576_vm4, %v1573_v1 }
 0x238   : > { %v494_v30 = vpop.f32.mrf.mxu1 }
 0x239   : > { %v495_v31 = vadd.f32 %v494_v30, %v341_v26 }
 0x23a   : > { %v1466_v32 = vpop.f32.mrf.mxu1 }
 0x23b   : > { %1472 = vmatmul.mubr.msk.f32.vlgmr.msra.gmra.mxu0 %vm502_vm6, %v495_v31 }
 0x23c   : > { %1487 = vmatprep.mubr.msk.f32.mxu0 %vm1576_vm4, %v1573_v1 }
 0x288   : > { %v645_v33 = vpop.f32.mrf.mxu1 }
 0x28a   : > { %v1480_v34 = vpop.f32.mrf.mxu1 }
 0x2fb   : > { %v572_v35 = vpop.f32.mrf.mxu0 }
 0x2fc   : > { %v646_v36 = vadd.f32 %v645_v33, %v572_v35 }
 0x2fd   : > { %v1473_v37 = vpop.f32.mrf.mxu0 }
 0x2fe   : > { %656 = vrot.lane.b32.xlu0 %v646_v36, %s1578_s29  ;;  %650 = vrot.lane.b32.xlu1 %v646_v36, %s1575_s12 }
 0x2ff   : > { %1491 = vmatpush3.msra.mxu1 %v646_v36 }
 0x300   : > { %1492 = vmatprep.subr.mxu1 %v1573_v1 }
 0x302   : > { %653 = vrot.lane.b32.xlu1 %v646_v36, %s1574_s11 }
 0x370   : > { %v651_v38 = vpop.permute.xlu1 %650  ;;  %v657_v40 = vpop.permute.xlu0 %656 }
 0x374   : > { %v654_v39 = vpop.permute.xlu1 %653 }
 0x375   : > { %v659_v41 = vsel %vm322_vm2, %v651_v38, %v654_v39 }
 0x376   : > { %v661_v42 = vsel %vm660_vm7, %v659_v41, %v657_v40  ;;  %vm1104_vm7 = vcmask 56320  }
 0x377   : > { %vm662_vm8 = vcmp.ge.f32.partialorder %v661_v42, 0.0  ;;  %v663_v43 = vmul.f32 0.2, %v661_v42 }
 0x379   : > { %v664_v44 = vsel %vm662_vm8, %v661_v42, %v663_v43  ;;  %vm1106_vm8 = vcmask 64512  }
 0x37a   : > { %667 = vrot.lane.b32.xlu0 %v664_v44, %s1575_s12  ;;  %670 = vrot.lane.b32.xlu1 %v664_v44, %s1579_s30  ;;  %s1593_s30 = smov 13  }
 0x37e   : > { %760 = vperm.xlu0 %1563, %v757_v45   ;;  %676 = vperm.xlu1 %1564, %v673_v46  }
 0x3ec   : > { %v671_v47 = vpop.permute.xlu1 %670  ;;  %v668_v48 = vpop.permute.xlu0 %667 }
 0x3ed   : > { %1482 = vmatpush3.msra.mxu0 %v671_v47 }
 0x3ee   : > { %1483 = vmatprep.subr.mxu0 %v1573_v1 }
 0x3ef   : > { %1484 = vmatpush3.msra.mxu0 %v668_v48 }
 0x3f0   : > { %1485 = vmatprep.subr.mxu0 %v1573_v1 }
 0x3f1   : > { %1486 = vmatpush3.msra.mxu0 %v664_v44 }
 0x3f2   : > { %1488 = vmatmul.mubr.msk.f32.vlgmr.msra.gmra.mxu0 %vm679_vm9, %v665_v49  ;;  %1506 = vmatprep.subr.mxu0 %v1573_v1 }
 0x3f3   : > { %1510 = vmatprep.mubr.msk.f32.mxu0 %vm1576_vm4, %v1573_v1 }
 0x3f9   : > { %v677_v50 = vpop.permute.xlu1 %676  ;;  %v761_v57 = vpop.permute.xlu0 %760 }
 0x4b2   : > { %v749_v51 = vpop.f32.mrf.mxu0 }
 0x4b3   : > { %v750_v52 = vadd.f32 %v749_v51, %v677_v50 }
 0x4b4   : > { %v1489_v53 = vpop.f32.mrf.mxu0 }
 0x4b5   : > { %vm753_vm10 = vcmp.ge.f32.partialorder %v750_v52, 0.0  ;;  %v754_v54 = vmul.f32 0.2, %v750_v52 }
 0x4b7   : > { %v755_v56 = vsel %vm753_vm10, %v750_v52, %v754_v54  ;;  %vm1108_vm10 = vcmask 72704  }
 0x4b8   : > { %1493 = vmatpush3.msra.mxu1 %v755_v56 }
 0x4b9   : > { %1495 = vmatmul.mubr.msk.f32.vlgmr.msra.gmra.mxu1 %vm502_vm6, %v756_v55  ;;  %1497 = vmatprep.subr.mxu1 %v1573_v1 }
 0x4ba   : > { %1503 = vmatprep.mubr.msk.f32.mxu1 %vm1576_vm4, %v1573_v1 }
 0x579   : > { %v832_v58 = vpop.f32.mrf.mxu1 }
 0x57a   : > { %v833_v59 = vadd.f32 %v832_v58, %v761_v57 }
 0x57b   : > { %v1496_v60 = vpop.f32.mrf.mxu1 }
 0x57c   : > { %840 = vrot.lane.b32.xlu0 %v833_v59, %s1575_s12  ;;  %837 = vrot.lane.b32.xlu1 %v833_v59, %s1580_s19 }
 0x57d   : > { %1507 = vmatpush3.msra.mxu0 %v833_v59 }
 0x57e   : > { %1508 = vmatprep.subr.mxu0 %v1573_v1 }
 0x580   : > { %846 = vrot.lane.b32.xlu0 %v833_v59, %s1578_s29  ;;  %843 = vrot.lane.b32.xlu1 %v833_v59, %s1574_s11 }
 0x584   : > { %852 = vrot.lane.b32.xlu0 %v833_v59, %s1581_s20  ;;  %849 = vrot.lane.b32.xlu1 %v833_v59, %s1582_s21 }
 0x588   : > { %855 = vrot.lane.b32.xlu1 %v833_v59, %s1583_s22 }
 0x5ee   : > { %v841_v61 = vpop.permute.xlu0 %840  ;;  %v838_v62 = vpop.permute.xlu1 %837 }
 0x5ef   : > { %v858_v63 = vsel %vm322_vm2, %v838_v62, %v841_v61 }
 0x5f2   : > { %v847_v0 = vpop.permute.xlu0 %846  ;;  %v844_v2 = vpop.permute.xlu1 %843 }
 0x5f3   : > { %v860_v3 = vsel %vm859_vm11, %v858_v63, %v844_v2 }
 0x5f4   : > { %v862_v4 = vsel %vm861_vm12, %v860_v3, %v847_v0 }
 0x5f6   : > { %v850_v5 = vpop.permute.xlu1 %849  ;;  %v853_v6 = vpop.permute.xlu0 %852 }
 0x5f7   : > { %v864_v7 = vsel %vm863_vm13, %v862_v4, %v850_v5  ;;  %vm1116_vm13 = vcmask 359424  }
 0x5f8   : > { %v866_v8 = vsel %vm865_vm14, %v864_v7, %v853_v6  ;;  %vm1118_vm14 = vcmask 367616   ;;  %v1399_v6 = vld [vmem:[%s1827_s6 + $0x10] sm:$0xff] }
 0x5f9   : > { %v1396_v7 = vld [vmem:[%s1825_s4 + $0x10] sm:$0xff] }
 0x5fa   : > { %v856_v9 = vpop.permute.xlu1 %855 }
 0x5fb   : > { %v868_v10 = vsel %vm867_vm15, %v866_v8, %v856_v9  ;;  %vm1120_vm15 = vcmask 375808  }
 0x5fc   : > { %v870_v11 = vmul.f32 0.2, %v868_v10  ;;  %vm869_vm0 = vcmp.ge.f32.partialorder %v868_v10, 0.0 }
 0x5fe   : > { %v871_v12 = vsel %vm869_vm0, %v868_v10, %v870_v11  ;;  %vm1137_vm0 = vcmask 384000   ;;  %v1395_v10 = vld [vmem:[%s1824_s3 + $0x10] sm:$0xff] }
 0x5ff   : > { %875 = vrot.lane.b32.xlu1 %v871_v12, %s1580_s19  ;;  %878 = vrot.lane.b32.xlu0 %v871_v12, %s1584_s23  ;;  %s1589_s23 = smov 123  }
 0x603   : > { %970 = vperm.xlu1 %1564, %v1393_v13   ;;  %885 = vperm.xlu0 %1563, %v1390_v14  }
 0x671   : > { %v879_v15 = vpop.permute.xlu0 %878  ;;  %v876_v16 = vpop.permute.xlu1 %875 }
 0x672   : > { %1498 = vmatpush3.msra.mxu1 %v879_v15 }
 0x673   : > { %1499 = vmatprep.subr.mxu1 %v1573_v1 }
 0x674   : > { %1500 = vmatpush3.msra.mxu1 %v876_v16  ;;  %v1398_v16 = vld [vmem:[%s1826_s5 + $0x10] sm:$0xff] }
 0x675   : > { %1501 = vmatprep.subr.mxu1 %v1573_v1 }
 0x676   : > { %1502 = vmatpush3.msra.mxu1 %v871_v12 }
 0x677   : > { %1504 = vmatmul.mubr.msk.f32.vlgmr.msra.gmra.mxu1 %vm679_vm9, %v1389_v17  ;;  %1522 = vmatprep.subr.mxu1 %v1573_v1 }
 0x678   : > { %1526 = vmatprep.mubr.msk.f32.mxu1 %vm1576_vm4, %v1573_v1 }
 0x67e   : > { %v886_v18 = vpop.permute.xlu0 %885  ;;  %v971_v25 = vpop.permute.xlu1 %970 }
 0x737   : > { %v957_v19 = vpop.f32.mrf.mxu1 }
 0x738   : > { %v958_v20 = vadd.f32 %v957_v19, %v886_v18 }
 0x739   : > { %v1505_v21 = vpop.f32.mrf.mxu1 }
 0x73a   : > { %vm961_vm1 = vcmp.ge.f32.partialorder %v958_v20, 0.0  ;;  %v962_v22 = vmul.f32 0.2, %v958_v20 }
 0x73c   : > { %v963_v24 = vsel %vm961_vm1, %v958_v20, %v962_v22 }
 0x73d   : > { %1509 = vmatpush3.msra.mxu0 %v963_v24 }
 0x73e   : > { %1511 = vmatmul.mubr.msk.f32.vlgmr.msra.gmra.mxu0 %vm502_vm6, %v1392_v23  ;;  %1513 = vmatprep.subr.mxu0 %v1573_v1 }
 0x73f   : > { %1519 = vmatprep.mubr.msk.f32.mxu0 %vm1576_vm4, %v1573_v1  ;;  %vm1100_vm4 = vcmask 39936  }
 0x7fe   : > { %v1042_v26 = vpop.f32.mrf.mxu0 }
 0x7ff   : > { %v1043_v27 = vadd.f32 %v1042_v26, %v971_v25 }
 0x800   : > { %v1512_v28 = vpop.f32.mrf.mxu0 }
 0x801   : > { %1125 = vrot.lane.b32.xlu1 %v1043_v27, %s1585_s15  ;;  %1122 = vrot.lane.b32.xlu0 %v1043_v27, %s1586_s16 }
 0x802   : > { %1523 = vmatpush3.msra.mxu1 %v1043_v27 }
 0x803   : > { %1524 = vmatprep.subr.mxu1 %v1573_v1 }
 0x805   : > { %1047 = vrot.lane.b32.xlu1 %v1043_v27, %s1587_s17  ;;  %1128 = vrot.lane.b32.xlu0 %v1043_v27, %s1588_s18 }
 0x809   : > { %1053 = vrot.lane.b32.xlu1 %v1043_v27, %s1589_s23  ;;  %1050 = vrot.lane.b32.xlu0 %v1043_v27, %s1590_s24 }
 0x80d   : > { %1059 = vrot.lane.b32.xlu1 %v1043_v27, %s1575_s12  ;;  %1056 = vrot.lane.b32.xlu0 %v1043_v27, %s1580_s19  ;;  %s1595_s12 = smov 17   ;;  %s1596_s19 = smov 21  }
 0x811   : > { %1065 = vrot.lane.b32.xlu1 %v1043_v27, %s1578_s29  ;;  %1062 = vrot.lane.b32.xlu0 %v1043_v27, %s1574_s11  ;;  %s1597_s11 = smov 47   ;;  %s1598_s29 = smov 110  }
 0x815   : > { %1071 = vrot.lane.b32.xlu1 %v1043_v27, %s1581_s20  ;;  %1068 = vrot.lane.b32.xlu0 %v1043_v27, %s1582_s21 }
 0x819   : > { %1077 = vrot.lane.b32.xlu1 %v1043_v27, %s1591_s25  ;;  %1074 = vrot.lane.b32.xlu0 %v1043_v27, %s1583_s22 }
 0x81d   : > { %1083 = vrot.lane.b32.xlu1 %v1043_v27, %s1592_s26  ;;  %1080 = vrot.lane.b32.xlu0 %v1043_v27, %s1593_s30 }
 0x821   : > { %1089 = vrot.lane.b32.xlu1 %v1043_v27, %s1594_s9  ;;  %1086 = vrot.lane.b32.xlu0 %v1043_v27, %s1595_s12 }
 0x825   : > { %1092 = vrot.lane.b32.xlu0 %v1043_v27, %s1596_s19 }
 0x873   : > { %v1123_v29 = vpop.permute.xlu0 %1122  ;;  %v1126_v30 = vpop.permute.xlu1 %1125 }
 0x874   : > { %v1131_v31 = vsel %vm322_vm2, %v1123_v29, %v1126_v30 }
 0x877   : > { %v1129_v32 = vpop.permute.xlu0 %1128  ;;  %v1048_v34 = vpop.permute.xlu1 %1047 }
 0x878   : > { %v1132_v33 = vsel %vm859_vm11, %v1131_v31, %v1129_v32 }
 0x879   : > { %1134 = vrot.lane.b32.xlu1 %v1132_v33, %s1597_s11 }
 0x87b   : > { %v1051_v35 = vpop.permute.xlu0 %1050  ;;  %v1054_v36 = vpop.permute.xlu1 %1053 }
 0x87c   : > { %v1095_v40 = vsel %vm322_vm2, %v1048_v34, %v1051_v35  ;;  %vm1110_vm2 = vcmask 334848  }
 0x87d   : > { %v1096_v43 = vsel %vm859_vm11, %v1095_v40, %v1054_v36  ;;  %vm1112_vm11 = vcmask 343040  }
 0x87f   : > { %v1057_v37 = vpop.permute.xlu0 %1056  ;;  %v1060_v38 = vpop.permute.xlu1 %1059 }
 0x880   : > { %v1097_v44 = vsel %vm861_vm12, %v1096_v43, %v1057_v37  ;;  %vm1114_vm12 = vcmask 351232  }
 0x881   : > { %v1099_v46 = vsel %vm1098_vm3, %v1097_v44, %v1060_v38 }
 0x883   : > { %v1063_v39 = vpop.permute.xlu0 %1062  ;;  %v1066_v41 = vpop.permute.xlu1 %1065 }
 0x884   : > { %v1101_v48 = vsel %vm1100_vm4, %v1099_v46, %v1063_v39 }
 0x885   : > { %v1103_v49 = vsel %vm1102_vm5, %v1101_v48, %v1066_v41 }
 0x887   : > { %v1069_v42 = vpop.permute.xlu0 %1068  ;;  %v1072_v45 = vpop.permute.xlu1 %1071 }
 0x888   : > { %v1105_v50 = vsel %vm1104_vm7, %v1103_v49, %v1069_v42 }
 0x889   : > { %v1107_v53 = vsel %vm1106_vm8, %v1105_v50, %v1072_v45 }
 0x88b   : > { %v1075_v47 = vpop.permute.xlu0 %1074  ;;  %v1078_v51 = vpop.permute.xlu1 %1077 }
 0x88c   : > { %v1109_v54 = vsel %vm1108_vm10, %v1107_v53, %v1075_v47 }
 0x88d   : > { %v1111_v56 = vsel %vm1110_vm2, %v1109_v54, %v1078_v51 }
 0x88f   : > { %v1081_v52 = vpop.permute.xlu0 %1080  ;;  %v1084_v55 = vpop.permute.xlu1 %1083 }
 0x890   : > { %v1113_v58 = vsel %vm1112_vm11, %v1111_v56, %v1081_v52 }
 0x891   : > { %v1115_v59 = vsel %vm1114_vm12, %v1113_v58, %v1084_v55 }
 0x893   : > { %v1087_v57 = vpop.permute.xlu0 %1086  ;;  %v1090_v60 = vpop.permute.xlu1 %1089 }
 0x894   : > { %v1117_v61 = vsel %vm1116_vm13, %v1115_v59, %v1087_v57 }
 0x895   : > { %v1119_v63 = vsel %vm1118_vm14, %v1117_v61, %v1090_v60 }
 0x897   : > { %v1093_v62 = vpop.permute.xlu0 %1092 }
 0x898   : > { %v1121_v0 = vsel %vm1120_vm15, %v1119_v63, %v1093_v62 }
 0x8eb   : > { %v1135_v2 = vpop.permute.xlu1 %1134 }
 0x8ec   : > { %v1138_v3 = vsel %vm1137_vm0, %v1121_v0, %v1135_v2 }
 0x8ed   : > { %v1140_v4 = vmul.f32 0.2, %v1138_v3  ;;  %vm1139_vm1 = vcmp.ge.f32.partialorder %v1138_v3, 0.0 }
 0x8ef   : > { %v1141_v5 = vsel %vm1139_vm1, %v1138_v3, %v1140_v4 }
 0x8f0   : > { %1145 = vrot.lane.b32.xlu1 %v1141_v5, %s1587_s17  ;;  %1148 = vrot.lane.b32.xlu0 %v1141_v5, %s1598_s29  ;;  %s1379_s17 = sshll.u32 %s1831_s28, 2 }
 0x8f1   : > { %s303_s24 = scalar_lea.vmem %s1829_s8, %s1379_s17 }
 0x8f4   : > { %1240 = vperm.xlu1 %1564, %v1399_v6   ;;  %1155 = vperm.xlu0 %1563, %v1396_v7  }
 0x962   : > { %v1149_v8 = vpop.permute.xlu0 %1148  ;;  %v1146_v9 = vpop.permute.xlu1 %1145 }
 0x963   : > { %1514 = vmatpush3.msra.mxu0 %v1149_v8 }
 0x964   : > { %1515 = vmatprep.subr.mxu0 %v1573_v1 }
 0x965   : > { %1516 = vmatpush3.msra.mxu0 %v1146_v9 }
 0x966   : > { %1517 = vmatprep.subr.mxu0 %v1573_v1 }
 0x967   : > { %1518 = vmatpush3.msra.mxu0 %v1141_v5 }
 0x968   : > { %1520 = vmatmul.mubr.msk.f32.vlgmr.msra.gmra.mxu0 %vm679_vm9, %v1395_v10  ;;  %vm1317_vm9 = vcmask 257024  }
 0x96f   : > { %v1156_v11 = vpop.permute.xlu0 %1155  ;;  %v1241_v18 = vpop.permute.xlu1 %1240 }
 0xa28   : > { %v1227_v12 = vpop.f32.mrf.mxu0 }
 0xa29   : > { %v1228_v13 = vadd.f32 %v1227_v12, %v1156_v11 }
 0xa2a   : > { %v1521_v14 = vpop.f32.mrf.mxu0 }
 0xa2b   : > { %vm1231_vm3 = vcmp.ge.f32.partialorder %v1228_v13, 0.0  ;;  %v1232_v15 = vmul.f32 0.2, %v1228_v13 }
 0xa2d   : > { %v1233_v17 = vsel %vm1231_vm3, %v1228_v13, %v1232_v15 }
 0xa2e   : > { %1525 = vmatpush3.msra.mxu1 %v1233_v17 }
 0xa2f   : > { %1527 = vmatmul.mubr.msk.f32.vlgmr.msra.gmra.mxu1 %vm502_vm6, %v1398_v16 }
 0xaef   : > { %v1312_v1 = vpop.f32.mrf.mxu1 }
 0xaf0   : > { %v1313_v19 = vadd.f32 %v1312_v1, %v1241_v18 }
 0xaf1   : > { %v1528_v20 = vpop.f32.mrf.mxu1 }
 0xaf2   : > { %v1316_v21 = vpack.c.bf16 %v1313_v19, %v1313_v19 }
 0xaf4   : > { %1318 = vst.msk [vmem:[%s303_s24] sm:$0xf] %vm1317_vm9, %v1316_v21 }
 0xaf5 PF: > { %s18_s27 = sadd.s32 1, %s1571_s27  }
 0xaf6   : > { %p15_p4 = scmp.ge.s32.totalorder %s18_s27, 4  }
 0xaf8   :  { %17 = sbr.rel (!%p15_p4) target bundleno = 1 (0x1), region = 91 }

// kernel: melgan_forward.4
= control target key start
LH: loop header
LB: loop body
LE: loop exit
PB: predicated region body
PF: predicated region fallthrough
CT: control target
= control target key end

     0   :  { %s2331_s13 = smov 0   ;;  %s2637_s0 = inlined_call_operand.vmem [shape: f32[2,8,8], index: 0, kind: input, shape index: {}]   ;;  %s2638_s1 = inlined_call_operand.vmem [shape: f32[32,56], index: 1, kind: input, shape index: {}]   ;;  %s2639_s2 = inlined_call_operand.vmem [shape: f32[32,1], index: 2, kind: input, shape index: {}]   ;;  %s2640_s3 = inlined_call_operand.vmem [shape: f32[2,16,64], index: 3, kind: input, shape index: {}]   ;;  %s2641_s4 = inlined_call_operand.vmem [shape: f32[16,1], index: 4, kind: input, shape index: {}]   ;;  %s2642_s5 = inlined_call_operand.vmem [shape: f32[3,16,48], index: 5, kind: input, shape index: {}]   ;;  %s2643_s6 = inlined_call_operand.vmem [shape: f32[3,16,1], index: 6, kind: input, shape index: {}]   ;;  %s2644_s7 = inlined_call_operand.vmem [shape: f32[3,16,32], index: 7, kind: input, shape index: {}]   ;;  %s2645_s8 = inlined_call_operand.vmem [shape: f32[3,16,1], index: 8, kind: input, shape index: {}]   ;;  %s2646_s9 = inlined_call_operand.vmem [shape: f32[2,8,16], index: 9, kind: input, shape index: {}]   ;;  %s2647_s10 = inlined_call_operand.vmem [shape: bf16[2,16,16], index: 10, kind: output, shape index: {}]  }
   0x1 LB: > { %s1926_s14 = sadd.s32 4294967295, %s2251_s13   ;;  %p1930_p0 = scmp.ge.s32.totalorder %s2251_s13, 1  ;;  %s2251_s13 = sphi %s2331_s13, %s20_s13  }
   0x2   : > { %p311_p1 = scmp.lt.s32.totalorder %s2251_s13, 3 }
   0x4   : > { %p312_p2 = pnand %p1930_p0, %p311_p1 }
   0x5   : > { %p348_p3 = scmp.lt.s32.totalorder (!%p312_p2), %s1926_s14, 1  ;;  %s2253_s19 = smov (!%p312_p2), 125  }
   0x6   : > { %315 = sbr.rel (%p312_p2) target bundleno = 3331 (0xd03), region = 60  ;;  %s2254_s20 = smov (!%p312_p2), 1  }
   0x7   : > { %s2255_s21 = smov (!%p312_p2), 127   ;;  %s2256_s22 = smov (!%p312_p2), 3  }
   0x8   : > { %s2257_s23 = smov (!%p312_p2), 5   ;;  %s2258_s24 = smov (!%p312_p2), 7  }
   0x9   : > { %s2259_s25 = smov (!%p312_p2), 9   ;;  %s2649_s28 = smov (!%p312_p2), 123  }
   0xa   : > { %s2261_s29 = smov (!%p312_p2), 122   ;;  %s2262_s30 = smov (!%p312_p2), 124  }
   0xb   : > { %s2654_s14 = smov (!%p348_p3, %s1926_s14), 1  ;;  %vm380_vm0 = vcmask 7168   ;;  %vm382_vm1 = vcmask 15360   ;;  %vm384_vm2 = vcmask 23552   ;;  %vm386_vm3 = vcmask 89088   ;;  %v392_v14 = vld [vmem:[%s2638_s1] sm:$0xff] }
   0xc   : > { %s2648_s15 = sshll.u32 %s2654_s14, 3  ;;  %vm388_vm4 = vcmask 97280   ;;  %vm390_vm5 = vcmask 105472   ;;  %vm439_vm6 = vcmask 457728   ;;  %v2263_v15 = vmov 0   ;;  %s2264_s11 = smov 126  }
   0xd   : > { %s351_s18 = scalar_lea.vmem %s2637_s0, %s2648_s15  ;;  %2080 = vmatprep.mubr.msk.f32.mxu0 %vm439_vm6, %v392_v14  ;;  %2243 = vset.pattern.permute.xlu1 %v2263_v15  ;;  %v418_v16 = vld [vmem:[%s2639_s2 + $0x18] sm:$0xff]  ;;  %v417_v17 = vld [vmem:[%s2639_s2 + $0x10] sm:$0xff]  ;;  %v416_v18 = vld [vmem:[%s2639_s2 + $0x8] sm:$0xff]  ;;  %vm569_vm11 = vcmask 72704   ;;  %vm604_vm12 = vcmask 523264   ;;  %vm784_vm13 = vcmask 64512  }
   0xe   : > { %v357_v0 = vld [vmem:[%s351_s18] sm:$0xff]  ;;  %2244 = vset.pattern.permute.xlu0 %v2263_v15  ;;  %v393_v26 = vld [vmem:[%s2638_s1 + $0x8] sm:$0xff]  ;;  %v394_v27 = vld [vmem:[%s2638_s1 + $0x10] sm:$0xff]  ;;  %vm969_vm14 = vcmask 138240   ;;  %s2265_s16 = smov 120   ;;  %s2266_s17 = smov 121  }
   0xf   : > { %359 = vrot.lane.b32.xlu0 %v357_v0, %s2253_s19  ;;  %365 = vrot.lane.b32.xlu1 %v357_v0, %s2254_s20  ;;  %v415_v19 = vld [vmem:[%s2639_s2] sm:$0xff]  ;;  %v395_v28 = vld [vmem:[%s2638_s1 + $0x18] sm:$0xff]  ;;  %s2267_s18 = smov 119   ;;  %s2651_s26 = smov 123  }
  0x10   : > { %v576_v56 = vld [vmem:[%s2640_s3] sm:$0xff] }
  0x11   : > { %2102 = vmatprep.mubr.msk.f32.mxu1 %vm604_vm12, %v576_v56 }
  0x13   : > { %362 = vrot.lane.b32.xlu0 %v357_v0, %s2255_s21  ;;  %368 = vrot.lane.b32.xlu1 %v357_v0, %s2256_s22 }
  0x17   : > { %371 = vrot.lane.b32.xlu0 %v357_v0, %s2257_s23  ;;  %374 = vrot.lane.b32.xlu1 %v357_v0, %s2258_s24 }
  0x1b   : > { %377 = vrot.lane.b32.xlu0 %v357_v0, %s2259_s25  ;;  %v1944_v0 = vld [vmem:[%s2640_s3 + $0x10] sm:$0xff] }
  0x81   : > { %v360_v1 = vpop.permute.xlu0 %359  ;;  %v366_v2 = vpop.permute.xlu1 %365 }
  0x85   : > { %v363_v3 = vpop.permute.xlu0 %362  ;;  %v369_v4 = vpop.permute.xlu1 %368 }
  0x86   : > { %v381_v5 = vsel %vm380_vm0, %v360_v1, %v363_v3  ;;  %v574_v3 = vld [vmem:[%s2641_s4] sm:$0xff] }
  0x87   : > { %v383_v6 = vsel %vm382_vm1, %v381_v5, %v366_v2  ;;  %v577_v5 = vld [vmem:[%s2640_s3 + $0x8] sm:$0xff] }
  0x88   : > { %v385_v7 = vsel %vm384_vm2, %v383_v6, %v369_v4  ;;  %v575_v4 = vld [vmem:[%s2641_s4 + $0x8] sm:$0xff] }
  0x89   : > { %v372_v8 = vpop.permute.xlu0 %371  ;;  %v375_v10 = vpop.permute.xlu1 %374 }
  0x8a   : > { %v387_v9 = vsel %vm386_vm3, %v385_v7, %v372_v8  ;;  %vm1006_vm3 = vcmask 392192  }
  0x8b   : > { %v389_v11 = vsel %vm388_vm4, %v387_v9, %v375_v10  ;;  %v1945_v10 = vld [vmem:[%s2640_s3 + $0x18] sm:$0xff] }
  0x8d   : > { %v378_v12 = vpop.permute.xlu0 %377 }
  0x8e   : > { %v391_v13 = vsel %vm390_vm5, %v389_v11, %v378_v12  ;;  %v783_v11 = vld [vmem:[%s2646_s9 + $0x8] sm:$0xff]  ;;  %v782_v12 = vld [vmem:[%s2646_s9] sm:$0xff]  ;;  %vm1108_vm5 = vcmask 261120  }
  0x8f   : > { %409 = vrot.lane.b32.xlu0 %v391_v13, %s2649_s28  ;;  %412 = vrot.lane.b32.xlu1 %v391_v13, %s2261_s29 }
  0x93   : > { %403 = vrot.lane.b32.xlu0 %v391_v13, %s2253_s19  ;;  %406 = vrot.lane.b32.xlu1 %v391_v13, %s2262_s30 }
  0x97   : > { %397 = vrot.lane.b32.xlu0 %v391_v13, %s2255_s21  ;;  %400 = vrot.lane.b32.xlu1 %v391_v13, %s2264_s11 }
  0x9b   : > { %436 = vperm.xlu1 %2243, %v418_v16   ;;  %431 = vperm.xlu0 %2244, %v417_v17  }
  0x9f   : > { %426 = vperm.xlu1 %2243, %v416_v18  }
  0xa3   : > { %421 = vperm.xlu1 %2243, %v415_v19  }
 0x101   : > { %v410_v20 = vpop.permute.xlu0 %409  ;;  %v413_v21 = vpop.permute.xlu1 %412 }
 0x102   : > { %2066 = vmatprep.subr.mxu0 %v413_v21 }
 0x103   : > { %2067 = vmatpush3.msra.mxu0 %v413_v21 }
 0x104   : > { %2068 = vmatprep.subr.mxu0 %v410_v20 }
 0x105   : > { %v404_v22 = vpop.permute.xlu0 %403  ;;  %2069 = vmatpush3.msra.mxu0 %v410_v20  ;;  %v407_v23 = vpop.permute.xlu1 %406 }
 0x106   : > { %2070 = vmatprep.subr.mxu0 %v407_v23 }
 0x107   : > { %2071 = vmatpush3.msra.mxu0 %v407_v23 }
 0x108   : > { %2072 = vmatprep.subr.mxu0 %v404_v22 }
 0x109   : > { %2073 = vmatpush3.msra.mxu0 %v404_v22  ;;  %v401_v24 = vpop.permute.xlu1 %400  ;;  %v398_v25 = vpop.permute.xlu0 %397 }
 0x10a   : > { %2074 = vmatprep.subr.mxu0 %v401_v24 }
 0x10b   : > { %2075 = vmatpush3.msra.mxu0 %v401_v24 }
 0x10c   : > { %2076 = vmatprep.subr.mxu0 %v398_v25 }
 0x10d   : > { %2077 = vmatpush3.msra.mxu0 %v398_v25 }
 0x10e   : > { %2078 = vmatprep.subr.mxu0 %v391_v13 }
 0x10f   : > { %2079 = vmatpush3.msra.mxu0 %v391_v13 }
 0x110   : > { %2081 = vmatmul.mubr.msk.f32.vlgmr.msra.gmra.mxu0 %vm439_vm6, %v393_v26 }
 0x111   : > { %2083 = vmatprep.mubr.msk.f32.mxu0 %vm439_vm6, %v394_v27 }
 0x114   : > { %2084 = vmatmul.mubr.msk.f32.gmra.mxu0 %vm439_vm6, %v395_v28 }
 0x115   : > { %2121 = vmatprep.mubr.msk.f32.mxu0 %vm604_vm12, %v1944_v0  ;;  %v1095_v0 = vld [vmem:[%s2644_s7 + $0x8] sm:$0xff] }
 0x116   : > { %v437_v29 = vpop.permute.xlu1 %436  ;;  %v432_v35 = vpop.permute.xlu0 %431 }
 0x11a   : > { %v427_v30 = vpop.permute.xlu1 %426 }
 0x11e   : > { %v422_v33 = vpop.permute.xlu1 %421 }
 0x1d0   : > { %v2082_v31 = vpop.f32.mrf.mxu0 }
 0x1d1   : > { %v524_v36 = vadd.f32 %v2082_v31, %v427_v30 }
 0x1d2   : > { %v518_v32 = vpop.f32.mrf.mxu0 }
 0x1d3   : > { %v519_v39 = vadd.f32 %v518_v32, %v422_v33  ;;  %v542_v42 = vmul.f32 0.2, %v524_v36  ;;  %vm538_vm9 = vcmp.ge.f32.partialorder %v524_v36, 0.0 }
 0x1d4   : > { %v2085_v34 = vpop.f32.mrf.mxu0 }
 0x1d5   : > { %v534_v37 = vadd.f32 %v2085_v34, %v437_v29  ;;  %v541_v46 = vmul.f32 0.2, %v519_v39  ;;  %vm537_vm10 = vcmp.ge.f32.partialorder %v519_v39, 0.0  ;;  %v546_v47 = vsel %vm538_vm9, %v524_v36, %v542_v42 }
 0x1d6   : > { %v528_v38 = vpop.f32.mrf.mxu0  ;;  %vm1243_vm9 = vcmask 162816  }
 0x1d7   : > { %v544_v40 = vmul.f32 0.2, %v534_v37  ;;  %v529_v41 = vadd.f32 %v528_v38, %v432_v35  ;;  %vm540_vm7 = vcmp.ge.f32.partialorder %v534_v37, 0.0  ;;  %v545_v48 = vsel %vm537_vm10, %v519_v39, %v541_v46  ;;  %v994_v46 = vld [vmem:[%s2643_s6] sm:$0xff] }
 0x1d8   : > { %vm1246_vm10 = vcmask 171008  }
 0x1d9   : > { %v543_v43 = vmul.f32 0.2, %v529_v41  ;;  %v548_v44 = vsel %vm540_vm7, %v534_v37, %v544_v40  ;;  %vm539_vm8 = vcmp.ge.f32.partialorder %v529_v41, 0.0 }
 0x1da   : > { %559 = vrot.lane.b32.xlu0 %v548_v44, %s2254_s20  ;;  %v995_v44 = vld [vmem:[%s2643_s6 + $0x8] sm:$0xff] }
 0x1db   : > { %v547_v45 = vsel %vm539_vm8, %v529_v41, %v543_v43  ;;  %v978_v41 = vld [vmem:[%s2642_s5] sm:$0xff]  ;;  %vm1240_vm8 = vcmask 154624  }
 0x1dc   : > { %557 = vrot.lane.b32.xlu1 %v547_v45, %s2254_s20  ;;  %v1097_v45 = vld [vmem:[%s2645_s8 + $0x8] sm:$0xff] }
 0x1de   : > { %555 = vrot.lane.b32.xlu0 %v546_v47, %s2254_s20  ;;  %v1096_v47 = vld [vmem:[%s2645_s8] sm:$0xff] }
 0x1e0   : > { %553 = vrot.lane.b32.xlu1 %v545_v48, %s2254_s20 }
 0x24c   : > { %v560_v49 = vpop.permute.xlu0 %559 }
 0x24d   : > { %v568_v50 = vsel %vm380_vm0, 0.0, %v560_v49 }
 0x24e   : > { %v558_v51 = vpop.permute.xlu1 %557  ;;  %v573_v52 = vsel %vm569_vm11, %v568_v50, 0.0 }
 0x24f   : > { %v567_v53 = vsel %vm380_vm0, 0.0, %v558_v51  ;;  %588 = vrot.lane.b32.xlu0 %v573_v52, %s2255_s21  ;;  %v979_v52 = vld [vmem:[%s2642_s5 + $0x8] sm:$0xff] }
 0x250   : > { %v556_v54 = vpop.permute.xlu0 %555  ;;  %v572_v55 = vsel %vm569_vm11, %v567_v53, 0.0 }
 0x251   : > { %v566_v57 = vsel %vm380_vm0, 0.0, %v556_v54  ;;  %586 = vrot.lane.b32.xlu1 %v572_v55, %s2255_s21 }
 0x252   : > { %v554_v58 = vpop.permute.xlu1 %553  ;;  %v571_v59 = vsel %vm569_vm11, %v566_v57, 0.0 }
 0x253   : > { %v565_v60 = vsel %vm380_vm0, 0.0, %v554_v58  ;;  %584 = vrot.lane.b32.xlu0 %v571_v59, %s2255_s21 }
 0x254   : > { %v570_v61 = vsel %vm569_vm11, %v565_v60, 0.0 }
 0x255   : > { %582 = vrot.lane.b32.xlu1 %v570_v61, %s2255_s21 }
 0x2c1   : > { %v589_v62 = vpop.permute.xlu0 %588 }
 0x2c2   : > { %2086 = vmatprep.subr.mxu1 %v589_v62  ;;  %695 = vrot.lane.b32.xlu0 %v589_v62, %s2255_s21 }
 0x2c3   : > { %2087 = vmatpush3.msra.mxu1 %v589_v62  ;;  %v587_v63 = vpop.permute.xlu1 %586 }
 0x2c4   : > { %2088 = vmatprep.subr.mxu1 %v587_v63  ;;  %693 = vrot.lane.b32.xlu1 %v587_v63, %s2255_s21 }
 0x2c5   : > { %v585_v1 = vpop.permute.xlu0 %584  ;;  %2089 = vmatpush3.msra.mxu1 %v587_v63 }
 0x2c6   : > { %691 = vrot.lane.b32.xlu0 %v585_v1, %s2255_s21  ;;  %2090 = vmatprep.subr.mxu1 %v585_v1 }
 0x2c7   : > { %2091 = vmatpush3.msra.mxu1 %v585_v1  ;;  %v583_v2 = vpop.permute.xlu1 %582 }
 0x2c8   : > { %2092 = vmatprep.subr.mxu1 %v583_v2  ;;  %689 = vrot.lane.b32.xlu1 %v583_v2, %s2255_s21 }
 0x2c9   : > { %2093 = vmatpush3.msra.mxu1 %v583_v2 }
 0x2ca   : > { %596 = vperm.xlu0 %2244, %v574_v3   ;;  %2094 = vmatprep.subr.msk.mxu1 %vm569_vm11, %v568_v50 }
 0x2cb   : > { %2095 = vmatpush3.msk.msra.mxu1 %vm569_vm11, %v568_v50 }
 0x2cc   : > { %2096 = vmatprep.subr.msk.mxu1 %vm569_vm11, %v567_v53  ;;  %601 = vperm.xlu1 %2243, %v575_v4  }
 0x2cd   : > { %2097 = vmatpush3.msk.msra.mxu1 %vm569_vm11, %v567_v53  ;;  %v1094_v53 = vld [vmem:[%s2644_s7] sm:$0xff] }
 0x2ce   : > { %2098 = vmatprep.subr.msk.mxu1 %vm569_vm11, %v566_v57 }
 0x2cf   : > { %2099 = vmatpush3.msk.msra.mxu1 %vm569_vm11, %v566_v57 }
 0x2d0   : > { %2100 = vmatprep.subr.msk.mxu1 %vm569_vm11, %v565_v60 }
 0x2d1   : > { %2101 = vmatpush3.msk.msra.mxu1 %vm569_vm11, %v565_v60 }
 0x2d2   : > { %2103 = vmatmul.mubr.msk.f32.vlgmr.msra.gmra.mxu1 %vm604_vm12, %v577_v5  ;;  %2124 = vmatprep.subr.mxu1 %v783_v11 }
 0x2d3   : > { %2125 = vmatpush3.msra.mxu1 %v783_v11 }
 0x2d4   : > { %2129 = vmatprep.subr.mxu1 %v782_v12 }
 0x334   : > { %v696_v6 = vpop.permute.xlu0 %695 }
 0x335   : > { %2105 = vmatprep.subr.mxu0 %v696_v6 }
 0x336   : > { %2106 = vmatpush3.msra.mxu0 %v696_v6  ;;  %v694_v7 = vpop.permute.xlu1 %693 }
 0x337   : > { %2107 = vmatprep.subr.mxu0 %v694_v7 }
 0x338   : > { %v692_v8 = vpop.permute.xlu0 %691  ;;  %2108 = vmatpush3.msra.mxu0 %v694_v7 }
 0x339   : > { %2109 = vmatprep.subr.mxu0 %v692_v8 }
 0x33a   : > { %2110 = vmatpush3.msra.mxu0 %v692_v8  ;;  %v690_v9 = vpop.permute.xlu1 %689 }
 0x33b   : > { %2111 = vmatprep.subr.mxu0 %v690_v9 }
 0x33c   : > { %2112 = vmatpush3.msra.mxu0 %v690_v9 }
 0x33d   : > { %2113 = vmatprep.subr.mxu0 %v589_v62 }
 0x33e   : > { %2114 = vmatpush3.msra.mxu0 %v589_v62 }
 0x33f   : > { %2115 = vmatprep.subr.mxu0 %v587_v63 }
 0x340   : > { %2116 = vmatpush3.msra.mxu0 %v587_v63 }
 0x341   : > { %2117 = vmatprep.subr.mxu0 %v585_v1 }
 0x342   : > { %2118 = vmatpush3.msra.mxu0 %v585_v1 }
 0x343   : > { %2119 = vmatprep.subr.mxu0 %v583_v2 }
 0x344   : > { %2120 = vmatpush3.msra.mxu0 %v583_v2 }
 0x345   : > { %2122 = vmatmul.mubr.msk.f32.vlgmr.msra.gmra.mxu0 %vm604_vm12, %v1945_v10  ;;  %v597_v15 = vpop.permute.xlu0 %596 }
 0x346   : > { %2157 = vmatprep.mubr.msk.f32.mxu0 %vm1108_vm5, %v1094_v53 }
 0x347   : > { %v602_v18 = vpop.permute.xlu1 %601 }
 0x392   : > { %v2104_v13 = vpop.f32.mrf.mxu1 }
 0x393   : > { %v683_v22 = vadd.f32 %v2104_v13, %v602_v18 }
 0x394   : > { %v677_v16 = vpop.f32.mrf.mxu1 }
 0x395   : > { %v678_v21 = vadd.f32 %v677_v16, %v597_v15 }
 0x405   : > { %v2123_v14 = vpop.f32.mrf.mxu0 }
 0x406   : > { %v779_v20 = vadd.f32 %v2123_v14, %v602_v18 }
 0x407   : > { %v773_v17 = vpop.f32.mrf.mxu0 }
 0x408   : > { %v774_v19 = vadd.f32 %v773_v17, %v597_v15 }
 0x40a   : > { %2126 = vmatprep.mubr.msk.f32.mxu1 %vm784_vm13, %v774_v19 }
 0x40b   : > { %2127 = vmatmul.mubr.msk.f32.vlgmr.msra.gmra.mxu1 %vm784_vm13, %v779_v20 }
 0x40c   : > { %2130 = vmatpush3.msra.mxu1 %v782_v12  ;;  %2131 = vmatprep.mubr.msk.f32.mxu1 %vm784_vm13, %v678_v21 }
 0x40f   : > { %2132 = vmatmul.mubr.msk.f32.vlgmr.msra.gmra.mxu1 %vm784_vm13, %v683_v22 }
 0x410   : > { %2146 = vmatprep.mubr.msk.f32.mxu1 %vm1006_vm3, %v978_v41  ;;  %v1964_v41 = vld [vmem:[%s2645_s8 + $0x10] sm:$0xff] }
 0x4cb   : > { %v2128_v23 = vpop.f32.mrf.mxu1 }
 0x4cd   : > { %v857_v24 = vpop.f32.mrf.mxu1 }
 0x4cf   : > { %v2133_v25 = vpop.f32.mrf.mxu1 }
 0x4d0   : > { %v944_v26 = vadd.f32 %v2133_v25, %v2128_v23 }
 0x4d1   : > { %v938_v27 = vpop.f32.mrf.mxu1 }
 0x4d2   : > { %v939_v28 = vadd.f32 %v938_v27, %v857_v24  ;;  %957 = vrot.lane.b32.xlu1 %v944_v26, %s2254_s20  ;;  %951 = vrot.lane.b32.xlu0 %v944_v26, %s2255_s21 }
 0x4d3   : > { %2149 = vmatprep.subr.mxu0 %v944_v26 }
 0x4d4   : > { %2150 = vmatpush3.msra.mxu0 %v944_v26 }
 0x4d5   : > { %2151 = vmatprep.subr.mxu0 %v939_v28 }
 0x4d6   : > { %2152 = vmatpush3.msra.mxu0 %v939_v28  ;;  %963 = vrot.lane.b32.xlu0 %v944_v26, %s2256_s22 }
 0x4d7   : > { %949 = vrot.lane.b32.xlu1 %v939_v28, %s2255_s21 }
 0x4da   : > { %955 = vrot.lane.b32.xlu0 %v939_v28, %s2254_s20 }
 0x4db   : > { %961 = vrot.lane.b32.xlu1 %v939_v28, %s2256_s22 }
 0x544   : > { %v958_v29 = vpop.permute.xlu1 %957  ;;  %v952_v30 = vpop.permute.xlu0 %951 }
 0x545   : > { %v968_v31 = vsel %vm380_vm0, %v952_v30, %v958_v29 }
 0x548   : > { %v964_v32 = vpop.permute.xlu0 %963 }
 0x549   : > { %v971_v33 = vsel %vm969_vm14, %v968_v31, %v964_v32  ;;  %v950_v34 = vpop.permute.xlu1 %949 }
 0x54a   : > { %vm973_vm15 = vcmp.ge.f32.partialorder %v971_v33, 0.0  ;;  %v975_v35 = vmul.f32 0.2, %v971_v33 }
 0x54c   : > { %v956_v36 = vpop.permute.xlu0 %955  ;;  %v977_v37 = vsel %vm973_vm15, %v971_v33, %v975_v35 }
 0x54d   : > { %v967_v38 = vsel %vm380_vm0, %v950_v34, %v956_v36  ;;  %v962_v39 = vpop.permute.xlu1 %961  ;;  %990 = vrot.lane.b32.xlu0 %v977_v37, %s2264_s11  ;;  %v1956_v34 = vld [vmem:[%s2642_s5 + $0x10] sm:$0xff] }
 0x54e   : > { %v970_v40 = vsel %vm969_vm14, %v967_v38, %v962_v39  ;;  %v1959_v38 = vld [vmem:[%s2643_s6 + $0x18] sm:$0xff] }
 0x54f   : > { %vm972_vm4 = vcmp.ge.f32.partialorder %v970_v40, 0.0  ;;  %v974_v42 = vmul.f32 0.2, %v970_v40  ;;  %v1965_v39 = vld [vmem:[%s2645_s8 + $0x18] sm:$0xff] }
 0x551   : > { %984 = vrot.lane.b32.xlu0 %v977_v37, %s2255_s21  ;;  %v976_v43 = vsel %vm972_vm4, %v970_v40, %v974_v42  ;;  %v1958_v40 = vld [vmem:[%s2643_s6 + $0x10] sm:$0xff] }
 0x552   : > { %988 = vrot.lane.b32.xlu1 %v976_v43, %s2264_s11 }
 0x555   : > { %1003 = vperm.xlu0 %2244, %v995_v44  }
 0x556   : > { %982 = vrot.lane.b32.xlu1 %v976_v43, %s2255_s21 }
 0x559   : > { %1105 = vperm.xlu0 %2244, %v1097_v45  }
 0x55a   : > { %998 = vperm.xlu1 %2243, %v994_v46   ;;  %v1957_v46 = vld [vmem:[%s2642_s5 + $0x18] sm:$0xff] }
 0x55e   : > { %1100 = vperm.xlu1 %2243, %v1096_v47   ;;  %v1962_v47 = vld [vmem:[%s2644_s7 + $0x10] sm:$0xff] }
 0x5bf   : > { %v991_v48 = vpop.permute.xlu0 %990 }
 0x5c0   : > { %2134 = vmatprep.subr.mxu1 %v991_v48 }
 0x5c1   : > { %2135 = vmatpush3.msra.mxu1 %v991_v48 }
 0x5c3   : > { %v985_v50 = vpop.permute.xlu0 %984 }
 0x5c4   : > { %v989_v49 = vpop.permute.xlu1 %988 }
 0x5c5   : > { %2136 = vmatprep.subr.mxu1 %v989_v49 }
 0x5c6   : > { %2137 = vmatpush3.msra.mxu1 %v989_v49 }
 0x5c7   : > { %2138 = vmatprep.subr.mxu1 %v985_v50 }
 0x5c8   : > { %2139 = vmatpush3.msra.mxu1 %v985_v50  ;;  %v983_v51 = vpop.permute.xlu1 %982 }
 0x5c9   : > { %2140 = vmatprep.subr.mxu1 %v983_v51 }
 0x5ca   : > { %2141 = vmatpush3.msra.mxu1 %v983_v51 }
 0x5cb   : > { %2142 = vmatprep.subr.mxu1 %v977_v37 }
 0x5cc   : > { %2143 = vmatpush3.msra.mxu1 %v977_v37 }
 0x5cd   : > { %2144 = vmatprep.subr.mxu1 %v976_v43 }
 0x5ce   : > { %2145 = vmatpush3.msra.mxu1 %v976_v43 }
 0x5cf   : > { %2147 = vmatmul.mubr.msk.f32.vlgmr.msra.gmra.mxu1 %vm1006_vm3, %v979_v52 }
 0x5d0   : > { %v1004_v54 = vpop.permute.xlu0 %1003  ;;  %2172 = vmatprep.mubr.msk.f32.mxu1 %vm1006_vm3, %v1956_v34 }
 0x5d4   : > { %v1106_v1 = vpop.permute.xlu0 %1105 }
 0x5d5   : > { %v999_v57 = vpop.permute.xlu1 %998 }
 0x5d9   : > { %v1101_v4 = vpop.permute.xlu1 %1100 }
 0x68f   : > { %v2148_v55 = vpop.f32.mrf.mxu1 }
 0x690   : > { %v1085_v56 = vadd.f32 %v2148_v55, %v1004_v54 }
 0x691   : > { %v1079_v58 = vpop.f32.mrf.mxu1 }
 0x692   : > { %v1091_v59 = vmul.f32 0.2, %v1085_v56  ;;  %v1080_v60 = vadd.f32 %v1079_v58, %v999_v57  ;;  %vm1089_vm6 = vcmp.ge.f32.partialorder %v1085_v56, 0.0  ;;  %v1963_v58 = vld [vmem:[%s2644_s7 + $0x18] sm:$0xff] }
 0x694   : > { %v1090_v61 = vmul.f32 0.2, %v1080_v60  ;;  %v1093_v62 = vsel %vm1089_vm6, %v1085_v56, %v1091_v59  ;;  %vm1088_vm7 = vcmp.ge.f32.partialorder %v1080_v60, 0.0  ;;  %vm1573_vm6 = vcmask 31744  }
 0x695   : > { %2153 = vmatprep.subr.mxu0 %v1093_v62 }
 0x696   : > { %2154 = vmatpush3.msra.mxu0 %v1093_v62  ;;  %v1092_v63 = vsel %vm1088_vm7, %v1080_v60, %v1090_v61  ;;  %vm1576_vm7 = vcmask 39936  }
 0x697   : > { %2155 = vmatprep.subr.mxu0 %v1092_v63 }
 0x698   : > { %2156 = vmatpush3.msra.mxu0 %v1092_v63 }
 0x699   : > { %2158 = vmatmul.mubr.msk.f32.vlgmr.msra.gmra.mxu0 %vm1108_vm5, %v1095_v0 }
 0x69a   : > { %2183 = vmatprep.mubr.msk.f32.mxu0 %vm1108_vm5, %v1962_v47 }
 0x759   : > { %v2159_v2 = vpop.f32.mrf.mxu0 }
 0x75a   : > { %v1187_v3 = vadd.f32 %v2159_v2, %v1106_v1 }
 0x75b   : > { %v1181_v5 = vpop.f32.mrf.mxu0 }
 0x75c   : > { %v1182_v6 = vadd.f32 %v1181_v5, %v1101_v4  ;;  %1200 = vrot.lane.b32.xlu1 %v1187_v3, %s2255_s21  ;;  %1194 = vrot.lane.b32.xlu0 %v1187_v3, %s2253_s19 }
 0x75d   : > { %2175 = vmatprep.subr.mxu0 %v1187_v3 }
 0x75e   : > { %2176 = vmatpush3.msra.mxu0 %v1187_v3 }
 0x75f   : > { %2177 = vmatprep.subr.mxu0 %v1182_v6 }
 0x760   : > { %2178 = vmatpush3.msra.mxu0 %v1182_v6  ;;  %1212 = vrot.lane.b32.xlu1 %v1187_v3, %s2256_s22 }
 0x761   : > { %1206 = vrot.lane.b32.xlu0 %v1187_v3, %s2254_s20 }
 0x764   : > { %1218 = vrot.lane.b32.xlu1 %v1187_v3, %s2257_s23 }
 0x765   : > { %1198 = vrot.lane.b32.xlu0 %v1182_v6, %s2255_s21 }
 0x768   : > { %1224 = vrot.lane.b32.xlu1 %v1187_v3, %s2258_s24 }
 0x769   : > { %1204 = vrot.lane.b32.xlu0 %v1182_v6, %s2254_s20 }
 0x76c   : > { %1192 = vrot.lane.b32.xlu1 %v1182_v6, %s2253_s19 }
 0x76d   : > { %1210 = vrot.lane.b32.xlu0 %v1182_v6, %s2256_s22 }
 0x770   : > { %1230 = vrot.lane.b32.xlu1 %v1187_v3, %s2259_s25 }
 0x771   : > { %1216 = vrot.lane.b32.xlu0 %v1182_v6, %s2257_s23 }
 0x774   : > { %1228 = vrot.lane.b32.xlu1 %v1182_v6, %s2259_s25 }
 0x775   : > { %1222 = vrot.lane.b32.xlu0 %v1182_v6, %s2258_s24 }
 0x7ce   : > { %v1201_v7 = vpop.permute.xlu1 %1200  ;;  %v1195_v8 = vpop.permute.xlu0 %1194 }
 0x7cf   : > { %v1235_v15 = vsel %vm380_vm0, %v1195_v8, %v1201_v7 }
 0x7d2   : > { %v1213_v9 = vpop.permute.xlu1 %1212 }
 0x7d3   : > { %v1207_v10 = vpop.permute.xlu0 %1206 }
 0x7d4   : > { %v1237_v16 = vsel %vm382_vm1, %v1235_v15, %v1207_v10 }
 0x7d5   : > { %v1239_v20 = vsel %vm384_vm2, %v1237_v16, %v1213_v9 }
 0x7d6   : > { %v1219_v11 = vpop.permute.xlu1 %1218 }
 0x7d7   : > { %v1199_v12 = vpop.permute.xlu0 %1198  ;;  %v1242_v21 = vsel %vm1240_vm8, %v1239_v20, %v1219_v11 }
 0x7da   : > { %v1225_v13 = vpop.permute.xlu1 %1224 }
 0x7db   : > { %v1205_v14 = vpop.permute.xlu0 %1204  ;;  %v1245_v23 = vsel %vm1243_vm9, %v1242_v21, %v1225_v13 }
 0x7de   : > { %v1193_v17 = vpop.permute.xlu1 %1192 }
 0x7df   : > { %v1211_v18 = vpop.permute.xlu0 %1210  ;;  %v1234_v19 = vsel %vm380_vm0, %v1193_v17, %v1199_v12 }
 0x7e0   : > { %v1236_v22 = vsel %vm382_vm1, %v1234_v19, %v1205_v14 }
 0x7e1   : > { %v1238_v27 = vsel %vm384_vm2, %v1236_v22, %v1211_v18 }
 0x7e2   : > { %v1231_v24 = vpop.permute.xlu1 %1230 }
 0x7e3   : > { %v1217_v25 = vpop.permute.xlu0 %1216  ;;  %v1248_v26 = vsel %vm1246_vm10, %v1245_v23, %v1231_v24 }
 0x7e4   : > { %vm1250_vm12 = vcmp.ge.f32.partialorder %v1248_v26, 0.0  ;;  %v1252_v28 = vmul.f32 0.2, %v1248_v26  ;;  %v1241_v31 = vsel %vm1240_vm8, %v1238_v27, %v1217_v25  ;;  %vm1579_vm8 = vcmask 48128  }
 0x7e6   : > { %v1229_v29 = vpop.permute.xlu1 %1228  ;;  %v1254_v30 = vsel %vm1250_vm12, %v1248_v26, %v1252_v28  ;;  %vm1601_vm12 = vcmask 236544  }
 0x7e7   : > { %v1223_v32 = vpop.permute.xlu0 %1222  ;;  %1268 = vrot.lane.b32.xlu0 %v1254_v30, %s2261_s29 }
 0x7e8   : > { %v1244_v33 = vsel %vm1243_vm9, %v1241_v31, %v1223_v32  ;;  %vm1582_vm9 = vcmask 56320  }
 0x7e9   : > { %v1247_v35 = vsel %vm1246_vm10, %v1244_v33, %v1229_v29  ;;  %vm1598_vm10 = vcmask 228352  }
 0x7ea   : > { %vm1249_vm14 = vcmp.ge.f32.partialorder %v1247_v35, 0.0  ;;  %v1251_v36 = vmul.f32 0.2, %v1247_v35 }
 0x7eb   : > { %1262 = vrot.lane.b32.xlu0 %v1254_v30, %s2253_s19 }
 0x7ec   : > { %v1253_v37 = vsel %vm1249_vm14, %v1247_v35, %v1251_v36  ;;  %vm1604_vm14 = vcmask 244736  }
 0x7ed   : > { %1266 = vrot.lane.b32.xlu1 %v1253_v37, %s2261_s29 }
 0x7ef   : > { %1282 = vperm.xlu0 %2244, %v1959_v38  }
 0x7f1   : > { %1260 = vrot.lane.b32.xlu1 %v1253_v37, %s2253_s19 }
 0x7f3   : > { %1385 = vperm.xlu0 %2244, %v1965_v39  }
 0x7f5   : > { %1277 = vperm.xlu1 %2243, %v1958_v40  }
 0x7f9   : > { %1380 = vperm.xlu1 %2243, %v1964_v41  }
 0x859   : > { %v1269_v42 = vpop.permute.xlu0 %1268 }
 0x85a   : > { %2160 = vmatprep.subr.mxu1 %v1269_v42 }
 0x85b   : > { %2161 = vmatpush3.msra.mxu1 %v1269_v42 }
 0x85d   : > { %v1263_v44 = vpop.permute.xlu0 %1262 }
 0x85f   : > { %v1267_v43 = vpop.permute.xlu1 %1266 }
 0x860   : > { %2162 = vmatprep.subr.mxu1 %v1267_v43 }
 0x861   : > { %2163 = vmatpush3.msra.mxu1 %v1267_v43 }
 0x862   : > { %2164 = vmatprep.subr.mxu1 %v1263_v44 }
 0x863   : > { %2165 = vmatpush3.msra.mxu1 %v1263_v44  ;;  %v1261_v45 = vpop.permute.xlu1 %1260 }
 0x864   : > { %2166 = vmatprep.subr.mxu1 %v1261_v45 }
 0x865   : > { %2167 = vmatpush3.msra.mxu1 %v1261_v45 }
 0x866   : > { %2168 = vmatprep.subr.mxu1 %v1254_v30 }
 0x867   : > { %2169 = vmatpush3.msra.mxu1 %v1254_v30 }
 0x868   : > { %2170 = vmatprep.subr.mxu1 %v1253_v37 }
 0x869   : > { %2171 = vmatpush3.msra.mxu1 %v1253_v37 }
 0x86a   : > { %2173 = vmatmul.mubr.msk.f32.vlgmr.msra.gmra.mxu1 %vm1006_vm3, %v1957_v46  ;;  %v1283_v48 = vpop.permute.xlu0 %1282 }
 0x86e   : > { %v1386_v59 = vpop.permute.xlu0 %1385 }
 0x870   : > { %v1278_v51 = vpop.permute.xlu1 %1277 }
 0x874   : > { %v1381_v62 = vpop.permute.xlu1 %1380 }
 0x92a   : > { %v2174_v49 = vpop.f32.mrf.mxu1 }
 0x92b   : > { %v1363_v50 = vadd.f32 %v2174_v49, %v1283_v48 }
 0x92c   : > { %v1357_v52 = vpop.f32.mrf.mxu1 }
 0x92d   : > { %v1369_v53 = vmul.f32 0.2, %v1363_v50  ;;  %v1358_v54 = vadd.f32 %v1357_v52, %v1278_v51  ;;  %vm1367_vm15 = vcmp.ge.f32.partialorder %v1363_v50, 0.0 }
 0x92f   : > { %v1368_v55 = vmul.f32 0.2, %v1358_v54  ;;  %v1371_v56 = vsel %vm1367_vm15, %v1363_v50, %v1369_v53  ;;  %vm1366_vm4 = vcmp.ge.f32.partialorder %v1358_v54, 0.0  ;;  %vm1637_vm15 = vcmask 252928  }
 0x930   : > { %2179 = vmatprep.subr.mxu0 %v1371_v56 }
 0x931   : > { %2180 = vmatpush3.msra.mxu0 %v1371_v56  ;;  %v1370_v57 = vsel %vm1366_vm4, %v1358_v54, %v1368_v55 }
 0x932   : > { %2181 = vmatprep.subr.mxu0 %v1370_v57 }
 0x933   : > { %2182 = vmatpush3.msra.mxu0 %v1370_v57 }
 0x934   : > { %2184 = vmatmul.mubr.msk.f32.vlgmr.msra.gmra.mxu0 %vm1108_vm5, %v1963_v58 }
 0x9f4   : > { %v2185_v60 = vpop.f32.mrf.mxu0 }
 0x9f5   : > { %v1466_v61 = vadd.f32 %v2185_v60, %v1386_v59 }
 0x9f6   : > { %v1460_v63 = vpop.f32.mrf.mxu0 }
 0x9f7   : > { %v1461_v0 = vadd.f32 %v1460_v63, %v1381_v62  ;;  %1615 = vrot.lane.b32.xlu1 %v1466_v61, %s2261_s29  ;;  %1609 = vrot.lane.b32.xlu0 %v1466_v61, %s2265_s16 }
 0x9f8   : > { %2201 = vmatprep.subr.mxu1 %v1466_v61 }
 0x9f9   : > { %2202 = vmatpush3.msra.mxu1 %v1466_v61 }
 0x9fa   : > { %2203 = vmatprep.subr.mxu1 %v1461_v0 }
 0x9fb   : > { %2204 = vmatpush3.msra.mxu1 %v1461_v0  ;;  %1479 = vrot.lane.b32.xlu1 %v1466_v61, %s2266_s17 }
 0x9fc   : > { %1621 = vrot.lane.b32.xlu0 %v1466_v61, %s2262_s30 }
 0x9ff   : > { %1491 = vrot.lane.b32.xlu1 %v1466_v61, %s2253_s19 }
 0xa00   : > { %1473 = vrot.lane.b32.xlu0 %v1466_v61, %s2267_s18 }
 0xa03   : > { %1607 = vrot.lane.b32.xlu1 %v1461_v0, %s2265_s16 }
 0xa04   : > { %1485 = vrot.lane.b32.xlu0 %v1466_v61, %s2651_s26 }
 0xa07   : > { %1619 = vrot.lane.b32.xlu1 %v1461_v0, %s2262_s30  ;;  %s2269_s30 = smov 13  }
 0xa08   : > { %1613 = vrot.lane.b32.xlu0 %v1461_v0, %s2261_s29  ;;  %s2268_s29 = smov 11  }
 0xa0b   : > { %1497 = vrot.lane.b32.xlu1 %v1466_v61, %s2255_s21 }
 0xa0c   : > { %1477 = vrot.lane.b32.xlu0 %v1461_v0, %s2266_s17 }
 0xa0f   : > { %1503 = vrot.lane.b32.xlu1 %v1466_v61, %s2254_s20 }
 0xa10   : > { %1483 = vrot.lane.b32.xlu0 %v1461_v0, %s2651_s26 }
 0xa13   : > { %1509 = vrot.lane.b32.xlu1 %v1466_v61, %s2256_s22 }
 0xa14   : > { %1489 = vrot.lane.b32.xlu0 %v1461_v0, %s2253_s19  ;;  %s2270_s19 = smov 15  }
 0xa17   : > { %1515 = vrot.lane.b32.xlu1 %v1466_v61, %s2257_s23 }
 0xa18   : > { %1495 = vrot.lane.b32.xlu0 %v1461_v0, %s2255_s21  ;;  %s2271_s21 = smov 17  }
 0xa1b   : > { %1521 = vrot.lane.b32.xlu1 %v1466_v61, %s2258_s24 }
 0xa1c   : > { %1501 = vrot.lane.b32.xlu0 %v1461_v0, %s2254_s20  ;;  %s2272_s20 = smov 19  }
 0xa1f   : > { %1527 = vrot.lane.b32.xlu1 %v1466_v61, %s2259_s25 }
 0xa20   : > { %1507 = vrot.lane.b32.xlu0 %v1461_v0, %s2256_s22  ;;  %s2273_s22 = smov 21  }
 0xa23   : > { %1533 = vrot.lane.b32.xlu1 %v1466_v61, %s2268_s29 }
 0xa24   : > { %1513 = vrot.lane.b32.xlu0 %v1461_v0, %s2257_s23  ;;  %s2274_s23 = smov 31  }
 0xa27   : > { %1539 = vrot.lane.b32.xlu1 %v1466_v61, %s2269_s30 }
 0xa28   : > { %1519 = vrot.lane.b32.xlu0 %v1461_v0, %s2258_s24  ;;  %s2275_s24 = smov 110  }
 0xa2b   : > { %1545 = vrot.lane.b32.xlu1 %v1466_v61, %s2270_s19 }
 0xa2c   : > { %1525 = vrot.lane.b32.xlu0 %v1461_v0, %s2259_s25 }
 0xa2f   : > { %1551 = vrot.lane.b32.xlu1 %v1466_v61, %s2271_s21 }
 0xa30   : > { %1531 = vrot.lane.b32.xlu0 %v1461_v0, %s2268_s29 }
 0xa33   : > { %1471 = vrot.lane.b32.xlu1 %v1461_v0, %s2267_s18 }
 0xa34   : > { %1537 = vrot.lane.b32.xlu0 %v1461_v0, %s2269_s30 }
 0xa37   : > { %1557 = vrot.lane.b32.xlu1 %v1466_v61, %s2272_s20 }
 0xa38   : > { %1543 = vrot.lane.b32.xlu0 %v1461_v0, %s2270_s19 }
 0xa3b   : > { %1563 = vrot.lane.b32.xlu1 %v1466_v61, %s2273_s22 }
 0xa3c   : > { %1549 = vrot.lane.b32.xlu0 %v1461_v0, %s2271_s21 }
 0xa40   : > { %1555 = vrot.lane.b32.xlu0 %v1461_v0, %s2272_s20 }
 0xa44   : > { %1561 = vrot.lane.b32.xlu0 %v1461_v0, %s2273_s22 }
 0xa69   : > { %v1616_v1 = vpop.permute.xlu1 %1615  ;;  %v1610_v2 = vpop.permute.xlu0 %1609 }
 0xa6a   : > { %v1626_v4 = vsel %vm380_vm0, %v1610_v2, %v1616_v1 }
 0xa6d   : > { %v1480_v3 = vpop.permute.xlu1 %1479 }
 0xa6e   : > { %v1622_v5 = vpop.permute.xlu0 %1621 }
 0xa6f   : > { %v1628_v6 = vsel %vm382_vm1, %v1626_v4, %v1622_v5 }
 0xa70   : > { %1633 = vrot.lane.b32.xlu1 %v1628_v6, %s2274_s23 }
 0xa71   : > { %v1492_v7 = vpop.permute.xlu1 %1491 }
 0xa72   : > { %v1474_v8 = vpop.permute.xlu0 %1473 }
 0xa73   : > { %v1568_v9 = vsel %vm380_vm0, %v1474_v8, %v1480_v3 }
 0xa75   : > { %v1608_v10 = vpop.permute.xlu1 %1607 }
 0xa76   : > { %v1486_v11 = vpop.permute.xlu0 %1485 }
 0xa77   : > { %v1570_v12 = vsel %vm382_vm1, %v1568_v9, %v1486_v11  ;;  %v1971_v11 = vld [vmem:[%s2643_s6 + $0x28] sm:$0xff] }
 0xa78   : > { %v1572_v13 = vsel %vm384_vm2, %v1570_v12, %v1492_v7 }
 0xa79   : > { %v1620_v14 = vpop.permute.xlu1 %1619 }
 0xa7a   : > { %v1614_v15 = vpop.permute.xlu0 %1613 }
 0xa7b   : > { %v1625_v16 = vsel %vm380_vm0, %v1608_v10, %v1614_v15  ;;  %v1968_v15 = vld [vmem:[%s2642_s5 + $0x20] sm:$0xff] }
 0xa7c   : > { %v1627_v17 = vsel %vm382_vm1, %v1625_v16, %v1620_v14  ;;  %2198 = vmatprep.mubr.msk.f32.mxu0 %vm1006_vm3, %v1968_v15 }
 0xa7d   : > { %1631 = vrot.lane.b32.xlu1 %v1627_v17, %s2274_s23  ;;  %v1498_v18 = vpop.permute.xlu1 %1497  ;;  %v1976_v17 = vld [vmem:[%s2645_s8 + $0x20] sm:$0xff]  ;;  %s2652_s23 = sshll.u32 %s2654_s14, 3 }
 0xa7e   : > { %v1478_v21 = vpop.permute.xlu0 %1477  ;;  %v1575_v46 = vsel %vm1573_vm6, %v1572_v13, %v1498_v18  ;;  %s356_s27 = scalar_lea.vmem %s2647_s10, %s2652_s23 }
 0xa81   : > { %v1504_v19 = vpop.permute.xlu1 %1503 }
 0xa82   : > { %v1484_v23 = vpop.permute.xlu0 %1483  ;;  %v1578_v47 = vsel %vm1576_vm7, %v1575_v46, %v1504_v19 }
 0xa85   : > { %v1510_v20 = vpop.permute.xlu1 %1509 }
 0xa86   : > { %v1490_v25 = vpop.permute.xlu0 %1489  ;;  %v1581_v49 = vsel %vm1579_vm8, %v1578_v47, %v1510_v20  ;;  %v1970_v20 = vld [vmem:[%s2643_s6 + $0x20] sm:$0xff] }
 0xa89   : > { %v1516_v22 = vpop.permute.xlu1 %1515 }
 0xa8a   : > { %v1496_v27 = vpop.permute.xlu0 %1495  ;;  %v1584_v51 = vsel %vm1582_vm9, %v1581_v49, %v1516_v22 }
 0xa8d   : > { %v1522_v24 = vpop.permute.xlu1 %1521 }
 0xa8e   : > { %v1502_v29 = vpop.permute.xlu0 %1501  ;;  %v1586_v53 = vsel %vm784_vm13, %v1584_v51, %v1522_v24 }
 0xa91   : > { %v1528_v26 = vpop.permute.xlu1 %1527 }
 0xa92   : > { %v1508_v31 = vpop.permute.xlu0 %1507  ;;  %v1588_v54 = vsel %vm569_vm11, %v1586_v53, %v1528_v26  ;;  %v1969_v26 = vld [vmem:[%s2642_s5 + $0x28] sm:$0xff] }
 0xa95   : > { %v1534_v28 = vpop.permute.xlu1 %1533 }
 0xa96   : > { %v1514_v33 = vpop.permute.xlu0 %1513 }
 0xa99   : > { %v1540_v30 = vpop.permute.xlu1 %1539 }
 0xa9a   : > { %v1520_v35 = vpop.permute.xlu0 %1519 }
 0xa9d   : > { %v1546_v32 = vpop.permute.xlu1 %1545 }
 0xa9e   : > { %v1526_v38 = vpop.permute.xlu0 %1525 }
 0xaa1   : > { %v1552_v34 = vpop.permute.xlu1 %1551 }
 0xaa2   : > { %v1532_v41 = vpop.permute.xlu0 %1531 }
 0xaa5   : > { %v1472_v36 = vpop.permute.xlu1 %1471 }
 0xaa6   : > { %v1567_v37 = vsel %vm380_vm0, %v1472_v36, %v1478_v21  ;;  %v1538_v44 = vpop.permute.xlu0 %1537  ;;  %vm1589_vm0 = vcmask 203776   ;;  %v1977_v21 = vld [vmem:[%s2645_s8 + $0x28] sm:$0xff] }
 0xaa7   : > { %v1569_v39 = vsel %vm382_vm1, %v1567_v37, %v1484_v23  ;;  %vm1592_vm1 = vcmask 211968   ;;  %v1591_v56 = vsel %vm1589_vm0, %v1588_v54, %v1534_v28 }
 0xaa8   : > { %v1571_v40 = vsel %vm384_vm2, %v1569_v39, %v1490_v25  ;;  %vm1595_vm2 = vcmask 220160   ;;  %v1594_v57 = vsel %vm1592_vm1, %v1591_v56, %v1540_v30 }
 0xaa9   : > { %v1574_v42 = vsel %vm1573_vm6, %v1571_v40, %v1496_v27  ;;  %v1558_v48 = vpop.permute.xlu1 %1557  ;;  %v1597_v59 = vsel %vm1595_vm2, %v1594_v57, %v1546_v32  ;;  %v1974_v27 = vld [vmem:[%s2644_s7 + $0x20] sm:$0xff] }
 0xaaa   : > { %v1577_v43 = vsel %vm1576_vm7, %v1574_v42, %v1502_v29  ;;  %v1544_v52 = vpop.permute.xlu0 %1543  ;;  %v1600_v61 = vsel %vm1598_vm10, %v1597_v59, %v1552_v34  ;;  %2209 = vmatprep.mubr.msk.f32.mxu1 %vm1108_vm5, %v1974_v27 }
 0xaab   : > { %v1580_v45 = vsel %vm1579_vm8, %v1577_v43, %v1508_v31  ;;  %v1603_v63 = vsel %vm1601_vm12, %v1600_v61, %v1558_v48 }
 0xaac   : > { %v1583_v50 = vsel %vm1582_vm9, %v1580_v45, %v1514_v33 }
 0xaad   : > { %v1585_v55 = vsel %vm784_vm13, %v1583_v50, %v1520_v35  ;;  %v1564_v58 = vpop.permute.xlu1 %1563 }
 0xaae   : > { %v1587_v60 = vsel %vm569_vm11, %v1585_v55, %v1526_v38  ;;  %v1550_v62 = vpop.permute.xlu0 %1549  ;;  %v1606_v1 = vsel %vm1604_vm14, %v1603_v63, %v1564_v58  ;;  %v1975_v38 = vld [vmem:[%s2644_s7 + $0x28] sm:$0xff] }
 0xaaf   : > { %v1590_v0 = vsel %vm1589_vm0, %v1587_v60, %v1532_v41 }
 0xab0   : > { %v1593_v5 = vsel %vm1592_vm1, %v1590_v0, %v1538_v44 }
 0xab1   : > { %v1596_v8 = vsel %vm1595_vm2, %v1593_v5, %v1544_v52 }
 0xab2   : > { %v1556_v6 = vpop.permute.xlu0 %1555  ;;  %v1599_v9 = vsel %vm1598_vm10, %v1596_v8, %v1550_v62 }
 0xab3   : > { %v1602_v12 = vsel %vm1601_vm12, %v1599_v9, %v1556_v6 }
 0xab6   : > { %v1562_v10 = vpop.permute.xlu0 %1561 }
 0xab7   : > { %v1605_v13 = vsel %vm1604_vm14, %v1602_v12, %v1562_v10 }
 0xae2   : > { %v1634_v2 = vpop.permute.xlu1 %1633 }
 0xae3   : > { %v1639_v3 = vsel %vm1637_vm15, %v1606_v1, %v1634_v2 }
 0xae4   : > { %vm1641_vm13 = vcmp.ge.f32.partialorder %v1639_v3, 0.0  ;;  %v1643_v4 = vmul.f32 0.2, %v1639_v3 }
 0xae6   : > { %v1645_v7 = vsel %vm1641_vm13, %v1639_v3, %v1643_v4 }
 0xae7   : > { %1659 = vrot.lane.b32.xlu0 %v1645_v7, %s2275_s24 }
 0xaeb   : > { %1653 = vrot.lane.b32.xlu0 %v1645_v7, %s2267_s18 }
 0xaef   : > { %1673 = vperm.xlu0 %2244, %v1971_v11   ;;  %v1632_v14 = vpop.permute.xlu1 %1631 }
 0xaf0   : > { %v1638_v16 = vsel %vm1637_vm15, %v1605_v13, %v1632_v14 }
 0xaf1   : > { %vm1640_vm11 = vcmp.ge.f32.partialorder %v1638_v16, 0.0  ;;  %v1642_v18 = vmul.f32 0.2, %v1638_v16 }
 0xaf3   : > { %1771 = vperm.xlu0 %2244, %v1976_v17   ;;  %v1644_v19 = vsel %vm1640_vm11, %v1638_v16, %v1642_v18 }
 0xaf4   : > { %1657 = vrot.lane.b32.xlu1 %v1644_v19, %s2275_s24 }
 0xaf8   : > { %1651 = vrot.lane.b32.xlu1 %v1644_v19, %s2267_s18 }
 0xafc   : > { %1668 = vperm.xlu1 %2243, %v1970_v20  }
 0xb00   : > { %1776 = vperm.xlu1 %2243, %v1977_v21  }
 0xb59   : > { %v1660_v22 = vpop.permute.xlu0 %1659 }
 0xb5a   : > { %2186 = vmatprep.subr.mxu0 %v1660_v22 }
 0xb5b   : > { %2187 = vmatpush3.msra.mxu0 %v1660_v22 }
 0xb5d   : > { %v1654_v24 = vpop.permute.xlu0 %1653 }
 0xb66   : > { %v1658_v23 = vpop.permute.xlu1 %1657 }
 0xb67   : > { %2188 = vmatprep.subr.mxu0 %v1658_v23 }
 0xb68   : > { %2189 = vmatpush3.msra.mxu0 %v1658_v23 }
 0xb69   : > { %2190 = vmatprep.subr.mxu0 %v1654_v24 }
 0xb6a   : > { %2191 = vmatpush3.msra.mxu0 %v1654_v24  ;;  %v1652_v25 = vpop.permute.xlu1 %1651  ;;  %v1674_v28 = vpop.permute.xlu0 %1673 }
 0xb6b   : > { %2192 = vmatprep.subr.mxu0 %v1652_v25 }
 0xb6c   : > { %2193 = vmatpush3.msra.mxu0 %v1652_v25 }
 0xb6d   : > { %2194 = vmatprep.subr.mxu0 %v1645_v7 }
 0xb6e   : > { %2195 = vmatpush3.msra.mxu0 %v1645_v7  ;;  %v1772_v42 = vpop.permute.xlu0 %1771 }
 0xb6f   : > { %2196 = vmatprep.subr.mxu0 %v1644_v19 }
 0xb70   : > { %2197 = vmatpush3.msra.mxu0 %v1644_v19 }
 0xb71   : > { %2199 = vmatmul.mubr.msk.f32.vlgmr.msra.gmra.mxu0 %vm1006_vm3, %v1969_v26  ;;  %vm1868_vm3 = vcmask 125952  }
 0xb77   : > { %v1669_v31 = vpop.permute.xlu1 %1668 }
 0xb7b   : > { %v1777_v39 = vpop.permute.xlu1 %1776 }
 0xc31   : > { %v2200_v29 = vpop.f32.mrf.mxu0 }
 0xc32   : > { %v1754_v30 = vadd.f32 %v2200_v29, %v1674_v28 }
 0xc33   : > { %v1748_v32 = vpop.f32.mrf.mxu0 }
 0xc34   : > { %v1760_v33 = vmul.f32 0.2, %v1754_v30  ;;  %v1749_v34 = vadd.f32 %v1748_v32, %v1669_v31  ;;  %vm1758_vm4 = vcmp.ge.f32.partialorder %v1754_v30, 0.0 }
 0xc36   : > { %v1759_v35 = vmul.f32 0.2, %v1749_v34  ;;  %v1762_v36 = vsel %vm1758_vm4, %v1754_v30, %v1760_v33  ;;  %vm1757_vm6 = vcmp.ge.f32.partialorder %v1749_v34, 0.0 }
 0xc37   : > { %2205 = vmatprep.subr.mxu1 %v1762_v36 }
 0xc38   : > { %2206 = vmatpush3.msra.mxu1 %v1762_v36  ;;  %v1761_v37 = vsel %vm1757_vm6, %v1749_v34, %v1759_v35 }
 0xc39   : > { %2207 = vmatprep.subr.mxu1 %v1761_v37 }
 0xc3a   : > { %2208 = vmatpush3.msra.mxu1 %v1761_v37 }
 0xc3b   : > { %2210 = vmatmul.mubr.msk.f32.vlgmr.msra.gmra.mxu1 %vm1108_vm5, %v1975_v38 }
 0xcfb   : > { %v2211_v40 = vpop.f32.mrf.mxu1 }
 0xcfc   : > { %v1857_v41 = vadd.f32 %v2211_v40, %v1777_v39 }
 0xcfd   : > { %v1851_v43 = vpop.f32.mrf.mxu1 }
 0xcfe   : > { %v1986_v44 = vpack.c.bf16 %v1857_v41, %v1857_v41  ;;  %v1852_v45 = vadd.f32 %v1851_v43, %v1772_v42 }
 0xd00   : > { %1870 = vst.msk [vmem:[%s356_s27 + $0x4] sm:$0xf] %vm1868_vm3, %v1986_v44  ;;  %v1985_v46 = vpack.c.bf16 %v1852_v45, %v1852_v45 }
 0xd02   : > { %1869 = vst.msk [vmem:[%s356_s27] sm:$0xf] %vm1868_vm3, %v1985_v46 }
 0xd03 PF: > { %s20_s13 = sadd.s32 1, %s2251_s13  }
 0xd04   : > { %p17_p4 = scmp.ge.s32.totalorder %s20_s13, 4  }
 0xd06   :  { %19 = sbr.rel (!%p17_p4) target bundleno = 1 (0x1), region = 99 }

// kernel: melgan_forward.6
= control target key start
LH: loop header
LB: loop body
LE: loop exit
PB: predicated region body
PF: predicated region fallthrough
CT: control target
= control target key end

     0   :  { %s2110_s27 = smov 0   ;;  %s2512_s0 = inlined_call_operand.vmem [shape: bf16[2,8,32], index: 0, kind: input, shape index: {}]   ;;  %s2513_s1 = inlined_call_operand.vmem [shape: f32[2,16,4], index: 1, kind: input, shape index: {}]   ;;  %s2514_s2 = inlined_call_operand.vmem [shape: f32[4,1], index: 2, kind: input, shape index: {}]   ;;  %s2515_s3 = inlined_call_operand.vmem [shape: f32[3,12,4], index: 3, kind: input, shape index: {}]   ;;  %s2516_s4 = inlined_call_operand.vmem [shape: f32[3,4,1], index: 4, kind: input, shape index: {}]   ;;  %s2517_s5 = inlined_call_operand.vmem [shape: f32[3,8,4], index: 5, kind: input, shape index: {}]   ;;  %s2518_s6 = inlined_call_operand.vmem [shape: f32[3,4,1], index: 6, kind: input, shape index: {}]   ;;  %s2519_s7 = inlined_call_operand.vmem [shape: f32[2,32,64], index: 7, kind: input, shape index: {}]   ;;  %s2520_s8 = inlined_call_operand.vmem [shape: bf16[2,4,64], index: 8, kind: output, shape index: {}]  }
   0x1 LB: > { %s1880_s28 = sadd.s32 4294967295, %s2034_s27   ;;  %p1884_p0 = scmp.ge.s32.totalorder %s2034_s27, 1  ;;  %s2034_s27 = sphi %s2110_s27, %s18_s27  }
   0x2   : > { %p261_p1 = scmp.lt.s32.totalorder %s2034_s27, 3 }
   0x4   : > { %p262_p2 = pnand %p1884_p0, %p261_p1 }
   0x5   : > { %p293_p3 = scmp.lt.s32.totalorder (!%p262_p2), %s1880_s28, 1  ;;  %s2040_s15 = smov (!%p262_p2), 1  }
   0x6   : > { %265 = sbr.rel (%p262_p2) target bundleno = 1655 (0x677), region = 52  ;;  %s2041_s20 = smov (!%p262_p2), 127  }
   0x7   : > { %s2044_s23 = smov (!%p262_p2), 3   ;;  %s2045_s10 = smov (!%p262_p2), 126  }
   0x8   : > { %s2046_s13 = smov (!%p262_p2), 125   ;;  %s2047_s14 = smov (!%p262_p2), 5  }
   0x9   : > { %s2048_s16 = smov (!%p262_p2), 9   ;;  %s2049_s19 = smov (!%p262_p2), 7  }
   0xa   : > { %s2050_s26 = smov (!%p262_p2), 122   ;;  %s2051_s11 = smov (!%p262_p2), 74  }
   0xb   : > { %v1888_v0 = vld [vmem:[%s2513_s1 + $0x18] sm:$0xff]  ;;  %v2036_v1 = vmov 1   ;;  %v2037_v2 = vmov 0   ;;  %s2522_s28 = smov (!%p293_p3, %s1880_s28), 1  ;;  %v2038_v3 = vmov 2   ;;  %v2039_v4 = vmov 3  }
   0xc   : > { %1972 = vset.pattern.permute.xlu0 %v2036_v1  ;;  %1974 = vset.pattern.permute.xlu1 %v2037_v2  ;;  %s1885_s9 = sshll.u32 %s2522_s28, 2  ;;  %v316_v7 = vld [vmem:[%s2513_s1 + $0x8] sm:$0xff]  ;;  %v1887_v10 = vld [vmem:[%s2513_s1 + $0x10] sm:$0xff]  ;;  %v314_v11 = vld [vmem:[%s2514_s2] sm:$0xf]  ;;  %vm310_vm1 = vcmask 7168  }
   0xd   : > { %506 = vperm.xlu0 %1972, %v1888_v0   ;;  %476 = vperm.xlu1 %1974, %v1888_v0   ;;  %s296_s12 = scalar_lea.vmem %s2512_s0, %s1885_s9  ;;  %vm312_vm2 = vcmask 269312   ;;  %vm480_vm3 = vcmask 277520   ;;  %vm337_vm4 = vcmask 269320   ;;  %vm2043_vm5 = vmmov 0   ;;  %s2053_s17 = smov 119  }
   0xe   : > { %v301_v5 = vld [vmem:[%s296_s12] sm:$0xf]  ;;  %vm446_vm6 = vcmask 1040384   ;;  %vm448_vm7 = vcmask 1041408   ;;  %vm450_vm8 = vcmask 1042432   ;;  %vm323_vm9 = vcmask 261120  }
   0xf   : > { %v302_v6 = vunpack.c.l.bf16 %v301_v5  ;;  %vm760_vm10 = vcmask 531456   ;;  %vm804_vm12 = vcmask 535568   ;;  %vm773_vm13 = vcmask 519168   ;;  %s2052_s12 = smov 72   ;;  %s2054_s18 = smov 76  }
  0x10   : > { %vm1095_vm15 = vcmask 15360   ;;  %s2055_s21 = smov 123   ;;  %s2056_s22 = smov 121  }
  0x11   : > { %1973 = vset.pattern.permute.xlu0 %v2038_v3  ;;  %1975 = vset.pattern.permute.xlu1 %v2039_v4  ;;  %vm303_vm0 = vcmp.ge.f32.partialorder %v302_v6, 0.0  ;;  %v304_v8 = vmul.f32 0.2, %v302_v6  ;;  %s2057_s24 = smov 11   ;;  %s2063_s29 = smov 79  }
  0x12   : > { %535 = vperm.xlu0 %1973, %v1888_v0   ;;  %564 = vperm.xlu1 %1975, %v1888_v0  }
  0x13   : > { %v305_v9 = vsel %vm303_vm0, %v302_v6, %v304_v8  ;;  %vm1097_vm0 = vcmask 23552  }
  0x16   : > { %1976 = vset.pattern.permute.xlu0 %v2036_v1  ;;  %1977 = vset.pattern.permute.xlu1 %v2036_v1 }
  0x17   : > { %363 = vperm.xlu0 %1976, %v316_v7   ;;  %307 = vrot.lane.b32.xlu1 %v305_v9, %s2040_s15 }
  0x1b   : > { %1979 = vset.pattern.permute.xlu0 %v2038_v3  ;;  %494 = vperm.xlu1 %1977, %v1887_v10  }
  0x1c   : > { %523 = vperm.xlu0 %1979, %v1887_v10  }
  0x1f   : > { %1978 = vset.pattern.permute.xlu1 %v2038_v3 }
  0x20   : > { %1982 = vset.pattern.permute.xlu0 %v2037_v2  ;;  %392 = vperm.xlu1 %1978, %v316_v7  }
  0x21   : > { %463 = vperm.xlu0 %1982, %v1887_v10  }
  0x24   : > { %1980 = vset.pattern.permute.xlu1 %v2037_v2 }
  0x25   : > { %1984 = vset.pattern.permute.xlu0 %v2036_v1  ;;  %333 = vperm.xlu1 %1980, %v316_v7  }
  0x29   : > { %1981 = vset.pattern.permute.xlu1 %v2039_v4 }
  0x2a   : > { %421 = vperm.xlu1 %1981, %v316_v7  }
  0x2e   : > { %552 = vperm.xlu1 %1981, %v1887_v10  }
  0x32   : > { %1983 = vset.pattern.permute.xlu1 %v2037_v2 }
  0x33   : > { %454 = vperm.xlu1 %1983, %v314_v11  }
  0x37   : > { %1985 = vset.pattern.permute.xlu1 %v2038_v3 }
  0x88   : > { %v477_v12 = vpop.permute.xlu1 %476  ;;  %v507_v13 = vpop.permute.xlu0 %506 }
  0x8d   : > { %v565_v14 = vpop.permute.xlu1 %564  ;;  %v536_v15 = vpop.permute.xlu0 %535 }
  0x91   : > { %v308_v16 = vpop.permute.xlu1 %307 }
  0x92   : > { %v311_v17 = vsel %vm310_vm1, 0.0, %v308_v16  ;;  %v364_v22 = vpop.permute.xlu0 %363 }
  0x93   : > { %v2152_v18 = vsel %vm312_vm2, %v311_v17, 0.0  ;;  %vm1099_vm2 = vcmask 547840  }
  0x94   : > { %v538_v19 = vmul.f32 %v536_v15, %v2152_v18  ;;  %v509_v20 = vmul.f32 %v507_v13, %v2152_v18  ;;  %v567_v21 = vmul.f32 %v565_v14, %v2152_v18  ;;  %v479_v23 = vmul.f32 %v477_v12, %v2152_v18  ;;  %v315_v12 = vld [vmem:[%s2513_s1] sm:$0xff] }
  0x95   : > { %v366_v31 = vmul.f32 %v364_v22, %v2152_v18 }
  0x96   : > { %v539_v24 = vsel %vm480_vm3, %v538_v19, 0.0  ;;  %v510_v25 = vsel %vm480_vm3, %v509_v20, 0.0  ;;  %v568_v26 = vsel %vm480_vm3, %v567_v21, 0.0  ;;  %v2158_v27 = vpop.permute.xlu1 %494  ;;  %v481_v32 = vsel %vm480_vm3, %v479_v23, 0.0 }
  0x97   : > { %v540_v28 = vrot.slane %v539_v24, 4  ;;  %v511_v29 = vrot.slane %v510_v25, 4  ;;  %v569_v30 = vrot.slane %v568_v26, 4  ;;  %v482_v36 = vrot.slane %v481_v32, 4 }
  0x98   : > { %v367_v38 = vsel %vm337_vm4, %v366_v31, 0.0  ;;  %v2042_v31 = vmov 0.0   ;;  %vm1101_vm3 = vcmask 556032  }
  0x99   : > { %v541_v33 = vadd.f32 %v540_v28, %v539_v24  ;;  %v512_v34 = vadd.f32 %v511_v29, %v510_v25  ;;  %v570_v35 = vadd.f32 %v569_v30, %v568_v26  ;;  %v483_v42 = vadd.f32 %v482_v36, %v481_v32  ;;  %1924 = vmatprep.subr.mxu1 %v2042_v31  ;;  %v596_v32 = vld [vmem:[%s2519_s7 + $0x18] sm:$0xff] }
  0x9a   : > { %v368_v47 = vrot.slane %v367_v38, 4  ;;  %1913 = vmatprep.subr.mxu0 %v2042_v31  ;;  %1925 = vmatpush3.msra.mxu1 %v596_v32  ;;  %v600_v36 = vld [vmem:[%s2519_s7 + $0x38] sm:$0xff] }
  0x9b   : > { %v542_v37 = vrot.slane %v541_v33, 2  ;;  %v393_v39 = vpop.permute.xlu1 %392  ;;  %v513_v40 = vrot.slane %v512_v34, 2  ;;  %v571_v41 = vrot.slane %v570_v35, 2  ;;  %v484_v48 = vrot.slane %v483_v42, 2  ;;  %1926 = vmatprep.subr.mxu1 %v2042_v31  ;;  %1932 = vmatprep.mubr.msk.f32.mxu1 %vm2043_vm5, %v2042_v31 }
  0x9c   : > { %v395_v43 = vmul.f32 %v393_v39, %v2152_v18  ;;  %v369_v58 = vadd.f32 %v368_v47, %v367_v38  ;;  %1921 = vmatprep.mubr.msk.f32.mxu0 %vm2043_vm5, %v2042_v31  ;;  %1914 = vmatpush3.msra.mxu0 %v600_v36  ;;  %v598_v38 = vld [vmem:[%s2519_s7 + $0x28] sm:$0xff]  ;;  %v597_v39 = vld [vmem:[%s2519_s7 + $0x20] sm:$0xff] }
  0x9d   : > { %v543_v44 = vadd.f32 %v542_v37, %v541_v33  ;;  %v514_v45 = vadd.f32 %v513_v40, %v512_v34  ;;  %v572_v46 = vadd.f32 %v571_v41, %v570_v35  ;;  %v485_v53 = vadd.f32 %v484_v48, %v483_v42  ;;  %v595_v33 = vld [vmem:[%s2519_s7 + $0x10] sm:$0xff]  ;;  %v594_v34 = vld [vmem:[%s2519_s7 + $0x8] sm:$0xff]  ;;  %v593_v35 = vld [vmem:[%s2519_s7] sm:$0xff]  ;;  %1915 = vmatprep.subr.mxu0 %v2042_v31  ;;  %v524_v40 = vpop.permute.xlu0 %523 }
  0x9e   : > { %v396_v49 = vsel %vm337_vm4, %v395_v43, 0.0  ;;  %v370_v6 = vrot.slane %v369_v58, 2  ;;  %1927 = vmatpush3.msra.mxu1 %v595_v33  ;;  %v599_v37 = vld [vmem:[%s2519_s7 + $0x30] sm:$0xff]  ;;  %v497_v41 = vmul.f32 %v2158_v27, %v2152_v18  ;;  %v526_v42 = vmul.f32 %v524_v40, %v2152_v18 }
  0x9f   : > { %v544_v50 = vrot.slane %v543_v44, 1  ;;  %v515_v51 = vrot.slane %v514_v45, 1  ;;  %v573_v57 = vrot.slane %v572_v46, 1  ;;  %v397_v59 = vrot.slane %v396_v49, 4  ;;  %1928 = vmatprep.subr.mxu1 %v2042_v31  ;;  %1916 = vmatpush3.msra.mxu0 %v599_v37 }
  0xa0   : > { %v334_v52 = vpop.permute.xlu1 %333  ;;  %v486_v60 = vrot.slane %v485_v53, 1  ;;  %v371_v14 = vadd.f32 %v370_v6, %v369_v58  ;;  %1929 = vmatpush3.msra.mxu1 %v594_v34  ;;  %1917 = vmatprep.subr.mxu0 %v2042_v31  ;;  %v527_v48 = vsel %vm337_vm4, %v526_v42, 0.0 }
  0xa1   : > { %v336_v54 = vmul.f32 %v334_v52, %v2152_v18  ;;  %v545_v55 = vadd.f32 %v544_v50, %v543_v44  ;;  %v516_v56 = vadd.f32 %v515_v51, %v514_v45  ;;  %v574_v0 = vadd.f32 %v573_v57, %v572_v46  ;;  %1930 = vmatprep.subr.mxu1 %v2042_v31  ;;  %v464_v43 = vpop.permute.xlu0 %463 }
  0xa2   : > { %v487_v5 = vadd.f32 %v486_v60, %v485_v53  ;;  %v398_v7 = vadd.f32 %v397_v59, %v396_v49  ;;  %v372_v20 = vrot.slane %v371_v14, 1  ;;  %1931 = vmatpush3.msra.mxu1 %v593_v35  ;;  %1918 = vmatpush3.msra.mxu0 %v598_v38  ;;  %v498_v45 = vsel %vm337_vm4, %v497_v41, 0.0 }
  0xa3   : > { %v338_v61 = vsel %vm337_vm4, %v336_v54, 0.0  ;;  %547 = vrot.lane.b32.xlu0 %v545_v55, %s2041_s20  ;;  %518 = vrot.lane.b32.xlu1 %v516_v56, %s2041_s20  ;;  %v466_v46 = vmul.f32 %v464_v43, %v2152_v18  ;;  %v499_v49 = vrot.slane %v498_v45, 4  ;;  %v528_v50 = vrot.slane %v527_v48, 4 }
  0xa4   : > { %v339_v62 = vrot.slane %v338_v61, 4  ;;  %v399_v15 = vrot.slane %v398_v7, 2  ;;  %v373_v23 = vadd.f32 %v372_v20, %v371_v14  ;;  %1919 = vmatprep.subr.mxu0 %v2042_v31 }
  0xa5   : > { %v422_v63 = vpop.permute.xlu1 %421  ;;  %1920 = vmatpush3.msra.mxu0 %v597_v39  ;;  %v467_v51 = vsel %vm337_vm4, %v466_v46, 0.0  ;;  %v500_v53 = vadd.f32 %v499_v49, %v498_v45  ;;  %v529_v55 = vadd.f32 %v528_v50, %v527_v48 }
  0xa6   : > { %v340_v8 = vadd.f32 %v339_v62, %v338_v61  ;;  %v424_v9 = vmul.f32 %v422_v63, %v2152_v18  ;;  %v400_v22 = vadd.f32 %v399_v15, %v398_v7  ;;  %v468_v27 = vrot.slane %v467_v51, 4 }
  0xa7   : > { %576 = vrot.lane.b32.xlu1 %v574_v0, %s2041_s20  ;;  %489 = vrot.lane.b32.xlu0 %v487_v5, %s2041_s20  ;;  %v501_v56 = vrot.slane %v500_v53, 2  ;;  %v530_v59 = vrot.slane %v529_v55, 2 }
  0xa8   : > { %v341_v10 = vrot.slane %v340_v8, 2  ;;  %v425_v11 = vsel %vm337_vm4, %v424_v9, 0.0  ;;  %v401_v25 = vrot.slane %v400_v22, 1  ;;  %v469_v57 = vadd.f32 %v468_v27, %v467_v51 }
  0xa9   : > { %v426_v13 = vrot.slane %v425_v11, 4  ;;  %v553_v44 = vpop.permute.xlu1 %552  ;;  %v502_v62 = vadd.f32 %v501_v56, %v500_v53  ;;  %v531_v63 = vadd.f32 %v530_v59, %v529_v55 }
  0xaa   : > { %v342_v16 = vadd.f32 %v341_v10, %v340_v8  ;;  %v402_v28 = vadd.f32 %v401_v25, %v400_v22  ;;  %v555_v47 = vmul.f32 %v553_v44, %v2152_v18  ;;  %v470_v60 = vrot.slane %v469_v57, 2 }
  0xab   : > { %v427_v17 = vadd.f32 %v426_v13, %v425_v11  ;;  %380 = vperm.xlu1 %1985, %v315_v12   ;;  %351 = vperm.xlu0 %1984, %v315_v12   ;;  %v503_v5 = vrot.slane %v502_v62, 1  ;;  %v532_v8 = vrot.slane %v531_v63, 1 }
  0xac   : > { %v343_v21 = vrot.slane %v342_v16, 1  ;;  %v556_v52 = vsel %vm337_vm4, %v555_v47, 0.0  ;;  %v471_v6 = vadd.f32 %v470_v60, %v469_v57  ;;  %vm1103_vm4 = vcmask 564224  }
  0xad   : > { %v428_v19 = vrot.slane %v427_v17, 2  ;;  %v557_v54 = vrot.slane %v556_v52, 4  ;;  %v504_v9 = vadd.f32 %v503_v5, %v502_v62  ;;  %v533_v13 = vadd.f32 %v532_v8, %v531_v63 }
  0xae   : > { %v344_v24 = vadd.f32 %v343_v21, %v342_v16  ;;  %v2216_v0 = vpop.permute.xlu1 %454  ;;  %v472_v10 = vrot.slane %v471_v6, 1 }
  0xaf   : > { %1986 = vset.pattern.permute.xlu1 %v2037_v2  ;;  %1987 = vset.pattern.permute.xlu0 %v2039_v4  ;;  %v429_v26 = vadd.f32 %v428_v19, %v427_v17  ;;  %v558_v58 = vadd.f32 %v557_v54, %v556_v52 }
  0xb0   : > { %319 = vperm.xlu1 %1986, %v315_v12   ;;  %409 = vperm.xlu0 %1987, %v315_v12   ;;  %v473_v17 = vadd.f32 %v472_v10, %v471_v6 }
  0xb1   : > { %v430_v29 = vrot.slane %v429_v26, 1  ;;  %v559_v61 = vrot.slane %v558_v58, 2 }
  0xb3   : > { %v431_v30 = vadd.f32 %v430_v29, %v429_v26  ;;  %v560_v7 = vadd.f32 %v559_v61, %v558_v58 }
  0xb4   : > { %375 = vrot.lane.b32.xlu1 %v373_v23, %s2041_s20  ;;  %346 = vrot.lane.b32.xlu0 %v344_v24, %s2041_s20 }
  0xb5   : > { %1988 = vset.pattern.permute.xlu0 %v2036_v1  ;;  %1989 = vset.pattern.permute.xlu1 %v2038_v3  ;;  %v561_v11 = vrot.slane %v560_v7, 1 }
  0xb7   : > { %v562_v19 = vadd.f32 %v561_v11, %v560_v7 }
  0xb8   : > { %404 = vrot.lane.b32.xlu1 %v402_v28, %s2041_s20 }
  0xbc   : > { %433 = vrot.lane.b32.xlu1 %v431_v30, %s2041_s20 }
 0x115   : > { %v548_v12 = vpop.permute.xlu0 %547  ;;  %v519_v14 = vpop.permute.xlu1 %518 }
 0x116   : > { %v521_v15 = vadd.f32 %v519_v14, %v504_v9  ;;  %v550_v16 = vadd.f32 %v548_v12, %v533_v13 }
 0x118   : > { %v581_v22 = vrot.slane %v521_v15, 7  ;;  %v584_v25 = vrot.slane %v550_v16, 6 }
 0x119   : > { %v490_v20 = vpop.permute.xlu0 %489  ;;  %v577_v21 = vpop.permute.xlu1 %576 }
 0x11a   : > { %v492_v23 = vadd.f32 %v490_v20, %v473_v17  ;;  %v579_v24 = vadd.f32 %v577_v21, %v562_v19 }
 0x11c   : > { %v589_v26 = vsel %vm446_vm6, %v492_v23, %v581_v22  ;;  %v587_v28 = vrot.slane %v579_v24, 5 }
 0x11d   : > { %v590_v29 = vsel %vm448_vm7, %v589_v26, %v584_v25 }
 0x11e   : > { %v591_v30 = vsel %vm450_vm8, %v590_v29, %v587_v28 }
 0x11f   : > { %v592_v31 = vadd.f32 %v591_v30, %v2216_v0  ;;  %v765_v30 = vld [vmem:[%s2515_s3] sm:$0xff] }
 0x121   : > { %602 = vrot.lane.b32.xlu0 %v592_v31, %s2041_s20  ;;  %v952_v31 = vld [vmem:[%s2516_s4] sm:$0xf] }
 0x126   : > { %v352_v32 = vpop.permute.xlu0 %351  ;;  %v381_v33 = vpop.permute.xlu1 %380 }
 0x127   : > { %v354_v34 = vmul.f32 %v352_v32, %v2152_v18  ;;  %v383_v35 = vmul.f32 %v381_v33, %v2152_v18 }
 0x129   : > { %v355_v36 = vsel %vm323_vm9, %v354_v34, 0.0  ;;  %v384_v37 = vsel %vm323_vm9, %v383_v35, 0.0 }
 0x12a   : > { %v356_v38 = vrot.slane %v355_v36, 4  ;;  %v385_v39 = vrot.slane %v384_v37, 4 }
 0x12b   : > { %v410_v40 = vpop.permute.xlu0 %409  ;;  %v320_v41 = vpop.permute.xlu1 %319 }
 0x12c   : > { %v357_v42 = vadd.f32 %v356_v38, %v355_v36  ;;  %v386_v43 = vadd.f32 %v385_v39, %v384_v37  ;;  %v412_v44 = vmul.f32 %v410_v40, %v2152_v18  ;;  %v322_v45 = vmul.f32 %v320_v41, %v2152_v18  ;;  %v962_v40 = vld [vmem:[%s2517_s5] sm:$0xff] }
 0x12e   : > { %v358_v46 = vrot.slane %v357_v42, 2  ;;  %v387_v47 = vrot.slane %v386_v43, 2  ;;  %v413_v48 = vsel %vm323_vm9, %v412_v44, 0.0  ;;  %v324_v49 = vsel %vm323_vm9, %v322_v45, 0.0 }
 0x12f   : > { %v414_v50 = vrot.slane %v413_v48, 4  ;;  %v325_v51 = vrot.slane %v324_v49, 4  ;;  %v376_v52 = vpop.permute.xlu1 %375  ;;  %v347_v11 = vpop.permute.xlu0 %346 }
 0x130   : > { %v359_v53 = vadd.f32 %v358_v46, %v357_v42  ;;  %v388_v27 = vadd.f32 %v387_v47, %v386_v43 }
 0x131   : > { %v415_v54 = vadd.f32 %v414_v50, %v413_v48  ;;  %v326_v55 = vadd.f32 %v325_v51, %v324_v49 }
 0x132   : > { %v360_v56 = vrot.slane %v359_v53, 1  ;;  %v389_v57 = vrot.slane %v388_v27, 1 }
 0x133   : > { %v416_v58 = vrot.slane %v415_v54, 2  ;;  %v327_v59 = vrot.slane %v326_v55, 2  ;;  %v405_v18 = vpop.permute.xlu1 %404 }
 0x134   : > { %v361_v60 = vadd.f32 %v360_v56, %v359_v53  ;;  %v390_v61 = vadd.f32 %v389_v57, %v388_v27 }
 0x135   : > { %v417_v62 = vadd.f32 %v416_v58, %v415_v54  ;;  %v328_v63 = vadd.f32 %v327_v59, %v326_v55 }
 0x136   : > { %v378_v6 = vadd.f32 %v376_v52, %v361_v60  ;;  %v407_v8 = vadd.f32 %v405_v18, %v390_v61 }
 0x137   : > { %v329_v5 = vrot.slane %v328_v63, 1  ;;  %v418_v7 = vrot.slane %v417_v62, 1  ;;  %v434_v12 = vpop.permute.xlu1 %433 }
 0x138   : > { %v438_v14 = vrot.slane %v378_v6, 7  ;;  %v441_v16 = vrot.slane %v407_v8, 6 }
 0x139   : > { %v330_v9 = vadd.f32 %v329_v5, %v328_v63  ;;  %v419_v10 = vadd.f32 %v418_v7, %v417_v62 }
 0x13b   : > { %v349_v13 = vadd.f32 %v347_v11, %v330_v9  ;;  %v436_v15 = vadd.f32 %v434_v12, %v419_v10 }
 0x13d   : > { %v447_v17 = vsel %vm446_vm6, %v349_v13, %v438_v14  ;;  %v444_v19 = vrot.slane %v436_v15, 5 }
 0x13e   : > { %v449_v20 = vsel %vm448_vm7, %v447_v17, %v441_v16  ;;  %v1065_v16 = vld [vmem:[%s2518_s6] sm:$0xf] }
 0x13f   : > { %v451_v21 = vsel %vm450_vm8, %v449_v20, %v444_v19 }
 0x140   : > { %v457_v22 = vadd.f32 %v2216_v0, %v451_v21  ;;  %v766_v0 = vld [vmem:[%s2515_s3 + $0x8] sm:$0xf] }
 0x142   : > { %1933 = vmatmul.mubr.msk.f32.vlgmr.msra.gmra.mxu1 %vm323_vm9, %v457_v22 }
 0x193   : > { %v603_v23 = vpop.permute.xlu0 %602 }
 0x194   : > { %1922 = vmatmul.mubr.msk.f32.vlgmr.msra.gmra.mxu0 %vm323_vm9, %v603_v23  ;;  %vm1147_vm9 = vcmask 568368  }
 0x202   : > { %v745_v24 = vpop.f32.mrf.mxu1 }
 0x204   : > { %v1934_v25 = vpop.f32.mrf.mxu1 }
 0x254   : > { %v672_v26 = vpop.f32.mrf.mxu0 }
 0x255   : > { %v2237_v28 = vadd.f32 %v745_v24, %v672_v26 }
 0x256   : > { %v1923_v29 = vpop.f32.mrf.mxu0 }
 0x257   : > { %753 = vrot.lane.b32.xlu0 %v2237_v28, %s2040_s15  ;;  %750 = vrot.lane.b32.xlu1 %v2237_v28, %s2041_s20 }
 0x25b   : > { %842 = vperm.xlu0 %1988, %v766_v0   ;;  %756 = vrot.lane.b32.xlu1 %v2237_v28, %s2044_s23 }
 0x25f   : > { %1991 = vset.pattern.permute.xlu0 %v2039_v4  ;;  %883 = vperm.xlu1 %1989, %v766_v0  }
 0x260   : > { %924 = vperm.xlu0 %1991, %v766_v0  }
 0x263   : > { %1990 = vset.pattern.permute.xlu1 %v2037_v2 }
 0x264   : > { %1994 = vset.pattern.permute.xlu0 %v2037_v2  ;;  %800 = vperm.xlu1 %1990, %v766_v0  }
 0x265   : > { %769 = vperm.xlu0 %1994, %v765_v30  }
 0x268   : > { %1992 = vset.pattern.permute.xlu1 %v2036_v1 }
 0x269   : > { %818 = vperm.xlu1 %1992, %v765_v30   ;;  %955 = vperm.xlu0 %1994, %v952_v31  }
 0x26d   : > { %1993 = vset.pattern.permute.xlu1 %v2038_v3  ;;  %1997 = vset.pattern.permute.xlu0 %v2036_v1 }
 0x26e   : > { %859 = vperm.xlu1 %1993, %v765_v30  }
 0x272   : > { %1995 = vset.pattern.permute.xlu1 %v2039_v4 }
 0x273   : > { %900 = vperm.xlu1 %1995, %v765_v30  }
 0x277   : > { %1996 = vset.pattern.permute.xlu1 %v2037_v2 }
 0x2c9   : > { %v751_v32 = vpop.permute.xlu1 %750  ;;  %v754_v33 = vpop.permute.xlu0 %753 }
 0x2ca   : > { %v759_v34 = vsel %vm310_vm1, %v751_v32, %v754_v33 }
 0x2cd   : > { %v757_v35 = vpop.permute.xlu1 %756 }
 0x2ce   : > { %v761_v36 = vsel %vm760_vm10, %v759_v34, %v757_v35 }
 0x2cf   : > { %vm762_vm11 = vcmp.ge.f32.partialorder %v761_v36, 0.0  ;;  %v763_v37 = vmul.f32 0.2, %v761_v36 }
 0x2d1   : > { %v2263_v38 = vsel %vm762_vm11, %v761_v36, %v763_v37  ;;  %vm1470_vm11 = vcmask 31744  }
 0x2d2   : > { %v782_v39 = vrot.slane %v2263_v38, 4 }
 0x2d4   : > { %783 = vrot.lane.b32.xlu1 %v782_v39, %s2041_s20 }
 0x2d6   : > { %v843_v41 = vpop.permute.xlu0 %842 }
 0x2d7   : > { %v845_v42 = vmul.f32 %v843_v41, %v2263_v38 }
 0x2d8   : > { %965 = vperm.xlu1 %1996, %v962_v40  }
 0x2d9   : > { %v846_v43 = vsel %vm804_vm12, %v845_v42, 0.0 }
 0x2da   : > { %v847_v44 = vrot.slane %v846_v43, 4  ;;  %v884_v45 = vpop.permute.xlu1 %883 }
 0x2db   : > { %v886_v46 = vmul.f32 %v884_v45, %v2263_v38  ;;  %v925_v47 = vpop.permute.xlu0 %924 }
 0x2dc   : > { %v848_v48 = vadd.f32 %v847_v44, %v846_v43  ;;  %v927_v49 = vmul.f32 %v925_v47, %v2263_v38  ;;  %1998 = vset.pattern.permute.xlu1 %v2038_v3 }
 0x2dd   : > { %v887_v50 = vsel %vm804_vm12, %v886_v46, 0.0 }
 0x2de   : > { %v849_v51 = vrot.slane %v848_v48, 2  ;;  %v888_v52 = vrot.slane %v887_v50, 4  ;;  %v928_v53 = vsel %vm804_vm12, %v927_v49, 0.0 }
 0x2df   : > { %v929_v27 = vrot.slane %v928_v53, 4  ;;  %v801_v54 = vpop.permute.xlu1 %800 }
 0x2e0   : > { %v850_v55 = vadd.f32 %v849_v51, %v848_v48  ;;  %v889_v56 = vadd.f32 %v888_v52, %v887_v50  ;;  %v803_v57 = vmul.f32 %v801_v54, %v2263_v38  ;;  %v770_v21 = vpop.permute.xlu0 %769 }
 0x2e1   : > { %v930_v58 = vadd.f32 %v929_v27, %v928_v53  ;;  %v772_v25 = vmul.f32 %v770_v21, %v2263_v38 }
 0x2e2   : > { %v890_v59 = vrot.slane %v889_v56, 2  ;;  %v805_v60 = vsel %vm804_vm12, %v803_v57, 0.0  ;;  %v851_v61 = vrot.slane %v850_v55, 1  ;;  %vm1472_vm12 = vcmask 39936  }
 0x2e3   : > { %v931_v18 = vrot.slane %v930_v58, 2  ;;  %v806_v62 = vrot.slane %v805_v60, 4  ;;  %v774_v30 = vsel %vm773_vm13, %v772_v25, 0.0 }
 0x2e4   : > { %v891_v63 = vadd.f32 %v890_v59, %v889_v56  ;;  %v852_v5 = vadd.f32 %v851_v61, %v850_v55  ;;  %v819_v17 = vpop.permute.xlu1 %818 }
 0x2e5   : > { %v932_v6 = vadd.f32 %v931_v18, %v930_v58  ;;  %v807_v7 = vadd.f32 %v806_v62, %v805_v60  ;;  %v821_v20 = vmul.f32 %v819_v17, %v2263_v38 }
 0x2e6   : > { %854 = vrot.lane.b32.xlu0 %v852_v5, %s2045_s10  ;;  %v892_v8 = vrot.slane %v891_v63, 1 }
 0x2e7   : > { %v808_v9 = vrot.slane %v807_v7, 2  ;;  %v933_v11 = vrot.slane %v932_v6, 1  ;;  %v822_v23 = vsel %vm773_vm13, %v821_v20, 0.0 }
 0x2e8   : > { %v893_v10 = vadd.f32 %v892_v8, %v891_v63  ;;  %v823_v29 = vrot.slane %v822_v23, 4 }
 0x2e9   : > { %v809_v12 = vadd.f32 %v808_v9, %v807_v7  ;;  %v934_v14 = vadd.f32 %v933_v11, %v932_v6  ;;  %v860_v19 = vpop.permute.xlu1 %859 }
 0x2ea   : > { %895 = vrot.lane.b32.xlu1 %v893_v10, %s2045_s10  ;;  %v862_v24 = vmul.f32 %v860_v19, %v2263_v38  ;;  %v824_v32 = vadd.f32 %v823_v29, %v822_v23 }
 0x2eb   : > { %v810_v13 = vrot.slane %v809_v12, 1 }
 0x2ec   : > { %v863_v0 = vsel %vm773_vm13, %v862_v24, 0.0  ;;  %v825_v45 = vrot.slane %v824_v32, 2 }
 0x2ed   : > { %v811_v15 = vadd.f32 %v810_v13, %v809_v12  ;;  %v864_v33 = vrot.slane %v863_v0, 4 }
 0x2ee   : > { %936 = vrot.lane.b32.xlu1 %v934_v14, %s2045_s10  ;;  %v901_v22 = vpop.permute.xlu1 %900  ;;  %v826_v61 = vadd.f32 %v825_v45, %v824_v32 }
 0x2ef   : > { %813 = vrot.lane.b32.xlu0 %v811_v15, %s2045_s10  ;;  %v903_v26 = vmul.f32 %v901_v22, %v2263_v38  ;;  %v865_v46 = vadd.f32 %v864_v33, %v863_v0  ;;  %v956_v15 = vpop.permute.xlu0 %955  ;;  %s2064_s10 = smov 110  }
 0x2f0   : > { %v827_v12 = vrot.slane %v826_v61, 1 }
 0x2f1   : > { %v904_v31 = vsel %vm773_vm13, %v903_v26, 0.0  ;;  %v866_v60 = vrot.slane %v865_v46, 2 }
 0x2f2   : > { %1015 = vperm.xlu1 %1998, %v962_v40   ;;  %v905_v41 = vrot.slane %v904_v31, 4  ;;  %v828_v25 = vadd.f32 %v827_v12, %v826_v61 }
 0x2f3   : > { %991 = vperm.xlu0 %1997, %v962_v40   ;;  %v867_v10 = vadd.f32 %v866_v60, %v865_v46 }
 0x2f4   : > { %v906_v55 = vadd.f32 %v905_v41, %v904_v31 }
 0x2f5   : > { %v868_v23 = vrot.slane %v867_v10, 1 }
 0x2f6   : > { %1999 = vset.pattern.permute.xlu1 %v2039_v4  ;;  %v907_v6 = vrot.slane %v906_v55, 2 }
 0x2f7   : > { %1039 = vperm.xlu1 %1999, %v962_v40   ;;  %2000 = vset.pattern.permute.xlu0 %v2037_v2  ;;  %v775_v40 = vrot.slane %v774_v30, 4 }
 0x2f8   : > { %1068 = vperm.xlu0 %2000, %v1065_v16  }
 0x2f9   : > { %v776_v54 = vadd.f32 %v775_v40, %v774_v30 }
 0x2fb   : > { %2001 = vset.pattern.permute.xlu1 %v2036_v1  ;;  %v777_v7 = vrot.slane %v776_v54, 2 }
 0x2fc   : > { %2002 = vset.pattern.permute.xlu0 %v2038_v3 }
 0x346   : > { %v784_v34 = vpop.permute.xlu1 %783 }
 0x347   : > { %v786_v35 = vmul.f32 %v784_v34, %v770_v21  ;;  %v829_v36 = vmul.f32 %v819_v17, %v784_v34  ;;  %v870_v37 = vmul.f32 %v860_v19, %v784_v34  ;;  %v911_v39 = vmul.f32 %v901_v22, %v784_v34 }
 0x348   : > { %v908_v17 = vadd.f32 %v907_v6, %v906_v55  ;;  %v778_v21 = vadd.f32 %v777_v7, %v776_v54  ;;  %v2299_v22 = vrot.slane %v2237_v28, 4  ;;  %v869_v34 = vadd.f32 %v868_v23, %v867_v10 }
 0x349   : > { %v788_v42 = vrot.slane %v786_v35, 4  ;;  %v831_v43 = vrot.slane %v829_v36, 4  ;;  %v872_v44 = vrot.slane %v870_v37, 4  ;;  %v913_v38 = vrot.slane %v911_v39, 4 }
 0x34a   : > { %v909_v30 = vrot.slane %v908_v17, 1  ;;  %v779_v32 = vrot.slane %v778_v21, 1 }
 0x34b   : > { %v790_v47 = vsel %vm773_vm13, %v788_v42, 0.0  ;;  %v833_v48 = vsel %vm773_vm13, %v831_v43, 0.0  ;;  %v874_v49 = vsel %vm773_vm13, %v872_v44, 0.0  ;;  %v915_v50 = vsel %vm773_vm13, %v913_v38, 0.0 }
 0x34c   : > { %v791_v51 = vrot.slane %v790_v47, 4  ;;  %v834_v52 = vrot.slane %v833_v48, 4  ;;  %v875_v53 = vrot.slane %v874_v49, 4  ;;  %v916_v27 = vrot.slane %v915_v50, 4 }
 0x34d   : > { %v910_v41 = vadd.f32 %v909_v30, %v908_v17  ;;  %v780_v42 = vadd.f32 %v779_v32, %v778_v21 }
 0x34e   : > { %v835_v56 = vadd.f32 %v834_v52, %v833_v48  ;;  %v876_v57 = vadd.f32 %v875_v53, %v874_v49  ;;  %v917_v58 = vadd.f32 %v916_v27, %v915_v50  ;;  %v792_v59 = vadd.f32 %v791_v51, %v790_v47 }
 0x350   : > { %v836_v18 = vrot.slane %v835_v56, 2  ;;  %v877_v62 = vrot.slane %v876_v57, 2  ;;  %v918_v63 = vrot.slane %v917_v58, 2  ;;  %v793_v5 = vrot.slane %v792_v59, 2 }
 0x352   : > { %v837_v8 = vadd.f32 %v836_v18, %v835_v56  ;;  %v878_v9 = vadd.f32 %v877_v62, %v876_v57  ;;  %v919_v11 = vadd.f32 %v918_v63, %v917_v58  ;;  %v794_v14 = vadd.f32 %v793_v5, %v792_v59 }
 0x353   : > { %v966_v19 = vpop.permute.xlu1 %965 }
 0x354   : > { %v838_v13 = vrot.slane %v837_v8, 1  ;;  %v879_v16 = vrot.slane %v878_v9, 1  ;;  %v920_v24 = vrot.slane %v919_v11, 1  ;;  %v795_v26 = vrot.slane %v794_v14, 1 }
 0x355   : > { %v978_v29 = vmul.f32 %v2299_v22, %v966_v19 }
 0x356   : > { %v839_v20 = vadd.f32 %v838_v13, %v837_v8  ;;  %v880_v0 = vadd.f32 %v879_v16, %v878_v9  ;;  %v921_v35 = vadd.f32 %v920_v24, %v919_v11  ;;  %v796_v37 = vadd.f32 %v795_v26, %v794_v14 }
 0x357   : > { %v980_v39 = vrot.slane %v978_v29, 4 }
 0x358   : > { %v840_v31 = vadd.f32 %v839_v20, %v828_v25  ;;  %v855_v33 = vpop.permute.xlu0 %854  ;;  %v881_v40 = vadd.f32 %v880_v0, %v869_v34  ;;  %v922_v44 = vadd.f32 %v921_v35, %v910_v41  ;;  %v797_v45 = vadd.f32 %v796_v37, %v780_v42 }
 0x359   : > { %v982_v46 = vsel %vm773_vm13, %v980_v39, 0.0 }
 0x35a   : > { %v857_v28 = vadd.f32 %v855_v33, %v840_v31  ;;  %v983_v53 = vrot.slane %v982_v46, 4 }
 0x35c   : > { %v896_v36 = vpop.permute.xlu1 %895  ;;  %v941_v49 = vrot.slane %v857_v28, 7  ;;  %v984_v57 = vadd.f32 %v983_v53, %v982_v46 }
 0x35d   : > { %v898_v43 = vadd.f32 %v896_v36, %v881_v40 }
 0x35e   : > { %v985_v60 = vrot.slane %v984_v57, 2 }
 0x35f   : > { %v944_v51 = vrot.slane %v898_v43, 6 }
 0x360   : > { %v937_v38 = vpop.permute.xlu1 %936  ;;  %v986_v10 = vadd.f32 %v985_v60, %v984_v57 }
 0x361   : > { %v939_v47 = vadd.f32 %v937_v38, %v922_v44  ;;  %v814_v48 = vpop.permute.xlu0 %813 }
 0x362   : > { %v816_v50 = vadd.f32 %v814_v48, %v797_v45  ;;  %v987_v31 = vrot.slane %v986_v10, 1 }
 0x363   : > { %v947_v52 = vrot.slane %v939_v47, 5 }
 0x364   : > { %v949_v27 = vsel %vm446_vm6, %v816_v50, %v941_v49  ;;  %v988_v48 = vadd.f32 %v987_v31, %v986_v10 }
 0x365   : > { %v950_v54 = vsel %vm448_vm7, %v949_v27, %v944_v51 }
 0x366   : > { %v951_v55 = vsel %vm450_vm8, %v950_v54, %v947_v52 }
 0x367   : > { %v958_v56 = vadd.f32 %v956_v15, %v951_v55 }
 0x369   : > { %vm959_vm14 = vcmp.ge.f32.partialorder %v958_v56, 0.0  ;;  %v960_v58 = vmul.f32 0.2, %v958_v56 }
 0x36b   : > { %v961_v59 = vsel %vm959_vm14, %v958_v56, %v960_v58  ;;  %vm1474_vm14 = vcmask 48128  }
 0x36c   : > { %v968_v61 = vmul.f32 %v966_v19, %v961_v59 }
 0x36d   : > { %v1016_v18 = vpop.permute.xlu1 %1015 }
 0x36e   : > { %v969_v62 = vsel %vm773_vm13, %v968_v61, 0.0  ;;  %v1018_v63 = vmul.f32 %v1016_v18, %v961_v59  ;;  %v1026_v5 = vmul.f32 %v1016_v18, %v2299_v22  ;;  %v992_v6 = vpop.permute.xlu0 %991 }
 0x36f   : > { %v970_v7 = vrot.slane %v969_v62, 4  ;;  %v994_v8 = vmul.f32 %v992_v6, %v961_v59  ;;  %v1002_v9 = vmul.f32 %v992_v6, %v2299_v22 }
 0x370   : > { %v1019_v11 = vsel %vm773_vm13, %v1018_v63, 0.0  ;;  %v1028_v12 = vrot.slane %v1026_v5, 4 }
 0x371   : > { %v971_v13 = vadd.f32 %v970_v7, %v969_v62  ;;  %v1020_v14 = vrot.slane %v1019_v11, 4  ;;  %v995_v15 = vsel %vm773_vm13, %v994_v8, 0.0  ;;  %v1004_v16 = vrot.slane %v1002_v9, 4 }
 0x372   : > { %v1030_v17 = vsel %vm773_vm13, %v1028_v12, 0.0  ;;  %v996_v19 = vrot.slane %v995_v15, 4  ;;  %v1040_v20 = vpop.permute.xlu1 %1039 }
 0x373   : > { %v972_v21 = vrot.slane %v971_v13, 2  ;;  %v1021_v23 = vadd.f32 %v1020_v14, %v1019_v11  ;;  %v1031_v24 = vrot.slane %v1030_v17, 4  ;;  %v1006_v25 = vsel %vm773_vm13, %v1004_v16, 0.0  ;;  %v1069_v11 = vpop.permute.xlu0 %1068  ;;  %v1891_v16 = vld [vmem:[%s2515_s3 + $0x10] sm:$0xff] }
 0x374   : > { %v997_v26 = vadd.f32 %v996_v19, %v995_v15  ;;  %v1007_v29 = vrot.slane %v1006_v25, 4  ;;  %v1042_v0 = vmul.f32 %v1040_v20, %v961_v59  ;;  %v1050_v30 = vmul.f32 %v1040_v20, %v2299_v22  ;;  %v1892_v15 = vld [vmem:[%s2515_s3 + $0x18] sm:$0xf] }
 0x375   : > { %v1022_v32 = vrot.slane %v1021_v23, 2  ;;  %v1032_v33 = vadd.f32 %v1031_v24, %v1030_v17  ;;  %v973_v34 = vadd.f32 %v972_v21, %v971_v13 }
 0x376   : > { %v998_v35 = vrot.slane %v997_v26, 2  ;;  %v1008_v36 = vadd.f32 %v1007_v29, %v1006_v25  ;;  %v1043_v37 = vsel %vm773_vm13, %v1042_v0, 0.0  ;;  %v1052_v39 = vrot.slane %v1050_v30, 4 }
 0x377   : > { %v1023_v40 = vadd.f32 %v1022_v32, %v1021_v23  ;;  %v1033_v41 = vrot.slane %v1032_v33, 2  ;;  %v1044_v28 = vrot.slane %v1043_v37, 4  ;;  %v974_v42 = vrot.slane %v973_v34, 1 }
 0x378   : > { %v999_v43 = vadd.f32 %v998_v35, %v997_v26  ;;  %v1009_v44 = vrot.slane %v1008_v36, 2  ;;  %v1054_v38 = vsel %vm773_vm13, %v1052_v39, 0.0 }
 0x379   : > { %v1024_v45 = vrot.slane %v1023_v40, 1  ;;  %v1034_v46 = vadd.f32 %v1033_v41, %v1032_v33  ;;  %v1045_v22 = vadd.f32 %v1044_v28, %v1043_v37  ;;  %v1055_v47 = vrot.slane %v1054_v38, 4  ;;  %v1893_v37 = vld [vmem:[%s2516_s4 + $0x4] sm:$0xf] }
 0x37a   : > { %v1000_v49 = vrot.slane %v999_v43, 1  ;;  %v1010_v50 = vadd.f32 %v1009_v44, %v1008_v36  ;;  %v975_v51 = vadd.f32 %v974_v42, %v973_v34 }
 0x37b   : > { %v1035_v52 = vrot.slane %v1034_v46, 1  ;;  %v1046_v53 = vrot.slane %v1045_v22, 2  ;;  %v1056_v27 = vadd.f32 %v1055_v47, %v1054_v38  ;;  %v1025_v56 = vadd.f32 %v1024_v45, %v1023_v40 }
 0x37c   : > { %v1011_v54 = vrot.slane %v1010_v50, 1  ;;  %v989_v55 = vadd.f32 %v988_v48, %v975_v51  ;;  %v1001_v60 = vadd.f32 %v1000_v49, %v999_v43 }
 0x37d   : > { %v1036_v57 = vadd.f32 %v1035_v52, %v1034_v46  ;;  %v1047_v58 = vadd.f32 %v1046_v53, %v1045_v22  ;;  %v1057_v59 = vrot.slane %v1056_v27, 2 }
 0x37e   : > { %v1012_v61 = vadd.f32 %v1011_v54, %v1010_v50 }
 0x37f   : > { %v1048_v18 = vrot.slane %v1047_v58, 1  ;;  %v1058_v62 = vadd.f32 %v1057_v59, %v1056_v27  ;;  %v1037_v63 = vadd.f32 %v1036_v57, %v1025_v56 }
 0x380   : > { %v1013_v5 = vadd.f32 %v1012_v61, %v1001_v60 }
 0x381   : > { %v1059_v6 = vrot.slane %v1058_v62, 1  ;;  %v1049_v8 = vadd.f32 %v1048_v18, %v1047_v58 }
 0x382   : > { %v1062_v7 = vsel %vm446_vm6, %v989_v55, %v1013_v5 }
 0x383   : > { %v1060_v9 = vadd.f32 %v1059_v6, %v1058_v62  ;;  %v1063_v10 = vsel %vm448_vm7, %v1062_v7, %v1037_v63 }
 0x385   : > { %v1061_v12 = vadd.f32 %v1060_v9, %v1049_v8  ;;  %v1894_v8 = vld [vmem:[%s2517_s5 + $0x8] sm:$0xff] }
 0x387   : > { %v1064_v13 = vsel %vm450_vm8, %v1063_v10, %v1061_v12 }
 0x388   : > { %v2319_v14 = vadd.f32 %v1069_v11, %v1064_v13  ;;  %v1895_v11 = vld [vmem:[%s2518_s6 + $0x4] sm:$0xf] }
 0x38a   : > { %1079 = vrot.lane.b32.xlu0 %v2319_v14, %s2040_s15  ;;  %1073 = vrot.lane.b32.xlu1 %v2319_v14, %s2046_s13 }
 0x38e   : > { %1085 = vrot.lane.b32.xlu0 %v2319_v14, %s2047_s14  ;;  %1076 = vrot.lane.b32.xlu1 %v2319_v14, %s2041_s20 }
 0x392   : > { %1091 = vrot.lane.b32.xlu0 %v2319_v14, %s2048_s16  ;;  %1082 = vrot.lane.b32.xlu1 %v2319_v14, %s2044_s23 }
 0x396   : > { %1226 = vperm.xlu0 %2002, %v1892_v15   ;;  %1088 = vrot.lane.b32.xlu1 %v2319_v14, %s2049_s19 }
 0x39a   : > { %2005 = vset.pattern.permute.xlu0 %v2036_v1  ;;  %1185 = vperm.xlu1 %2001, %v1892_v15  }
 0x39b   : > { %1161 = vperm.xlu0 %2005, %v1891_v16  }
 0x39e   : > { %2003 = vset.pattern.permute.xlu1 %v2037_v2 }
 0x39f   : > { %2008 = vset.pattern.permute.xlu0 %v2039_v4  ;;  %1143 = vperm.xlu1 %2003, %v1892_v15  }
 0x3a0   : > { %1243 = vperm.xlu0 %2008, %v1891_v16  }
 0x3a3   : > { %2004 = vset.pattern.permute.xlu1 %v2039_v4 }
 0x3a4   : > { %1267 = vperm.xlu1 %2004, %v1892_v15   ;;  %2009 = vset.pattern.permute.xlu0 %v2037_v2 }
 0x3a8   : > { %2006 = vset.pattern.permute.xlu1 %v2038_v3 }
 0x3a9   : > { %1202 = vperm.xlu1 %2006, %v1891_v16  }
 0x3ad   : > { %2007 = vset.pattern.permute.xlu1 %v2037_v2 }
 0x3ae   : > { %1113 = vperm.xlu1 %2007, %v1891_v16  }
 0x3fc   : > { %v1074_v17 = vpop.permute.xlu1 %1073  ;;  %v1080_v19 = vpop.permute.xlu0 %1079 }
 0x400   : > { %v1077_v20 = vpop.permute.xlu1 %1076  ;;  %v1086_v23 = vpop.permute.xlu0 %1085 }
 0x401   : > { %v1094_v21 = vsel %vm310_vm1, %v1074_v17, %v1077_v20 }
 0x402   : > { %v1096_v24 = vsel %vm1095_vm15, %v1094_v21, %v1080_v19 }
 0x404   : > { %v1083_v25 = vpop.permute.xlu1 %1082  ;;  %v1092_v30 = vpop.permute.xlu0 %1091 }
 0x405   : > { %v1098_v26 = vsel %vm1097_vm0, %v1096_v24, %v1083_v25 }
 0x406   : > { %v1100_v29 = vsel %vm1099_vm2, %v1098_v26, %v1086_v23  ;;  %vm1476_vm2 = vcmask 56320  }
 0x408   : > { %v1089_v0 = vpop.permute.xlu1 %1088 }
 0x409   : > { %v1102_v31 = vsel %vm1101_vm3, %v1100_v29, %v1089_v0  ;;  %vm1478_vm3 = vcmask 64512  }
 0x40a   : > { %v1104_v32 = vsel %vm1103_vm4, %v1102_v31, %v1092_v30  ;;  %vm1480_vm4 = vcmask 72704  }
 0x40b   : > { %vm1105_vm5 = vcmp.ge.f32.partialorder %v1104_v32, 0.0  ;;  %v1106_v33 = vmul.f32 0.2, %v1104_v32 }
 0x40d   : > { %v2351_v34 = vsel %vm1105_vm5, %v1104_v32, %v1106_v33  ;;  %vm1488_vm5 = vcmask 621568  }
 0x40e   : > { %v1125_v35 = vrot.slane %v2351_v34, 4 }
 0x410   : > { %1126 = vrot.lane.b32.xlu1 %v1125_v35, %s2046_s13 }
 0x411   : > { %v1227_v36 = vpop.permute.xlu0 %1226 }
 0x412   : > { %v1229_v39 = vmul.f32 %v1227_v36, %v2351_v34 }
 0x414   : > { %v1230_v40 = vsel %vm1147_vm9, %v1229_v39, 0.0  ;;  %1299 = vperm.xlu1 %2007, %v1893_v37  }
 0x415   : > { %v1231_v41 = vrot.slane %v1230_v40, 4  ;;  %v1186_v28 = vpop.permute.xlu1 %1185 }
 0x416   : > { %v1188_v42 = vmul.f32 %v1186_v28, %v2351_v34  ;;  %v1162_v13 = vpop.permute.xlu0 %1161 }
 0x417   : > { %v1232_v43 = vadd.f32 %v1231_v41, %v1230_v40  ;;  %v1164_v15 = vmul.f32 %v1162_v13, %v2351_v34 }
 0x418   : > { %v1189_v44 = vsel %vm1147_vm9, %v1188_v42, 0.0  ;;  %2010 = vset.pattern.permute.xlu1 %v2036_v1 }
 0x419   : > { %v1233_v38 = vrot.slane %v1232_v43, 2  ;;  %v1190_v45 = vrot.slane %v1189_v44, 4  ;;  %v1165_v20 = vsel %vm773_vm13, %v1164_v15, 0.0 }
 0x41a   : > { %v1144_v46 = vpop.permute.xlu1 %1143  ;;  %v1166_v24 = vrot.slane %v1165_v20, 4 }
 0x41b   : > { %v1234_v22 = vadd.f32 %v1233_v38, %v1232_v43  ;;  %v1191_v47 = vadd.f32 %v1190_v45, %v1189_v44  ;;  %v1146_v48 = vmul.f32 %v1144_v46, %v2351_v34  ;;  %v1244_v21 = vpop.permute.xlu0 %1243 }
 0x41c   : > { %v1246_v25 = vmul.f32 %v1244_v21, %v2351_v34  ;;  %v1167_v40 = vadd.f32 %v1166_v24, %v1165_v20 }
 0x41d   : > { %v1192_v49 = vrot.slane %v1191_v47, 2  ;;  %v1148_v50 = vsel %vm1147_vm9, %v1146_v48, 0.0  ;;  %v1235_v51 = vrot.slane %v1234_v22, 1 }
 0x41e   : > { %v1149_v52 = vrot.slane %v1148_v50, 4  ;;  %v1247_v41 = vsel %vm773_vm13, %v1246_v25, 0.0 }
 0x41f   : > { %v1193_v53 = vadd.f32 %v1192_v49, %v1191_v47  ;;  %v1268_v27 = vpop.permute.xlu1 %1267  ;;  %v1236_v54 = vadd.f32 %v1235_v51, %v1234_v22  ;;  %v1248_v47 = vrot.slane %v1247_v41, 4 }
 0x420   : > { %v1150_v55 = vadd.f32 %v1149_v52, %v1148_v50  ;;  %v1270_v56 = vmul.f32 %v1268_v27, %v2351_v34 }
 0x421   : > { %1238 = vrot.lane.b32.xlu0 %v1236_v54, %s2050_s26  ;;  %v1194_v57 = vrot.slane %v1193_v53, 1 }
 0x422   : > { %v1151_v58 = vrot.slane %v1150_v55, 2  ;;  %v1271_v59 = vsel %vm1147_vm9, %v1270_v56, 0.0  ;;  %vm1490_vm9 = vcmask 629760  }
 0x423   : > { %v1272_v60 = vrot.slane %v1271_v59, 4  ;;  %v1195_v61 = vadd.f32 %v1194_v57, %v1193_v53  ;;  %v1168_v53 = vrot.slane %v1167_v40, 2 }
 0x424   : > { %v1152_v18 = vadd.f32 %v1151_v58, %v1150_v55  ;;  %v1203_v12 = vpop.permute.xlu1 %1202  ;;  %v1249_v58 = vadd.f32 %v1248_v47, %v1247_v41 }
 0x425   : > { %v1273_v62 = vadd.f32 %v1272_v60, %v1271_v59  ;;  %1197 = vrot.lane.b32.xlu1 %v1195_v61, %s2050_s26  ;;  %v1205_v17 = vmul.f32 %v1203_v12, %v2351_v34 }
 0x426   : > { %v1153_v63 = vrot.slane %v1152_v18, 1 }
 0x427   : > { %v1274_v5 = vrot.slane %v1273_v62, 2  ;;  %v1206_v23 = vsel %vm773_vm13, %v1205_v17, 0.0 }
 0x428   : > { %v1154_v6 = vadd.f32 %v1153_v63, %v1152_v18  ;;  %v1207_v33 = vrot.slane %v1206_v23, 4  ;;  %v1169_v18 = vadd.f32 %v1168_v53, %v1167_v40 }
 0x429   : > { %v1275_v7 = vadd.f32 %v1274_v5, %v1273_v62  ;;  %v1114_v16 = vpop.permute.xlu1 %1113 }
 0x42a   : > { %1156 = vrot.lane.b32.xlu1 %v1154_v6, %s2050_s26  ;;  %v1116_v19 = vmul.f32 %v1114_v16, %v2351_v34  ;;  %v1208_v48 = vadd.f32 %v1207_v33, %v1206_v23  ;;  %v1250_v6 = vrot.slane %v1249_v58, 2 }
 0x42b   : > { %v1276_v9 = vrot.slane %v1275_v7, 1 }
 0x42c   : > { %v1117_v26 = vsel %vm773_vm13, %v1116_v19, 0.0  ;;  %v1209_v57 = vrot.slane %v1208_v48, 2  ;;  %v1251_v19 = vadd.f32 %v1250_v6, %v1249_v58 }
 0x42d   : > { %v1277_v10 = vadd.f32 %v1276_v9, %v1275_v7  ;;  %v1118_v28 = vrot.slane %v1117_v26, 4 }
 0x42e   : > { %1336 = vperm.xlu1 %2010, %v1894_v8   ;;  %v1210_v5 = vadd.f32 %v1209_v57, %v1208_v48  ;;  %v1321_v48 = vrot.slane %v2319_v14, 4 }
 0x42f   : > { %1279 = vrot.lane.b32.xlu0 %v1277_v10, %s2050_s26  ;;  %v1119_v49 = vadd.f32 %v1118_v28, %v1117_v26 }
 0x430   : > { %v1211_v15 = vrot.slane %v1210_v5, 1 }
 0x431   : > { %v1120_v59 = vrot.slane %v1119_v49, 2 }
 0x432   : > { %2011 = vset.pattern.permute.xlu1 %v2038_v3  ;;  %v1212_v26 = vadd.f32 %v1211_v15, %v1210_v5 }
 0x433   : > { %1360 = vperm.xlu1 %2011, %v1894_v8   ;;  %1310 = vperm.xlu0 %2009, %v1894_v8  }
 0x437   : > { %2012 = vset.pattern.permute.xlu0 %v2039_v4  ;;  %2013 = vset.pattern.permute.xlu1 %v2037_v2 }
 0x438   : > { %1384 = vperm.xlu0 %2012, %v1894_v8   ;;  %1414 = vperm.xlu1 %2013, %v1895_v11   ;;  %v1121_v8 = vadd.f32 %v1120_v59, %v1119_v49  ;;  %v1170_v11 = vrot.slane %v1169_v18, 1 }
 0x43a   : > { %v1122_v17 = vrot.slane %v1121_v8, 1  ;;  %v1171_v23 = vadd.f32 %v1170_v11, %v1169_v18 }
 0x43c   : > { %2014 = vset.pattern.permute.xlu1 %v2036_v1  ;;  %2015 = vset.pattern.permute.xlu0 %v2038_v3 }
 0x482   : > { %v1127_v29 = vpop.permute.xlu1 %1126 }
 0x483   : > { %v1129_v0 = vmul.f32 %v1127_v29, %v1114_v16  ;;  %v1172_v30 = vmul.f32 %v1162_v13, %v1127_v29  ;;  %v1213_v31 = vmul.f32 %v1203_v12, %v1127_v29  ;;  %v1254_v32 = vmul.f32 %v1244_v21, %v1127_v29 }
 0x485   : > { %v1131_v35 = vrot.slane %v1129_v0, 4  ;;  %v1174_v36 = vrot.slane %v1172_v30, 4  ;;  %v1215_v37 = vrot.slane %v1213_v31, 4  ;;  %v1256_v39 = vrot.slane %v1254_v32, 4 }
 0x486   : > { %v1123_v0 = vadd.f32 %v1122_v17, %v1121_v8  ;;  %v1252_v30 = vrot.slane %v1251_v19, 1 }
 0x487   : > { %v1133_v42 = vsel %vm773_vm13, %v1131_v35, 0.0  ;;  %v1176_v34 = vsel %vm773_vm13, %v1174_v36, 0.0  ;;  %v1217_v43 = vsel %vm773_vm13, %v1215_v37, 0.0  ;;  %v1258_v44 = vsel %vm773_vm13, %v1256_v39, 0.0 }
 0x488   : > { %v1134_v38 = vrot.slane %v1133_v42, 4  ;;  %v1177_v45 = vrot.slane %v1176_v34, 4  ;;  %v1218_v46 = vrot.slane %v1217_v43, 4  ;;  %v1259_v22 = vrot.slane %v1258_v44, 4 }
 0x489   : > { %v1253_v40 = vadd.f32 %v1252_v30, %v1251_v19 }
 0x48a   : > { %v1219_v50 = vadd.f32 %v1218_v46, %v1217_v43  ;;  %v1178_v51 = vadd.f32 %v1177_v45, %v1176_v34  ;;  %v1135_v52 = vadd.f32 %v1134_v38, %v1133_v42  ;;  %v1260_v56 = vadd.f32 %v1259_v22, %v1258_v44 }
 0x48c   : > { %v1220_v27 = vrot.slane %v1219_v50, 2  ;;  %v1179_v54 = vrot.slane %v1178_v51, 2  ;;  %v1136_v55 = vrot.slane %v1135_v52, 2  ;;  %v1261_v63 = vrot.slane %v1260_v56, 2 }
 0x48e   : > { %v1180_v60 = vadd.f32 %v1179_v54, %v1178_v51  ;;  %v1221_v61 = vadd.f32 %v1220_v27, %v1219_v50  ;;  %v1137_v62 = vadd.f32 %v1136_v55, %v1135_v52  ;;  %v1262_v13 = vadd.f32 %v1261_v63, %v1260_v56 }
 0x48f   : > { %v1300_v9 = vpop.permute.xlu1 %1299 }
 0x490   : > { %v1181_v7 = vrot.slane %v1180_v60, 1  ;;  %v1222_v10 = vrot.slane %v1221_v61, 1  ;;  %v1138_v12 = vrot.slane %v1137_v62, 1  ;;  %v1263_v25 = vrot.slane %v1262_v13, 1 }
 0x492   : > { %v1182_v16 = vadd.f32 %v1181_v7, %v1180_v60  ;;  %v1223_v20 = vadd.f32 %v1222_v10, %v1221_v61  ;;  %v1139_v24 = vadd.f32 %v1138_v12, %v1137_v62  ;;  %v1264_v36 = vadd.f32 %v1263_v25, %v1262_v13 }
 0x493   : > { %v1239_v37 = vpop.permute.xlu0 %1238 }
 0x494   : > { %v1183_v29 = vadd.f32 %v1182_v16, %v1171_v23  ;;  %v1224_v31 = vadd.f32 %v1223_v20, %v1212_v26  ;;  %v1140_v33 = vadd.f32 %v1139_v24, %v1123_v0  ;;  %v1265_v42 = vadd.f32 %v1264_v36, %v1253_v40 }
 0x496   : > { %v1241_v41 = vadd.f32 %v1239_v37, %v1224_v31 }
 0x497   : > { %v1198_v21 = vpop.permute.xlu1 %1197 }
 0x498   : > { %v1200_v32 = vadd.f32 %v1198_v21, %v1183_v29  ;;  %v1287_v38 = vrot.slane %v1241_v41, 6 }
 0x49a   : > { %v1284_v28 = vrot.slane %v1200_v32, 7 }
 0x49c   : > { %v1157_v35 = vpop.permute.xlu1 %1156 }
 0x49d   : > { %v1159_v39 = vadd.f32 %v1157_v35, %v1140_v33 }
 0x49f   : > { %v1292_v43 = vsel %vm446_vm6, %v1159_v39, %v1284_v28 }
 0x4a0   : > { %v1293_v46 = vsel %vm448_vm7, %v1292_v43, %v1287_v38 }
 0x4a1   : > { %v1280_v34 = vpop.permute.xlu0 %1279 }
 0x4a2   : > { %v1282_v44 = vadd.f32 %v1280_v34, %v1265_v42 }
 0x4a4   : > { %v1290_v45 = vrot.slane %v1282_v44, 5 }
 0x4a6   : > { %v1294_v22 = vsel %vm450_vm8, %v1293_v46, %v1290_v45 }
 0x4a7   : > { %v1302_v47 = vadd.f32 %v1300_v9, %v1294_v22 }
 0x4a9   : > { %vm1303_vm10 = vcmp.ge.f32.partialorder %v1302_v47, 0.0  ;;  %v1304_v49 = vmul.f32 0.2, %v1302_v47  ;;  %v1337_v50 = vpop.permute.xlu1 %1336 }
 0x4aa   : > { %v1347_v51 = vmul.f32 %v1337_v50, %v1321_v48 }
 0x4ab   : > { %v1305_v52 = vsel %vm1303_vm10, %v1302_v47, %v1304_v49  ;;  %vm1492_vm10 = vcmask 637952  }
 0x4ac   : > { %v1339_v53 = vmul.f32 %v1337_v50, %v1305_v52  ;;  %v1349_v27 = vrot.slane %v1347_v51, 4 }
 0x4ae   : > { %v1340_v54 = vsel %vm773_vm13, %v1339_v53, 0.0  ;;  %v1351_v55 = vsel %vm773_vm13, %v1349_v27, 0.0  ;;  %v1311_v56 = vpop.permute.xlu0 %1310  ;;  %v1361_v57 = vpop.permute.xlu1 %1360 }
 0x4af   : > { %v1341_v58 = vrot.slane %v1340_v54, 4  ;;  %v1352_v59 = vrot.slane %v1351_v55, 4  ;;  %v1313_v60 = vmul.f32 %v1311_v56, %v1305_v52  ;;  %v1323_v61 = vmul.f32 %v1321_v48, %v1311_v56 }
 0x4b0   : > { %v1363_v18 = vmul.f32 %v1361_v57, %v1305_v52  ;;  %v1371_v62 = vmul.f32 %v1361_v57, %v1321_v48 }
 0x4b1   : > { %v1342_v14 = vadd.f32 %v1341_v58, %v1340_v54  ;;  %v1353_v63 = vadd.f32 %v1352_v59, %v1351_v55  ;;  %v1314_v5 = vsel %vm773_vm13, %v1313_v60, 0.0  ;;  %v1325_v6 = vrot.slane %v1323_v61, 4 }
 0x4b2   : > { %v1315_v7 = vrot.slane %v1314_v5, 4  ;;  %v1364_v8 = vsel %vm773_vm13, %v1363_v18, 0.0  ;;  %v1373_v9 = vrot.slane %v1371_v62, 4 }
 0x4b3   : > { %v1343_v10 = vrot.slane %v1342_v14, 2  ;;  %v1354_v11 = vrot.slane %v1353_v63, 2  ;;  %v1327_v12 = vsel %vm773_vm13, %v1325_v6, 0.0  ;;  %v1365_v13 = vrot.slane %v1364_v8, 4  ;;  %v1385_v15 = vpop.permute.xlu0 %1384  ;;  %v1415_v6 = vpop.permute.xlu1 %1414 }
 0x4b4   : > { %v1316_v16 = vadd.f32 %v1315_v7, %v1314_v5  ;;  %v1328_v17 = vrot.slane %v1327_v12, 4  ;;  %v1375_v19 = vsel %vm773_vm13, %v1373_v9, 0.0  ;;  %v1387_v20 = vmul.f32 %v1385_v15, %v1305_v52 }
 0x4b5   : > { %v1344_v21 = vadd.f32 %v1343_v10, %v1342_v14  ;;  %v1355_v23 = vadd.f32 %v1354_v11, %v1353_v63  ;;  %v1366_v24 = vadd.f32 %v1365_v13, %v1364_v8  ;;  %v1376_v25 = vrot.slane %v1375_v19, 4  ;;  %v1897_v10 = vld [vmem:[%s2515_s3 + $0x28] sm:$0xf]  ;;  %v1896_v11 = vld [vmem:[%s2515_s3 + $0x20] sm:$0xff] }
 0x4b6   : > { %v1317_v26 = vrot.slane %v1316_v16, 2  ;;  %v1329_v29 = vadd.f32 %v1328_v17, %v1327_v12  ;;  %v1388_v0 = vsel %vm773_vm13, %v1387_v20, 0.0  ;;  %v1395_v30 = vmul.f32 %v1385_v15, %v1321_v48 }
 0x4b7   : > { %v1345_v31 = vrot.slane %v1344_v21, 1  ;;  %v1356_v32 = vrot.slane %v1355_v23, 1  ;;  %v1367_v33 = vrot.slane %v1366_v24, 2  ;;  %v1377_v35 = vadd.f32 %v1376_v25, %v1375_v19 }
 0x4b8   : > { %v1318_v36 = vadd.f32 %v1317_v26, %v1316_v16  ;;  %v1330_v37 = vrot.slane %v1329_v29, 2  ;;  %v1389_v39 = vrot.slane %v1388_v0, 4  ;;  %v1397_v40 = vrot.slane %v1395_v30, 4 }
 0x4b9   : > { %v1346_v41 = vadd.f32 %v1345_v31, %v1344_v21  ;;  %v1357_v28 = vadd.f32 %v1356_v32, %v1355_v23  ;;  %v1368_v42 = vadd.f32 %v1367_v33, %v1366_v24  ;;  %v1378_v34 = vrot.slane %v1377_v35, 2 }
 0x4ba   : > { %v1319_v43 = vrot.slane %v1318_v36, 1  ;;  %v1331_v44 = vadd.f32 %v1330_v37, %v1329_v29  ;;  %v1390_v38 = vadd.f32 %v1389_v39, %v1388_v0  ;;  %v1399_v45 = vsel %vm773_vm13, %v1397_v40, 0.0 }
 0x4bb   : > { %v1369_v46 = vrot.slane %v1368_v42, 1  ;;  %v1379_v22 = vadd.f32 %v1378_v34, %v1377_v35  ;;  %v1400_v47 = vrot.slane %v1399_v45, 4  ;;  %v1358_v48 = vadd.f32 %v1357_v28, %v1346_v41 }
 0x4bc   : > { %v1332_v49 = vrot.slane %v1331_v44, 1  ;;  %v1391_v50 = vrot.slane %v1390_v38, 2  ;;  %v1320_v53 = vadd.f32 %v1319_v43, %v1318_v36 }
 0x4bd   : > { %v1380_v51 = vrot.slane %v1379_v22, 1  ;;  %v1401_v52 = vadd.f32 %v1400_v47, %v1399_v45  ;;  %v1370_v55 = vadd.f32 %v1369_v46, %v1368_v42 }
 0x4be   : > { %v1333_v27 = vadd.f32 %v1332_v49, %v1331_v44  ;;  %v1392_v54 = vadd.f32 %v1391_v50, %v1390_v38 }
 0x4bf   : > { %v1381_v56 = vadd.f32 %v1380_v51, %v1379_v22  ;;  %v1402_v57 = vrot.slane %v1401_v52, 2 }
 0x4c0   : > { %v1334_v58 = vadd.f32 %v1333_v27, %v1320_v53  ;;  %v1393_v59 = vrot.slane %v1392_v54, 1 }
 0x4c1   : > { %v1403_v60 = vadd.f32 %v1402_v57, %v1401_v52  ;;  %v1382_v61 = vadd.f32 %v1381_v56, %v1370_v55 }
 0x4c2   : > { %v1407_v18 = vsel %vm446_vm6, %v1334_v58, %v1358_v48  ;;  %v1394_v63 = vadd.f32 %v1393_v59, %v1392_v54 }
 0x4c3   : > { %v1404_v62 = vrot.slane %v1403_v60, 1  ;;  %v1408_v14 = vsel %vm448_vm7, %v1407_v18, %v1382_v61  ;;  %v1898_v61 = vld [vmem:[%s2516_s4 + $0x8] sm:$0xf] }
 0x4c5   : > { %v1405_v5 = vadd.f32 %v1404_v62, %v1403_v60 }
 0x4c7   : > { %v1406_v7 = vadd.f32 %v1405_v5, %v1394_v63 }
 0x4c9   : > { %v1409_v8 = vsel %vm450_vm8, %v1408_v14, %v1406_v7 }
 0x4ca   : > { %v2405_v9 = vadd.f32 %v1415_v6, %v1409_v8 }
 0x4cc   : > { %1497 = vrot.lane.b32.xlu0 %v2405_v9, %s2051_s11  ;;  %1494 = vrot.lane.b32.xlu1 %v2405_v9, %s2052_s12 }
 0x4d0   : > { %1419 = vrot.lane.b32.xlu0 %v2405_v9, %s2053_s17  ;;  %1500 = vrot.lane.b32.xlu1 %v2405_v9, %s2054_s18 }
 0x4d4   : > { %1425 = vrot.lane.b32.xlu0 %v2405_v9, %s2055_s21  ;;  %1422 = vrot.lane.b32.xlu1 %v2405_v9, %s2056_s22  ;;  %s1886_s21 = sshll.u32 %s2522_s28, 1 }
 0x4d8   : > { %1431 = vrot.lane.b32.xlu0 %v2405_v9, %s2041_s20  ;;  %1428 = vrot.lane.b32.xlu1 %v2405_v9, %s2046_s13  ;;  %s2058_s20 = smov 15   ;;  %s2059_s13 = smov 13  }
 0x4dc   : > { %1437 = vrot.lane.b32.xlu0 %v2405_v9, %s2044_s23  ;;  %1434 = vrot.lane.b32.xlu1 %v2405_v9, %s2040_s15  ;;  %s2060_s23 = smov 19   ;;  %s2061_s15 = smov 17  }
 0x4e0   : > { %1443 = vrot.lane.b32.xlu0 %v2405_v9, %s2049_s19  ;;  %1440 = vrot.lane.b32.xlu1 %v2405_v9, %s2047_s14  ;;  %s2062_s19 = smov 21  }
 0x4e4   : > { %1449 = vrot.lane.b32.xlu0 %v2405_v9, %s2057_s24  ;;  %1446 = vrot.lane.b32.xlu1 %v2405_v9, %s2048_s16 }
 0x4e8   : > { %1455 = vrot.lane.b32.xlu0 %v2405_v9, %s2058_s20  ;;  %1452 = vrot.lane.b32.xlu1 %v2405_v9, %s2059_s13  ;;  %s300_s20 = scalar_lea.vmem %s2520_s8, %s1886_s21 }
 0x4ec   : > { %1461 = vrot.lane.b32.xlu0 %v2405_v9, %s2060_s23  ;;  %1458 = vrot.lane.b32.xlu1 %v2405_v9, %s2061_s15 }
 0x4f0   : > { %1464 = vrot.lane.b32.xlu1 %v2405_v9, %s2062_s19 }
 0x4f4   : > { %1591 = vperm.xlu1 %2014, %v1897_v10  }
 0x4f8   : > { %2016 = vset.pattern.permute.xlu1 %v2037_v2 }
 0x4f9   : > { %1549 = vperm.xlu1 %2016, %v1897_v10  }
 0x4fd   : > { %2017 = vset.pattern.permute.xlu1 %v2039_v4 }
 0x4fe   : > { %1673 = vperm.xlu1 %2017, %v1897_v10  }
 0x502   : > { %2019 = vset.pattern.permute.xlu1 %v2038_v3 }
 0x503   : > { %1608 = vperm.xlu1 %2019, %v1896_v11  }
 0x507   : > { %2020 = vset.pattern.permute.xlu1 %v2037_v2 }
 0x508   : > { %1519 = vperm.xlu1 %2020, %v1896_v11  }
 0x53e   : > { %v1495_v12 = vpop.permute.xlu1 %1494  ;;  %v1498_v13 = vpop.permute.xlu0 %1497 }
 0x53f   : > { %v1503_v15 = vsel %vm310_vm1, %v1495_v12, %v1498_v13 }
 0x542   : > { %v1501_v16 = vpop.permute.xlu1 %1500  ;;  %v1420_v21 = vpop.permute.xlu0 %1419 }
 0x543   : > { %v1504_v17 = vsel %vm1095_vm15, %v1503_v15, %v1501_v16 }
 0x544   : > { %1506 = vrot.lane.b32.xlu0 %v1504_v17, %s2063_s29 }
 0x546   : > { %v1423_v19 = vpop.permute.xlu1 %1422  ;;  %v1426_v24 = vpop.permute.xlu0 %1425 }
 0x547   : > { %v1467_v0 = vsel %vm310_vm1, %v1420_v21, %v1423_v19  ;;  %vm1482_vm1 = vcmask 596992  }
 0x548   : > { %1632 = vperm.xlu0 %2015, %v1897_v10   ;;  %v1468_v31 = vsel %vm1095_vm15, %v1467_v0, %v1426_v24  ;;  %vm1484_vm15 = vcmask 605184  }
 0x54a   : > { %v1429_v20 = vpop.permute.xlu1 %1428  ;;  %v1432_v26 = vpop.permute.xlu0 %1431 }
 0x54b   : > { %v1469_v32 = vsel %vm1097_vm0, %v1468_v31, %v1429_v20  ;;  %vm1486_vm0 = vcmask 613376  }
 0x54c   : > { %2018 = vset.pattern.permute.xlu0 %v2036_v1  ;;  %v1471_v36 = vsel %vm1470_vm11, %v1469_v32, %v1432_v26  ;;  %vm1509_vm11 = vcmask 646144  }
 0x54d   : > { %1567 = vperm.xlu0 %2018, %v1896_v11  }
 0x54e   : > { %v1435_v23 = vpop.permute.xlu1 %1434  ;;  %v1438_v30 = vpop.permute.xlu0 %1437 }
 0x54f   : > { %v1473_v37 = vsel %vm1472_vm12, %v1471_v36, %v1435_v23  ;;  %v1900_v36 = vld [vmem:[%s2518_s6 + $0x8] sm:$0xf] }
 0x550   : > { %v1475_v39 = vsel %vm1474_vm14, %v1473_v37, %v1438_v30  ;;  %vm1553_vm14 = vcmask 666768  }
 0x551   : > { %2021 = vset.pattern.permute.xlu0 %v2039_v4 }
 0x552   : > { %1649 = vperm.xlu0 %2021, %v1896_v11   ;;  %v1441_v25 = vpop.permute.xlu1 %1440  ;;  %v1444_v35 = vpop.permute.xlu0 %1443 }
 0x553   : > { %v1477_v41 = vsel %vm1476_vm2, %v1475_v39, %v1441_v25 }
 0x554   : > { %v1479_v42 = vsel %vm1478_vm3, %v1477_v41, %v1444_v35 }
 0x556   : > { %2022 = vset.pattern.permute.xlu0 %v2037_v2  ;;  %v1447_v29 = vpop.permute.xlu1 %1446  ;;  %v1450_v28 = vpop.permute.xlu0 %1449 }
 0x557   : > { %v1481_v34 = vsel %vm1480_vm4, %v1479_v42, %v1447_v29 }
 0x558   : > { %v1483_v38 = vsel %vm1482_vm1, %v1481_v34, %v1450_v28 }
 0x55a   : > { %v1453_v33 = vpop.permute.xlu1 %1452  ;;  %v1456_v44 = vpop.permute.xlu0 %1455 }
 0x55b   : > { %v1485_v45 = vsel %vm1484_vm15, %v1483_v38, %v1453_v33 }
 0x55c   : > { %v1487_v22 = vsel %vm1486_vm0, %v1485_v45, %v1456_v44 }
 0x55e   : > { %v1459_v40 = vpop.permute.xlu1 %1458  ;;  %v1462_v47 = vpop.permute.xlu0 %1461 }
 0x55f   : > { %v1489_v48 = vsel %vm1488_vm5, %v1487_v22, %v1459_v40 }
 0x560   : > { %v1491_v49 = vsel %vm1490_vm9, %v1489_v48, %v1462_v47 }
 0x562   : > { %v1465_v43 = vpop.permute.xlu1 %1464 }
 0x563   : > { %v1493_v51 = vsel %vm1492_vm10, %v1491_v49, %v1465_v43 }
 0x56f   : > { %v1592_v46 = vpop.permute.xlu1 %1591 }
 0x574   : > { %v1550_v50 = vpop.permute.xlu1 %1549 }
 0x579   : > { %v1674_v55 = vpop.permute.xlu1 %1673 }
 0x57e   : > { %v1609_v37 = vpop.permute.xlu1 %1608 }
 0x5b6   : > { %v1507_v52 = vpop.permute.xlu0 %1506 }
 0x5b7   : > { %v1510_v53 = vsel %vm1509_vm11, %v1493_v51, %v1507_v52 }
 0x5b8   : > { %vm1511_vm12 = vcmp.ge.f32.partialorder %v1510_v53, 0.0  ;;  %v1512_v27 = vmul.f32 0.2, %v1510_v53 }
 0x5ba   : > { %v2452_v54 = vsel %vm1511_vm12, %v1510_v53, %v1512_v27 }
 0x5bb   : > { %v1531_v56 = vrot.slane %v2452_v54, 4  ;;  %v1552_v57 = vmul.f32 %v1550_v50, %v2452_v54  ;;  %v1594_v58 = vmul.f32 %v1592_v46, %v2452_v54  ;;  %v1676_v59 = vmul.f32 %v1674_v55, %v2452_v54 }
 0x5bc   : > { %v1611_v41 = vmul.f32 %v1609_v37, %v2452_v54 }
 0x5bd   : > { %1532 = vrot.lane.b32.xlu1 %v1531_v56, %s2053_s17  ;;  %v1554_v60 = vsel %vm1553_vm14, %v1552_v57, 0.0  ;;  %v1595_v62 = vsel %vm1553_vm14, %v1594_v58, 0.0  ;;  %v1677_v63 = vsel %vm1553_vm14, %v1676_v59, 0.0 }
 0x5be   : > { %v1555_v18 = vrot.slane %v1554_v60, 4  ;;  %v1596_v14 = vrot.slane %v1595_v62, 4  ;;  %v1678_v7 = vrot.slane %v1677_v63, 4  ;;  %v1612_v44 = vsel %vm773_vm13, %v1611_v41, 0.0 }
 0x5c0   : > { %v1556_v5 = vadd.f32 %v1555_v18, %v1554_v60  ;;  %v1597_v6 = vadd.f32 %v1596_v14, %v1595_v62  ;;  %v1679_v16 = vadd.f32 %v1678_v7, %v1677_v63 }
 0x5c1   : > { %1705 = vperm.xlu1 %2020, %v1898_v61  }
 0x5c2   : > { %v1557_v8 = vrot.slane %v1556_v5, 2  ;;  %v1598_v11 = vrot.slane %v1597_v6, 2  ;;  %v1680_v25 = vrot.slane %v1679_v16, 2 }
 0x5c3   : > { %v1633_v10 = vpop.permute.xlu0 %1632 }
 0x5c4   : > { %v1635_v12 = vmul.f32 %v1633_v10, %v2452_v54  ;;  %v1599_v13 = vadd.f32 %v1598_v11, %v1597_v6  ;;  %v1558_v15 = vadd.f32 %v1557_v8, %v1556_v5  ;;  %v1681_v30 = vadd.f32 %v1680_v25, %v1679_v16 }
 0x5c5   : > { %2023 = vset.pattern.permute.xlu1 %v2036_v1  ;;  %v1899_v1 = vld [vmem:[%s2517_s5 + $0x10] sm:$0xff] }
 0x5c6   : > { %v1636_v17 = vsel %vm1553_vm14, %v1635_v12, 0.0  ;;  %v1600_v20 = vrot.slane %v1599_v13, 1  ;;  %v1559_v24 = vrot.slane %v1558_v15, 1  ;;  %v1682_v33 = vrot.slane %v1681_v30, 1 }
 0x5c7   : > { %v1637_v19 = vrot.slane %v1636_v17, 4 }
 0x5c8   : > { %v1601_v23 = vadd.f32 %v1600_v20, %v1599_v13  ;;  %v1560_v0 = vadd.f32 %v1559_v24, %v1558_v15  ;;  %v1683_v35 = vadd.f32 %v1682_v33, %v1681_v30  ;;  %v1568_v39 = vpop.permute.xlu0 %1567 }
 0x5c9   : > { %v1638_v21 = vadd.f32 %v1637_v19, %v1636_v17  ;;  %v1570_v40 = vmul.f32 %v1568_v39, %v2452_v54 }
 0x5ca   : > { %1603 = vrot.lane.b32.xlu1 %v1601_v23, %s2064_s10 }
 0x5cb   : > { %v1639_v26 = vrot.slane %v1638_v21, 2  ;;  %v1571_v28 = vsel %vm773_vm13, %v1570_v40, 0.0 }
 0x5cc   : > { %v1572_v43 = vrot.slane %v1571_v28, 4 }
 0x5cd   : > { %v1640_v29 = vadd.f32 %v1639_v26, %v1638_v21  ;;  %v1650_v42 = vpop.permute.xlu0 %1649 }
 0x5ce   : > { %1562 = vrot.lane.b32.xlu1 %v1560_v0, %s2064_s10  ;;  %v1573_v45 = vadd.f32 %v1572_v43, %v1571_v28 }
 0x5cf   : > { %v1641_v31 = vrot.slane %v1640_v29, 1 }
 0x5d0   : > { %v1574_v53 = vrot.slane %v1573_v45, 2 }
 0x5d1   : > { %v1642_v32 = vadd.f32 %v1641_v31, %v1640_v29 }
 0x5d2   : > { %1742 = vperm.xlu1 %2023, %v1899_v1   ;;  %v1575_v8 = vadd.f32 %v1574_v53, %v1573_v45 }
 0x5d3   : > { %1644 = vrot.lane.b32.xlu0 %v1642_v32, %s2064_s10 }
 0x5d4   : > { %v1576_v24 = vrot.slane %v1575_v8, 1 }
 0x5d6   : > { %2024 = vset.pattern.permute.xlu1 %v2038_v3  ;;  %v1520_v3 = vpop.permute.xlu1 %1519 }
 0x5d7   : > { %1685 = vrot.lane.b32.xlu0 %v1683_v35, %s2064_s10  ;;  %1766 = vperm.xlu1 %2024, %v1899_v1   ;;  %v1522_v34 = vmul.f32 %v1520_v3, %v2452_v54 }
 0x5d9   : > { %v1523_v38 = vsel %vm773_vm13, %v1522_v34, 0.0 }
 0x5da   : > { %v1524_v22 = vrot.slane %v1523_v38, 4 }
 0x5db   : > { %1716 = vperm.xlu0 %2022, %v1899_v1   ;;  %2026 = vset.pattern.permute.xlu1 %v2037_v2 }
 0x5dc   : > { %1820 = vperm.xlu1 %2026, %v1900_v36  }
 0x5df   : > { %2025 = vset.pattern.permute.xlu0 %v2039_v4  ;;  %v1652_v4 = vmul.f32 %v1650_v42, %v2452_v54  ;;  %v1525_v54 = vadd.f32 %v1524_v22, %v1523_v38 }
 0x5e0   : > { %1790 = vperm.xlu0 %2025, %v1899_v1  }
 0x5e1   : > { %v1653_v46 = vsel %vm773_vm13, %v1652_v4, 0.0  ;;  %v1526_v15 = vrot.slane %v1525_v54, 2 }
 0x5e2   : > { %v1654_v27 = vrot.slane %v1653_v46, 4 }
 0x5e3   : > { %v1527_v30 = vadd.f32 %v1526_v15, %v1525_v54  ;;  %v1727_v54 = vrot.slane %v2405_v9, 4 }
 0x5e4   : > { %2027 = vset.pattern.permute.xlu0 %v2037_v2  ;;  %v1613_v2 = vrot.slane %v1612_v44, 4  ;;  %v1655_v7 = vadd.f32 %v1654_v27, %v1653_v46 }
 0x5e6   : > { %v1614_v52 = vadd.f32 %v1613_v2, %v1612_v44  ;;  %v1656_v21 = vrot.slane %v1655_v7, 2 }
 0x5e8   : > { %v1615_v6 = vrot.slane %v1614_v52, 2  ;;  %v1657_v36 = vadd.f32 %v1656_v21, %v1655_v7 }
 0x5ea   : > { %v1616_v23 = vadd.f32 %v1615_v6, %v1614_v52  ;;  %v1658_v44 = vrot.slane %v1657_v36, 1 }
 0x5ec   : > { %v1617_v35 = vrot.slane %v1616_v23, 1 }
 0x5ee   : > { %v1618_v43 = vadd.f32 %v1617_v35, %v1616_v23 }
 0x62f   : > { %v1533_v47 = vpop.permute.xlu1 %1532 }
 0x630   : > { %v1535_v48 = vmul.f32 %v1533_v47, %v1520_v3  ;;  %v1578_v49 = vmul.f32 %v1568_v39, %v1533_v47  ;;  %v1619_v50 = vmul.f32 %v1609_v37, %v1533_v47  ;;  %v1660_v51 = vmul.f32 %v1650_v42, %v1533_v47 }
 0x631   : > { %v1577_v37 = vadd.f32 %v1576_v24, %v1575_v8  ;;  %v1528_v3 = vrot.slane %v1527_v30, 1 }
 0x632   : > { %v1537_v55 = vrot.slane %v1535_v48, 4  ;;  %v1580_v56 = vrot.slane %v1578_v49, 4  ;;  %v1621_v57 = vrot.slane %v1619_v50, 4  ;;  %v1662_v58 = vrot.slane %v1660_v51, 4 }
 0x633   : > { %v1529_v38 = vadd.f32 %v1528_v3, %v1527_v30  ;;  %v1659_v49 = vadd.f32 %v1658_v44, %v1657_v36 }
 0x634   : > { %v1539_v59 = vsel %vm773_vm13, %v1537_v55, 0.0  ;;  %v1582_v60 = vsel %vm773_vm13, %v1580_v56, 0.0  ;;  %v1623_v61 = vsel %vm773_vm13, %v1621_v57, 0.0  ;;  %v1664_v18 = vsel %vm773_vm13, %v1662_v58, 0.0 }
 0x635   : > { %v1540_v62 = vrot.slane %v1539_v59, 4  ;;  %v1583_v14 = vrot.slane %v1582_v60, 4  ;;  %v1624_v63 = vrot.slane %v1623_v61, 4  ;;  %v1665_v5 = vrot.slane %v1664_v18, 4 }
 0x637   : > { %v1584_v10 = vadd.f32 %v1583_v14, %v1582_v60  ;;  %v1541_v11 = vadd.f32 %v1540_v62, %v1539_v59  ;;  %v1625_v12 = vadd.f32 %v1624_v63, %v1623_v61  ;;  %v1666_v13 = vadd.f32 %v1665_v5, %v1664_v18 }
 0x639   : > { %v1585_v16 = vrot.slane %v1584_v10, 2  ;;  %v1542_v17 = vrot.slane %v1541_v11, 2  ;;  %v1626_v19 = vrot.slane %v1625_v12, 2  ;;  %v1667_v20 = vrot.slane %v1666_v13, 2 }
 0x63b   : > { %v1586_v25 = vadd.f32 %v1585_v16, %v1584_v10  ;;  %v1543_v26 = vadd.f32 %v1542_v17, %v1541_v11  ;;  %v1627_v29 = vadd.f32 %v1626_v19, %v1625_v12  ;;  %v1668_v31 = vadd.f32 %v1667_v20, %v1666_v13 }
 0x63c   : > { %v1706_v0 = vpop.permute.xlu1 %1705 }
 0x63d   : > { %v1587_v1 = vrot.slane %v1586_v25, 1  ;;  %v1628_v32 = vrot.slane %v1627_v29, 1  ;;  %v1544_v33 = vrot.slane %v1543_v26, 1  ;;  %v1669_v28 = vrot.slane %v1668_v31, 1 }
 0x63f   : > { %v1588_v39 = vadd.f32 %v1587_v1, %v1586_v25  ;;  %v1629_v41 = vadd.f32 %v1628_v32, %v1627_v29  ;;  %v1545_v34 = vadd.f32 %v1544_v33, %v1543_v26  ;;  %v1670_v45 = vadd.f32 %v1669_v28, %v1668_v31 }
 0x640   : > { %v1604_v40 = vpop.permute.xlu1 %1603 }
 0x641   : > { %v1589_v42 = vadd.f32 %v1588_v39, %v1577_v37  ;;  %v1630_v2 = vadd.f32 %v1629_v41, %v1618_v43  ;;  %v1546_v47 = vadd.f32 %v1545_v34, %v1529_v38  ;;  %v1671_v52 = vadd.f32 %v1670_v45, %v1659_v49 }
 0x643   : > { %v1606_v4 = vadd.f32 %v1604_v40, %v1589_v42 }
 0x644   : > { %v1563_v46 = vpop.permute.xlu1 %1562 }
 0x645   : > { %v1645_v22 = vpop.permute.xlu0 %1644  ;;  %v1690_v50 = vrot.slane %v1606_v4, 7  ;;  %v1565_v51 = vadd.f32 %v1563_v46, %v1546_v47 }
 0x646   : > { %v1647_v48 = vadd.f32 %v1645_v22, %v1630_v2 }
 0x647   : > { %v1698_v56 = vsel %vm446_vm6, %v1565_v51, %v1690_v50 }
 0x648   : > { %v1693_v53 = vrot.slane %v1647_v48, 6 }
 0x649   : > { %v1686_v27 = vpop.permute.xlu0 %1685 }
 0x64a   : > { %v1688_v55 = vadd.f32 %v1686_v27, %v1671_v52  ;;  %v1699_v58 = vsel %vm448_vm7, %v1698_v56, %v1693_v53 }
 0x64c   : > { %v1696_v57 = vrot.slane %v1688_v55, 5 }
 0x64d   : > { %v1743_v60 = vpop.permute.xlu1 %1742 }
 0x64e   : > { %v1700_v59 = vsel %vm450_vm8, %v1699_v58, %v1696_v57  ;;  %v1753_v18 = vmul.f32 %v1743_v60, %v1727_v54 }
 0x64f   : > { %v1708_v61 = vadd.f32 %v1706_v0, %v1700_v59 }
 0x650   : > { %v1755_v14 = vrot.slane %v1753_v18, 4 }
 0x651   : > { %vm1709_vm2 = vcmp.ge.f32.partialorder %v1708_v61, 0.0  ;;  %v1710_v62 = vmul.f32 0.2, %v1708_v61 }
 0x652   : > { %v1757_v5 = vsel %vm773_vm13, %v1755_v14, 0.0  ;;  %v1767_v6 = vpop.permute.xlu1 %1766 }
 0x653   : > { %v1711_v63 = vsel %vm1709_vm2, %v1708_v61, %v1710_v62  ;;  %v1758_v8 = vrot.slane %v1757_v5, 4  ;;  %v1777_v11 = vmul.f32 %v1767_v6, %v1727_v54 }
 0x654   : > { %v1745_v7 = vmul.f32 %v1743_v60, %v1711_v63  ;;  %v1769_v10 = vmul.f32 %v1767_v6, %v1711_v63 }
 0x655   : > { %v1759_v13 = vadd.f32 %v1758_v8, %v1757_v5  ;;  %v1779_v15 = vrot.slane %v1777_v11, 4 }
 0x656   : > { %v1746_v12 = vsel %vm773_vm13, %v1745_v7, 0.0  ;;  %v1770_v9 = vsel %vm773_vm13, %v1769_v10, 0.0  ;;  %v1717_v16 = vpop.permute.xlu0 %1716 }
 0x657   : > { %v1747_v17 = vrot.slane %v1746_v12, 4  ;;  %v1771_v19 = vrot.slane %v1770_v9, 4  ;;  %v1719_v20 = vmul.f32 %v1717_v16, %v1711_v63  ;;  %v1729_v21 = vmul.f32 %v1727_v54, %v1717_v16  ;;  %v1821_v16 = vpop.permute.xlu1 %1820 }
 0x658   : > { %v1760_v23 = vrot.slane %v1759_v13, 2  ;;  %v1781_v24 = vsel %vm773_vm13, %v1779_v15, 0.0 }
 0x659   : > { %v1748_v25 = vadd.f32 %v1747_v17, %v1746_v12  ;;  %v1772_v26 = vadd.f32 %v1771_v19, %v1770_v9  ;;  %v1782_v29 = vrot.slane %v1781_v24, 4  ;;  %v1720_v0 = vsel %vm773_vm13, %v1719_v20, 0.0 }
 0x65a   : > { %v1761_v30 = vadd.f32 %v1760_v23, %v1759_v13  ;;  %v1721_v31 = vrot.slane %v1720_v0, 4  ;;  %v1731_v1 = vrot.slane %v1729_v21, 4 }
 0x65b   : > { %v1749_v32 = vrot.slane %v1748_v25, 2  ;;  %v1773_v33 = vrot.slane %v1772_v26, 2  ;;  %v1783_v35 = vadd.f32 %v1782_v29, %v1781_v24  ;;  %v1791_v36 = vpop.permute.xlu0 %1790 }
 0x65c   : > { %v1762_v37 = vrot.slane %v1761_v30, 1  ;;  %v1722_v39 = vadd.f32 %v1721_v31, %v1720_v0  ;;  %v1733_v40 = vsel %vm773_vm13, %v1731_v1, 0.0  ;;  %v1793_v3 = vmul.f32 %v1791_v36, %v1711_v63 }
 0x65d   : > { %v1750_v41 = vadd.f32 %v1749_v32, %v1748_v25  ;;  %v1774_v28 = vadd.f32 %v1773_v33, %v1772_v26  ;;  %v1784_v42 = vrot.slane %v1783_v35, 2  ;;  %v1734_v34 = vrot.slane %v1733_v40, 4 }
 0x65e   : > { %v1723_v43 = vrot.slane %v1722_v39, 2  ;;  %v1794_v44 = vsel %vm773_vm13, %v1793_v3, 0.0  ;;  %v1801_v4 = vmul.f32 %v1791_v36, %v1727_v54  ;;  %v1763_v22 = vadd.f32 %v1762_v37, %v1761_v30 }
 0x65f   : > { %v1751_v38 = vrot.slane %v1750_v41, 1  ;;  %v1775_v2 = vrot.slane %v1774_v28, 1  ;;  %v1785_v45 = vadd.f32 %v1784_v42, %v1783_v35  ;;  %v1735_v46 = vadd.f32 %v1734_v34, %v1733_v40 }
 0x660   : > { %v1724_v47 = vadd.f32 %v1723_v43, %v1722_v39  ;;  %v1795_v48 = vrot.slane %v1794_v44, 4  ;;  %v1803_v49 = vrot.slane %v1801_v4, 4 }
 0x661   : > { %v1752_v50 = vadd.f32 %v1751_v38, %v1750_v41  ;;  %v1776_v51 = vadd.f32 %v1775_v2, %v1774_v28  ;;  %v1786_v52 = vrot.slane %v1785_v45, 1  ;;  %v1736_v53 = vrot.slane %v1735_v46, 2 }
 0x662   : > { %v1725_v27 = vrot.slane %v1724_v47, 1  ;;  %v1796_v55 = vadd.f32 %v1795_v48, %v1794_v44  ;;  %v1805_v56 = vsel %vm773_vm13, %v1803_v49, 0.0  ;;  %vm1825_vm13 = vcmask 517120  }
 0x663   : > { %v1787_v57 = vadd.f32 %v1786_v52, %v1785_v45  ;;  %v1737_v58 = vadd.f32 %v1736_v53, %v1735_v46  ;;  %v1806_v59 = vrot.slane %v1805_v56, 4  ;;  %v1764_v54 = vadd.f32 %v1763_v22, %v1752_v50 }
 0x664   : > { %v1797_v60 = vrot.slane %v1796_v55, 2  ;;  %v1726_v63 = vadd.f32 %v1725_v27, %v1724_v47 }
 0x665   : > { %v1738_v61 = vrot.slane %v1737_v58, 1  ;;  %v1807_v18 = vadd.f32 %v1806_v59, %v1805_v56  ;;  %v1788_v62 = vadd.f32 %v1787_v57, %v1776_v51 }
 0x666   : > { %v1798_v14 = vadd.f32 %v1797_v60, %v1796_v55 }
 0x667   : > { %v1739_v5 = vadd.f32 %v1738_v61, %v1737_v58  ;;  %v1808_v6 = vrot.slane %v1807_v18, 2 }
 0x668   : > { %v1799_v7 = vrot.slane %v1798_v14, 1 }
 0x669   : > { %v1809_v8 = vadd.f32 %v1808_v6, %v1807_v18  ;;  %v1740_v10 = vadd.f32 %v1739_v5, %v1726_v63 }
 0x66a   : > { %v1800_v9 = vadd.f32 %v1799_v7, %v1798_v14 }
 0x66b   : > { %v1810_v11 = vrot.slane %v1809_v8, 1  ;;  %v1813_v12 = vsel %vm446_vm6, %v1740_v10, %v1764_v54 }
 0x66c   : > { %v1814_v13 = vsel %vm448_vm7, %v1813_v12, %v1788_v62 }
 0x66d   : > { %v1811_v15 = vadd.f32 %v1810_v11, %v1809_v8 }
 0x66f   : > { %v1812_v17 = vadd.f32 %v1811_v15, %v1800_v9 }
 0x671   : > { %v1815_v19 = vsel %vm450_vm8, %v1814_v13, %v1812_v17 }
 0x672   : > { %v1823_v20 = vadd.f32 %v1821_v16, %v1815_v19 }
 0x674   : > { %v1824_v21 = vpack.c.bf16 %v1823_v20, %v1823_v20 }
 0x676   : > { %1826 = vst.msk [vmem:[%s300_s20] sm:$0x3] %vm1825_vm13, %v1824_v21 }
 0x677 PF: > { %s18_s27 = sadd.s32 1, %s2034_s27  }
 0x678   : > { %p15_p4 = scmp.ge.s32.totalorder %s18_s27, 4  }
 0x67a   :  { %17 = sbr.rel (!%p15_p4) target bundleno = 1 (0x1), region = 91 }

// kernel: melgan_forward.7
= control target key start
LH: loop header
LB: loop body
LE: loop exit
PB: predicated region body
PF: predicated region fallthrough
CT: control target
= control target key end

     0   :  { %s2290_s0 = inlined_call_operand.vmem [shape: bf16[2,4,64], index: 0, kind: input, shape index: {}]   ;;  %s2291_s1 = inlined_call_operand.vmem [shape: f32[2,8,2], index: 1, kind: input, shape index: {}]   ;;  %s2292_s2 = inlined_call_operand.vmem [shape: f32[2,1], index: 2, kind: input, shape index: {}]   ;;  %s2293_s3 = inlined_call_operand.vmem [shape: f32[3,6,2], index: 3, kind: input, shape index: {}]   ;;  %s2294_s4 = inlined_call_operand.vmem [shape: f32[3,2,1], index: 4, kind: input, shape index: {}]   ;;  %s2295_s5 = inlined_call_operand.vmem [shape: f32[3,4,2], index: 5, kind: input, shape index: {}]   ;;  %s2296_s6 = inlined_call_operand.vmem [shape: f32[3,2,1], index: 6, kind: input, shape index: {}]   ;;  %s2297_s7 = inlined_call_operand.vmem [shape: f32[2,64,128], index: 7, kind: input, shape index: {}]   ;;  %s2298_s8 = inlined_call_operand.vmem [shape: f32[14,1], index: 8, kind: input, shape index: {}]   ;;  %s2299_s9 = inlined_call_operand.<no memory space> [shape: f32[1,1], index: 9, kind: input, shape index: {}]   ;;  %s2300_s10 = inlined_call_operand.hbm [shape: f32[2,1,128], index: 10, kind: output, shape index: {}]  }
   0x1   :  { %v15_v0 = vstv %s2299_s9 }
   0x2   :  { %16 = vst [vmem:[#allocation2] sm:$0x1] %v15_v0 }
   0x3   :  { %17 = vsyncpa [#allocation4], 0 }
   0x4   :  { %19 = vsyncpa [#allocation4 + $0x1], 0  ;;  %s1888_s15 = smov 0   ;;  %s1890_s16 = smov 0  }
   0x5   :  { %s1892_s17 = smov 0   ;;  %s1894_s18 = smov 0  }
   0x6 LB: > { %s1909_s9 = sadd.s32 4294967295, %s1800_s18   ;;  %s1582_s19 = sadd.s32 4294967294, %s1800_s18   ;;  %s1800_s18 = sphi %s1894_s18, %s2329_s18   ;;  %s1796_s17 = sphi %s1892_s17, %s2328_s17   ;;  %s1792_s16 = sphi %s1890_s16, %s2327_s16   ;;  %s1788_s15 = sphi %s1888_s15, %s2326_s15  }
   0x7   : > { %s1913_s20 = sadd.s32 1, %s1800_s18   ;;  %s247_s21 = sadd.s32 1, %s1796_s17 }
   0x8   : > { %s244_s22 = ssub.s32 %s1800_s18, %s1913_s20  ;;  %p257_p0 = scmp.ne.s32.totalorder %s1796_s17, %s1792_s16 }
   0x9   : > { %p245_p1 = scmp.eq.s32.totalorder %s244_s22, 0  ;;  %p258_p2 = scmp.eq.s32.totalorder %s1909_s9, 1 }
   0xa   : > { %p263_p3 = scmp.ne.s32.totalorder %s1792_s16, %s1788_s15  ;;  %p264_p4 = scmp.eq.s32.totalorder %s1582_s19, 1 }
   0xb   : > { %s1924_s23 = scalar_select %p245_p1, %s1796_s17, %s247_s21  }
   0xc   : > { %p1926_p5 = por %p258_p2, %p257_p0  ;;  %p1930_p6 = por %p264_p4, %p263_p3 }
   0xd   : > { %p1585_p7 = scmp.ge.s32.totalorder %s1800_s18, 1  ;;  %p316_p8 = scmp.lt.s32.totalorder %s1800_s18, 3 }
   0xf   : > { %p317_p9 = pnand %p1585_p7, %p316_p8 }
  0x10   : > { %p352_p10 = scmp.lt.s32.totalorder (!%p317_p9), %s1909_s9, 1  ;;  %s2312_s13 = smov (!%p317_p9), 1  }
  0x11   : > { %320 = sbr.rel (%p317_p9) target bundleno = 2022 (0x7e6), region = 60  ;;  %s2301_s14 = smov (!%p317_p9), 126  }
  0x12   : > { %s1806_s27 = smov (!%p317_p9), 127   ;;  %s1809_s22 = smov (!%p317_p9), 3  }
  0x13   : > { %s1810_s19 = smov (!%p317_p9), 125   ;;  %s2305_s21 = smov (!%p317_p9), 5  }
  0x14   : > { %s2303_s26 = smov (!%p317_p9), 7   ;;  %s2311_s30 = smov (!%p317_p9), 9  }
  0x15   : > { %s2307_s11 = smov (!%p317_p9), 122  }
  0x16   : > { %v1587_v1 = vld [vmem:[%s2291_s1 + $0x8] sm:$0xff]  ;;  %v1802_v2 = vmov 0   ;;  %v1803_v3 = vmov 1   ;;  %s353_s28 = scalar_select %p352_p10, %s1909_s9, 1  ;;  %vm365_vm1 = vcmask 7168   ;;  %vm367_vm2 = vcmask 531456  }
  0x17   : > { %1724 = vset.pattern.permute.xlu1 %v1802_v2  ;;  %1723 = vset.pattern.permute.xlu0 %v1803_v3  ;;  %v369_v12 = vld [vmem:[%s2292_s2] sm:$0x3]  ;;  %vm377_vm3 = vcmask 519168   ;;  %v1807_v35 = vmov 0.0   ;;  %v509_v36 = vld [vmem:[%s2297_s7 + $0x38] sm:$0xff]  ;;  %v508_v37 = vld [vmem:[%s2297_s7 + $0x30] sm:$0xff] }
  0x18   : > { %438 = vperm.xlu1 %1724, %v1587_v1   ;;  %s1586_s29 = sshll.u32 %s353_s28, 1  ;;  %v370_v34 = vld [vmem:[%s2291_s1] sm:$0xff]  ;;  %1638 = vmatprep.subr.mxu1 %v1807_v35  ;;  %v507_v38 = vld [vmem:[%s2297_s7 + $0x28] sm:$0xff]  ;;  %v505_v40 = vld [vmem:[%s2297_s7 + $0x18] sm:$0xff]  ;;  %vm1808_vm4 = vmmov 0   ;;  %vm442_vm5 = vcmask 527368  }
  0x19   : > { %s355_s12 = scalar_lea.vmem %s2290_s0, %s1586_s29  ;;  %1619 = vmatprep.subr.mxu0 %v1807_v35  ;;  %1639 = vmatpush3.msra.mxu1 %v509_v36  ;;  %v506_v39 = vld [vmem:[%s2297_s7 + $0x20] sm:$0xff]  ;;  %v504_v41 = vld [vmem:[%s2297_s7 + $0x10] sm:$0xff]  ;;  %v503_v42 = vld [vmem:[%s2297_s7 + $0x8] sm:$0xff]  ;;  %vm426_vm6 = vcmask 1040384   ;;  %vm521_vm7 = vcmask 523264   ;;  %vm692_vm10 = vcmask 1041408  }
  0x1a   : > { %v356_v4 = vld [vmem:[%s355_s12] sm:$0x3]  ;;  %1640 = vmatprep.subr.mxu1 %v1807_v35  ;;  %1654 = vmatprep.mubr.msk.f32.mxu1 %vm1808_vm4, %v1807_v35  ;;  %v517_v44 = vld [vmem:[%s2297_s7 + $0x78] sm:$0xff]  ;;  %v516_v45 = vld [vmem:[%s2297_s7 + $0x70] sm:$0xff]  ;;  %vm708_vm11 = vcmask 1039360   ;;  %vm729_vm12 = vcmask 1031168  }
  0x1b   : > { %v357_v5 = vunpack.c.l.bf16 %v356_v4  ;;  %1641 = vmatpush3.msra.mxu1 %v508_v37  ;;  %v502_v43 = vld [vmem:[%s2297_s7] sm:$0xff]  ;;  %1635 = vmatprep.mubr.msk.f32.mxu0 %vm1808_vm4, %v1807_v35  ;;  %v515_v46 = vld [vmem:[%s2297_s7 + $0x68] sm:$0xff]  ;;  %v513_v48 = vld [vmem:[%s2297_s7 + $0x58] sm:$0xff]  ;;  %vm874_vm14 = vcmask 15360   ;;  %vm876_vm15 = vcmask 23552   ;;  %s1818_s12 = smov 12  }
  0x1c   : > { %1642 = vmatprep.subr.mxu1 %v1807_v35  ;;  %1620 = vmatpush3.msra.mxu0 %v517_v44  ;;  %v514_v47 = vld [vmem:[%s2297_s7 + $0x60] sm:$0xff]  ;;  %v512_v49 = vld [vmem:[%s2297_s7 + $0x50] sm:$0xff]  ;;  %v511_v50 = vld [vmem:[%s2297_s7 + $0x48] sm:$0xff]  ;;  %s2309_s28 = smov 123   ;;  %s1820_s29 = smov 121  }
  0x1d   : > { %vm358_vm0 = vcmp.ge.f32.partialorder %v357_v5, 0.0  ;;  %v359_v6 = vmul.f32 0.2, %v357_v5  ;;  %1643 = vmatpush3.msra.mxu1 %v507_v38  ;;  %1621 = vmatprep.subr.mxu0 %v1807_v35  ;;  %v510_v51 = vld [vmem:[%s2297_s7 + $0x40] sm:$0xff] }
  0x1e   : > { %1644 = vmatprep.subr.mxu1 %v1807_v35  ;;  %1622 = vmatpush3.msra.mxu0 %v516_v45 }
  0x1f   : > { %v360_v7 = vsel %vm358_vm0, %v357_v5, %v359_v6  ;;  %1645 = vmatpush3.msra.mxu1 %v506_v39  ;;  %1623 = vmatprep.subr.mxu0 %v1807_v35  ;;  %vm879_vm0 = vcmask 31744  }
  0x20   : > { %362 = vrot.lane.b32.xlu0 %v360_v7, %s2312_s13  ;;  %1646 = vmatprep.subr.mxu1 %v1807_v35 }
  0x21   : > { %1647 = vmatpush3.msra.mxu1 %v505_v40  ;;  %1624 = vmatpush3.msra.mxu0 %v515_v46 }
  0x22   : > { %1648 = vmatprep.subr.mxu1 %v1807_v35  ;;  %1625 = vmatprep.subr.mxu0 %v1807_v35 }
  0x23   : > { %1649 = vmatpush3.msra.mxu1 %v504_v41  ;;  %1626 = vmatpush3.msra.mxu0 %v514_v47 }
  0x24   : > { %470 = vperm.xlu0 %1723, %v1587_v1   ;;  %1650 = vmatprep.subr.mxu1 %v1807_v35 }
  0x25   : > { %1651 = vmatpush3.msra.mxu1 %v503_v42  ;;  %1627 = vmatprep.subr.mxu0 %v1807_v35 }
  0x26   : > { %1652 = vmatprep.subr.mxu1 %v1807_v35  ;;  %1628 = vmatpush3.msra.mxu0 %v513_v48 }
  0x27   : > { %1653 = vmatpush3.msra.mxu1 %v502_v43  ;;  %1629 = vmatprep.subr.mxu0 %v1807_v35 }
  0x28   : > { %1725 = vset.pattern.permute.xlu0 %v1802_v2  ;;  %1630 = vmatpush3.msra.mxu0 %v512_v49 }
  0x29   : > { %1631 = vmatprep.subr.mxu0 %v1807_v35 }
  0x2a   : > { %1632 = vmatpush3.msra.mxu0 %v511_v50 }
  0x2b   : > { %1633 = vmatprep.subr.mxu0 %v1807_v35 }
  0x2c   : > { %1634 = vmatpush3.msra.mxu0 %v510_v51 }
  0x92   : > { %v363_v8 = vpop.permute.xlu0 %362 }
  0x93   : > { %v366_v9 = vsel %vm365_vm1, 0.0, %v363_v8  ;;  %v1957_v13 = vpop.permute.xlu1 %438 }
  0x94   : > { %v1949_v10 = vsel %vm367_vm2, %v366_v9, 0.0  ;;  %vm881_vm2 = vcmask 39936  }
  0x95   : > { %v386_v11 = vrot.slane %v1949_v10, 4  ;;  %v441_v53 = vmul.f32 %v1957_v13, %v1949_v10 }
  0x97   : > { %450 = vrot.lane.b32.xlu1 %v386_v11, %s2301_s14  ;;  %v443_v55 = vsel %vm442_vm5, %v441_v53, 0.0 }
  0x98   : > { %v444_v57 = vrot.slane %v443_v55, 4 }
  0x9a   : > { %v445_v59 = vadd.f32 %v444_v57, %v443_v55 }
  0x9b   : > { %430 = vperm.xlu1 %1724, %v369_v12  }
  0x9c   : > { %v446_v61 = vrot.slane %v445_v59, 2 }
  0x9e   : > { %v447_v63 = vadd.f32 %v446_v61, %v445_v59  ;;  %v685_v61 = vld [vmem:[%s2293_s3] sm:$0x3f] }
  0x9f   : > { %1726 = vset.pattern.permute.xlu1 %v1803_v3  ;;  %v1959_v14 = vpop.permute.xlu0 %470 }
  0xa0   : > { %v473_v52 = vmul.f32 %v1959_v14, %v1949_v10  ;;  %v448_v4 = vrot.slane %v447_v63, 1 }
  0xa2   : > { %v474_v54 = vsel %vm442_vm5, %v473_v52, 0.0  ;;  %v449_v8 = vadd.f32 %v448_v4, %v447_v63  ;;  %vm2314_vm5 = vcmask 1022976  }
  0xa3   : > { %v475_v56 = vrot.slane %v474_v54, 4 }
  0xa5   : > { %v476_v58 = vadd.f32 %v475_v56, %v474_v54 }
  0xa7   : > { %v477_v60 = vrot.slane %v476_v58, 2 }
  0xa9   : > { %v478_v62 = vadd.f32 %v477_v60, %v476_v58 }
  0xab   : > { %v479_v0 = vrot.slane %v478_v62, 1 }
  0xad   : > { %v480_v5 = vadd.f32 %v479_v0, %v478_v62 }
 0x109   : > { %v451_v15 = vpop.permute.xlu1 %450 }
 0x10a   : > { %v453_v16 = vmul.f32 %v451_v15, %v1957_v13  ;;  %v481_v17 = vmul.f32 %v1959_v14, %v451_v15 }
 0x10c   : > { %v455_v18 = vrot.slane %v453_v16, 4  ;;  %v483_v19 = vrot.slane %v481_v17, 4 }
 0x10e   : > { %v457_v20 = vsel %vm377_vm3, %v455_v18, 0.0  ;;  %v485_v21 = vsel %vm377_vm3, %v483_v19, 0.0 }
 0x10f   : > { %v458_v22 = vrot.slane %v457_v20, 4  ;;  %v486_v23 = vrot.slane %v485_v21, 4 }
 0x111   : > { %v459_v24 = vadd.f32 %v458_v22, %v457_v20  ;;  %v487_v25 = vadd.f32 %v486_v23, %v485_v21 }
 0x113   : > { %v460_v26 = vrot.slane %v459_v24, 2  ;;  %v488_v27 = vrot.slane %v487_v25, 2 }
 0x115   : > { %v461_v28 = vadd.f32 %v460_v26, %v459_v24  ;;  %v489_v29 = vadd.f32 %v488_v27, %v487_v25 }
 0x116   : > { %v431_v1 = vpop.permute.xlu1 %430 }
 0x117   : > { %v462_v30 = vrot.slane %v461_v28, 1  ;;  %v490_v31 = vrot.slane %v489_v29, 1 }
 0x119   : > { %v463_v32 = vadd.f32 %v462_v30, %v461_v28  ;;  %v491_v33 = vadd.f32 %v490_v31, %v489_v29 }
 0x11b   : > { %465 = vrot.lane.b32.xlu1 %v463_v32, %s2312_s13  ;;  %493 = vrot.lane.b32.xlu0 %v491_v33, %s2312_s13 }
 0x11f   : > { %403 = vperm.xlu1 %1726, %v370_v34   ;;  %373 = vperm.xlu0 %1725, %v370_v34  }
 0x123   : > { %387 = vrot.lane.b32.xlu1 %v386_v11, %s1806_s27 }
 0x18d   : > { %v466_v6 = vpop.permute.xlu1 %465  ;;  %v494_v7 = vpop.permute.xlu0 %493 }
 0x18e   : > { %v496_v9 = vadd.f32 %v494_v7, %v480_v5  ;;  %v468_v11 = vadd.f32 %v466_v6, %v449_v8 }
 0x190   : > { %v498_v12 = vrot.slane %v496_v9, 7 }
 0x192   : > { %v500_v13 = vsel %vm426_vm6, %v468_v11, %v498_v12 }
 0x193   : > { %v501_v14 = vadd.f32 %v500_v13, %v431_v1  ;;  %v781_v13 = vld [vmem:[%s2294_s4] sm:$0x3] }
 0x195   : > { %519 = vrot.lane.b32.xlu0 %v501_v14, %s1806_s27 }
 0x19a   : > { %v404_v15 = vpop.permute.xlu1 %403  ;;  %v374_v16 = vpop.permute.xlu0 %373 }
 0x19b   : > { %v406_v17 = vmul.f32 %v404_v15, %v1949_v10  ;;  %v376_v18 = vmul.f32 %v374_v16, %v1949_v10 }
 0x19d   : > { %v407_v19 = vsel %vm377_vm3, %v406_v17, 0.0  ;;  %v378_v20 = vsel %vm377_vm3, %v376_v18, 0.0 }
 0x19e   : > { %v408_v21 = vrot.slane %v407_v19, 4  ;;  %v379_v22 = vrot.slane %v378_v20, 4  ;;  %v388_v23 = vpop.permute.xlu1 %387 }
 0x19f   : > { %v390_v24 = vmul.f32 %v388_v23, %v374_v16  ;;  %v414_v25 = vmul.f32 %v404_v15, %v388_v23  ;;  %v791_v15 = vld [vmem:[%s2295_s5] sm:$0xf] }
 0x1a0   : > { %v409_v26 = vadd.f32 %v408_v21, %v407_v19  ;;  %v380_v27 = vadd.f32 %v379_v22, %v378_v20  ;;  %v844_v16 = vld [vmem:[%s2296_s6] sm:$0x3] }
 0x1a1   : > { %v392_v28 = vrot.slane %v390_v24, 4  ;;  %v416_v29 = vrot.slane %v414_v25, 4 }
 0x1a2   : > { %v410_v30 = vrot.slane %v409_v26, 2  ;;  %v381_v31 = vrot.slane %v380_v27, 2 }
 0x1a3   : > { %v394_v32 = vsel %vm377_vm3, %v392_v28, 0.0  ;;  %v418_v33 = vsel %vm377_vm3, %v416_v29, 0.0 }
 0x1a4   : > { %v395_v10 = vrot.slane %v394_v32, 4  ;;  %v419_v34 = vrot.slane %v418_v33, 4  ;;  %v411_v35 = vadd.f32 %v410_v30, %v409_v26  ;;  %v382_v36 = vadd.f32 %v381_v31, %v380_v27 }
 0x1a6   : > { %v396_v37 = vadd.f32 %v395_v10, %v394_v32  ;;  %v420_v38 = vadd.f32 %v419_v34, %v418_v33  ;;  %v412_v41 = vrot.slane %v411_v35, 1  ;;  %v383_v42 = vrot.slane %v382_v36, 1 }
 0x1a8   : > { %v397_v39 = vrot.slane %v396_v37, 2  ;;  %v421_v40 = vrot.slane %v420_v38, 2  ;;  %v413_v47 = vadd.f32 %v412_v41, %v411_v35  ;;  %v384_v48 = vadd.f32 %v383_v42, %v382_v36 }
 0x1aa   : > { %v398_v43 = vadd.f32 %v397_v39, %v396_v37  ;;  %v422_v44 = vadd.f32 %v421_v40, %v420_v38 }
 0x1ac   : > { %v399_v45 = vrot.slane %v398_v43, 1  ;;  %v423_v46 = vrot.slane %v422_v44, 1 }
 0x1ae   : > { %v400_v49 = vadd.f32 %v399_v45, %v398_v43  ;;  %v424_v50 = vadd.f32 %v423_v46, %v422_v44 }
 0x1b0   : > { %v401_v51 = vadd.f32 %v400_v49, %v384_v48  ;;  %v425_v52 = vadd.f32 %v424_v50, %v413_v47 }
 0x1b2   : > { %v427_v53 = vsel %vm426_vm6, %v401_v51, %v425_v52 }
 0x1b3   : > { %v433_v54 = vadd.f32 %v431_v1, %v427_v53 }
 0x1b5   : > { %1655 = vmatmul.mubr.msk.f32.vlgmr.msra.gmra.mxu1 %vm521_vm7, %v433_v54 }
 0x207   : > { %v520_v55 = vpop.permute.xlu0 %519 }
 0x208   : > { %1636 = vmatmul.mubr.msk.f32.vlgmr.msra.gmra.mxu0 %vm521_vm7, %v520_v55  ;;  %vm2313_vm7 = vcmask 998400  }
 0x275   : > { %v663_v56 = vpop.f32.mrf.mxu1 }
 0x277   : > { %v1656_v57 = vpop.f32.mrf.mxu1 }
 0x2c8   : > { %v590_v58 = vpop.f32.mrf.mxu0 }
 0x2c9   : > { %v2032_v59 = vadd.f32 %v663_v56, %v590_v58 }
 0x2ca   : > { %v1637_v60 = vpop.f32.mrf.mxu0 }
 0x2cb   : > { %671 = vrot.lane.b32.xlu0 %v2032_v59, %s2312_s13  ;;  %668 = vrot.lane.b32.xlu1 %v2032_v59, %s1806_s27 }
 0x2cf   : > { %688 = vperm.xlu0 %1725, %v685_v61   ;;  %674 = vrot.lane.b32.xlu1 %v2032_v59, %s1809_s22 }
 0x2d3   : > { %745 = vperm.xlu1 %1726, %v685_v61  }
 0x2d7   : > { %1727 = vset.pattern.permute.xlu1 %v1802_v2 }
 0x33d   : > { %v672_v62 = vpop.permute.xlu0 %671  ;;  %v669_v63 = vpop.permute.xlu1 %668 }
 0x33e   : > { %v677_v0 = vsel %vm365_vm1, %v669_v63, %v672_v62 }
 0x33f   : > { %vm679_vm8 = vcmp.ge.f32.partialorder %v677_v0, 0.0  ;;  %v681_v1 = vmul.f32 0.2, %v677_v0 }
 0x341   : > { %v683_v4 = vsel %vm679_vm8, %v677_v0, %v681_v1  ;;  %v675_v5 = vpop.permute.xlu1 %674 }
 0x342   : > { %v678_v6 = vsel %vm365_vm1, %v672_v62, %v675_v5  ;;  %v702_v7 = vrot.slane %v683_v4, 6  ;;  %v723_v11 = vrot.slane %v683_v4, 4 }
 0x343   : > { %vm680_vm9 = vcmp.ge.f32.partialorder %v678_v6, 0.0  ;;  %v682_v8 = vmul.f32 0.2, %v678_v6 }
 0x344   : > { %704 = vrot.lane.b32.xlu0 %v702_v7, %s1806_s27 }
 0x345   : > { %v684_v9 = vsel %vm680_vm9, %v678_v6, %v682_v8  ;;  %v805_v6 = vrot.slane %v2032_v59, 6  ;;  %vm1118_vm9 = vcmask 72704  }
 0x346   : > { %v703_v12 = vrot.slane %v684_v9, 6  ;;  %v724_v14 = vrot.slane %v684_v9, 4 }
 0x348   : > { %725 = vrot.lane.b32.xlu0 %v723_v11, %s2301_s14  ;;  %706 = vrot.lane.b32.xlu1 %v703_v12, %s1806_s27 }
 0x34a   : > { %v689_v17 = vpop.permute.xlu0 %688 }
 0x34b   : > { %v691_v19 = vmul.f32 %v689_v17, %v683_v4 }
 0x34c   : > { %784 = vperm.xlu0 %1725, %v781_v13   ;;  %727 = vrot.lane.b32.xlu1 %v724_v14, %s2301_s14  ;;  %s1815_s14 = smov 10  }
 0x34d   : > { %v693_v21 = vsel %vm692_vm10, %v691_v19, 0.0 }
 0x34e   : > { %v746_v18 = vpop.permute.xlu1 %745  ;;  %v694_v23 = vrot.slane %v693_v21, 4 }
 0x34f   : > { %v748_v20 = vmul.f32 %v746_v18, %v683_v4 }
 0x350   : > { %1728 = vset.pattern.permute.xlu0 %v1803_v3  ;;  %794 = vperm.xlu1 %1727, %v791_v15   ;;  %v695_v27 = vadd.f32 %v694_v23, %v693_v21 }
 0x351   : > { %820 = vperm.xlu0 %1728, %v791_v15   ;;  %v749_v22 = vsel %vm692_vm10, %v748_v20, 0.0 }
 0x352   : > { %v750_v24 = vrot.slane %v749_v22, 4  ;;  %v696_v35 = vrot.slane %v695_v27, 2 }
 0x354   : > { %847 = vperm.xlu1 %1727, %v844_v16   ;;  %v751_v28 = vadd.f32 %v750_v24, %v749_v22  ;;  %v697_v48 = vadd.f32 %v696_v35, %v695_v27 }
 0x355   : > { %1729 = vset.pattern.permute.xlu0 %v1802_v2 }
 0x356   : > { %v752_v36 = vrot.slane %v751_v28, 2  ;;  %v698_v62 = vrot.slane %v697_v48, 1 }
 0x358   : > { %1730 = vset.pattern.permute.xlu1 %v1803_v3  ;;  %v753_v49 = vadd.f32 %v752_v36, %v751_v28  ;;  %v699_v15 = vadd.f32 %v698_v62, %v697_v48 }
 0x35a   : > { %v754_v63 = vrot.slane %v753_v49, 1 }
 0x3b6   : > { %v705_v25 = vpop.permute.xlu0 %704 }
 0x3ba   : > { %v707_v26 = vpop.permute.xlu1 %706  ;;  %v726_v32 = vpop.permute.xlu0 %725 }
 0x3bb   : > { %v709_v29 = vsel %vm708_vm11, %v705_v25, %v707_v26 }
 0x3bc   : > { %v711_v30 = vmul.f32 %v709_v29, %v689_v17  ;;  %v756_v31 = vmul.f32 %v746_v18, %v709_v29 }
 0x3be   : > { %v713_v33 = vrot.slane %v711_v30, 2  ;;  %v758_v10 = vrot.slane %v756_v31, 2  ;;  %v728_v34 = vpop.permute.xlu1 %727 }
 0x3bf   : > { %v730_v37 = vsel %vm729_vm12, %v726_v32, %v728_v34 }
 0x3c0   : > { %v715_v38 = vsel %vm692_vm10, %v713_v33, 0.0  ;;  %v760_v39 = vsel %vm692_vm10, %v758_v10, 0.0  ;;  %v732_v40 = vmul.f32 %v730_v37, %v689_v17  ;;  %v768_v41 = vmul.f32 %v746_v18, %v730_v37 }
 0x3c1   : > { %v716_v42 = vrot.slane %v715_v38, 4  ;;  %v761_v43 = vrot.slane %v760_v39, 4  ;;  %v755_v17 = vadd.f32 %v754_v63, %v753_v49 }
 0x3c2   : > { %v734_v44 = vrot.slane %v732_v40, 4  ;;  %v770_v45 = vrot.slane %v768_v41, 4 }
 0x3c3   : > { %v717_v46 = vadd.f32 %v716_v42, %v715_v38  ;;  %v762_v47 = vadd.f32 %v761_v43, %v760_v39 }
 0x3c4   : > { %v736_v50 = vsel %vm692_vm10, %v734_v44, 0.0  ;;  %v772_v51 = vsel %vm692_vm10, %v770_v45, 0.0 }
 0x3c5   : > { %v718_v52 = vrot.slane %v717_v46, 2  ;;  %v763_v53 = vrot.slane %v762_v47, 2  ;;  %v737_v54 = vrot.slane %v736_v50, 4  ;;  %v773_v55 = vrot.slane %v772_v51, 4 }
 0x3c7   : > { %v719_v56 = vadd.f32 %v718_v52, %v717_v46  ;;  %v764_v57 = vadd.f32 %v763_v53, %v762_v47  ;;  %v738_v58 = vadd.f32 %v737_v54, %v736_v50  ;;  %v774_v60 = vadd.f32 %v773_v55, %v772_v51  ;;  %v785_v61 = vpop.permute.xlu0 %784 }
 0x3c9   : > { %v720_v0 = vrot.slane %v719_v56, 1  ;;  %v765_v1 = vrot.slane %v764_v57, 1  ;;  %v739_v4 = vrot.slane %v738_v58, 2  ;;  %v775_v5 = vrot.slane %v774_v60, 2 }
 0x3cb   : > { %v740_v7 = vadd.f32 %v739_v4, %v738_v58  ;;  %v776_v8 = vadd.f32 %v775_v5, %v774_v60  ;;  %v721_v9 = vadd.f32 %v720_v0, %v719_v56  ;;  %v766_v11 = vadd.f32 %v765_v1, %v764_v57  ;;  %v795_v12 = vpop.permute.xlu1 %794  ;;  %v1590_v4 = vld [vmem:[%s2293_s3 + $0x8] sm:$0x3f] }
 0x3cc   : > { %v807_v13 = vmul.f32 %v805_v6, %v795_v12  ;;  %v821_v14 = vpop.permute.xlu0 %820 }
 0x3cd   : > { %v741_v16 = vrot.slane %v740_v7, 1  ;;  %v777_v18 = vrot.slane %v776_v8, 1  ;;  %v831_v20 = vmul.f32 %v821_v14, %v805_v6  ;;  %v722_v21 = vadd.f32 %v721_v9, %v699_v15 }
 0x3ce   : > { %v809_v19 = vrot.slane %v807_v13, 2  ;;  %v767_v23 = vadd.f32 %v766_v11, %v755_v17 }
 0x3cf   : > { %v742_v22 = vadd.f32 %v741_v16, %v740_v7  ;;  %v778_v24 = vadd.f32 %v777_v18, %v776_v8  ;;  %v833_v59 = vrot.slane %v831_v20, 2  ;;  %v848_v63 = vpop.permute.xlu1 %847 }
 0x3d0   : > { %v811_v25 = vsel %vm692_vm10, %v809_v19, 0.0 }
 0x3d1   : > { %v743_v26 = vadd.f32 %v742_v22, %v722_v21  ;;  %v779_v27 = vadd.f32 %v778_v24, %v767_v23  ;;  %v812_v28 = vrot.slane %v811_v25, 4  ;;  %v835_v29 = vsel %vm692_vm10, %v833_v59, 0.0 }
 0x3d2   : > { %v836_v31 = vrot.slane %v835_v29, 4 }
 0x3d3   : > { %v780_v30 = vsel %vm426_vm6, %v743_v26, %v779_v27  ;;  %v813_v10 = vadd.f32 %v812_v28, %v811_v25  ;;  %v1591_v26 = vld [vmem:[%s2294_s4 + $0x2] sm:$0x3]  ;;  %v1592_v27 = vld [vmem:[%s2295_s5 + $0x4] sm:$0xf] }
 0x3d4   : > { %v787_v32 = vadd.f32 %v785_v61, %v780_v30  ;;  %v837_v34 = vadd.f32 %v836_v31, %v835_v29  ;;  %v1593_v28 = vld [vmem:[%s2296_s6 + $0x2] sm:$0x3] }
 0x3d5   : > { %v814_v38 = vrot.slane %v813_v10, 2 }
 0x3d6   : > { %v789_v33 = vmul.f32 0.2, %v787_v32  ;;  %vm788_vm13 = vcmp.ge.f32.partialorder %v787_v32, 0.0  ;;  %v838_v39 = vrot.slane %v837_v34, 2 }
 0x3d7   : > { %v815_v45 = vadd.f32 %v814_v38, %v813_v10 }
 0x3d8   : > { %v790_v35 = vsel %vm788_vm13, %v787_v32, %v789_v33  ;;  %v839_v47 = vadd.f32 %v838_v39, %v837_v34  ;;  %vm1112_vm13 = vcmask 48128  }
 0x3d9   : > { %v797_v36 = vmul.f32 %v795_v12, %v790_v35  ;;  %v823_v37 = vmul.f32 %v821_v14, %v790_v35  ;;  %v816_v51 = vrot.slane %v815_v45, 1 }
 0x3da   : > { %v840_v53 = vrot.slane %v839_v47, 1 }
 0x3db   : > { %v798_v40 = vsel %vm692_vm10, %v797_v36, 0.0  ;;  %v824_v41 = vsel %vm692_vm10, %v823_v37, 0.0  ;;  %v817_v58 = vadd.f32 %v816_v51, %v815_v45 }
 0x3dc   : > { %v799_v42 = vrot.slane %v798_v40, 4  ;;  %v825_v43 = vrot.slane %v824_v41, 4  ;;  %v841_v60 = vadd.f32 %v840_v53, %v839_v47 }
 0x3de   : > { %v800_v44 = vadd.f32 %v799_v42, %v798_v40  ;;  %v826_v46 = vadd.f32 %v825_v43, %v824_v41 }
 0x3e0   : > { %v801_v48 = vrot.slane %v800_v44, 2  ;;  %v827_v49 = vrot.slane %v826_v46, 2 }
 0x3e2   : > { %v802_v50 = vadd.f32 %v801_v48, %v800_v44  ;;  %v828_v52 = vadd.f32 %v827_v49, %v826_v46 }
 0x3e4   : > { %v803_v54 = vrot.slane %v802_v50, 1  ;;  %v829_v55 = vrot.slane %v828_v52, 1 }
 0x3e6   : > { %v804_v56 = vadd.f32 %v803_v54, %v802_v50  ;;  %v830_v57 = vadd.f32 %v829_v55, %v828_v52 }
 0x3e8   : > { %v818_v61 = vadd.f32 %v817_v58, %v804_v56  ;;  %v842_v62 = vadd.f32 %v841_v60, %v830_v57 }
 0x3ea   : > { %v843_v0 = vsel %vm426_vm6, %v818_v61, %v842_v62 }
 0x3eb   : > { %v2077_v1 = vadd.f32 %v848_v63, %v843_v0 }
 0x3ed   : > { %855 = vrot.lane.b32.xlu0 %v2077_v1, %s1806_s27  ;;  %852 = vrot.lane.b32.xlu1 %v2077_v1, %s1810_s19 }
 0x3f1   : > { %864 = vrot.lane.b32.xlu0 %v2077_v1, %s2305_s21  ;;  %861 = vrot.lane.b32.xlu1 %v2077_v1, %s1809_s22  ;;  %s1816_s21 = smov 8  }
 0x3f5   : > { %867 = vrot.lane.b32.xlu0 %v2077_v1, %s2303_s26  ;;  %858 = vrot.lane.b32.xlu1 %v2077_v1, %s2312_s13  ;;  %s1817_s26 = smov 119  }
 0x3f9   : > { %893 = vperm.xlu0 %1729, %v1590_v4   ;;  %870 = vrot.lane.b32.xlu1 %v2077_v1, %s2311_s30 }
 0x3fd   : > { %949 = vperm.xlu1 %1730, %v1590_v4  }
 0x401   : > { %1731 = vset.pattern.permute.xlu1 %v1802_v2 }
 0x45f   : > { %v856_v5 = vpop.permute.xlu0 %855  ;;  %v853_v6 = vpop.permute.xlu1 %852 }
 0x460   : > { %v873_v9 = vsel %vm365_vm1, %v853_v6, %v856_v5 }
 0x463   : > { %v865_v7 = vpop.permute.xlu0 %864  ;;  %v862_v8 = vpop.permute.xlu1 %861 }
 0x464   : > { %v878_v15 = vsel %vm876_vm15, %v862_v8, %v865_v7 }
 0x467   : > { %v859_v11 = vpop.permute.xlu1 %858  ;;  %v868_v12 = vpop.permute.xlu0 %867 }
 0x468   : > { %v875_v13 = vsel %vm874_vm14, %v873_v9, %v859_v11  ;;  %v880_v17 = vsel %vm879_vm0, %v878_v15, %v868_v12 }
 0x469   : > { %v877_v14 = vsel %vm876_vm15, %v875_v13, %v862_v8 }
 0x46a   : > { %vm883_vm3 = vcmp.ge.f32.partialorder %v877_v14, 0.0  ;;  %v885_v16 = vmul.f32 0.2, %v877_v14 }
 0x46b   : > { %v871_v18 = vpop.permute.xlu1 %870 }
 0x46c   : > { %v887_v19 = vsel %vm883_vm3, %v877_v14, %v885_v16  ;;  %v882_v20 = vsel %vm881_vm2, %v880_v17, %v871_v18  ;;  %vm1114_vm3 = vcmask 56320  }
 0x46d   : > { %vm884_vm4 = vcmp.ge.f32.partialorder %v882_v20, 0.0  ;;  %v886_v21 = vmul.f32 0.2, %v882_v20  ;;  %v906_v22 = vrot.slane %v887_v19, 6  ;;  %v927_v25 = vrot.slane %v887_v19, 4 }
 0x46f   : > { %v888_v23 = vsel %vm884_vm4, %v882_v20, %v886_v21  ;;  %908 = vrot.lane.b32.xlu1 %v906_v22, %s1810_s19  ;;  %v1011_v20 = vrot.slane %v2077_v1, 6  ;;  %vm1116_vm4 = vcmask 64512  }
 0x470   : > { %v907_v24 = vrot.slane %v888_v23, 6  ;;  %v928_v59 = vrot.slane %v888_v23, 4 }
 0x472   : > { %910 = vrot.lane.b32.xlu0 %v907_v24, %s1810_s19 }
 0x473   : > { %929 = vrot.lane.b32.xlu1 %v927_v25, %s2307_s11 }
 0x474   : > { %v894_v29 = vpop.permute.xlu0 %893 }
 0x475   : > { %v896_v31 = vmul.f32 %v894_v29, %v887_v19 }
 0x476   : > { %931 = vrot.lane.b32.xlu0 %v928_v59, %s2307_s11  ;;  %s1824_s11 = smov 17  }
 0x477   : > { %989 = vperm.xlu1 %1731, %v1591_v26   ;;  %v897_v33 = vsel %vm692_vm10, %v896_v31, 0.0 }
 0x478   : > { %v950_v30 = vpop.permute.xlu1 %949  ;;  %v898_v34 = vrot.slane %v897_v33, 4 }
 0x479   : > { %v952_v32 = vmul.f32 %v950_v30, %v887_v19 }
 0x47a   : > { %1000 = vperm.xlu0 %1729, %v1592_v27   ;;  %v899_v38 = vadd.f32 %v898_v34, %v897_v33 }
 0x47b   : > { %1732 = vset.pattern.permute.xlu1 %v1803_v3  ;;  %v953_v10 = vsel %vm692_vm10, %v952_v32, 0.0 }
 0x47c   : > { %1026 = vperm.xlu1 %1732, %v1592_v27   ;;  %v954_v35 = vrot.slane %v953_v10, 4  ;;  %v900_v47 = vrot.slane %v899_v38, 2 }
 0x47e   : > { %1054 = vperm.xlu0 %1729, %v1593_v28   ;;  %v955_v39 = vadd.f32 %v954_v35, %v953_v10  ;;  %v901_v61 = vadd.f32 %v900_v47, %v899_v38 }
 0x480   : > { %1733 = vset.pattern.permute.xlu1 %v1802_v2  ;;  %v956_v48 = vrot.slane %v955_v39, 2  ;;  %v902_v13 = vrot.slane %v901_v61, 1 }
 0x482   : > { %1734 = vset.pattern.permute.xlu0 %v1803_v3  ;;  %v957_v62 = vadd.f32 %v956_v48, %v955_v39  ;;  %v903_v26 = vadd.f32 %v902_v13, %v901_v61 }
 0x484   : > { %v958_v14 = vrot.slane %v957_v62, 1 }
 0x486   : > { %v959_v28 = vadd.f32 %v958_v14, %v957_v62 }
 0x4e1   : > { %v909_v36 = vpop.permute.xlu1 %908 }
 0x4e4   : > { %v911_v37 = vpop.permute.xlu0 %910 }
 0x4e5   : > { %v913_v40 = vsel %vm2314_vm5, %v909_v36, %v911_v37  ;;  %v930_v45 = vpop.permute.xlu1 %929 }
 0x4e6   : > { %v915_v41 = vmul.f32 %v913_v40, %v894_v29  ;;  %v960_v42 = vmul.f32 %v950_v30, %v913_v40 }
 0x4e8   : > { %v917_v43 = vrot.slane %v915_v41, 2  ;;  %v962_v44 = vrot.slane %v960_v42, 2  ;;  %v932_v46 = vpop.permute.xlu0 %931 }
 0x4e9   : > { %v934_v49 = vsel %vm2313_vm7, %v930_v45, %v932_v46  ;;  %vm1146_vm7 = vcmask 121856  }
 0x4ea   : > { %v919_v50 = vsel %vm692_vm10, %v917_v43, 0.0  ;;  %v964_v51 = vsel %vm692_vm10, %v962_v44, 0.0  ;;  %v936_v52 = vmul.f32 %v934_v49, %v894_v29  ;;  %v972_v53 = vmul.f32 %v950_v30, %v934_v49 }
 0x4eb   : > { %v920_v54 = vrot.slane %v919_v50, 4  ;;  %v965_v55 = vrot.slane %v964_v51, 4 }
 0x4ec   : > { %v938_v56 = vrot.slane %v936_v52, 4  ;;  %v974_v57 = vrot.slane %v972_v53, 4 }
 0x4ed   : > { %v921_v58 = vadd.f32 %v920_v54, %v919_v50  ;;  %v966_v60 = vadd.f32 %v965_v55, %v964_v51 }
 0x4ee   : > { %v940_v63 = vsel %vm692_vm10, %v938_v56, 0.0  ;;  %v976_v0 = vsel %vm692_vm10, %v974_v57, 0.0 }
 0x4ef   : > { %v922_v4 = vrot.slane %v921_v58, 2  ;;  %v967_v5 = vrot.slane %v966_v60, 2  ;;  %v941_v6 = vrot.slane %v940_v63, 4  ;;  %v977_v7 = vrot.slane %v976_v0, 4 }
 0x4f1   : > { %v923_v8 = vadd.f32 %v922_v4, %v921_v58  ;;  %v968_v9 = vadd.f32 %v967_v5, %v966_v60  ;;  %v942_v11 = vadd.f32 %v941_v6, %v940_v63  ;;  %v978_v12 = vadd.f32 %v977_v7, %v976_v0 }
 0x4f2   : > { %v990_v15 = vpop.permute.xlu1 %989 }
 0x4f3   : > { %v924_v16 = vrot.slane %v923_v8, 1  ;;  %v969_v17 = vrot.slane %v968_v9, 1  ;;  %v943_v18 = vrot.slane %v942_v11, 2  ;;  %v979_v19 = vrot.slane %v978_v12, 2 }
 0x4f5   : > { %v944_v21 = vadd.f32 %v943_v18, %v942_v11  ;;  %v980_v22 = vadd.f32 %v979_v19, %v978_v12  ;;  %v925_v23 = vadd.f32 %v924_v16, %v923_v8  ;;  %v970_v24 = vadd.f32 %v969_v17, %v968_v9  ;;  %v1001_v25 = vpop.permute.xlu0 %1000  ;;  %v1594_v18 = vld [vmem:[%s2293_s3 + $0x10] sm:$0x3f] }
 0x4f6   : > { %v1013_v59 = vmul.f32 %v1011_v20, %v1001_v25 }
 0x4f7   : > { %v945_v27 = vrot.slane %v944_v21, 1  ;;  %v981_v29 = vrot.slane %v980_v22, 1  ;;  %v1027_v30 = vpop.permute.xlu1 %1026  ;;  %v926_v33 = vadd.f32 %v925_v23, %v903_v26  ;;  %v971_v34 = vadd.f32 %v970_v24, %v959_v28 }
 0x4f8   : > { %v1015_v31 = vrot.slane %v1013_v59, 2  ;;  %v1037_v32 = vmul.f32 %v1027_v30, %v1011_v20 }
 0x4f9   : > { %v946_v10 = vadd.f32 %v945_v27, %v944_v21  ;;  %v982_v35 = vadd.f32 %v981_v29, %v980_v22 }
 0x4fa   : > { %v1017_v36 = vsel %vm692_vm10, %v1015_v31, 0.0  ;;  %v1039_v1 = vrot.slane %v1037_v32, 2 }
 0x4fb   : > { %v947_v37 = vadd.f32 %v946_v10, %v926_v33  ;;  %v983_v38 = vadd.f32 %v982_v35, %v971_v34  ;;  %v1018_v39 = vrot.slane %v1017_v36, 4 }
 0x4fc   : > { %v1041_v40 = vsel %vm692_vm10, %v1039_v1, 0.0 }
 0x4fd   : > { %v984_v41 = vsel %vm426_vm6, %v947_v37, %v983_v38  ;;  %v1042_v42 = vrot.slane %v1041_v40, 4  ;;  %v1019_v45 = vadd.f32 %v1018_v39, %v1017_v36 }
 0x4fe   : > { %v992_v43 = vadd.f32 %v990_v15, %v984_v41  ;;  %v1055_v15 = vpop.permute.xlu0 %1054 }
 0x4ff   : > { %v1043_v46 = vadd.f32 %v1042_v42, %v1041_v40  ;;  %v1020_v50 = vrot.slane %v1019_v45, 2 }
 0x500   : > { %v994_v44 = vmul.f32 0.2, %v992_v43  ;;  %vm993_vm8 = vcmp.ge.f32.partialorder %v992_v43, 0.0 }
 0x501   : > { %v1044_v51 = vrot.slane %v1043_v46, 2  ;;  %v1021_v57 = vadd.f32 %v1020_v50, %v1019_v45 }
 0x502   : > { %v995_v47 = vsel %vm993_vm8, %v992_v43, %v994_v44 }
 0x503   : > { %v1003_v48 = vmul.f32 %v1001_v25, %v995_v47  ;;  %v1029_v49 = vmul.f32 %v1027_v30, %v995_v47  ;;  %v1045_v60 = vadd.f32 %v1044_v51, %v1043_v46  ;;  %v1022_v0 = vrot.slane %v1021_v57, 1  ;;  %v1595_v46 = vld [vmem:[%s2294_s4 + $0x4] sm:$0x3] }
 0x504   : > { %v1597_v47 = vld [vmem:[%s2296_s6 + $0x4] sm:$0x3] }
 0x505   : > { %v1004_v52 = vsel %vm692_vm10, %v1003_v48, 0.0  ;;  %v1030_v53 = vsel %vm692_vm10, %v1029_v49, 0.0  ;;  %v1046_v5 = vrot.slane %v1045_v60, 1  ;;  %v1023_v9 = vadd.f32 %v1022_v0, %v1021_v57 }
 0x506   : > { %v1005_v54 = vrot.slane %v1004_v52, 4  ;;  %v1031_v55 = vrot.slane %v1030_v53, 4 }
 0x507   : > { %v1047_v12 = vadd.f32 %v1046_v5, %v1045_v60 }
 0x508   : > { %v1006_v56 = vadd.f32 %v1005_v54, %v1004_v52  ;;  %v1032_v58 = vadd.f32 %v1031_v55, %v1030_v53 }
 0x50a   : > { %v1007_v61 = vrot.slane %v1006_v56, 2  ;;  %v1033_v62 = vrot.slane %v1032_v58, 2 }
 0x50c   : > { %v1008_v63 = vadd.f32 %v1007_v61, %v1006_v56  ;;  %v1034_v4 = vadd.f32 %v1033_v62, %v1032_v58 }
 0x50e   : > { %v1009_v6 = vrot.slane %v1008_v63, 1  ;;  %v1035_v7 = vrot.slane %v1034_v4, 1 }
 0x510   : > { %v1010_v8 = vadd.f32 %v1009_v6, %v1008_v63  ;;  %v1036_v11 = vadd.f32 %v1035_v7, %v1034_v4  ;;  %v1596_v4 = vld [vmem:[%s2295_s5 + $0x8] sm:$0xf] }
 0x512   : > { %v1024_v13 = vadd.f32 %v1023_v9, %v1010_v8  ;;  %v1048_v14 = vadd.f32 %v1047_v12, %v1036_v11 }
 0x514   : > { %v1049_v16 = vsel %vm426_vm6, %v1024_v13, %v1048_v14 }
 0x515   : > { %v2134_v17 = vadd.f32 %v1055_v15, %v1049_v16 }
 0x517   : > { %1134 = vrot.lane.b32.xlu0 %v2134_v17, %s1815_s14  ;;  %1131 = vrot.lane.b32.xlu1 %v2134_v17, %s1816_s21  ;;  %s1821_s14 = smov 11   ;;  %s1822_s21 = smov 13  }
 0x51b   : > { %1059 = vrot.lane.b32.xlu0 %v2134_v17, %s1817_s26  ;;  %1137 = vrot.lane.b32.xlu1 %v2134_v17, %s1818_s12  ;;  %s1823_s12 = smov 15  }
 0x51f   : > { %1065 = vrot.lane.b32.xlu0 %v2134_v17, %s2309_s28  ;;  %1062 = vrot.lane.b32.xlu1 %v2134_v17, %s1820_s29  ;;  %s2317_s29 = smov 5   ;;  %s2318_s28 = smov 7  }
 0x523   : > { %1086 = vrot.lane.b32.xlu0 %v2134_v17, %s2311_s30  ;;  %1068 = vrot.lane.b32.xlu1 %v2134_v17, %s1810_s19  ;;  %s1826_s30 = smov 21  }
 0x527   : > { %1071 = vrot.lane.b32.xlu0 %v2134_v17, %s1806_s27  ;;  %1089 = vrot.lane.b32.xlu1 %v2134_v17, %s1821_s14  ;;  %s1825_s14 = smov 19  }
 0x52b   : > { %1074 = vrot.lane.b32.xlu0 %v2134_v17, %s2312_s13  ;;  %1092 = vrot.lane.b32.xlu1 %v2134_v17, %s1822_s21  ;;  %s1827_s13 = smov 110  }
 0x52f   : > { %1077 = vrot.lane.b32.xlu0 %v2134_v17, %s1809_s22  ;;  %1095 = vrot.lane.b32.xlu1 %v2134_v17, %s1823_s12 }
 0x533   : > { %1080 = vrot.lane.b32.xlu0 %v2134_v17, %s2317_s29  ;;  %1098 = vrot.lane.b32.xlu1 %v2134_v17, %s1824_s11 }
 0x537   : > { %1083 = vrot.lane.b32.xlu0 %v2134_v17, %s2318_s28  ;;  %1101 = vrot.lane.b32.xlu1 %v2134_v17, %s1825_s14 }
 0x53b   : > { %1104 = vrot.lane.b32.xlu1 %v2134_v17, %s1826_s30  ;;  %s1598_s30 = sshll.u32 %s1909_s9, 4 }
 0x53c   : > { %s2255_s14 = scalar_lea.hbm %s2300_s10, %s1598_s30 }
 0x53f   : > { %1158 = vperm.xlu1 %1733, %v1594_v18  }
 0x589   : > { %v1135_v19 = vpop.permute.xlu0 %1134  ;;  %v1132_v20 = vpop.permute.xlu1 %1131 }
 0x58a   : > { %v1140_v21 = vsel %vm365_vm1, %v1132_v20, %v1135_v19 }
 0x58d   : > { %v1060_v22 = vpop.permute.xlu0 %1059  ;;  %v1138_v23 = vpop.permute.xlu1 %1137 }
 0x58e   : > { %v1141_v24 = vsel %vm874_vm14, %v1140_v21, %v1138_v23 }
 0x58f   : > { %1143 = vrot.lane.b32.xlu0 %v1141_v24, %s1823_s12  ;;  %s2320_s12 = smov 9  }
 0x591   : > { %v1066_v25 = vpop.permute.xlu0 %1065  ;;  %v1063_v59 = vpop.permute.xlu1 %1062 }
 0x592   : > { %v1107_v32 = vsel %vm365_vm1, %v1060_v22, %v1063_v59 }
 0x593   : > { %1214 = vperm.xlu0 %1734, %v1594_v18   ;;  %v1108_v10 = vsel %vm874_vm14, %v1107_v32, %v1066_v25 }
 0x595   : > { %v1087_v26 = vpop.permute.xlu0 %1086  ;;  %v1069_v27 = vpop.permute.xlu1 %1068 }
 0x596   : > { %v1109_v34 = vsel %vm876_vm15, %v1108_v10, %v1069_v27 }
 0x597   : > { %1735 = vset.pattern.permute.xlu0 %v1802_v2 }
 0x599   : > { %v1072_v28 = vpop.permute.xlu0 %1071  ;;  %v1090_v29 = vpop.permute.xlu1 %1089 }
 0x59a   : > { %v1120_v30 = vsel %vm1118_vm9, %v1087_v26, %v1090_v29  ;;  %v1110_v36 = vsel %vm879_vm0, %v1109_v34, %v1072_v28 }
 0x59d   : > { %v1075_v31 = vpop.permute.xlu0 %1074  ;;  %v1093_v48 = vpop.permute.xlu1 %1092 }
 0x59e   : > { %v1111_v1 = vsel %vm881_vm2, %v1110_v36, %v1075_v31 }
 0x5a1   : > { %v1078_v33 = vpop.permute.xlu0 %1077  ;;  %v1096_v49 = vpop.permute.xlu1 %1095 }
 0x5a2   : > { %v1113_v37 = vsel %vm1112_vm13, %v1111_v1, %v1078_v33  ;;  %vm1123_vm13 = vcmask 89088  }
 0x5a5   : > { %v1081_v35 = vpop.permute.xlu0 %1080  ;;  %v1099_v50 = vpop.permute.xlu1 %1098 }
 0x5a6   : > { %v1115_v38 = vsel %vm1114_vm3, %v1113_v37, %v1081_v35  ;;  %vm1125_vm3 = vcmask 97280  }
 0x5a9   : > { %v1084_v39 = vpop.permute.xlu0 %1083  ;;  %v1102_v51 = vpop.permute.xlu1 %1101 }
 0x5aa   : > { %v1117_v40 = vsel %vm1116_vm4, %v1115_v38, %v1084_v39  ;;  %vm1127_vm4 = vcmask 105472  }
 0x5ab   : > { %v1119_v41 = vsel %vm1118_vm9, %v1117_v40, %v1087_v26  ;;  %vm1121_vm9 = vcmask 80896  }
 0x5ac   : > { %vm1148_vm8 = vcmp.ge.f32.partialorder %v1119_v41, 0.0  ;;  %v1150_v42 = vmul.f32 0.2, %v1119_v41  ;;  %v1122_v52 = vsel %vm1121_vm9, %v1120_v30, %v1093_v48 }
 0x5ad   : > { %v1124_v53 = vsel %vm1123_vm13, %v1122_v52, %v1096_v49  ;;  %v1105_v54 = vpop.permute.xlu1 %1104  ;;  %v1276_v52 = vrot.slane %v2134_v17, 6 }
 0x5ae   : > { %v1152_v43 = vsel %vm1148_vm8, %v1119_v41, %v1150_v42  ;;  %vm1129_vm8 = vcmask 113664   ;;  %v1126_v55 = vsel %vm1125_vm3, %v1124_v53, %v1099_v50 }
 0x5af   : > { %v1192_v44 = vrot.slane %v1152_v43, 4  ;;  %v1171_v45 = vrot.slane %v1152_v43, 6  ;;  %v1128_v56 = vsel %vm1127_vm4, %v1126_v55, %v1102_v51 }
 0x5b0   : > { %v1130_v57 = vsel %vm1129_vm8, %v1128_v56, %v1105_v54 }
 0x5b1   : > { %1194 = vrot.lane.b32.xlu0 %v1192_v44, %s1827_s13  ;;  %1173 = vrot.lane.b32.xlu1 %v1171_v45, %s1817_s26 }
 0x5b5   : > { %1254 = vperm.xlu0 %1735, %v1595_v46  }
 0x5b9   : > { %1319 = vperm.xlu0 %1735, %v1597_v47  }
 0x5ba   : > { %v1159_v5 = vpop.permute.xlu1 %1158 }
 0x5bb   : > { %v1161_v7 = vmul.f32 %v1159_v5, %v1152_v43 }
 0x5bd   : > { %v1162_v9 = vsel %vm692_vm10, %v1161_v7, 0.0 }
 0x5be   : > { %v1163_v13 = vrot.slane %v1162_v9, 4 }
 0x5c0   : > { %v1164_v16 = vadd.f32 %v1163_v13, %v1162_v9 }
 0x5c2   : > { %v1165_v24 = vrot.slane %v1164_v16, 2 }
 0x5c4   : > { %v1166_v35 = vadd.f32 %v1165_v24, %v1164_v16 }
 0x5c6   : > { %v1167_v46 = vrot.slane %v1166_v35, 1 }
 0x601   : > { %v1144_v58 = vpop.permute.xlu0 %1143 }
 0x602   : > { %v1147_v60 = vsel %vm1146_vm7, %v1130_v57, %v1144_v58  ;;  %vm1198_vm7 = vcmask 900096  }
 0x603   : > { %vm1149_vm5 = vcmp.ge.f32.partialorder %v1147_v60, 0.0  ;;  %v1151_v61 = vmul.f32 0.2, %v1147_v60 }
 0x605   : > { %v1153_v62 = vsel %vm1149_vm5, %v1147_v60, %v1151_v61  ;;  %vm1177_vm5 = vcmask 973824   ;;  %v1168_v61 = vadd.f32 %v1167_v46, %v1166_v35 }
 0x606   : > { %v1172_v63 = vrot.slane %v1153_v62, 6  ;;  %v1193_v0 = vrot.slane %v1153_v62, 4 }
 0x608   : > { %1175 = vrot.lane.b32.xlu1 %v1172_v63, %s1817_s26  ;;  %s2319_s26 = smov 1  }
 0x60c   : > { %1196 = vrot.lane.b32.xlu1 %v1193_v0, %s1827_s13 }
 0x60e   : > { %v1215_v6 = vpop.permute.xlu0 %1214 }
 0x60f   : > { %v1217_v8 = vmul.f32 %v1215_v6, %v1152_v43 }
 0x610   : > { %1265 = vperm.xlu1 %1733, %v1596_v4  }
 0x611   : > { %v1218_v11 = vsel %vm692_vm10, %v1217_v8, 0.0 }
 0x612   : > { %v1219_v14 = vrot.slane %v1218_v11, 4 }
 0x614   : > { %1736 = vset.pattern.permute.xlu1 %v1803_v3  ;;  %v1220_v18 = vadd.f32 %v1219_v14, %v1218_v11 }
 0x615   : > { %1291 = vperm.xlu1 %1736, %v1596_v4  }
 0x616   : > { %v1221_v25 = vrot.slane %v1220_v18, 2 }
 0x618   : > { %v1222_v36 = vadd.f32 %v1221_v25, %v1220_v18 }
 0x619   : > { %1737 = vset.pattern.permute.xlu1 %v1802_v2 }
 0x61a   : > { %v1223_v47 = vrot.slane %v1222_v36, 1 }
 0x61c   : > { %v1224_v60 = vadd.f32 %v1223_v47, %v1222_v36 }
 0x623   : > { %v1174_v12 = vpop.permute.xlu1 %1173  ;;  %v1195_v2 = vpop.permute.xlu0 %1194 }
 0x630   : > { %v1255_v14 = vpop.permute.xlu0 %1254 }
 0x634   : > { %v1320_v46 = vpop.permute.xlu0 %1319 }
 0x67a   : > { %v1176_v15 = vpop.permute.xlu1 %1175 }
 0x67b   : > { %v1178_v19 = vsel %vm1177_vm5, %v1174_v12, %v1176_v15 }
 0x67c   : > { %v1180_v3 = vmul.f32 %v1178_v19, %v1159_v5  ;;  %v1225_v20 = vmul.f32 %v1215_v6, %v1178_v19 }
 0x67e   : > { %v1182_v21 = vrot.slane %v1180_v3, 2  ;;  %v1227_v22 = vrot.slane %v1225_v20, 2  ;;  %v1197_v23 = vpop.permute.xlu1 %1196 }
 0x67f   : > { %v1199_v59 = vsel %vm1198_vm7, %v1195_v2, %v1197_v23 }
 0x680   : > { %v1184_v26 = vsel %vm692_vm10, %v1182_v21, 0.0  ;;  %v1229_v27 = vsel %vm692_vm10, %v1227_v22, 0.0  ;;  %v1201_v28 = vmul.f32 %v1199_v59, %v1159_v5  ;;  %v1237_v29 = vmul.f32 %v1215_v6, %v1199_v59 }
 0x681   : > { %v1185_v30 = vrot.slane %v1184_v26, 4  ;;  %v1230_v31 = vrot.slane %v1229_v27, 4 }
 0x682   : > { %v1203_v32 = vrot.slane %v1201_v28, 4  ;;  %v1239_v33 = vrot.slane %v1237_v29, 4 }
 0x683   : > { %v1186_v10 = vadd.f32 %v1185_v30, %v1184_v26  ;;  %v1231_v34 = vadd.f32 %v1230_v31, %v1229_v27 }
 0x684   : > { %v1205_v1 = vsel %vm692_vm10, %v1203_v32, 0.0  ;;  %v1241_v37 = vsel %vm692_vm10, %v1239_v33, 0.0 }
 0x685   : > { %v1187_v38 = vrot.slane %v1186_v10, 2  ;;  %v1232_v39 = vrot.slane %v1231_v34, 2  ;;  %v1206_v40 = vrot.slane %v1205_v1, 4  ;;  %v1242_v41 = vrot.slane %v1241_v37, 4 }
 0x687   : > { %v1188_v42 = vadd.f32 %v1187_v38, %v1186_v10  ;;  %v1233_v43 = vadd.f32 %v1232_v39, %v1231_v34  ;;  %v1207_v44 = vadd.f32 %v1206_v40, %v1205_v1  ;;  %v1243_v45 = vadd.f32 %v1242_v41, %v1241_v37 }
 0x689   : > { %v1189_v48 = vrot.slane %v1188_v42, 1  ;;  %v1234_v49 = vrot.slane %v1233_v43, 1  ;;  %v1208_v50 = vrot.slane %v1207_v44, 2  ;;  %v1244_v51 = vrot.slane %v1243_v45, 2 }
 0x68b   : > { %v1209_v53 = vadd.f32 %v1208_v50, %v1207_v44  ;;  %v1245_v54 = vadd.f32 %v1244_v51, %v1243_v45  ;;  %v1266_v55 = vpop.permute.xlu1 %1265  ;;  %v1190_v56 = vadd.f32 %v1189_v48, %v1188_v42  ;;  %v1235_v57 = vadd.f32 %v1234_v49, %v1233_v43  ;;  %v1355_v51 = vld [vmem:[%s2298_s8 + $0x8] sm:$0x3f] }
 0x68c   : > { %v1278_v58 = vmul.f32 %v1276_v52, %v1266_v55 }
 0x68d   : > { %v1210_v62 = vrot.slane %v1209_v53, 1  ;;  %v1246_v63 = vrot.slane %v1245_v54, 1  ;;  %v1191_v4 = vadd.f32 %v1190_v56, %v1168_v61  ;;  %v1236_v6 = vadd.f32 %v1235_v57, %v1224_v60 }
 0x68e   : > { %v1280_v0 = vrot.slane %v1278_v58, 2 }
 0x68f   : > { %v1211_v5 = vadd.f32 %v1210_v62, %v1209_v53  ;;  %v1247_v7 = vadd.f32 %v1246_v63, %v1245_v54 }
 0x690   : > { %v1282_v8 = vsel %vm692_vm10, %v1280_v0, 0.0  ;;  %v1292_v9 = vpop.permute.xlu1 %1291 }
 0x691   : > { %v1212_v11 = vadd.f32 %v1211_v5, %v1191_v4  ;;  %v1248_v17 = vadd.f32 %v1247_v7, %v1236_v6  ;;  %v1302_v12 = vmul.f32 %v1292_v9, %v1276_v52  ;;  %v1283_v13 = vrot.slane %v1282_v8, 4  ;;  %v1354_v52 = vld [vmem:[%s2298_s8] sm:$0xff] }
 0x693   : > { %v1249_v15 = vsel %vm426_vm6, %v1212_v11, %v1248_v17  ;;  %v1304_v16 = vrot.slane %v1302_v12, 2  ;;  %v1284_v3 = vadd.f32 %v1283_v13, %v1282_v8 }
 0x694   : > { %v1257_v18 = vadd.f32 %v1255_v14, %v1249_v15 }
 0x695   : > { %v1306_v19 = vsel %vm692_vm10, %v1304_v16, 0.0  ;;  %v1285_v25 = vrot.slane %v1284_v3, 2 }
 0x696   : > { %v1259_v20 = vmul.f32 0.2, %v1257_v18  ;;  %vm1258_vm9 = vcmp.ge.f32.partialorder %v1257_v18, 0.0  ;;  %v1307_v2 = vrot.slane %v1306_v19, 4 }
 0x697   : > { %v1286_v30 = vadd.f32 %v1285_v25, %v1284_v3 }
 0x698   : > { %v1260_v21 = vsel %vm1258_vm9, %v1257_v18, %v1259_v20  ;;  %v1308_v22 = vadd.f32 %v1307_v2, %v1306_v19 }
 0x699   : > { %v1268_v23 = vmul.f32 %v1266_v55, %v1260_v21  ;;  %v1294_v24 = vmul.f32 %v1292_v9, %v1260_v21  ;;  %v1287_v35 = vrot.slane %v1286_v30, 1 }
 0x69a   : > { %v1309_v59 = vrot.slane %v1308_v22, 2 }
 0x69b   : > { %v1269_v26 = vsel %vm692_vm10, %v1268_v23, 0.0  ;;  %v1295_v27 = vsel %vm692_vm10, %v1294_v24, 0.0  ;;  %v1288_v41 = vadd.f32 %v1287_v35, %v1286_v30 }
 0x69c   : > { %v1270_v28 = vrot.slane %v1269_v26, 4  ;;  %v1296_v29 = vrot.slane %v1295_v27, 4  ;;  %v1310_v33 = vadd.f32 %v1309_v59, %v1308_v22 }
 0x69e   : > { %v1271_v31 = vadd.f32 %v1270_v28, %v1269_v26  ;;  %v1297_v32 = vadd.f32 %v1296_v29, %v1295_v27  ;;  %v1311_v37 = vrot.slane %v1310_v33, 1  ;;  %v1501_v27 = vld [vmem:[#allocation2] sm:$0x1] }
 0x6a0   : > { %v1272_v10 = vrot.slane %v1271_v31, 2  ;;  %v1298_v34 = vrot.slane %v1297_v32, 2  ;;  %v1312_v43 = vadd.f32 %v1311_v37, %v1310_v33 }
 0x6a2   : > { %v1273_v36 = vadd.f32 %v1272_v10, %v1271_v31  ;;  %v1299_v1 = vadd.f32 %v1298_v34, %v1297_v32 }
 0x6a4   : > { %v1300_v38 = vrot.slane %v1299_v1, 1  ;;  %v1274_v39 = vrot.slane %v1273_v36, 1 }
 0x6a6   : > { %v1275_v40 = vadd.f32 %v1274_v39, %v1273_v36  ;;  %v1301_v42 = vadd.f32 %v1300_v38, %v1299_v1 }
 0x6a8   : > { %v1289_v44 = vadd.f32 %v1288_v41, %v1275_v40  ;;  %v1313_v45 = vadd.f32 %v1312_v43, %v1301_v42 }
 0x6aa   : > { %v1314_v47 = vsel %vm426_vm6, %v1289_v44, %v1313_v45  ;;  %vm1446_vm6 = vcmask 25600  }
 0x6ab   : > { %v1322_v48 = vadd.f32 %v1320_v46, %v1314_v47 }
 0x6ad   : > { %vm1323_vm13 = vcmp.ge.f32.partialorder %v1322_v48, 0.0  ;;  %v1324_v49 = vmul.f32 0.2, %v1322_v48 }
 0x6af   : > { %v1325_v50 = vsel %vm1323_vm13, %v1322_v48, %v1324_v49 }
 0x6b0   : > { %1330 = vrot.lane.b32.xlu0 %v1325_v50, %s1806_s27  ;;  %1327 = vrot.lane.b32.xlu1 %v1325_v50, %s1810_s19 }
 0x6b4   : > { %1339 = vrot.lane.b32.xlu0 %v1325_v50, %s2317_s29  ;;  %1336 = vrot.lane.b32.xlu1 %v1325_v50, %s1809_s22  ;;  %s2321_s22 = smov 126   ;;  %s350_s29 = sand.u32 1, %s1792_s16  }
 0x6b5   : > { %s1515_s21 = scalar_lea.sflag [#allocation4], %s350_s29 }
 0x6b8   : > { %1342 = vrot.lane.b32.xlu0 %v1325_v50, %s2318_s28  ;;  %1333 = vrot.lane.b32.xlu1 %v1325_v50, %s2319_s26  ;;  %s2323_s28 = smov 122   ;;  %s351_s26 = scalar_lea.vmem [#allocation3], %s350_s29 }
 0x6b9   : > { %s1527_s13 = sshll.u32 %s351_s26, 4  ;;  %s1528_s13 = int_to_ptr.vmem [resolvable:$true] %s1527_s13 }
 0x6bc   : > { %1433 = vperm.xlu0 %1735, %v1355_v51   ;;  %1345 = vrot.lane.b32.xlu1 %v1325_v50, %s2320_s12 }
 0x6c0   : > { %1358 = vperm.xlu1 %1737, %v1354_v52  }
 0x722   : > { %v1331_v53 = vpop.permute.xlu0 %1330  ;;  %v1328_v54 = vpop.permute.xlu1 %1327 }
 0x723   : > { %v1348_v57 = vsel %vm365_vm1, %v1328_v54, %v1331_v53  ;;  %vm1438_vm1 = vcmask 1041440  }
 0x726   : > { %v1340_v55 = vpop.permute.xlu0 %1339  ;;  %v1337_v56 = vpop.permute.xlu1 %1336 }
 0x727   : > { %v1351_v63 = vsel %vm876_vm15, %v1337_v56, %v1340_v55 }
 0x72a   : > { %v1334_v58 = vpop.permute.xlu1 %1333  ;;  %v1343_v60 = vpop.permute.xlu0 %1342 }
 0x72b   : > { %v1349_v61 = vsel %vm874_vm14, %v1348_v57, %v1334_v58  ;;  %v1352_v4 = vsel %vm879_vm0, %v1351_v63, %v1343_v60  ;;  %vm2324_vm14 = vcmask 1022976  }
 0x72c   : > { %v1350_v62 = vsel %vm876_vm15, %v1349_v61, %v1337_v56  ;;  %vm1460_vm15 = vcmask 1014784  }
 0x72d   : > { %v1371_v0 = vrot.slane %v1350_v62, 6  ;;  %v1391_v8 = vrot.slane %v1350_v62, 4  ;;  %v1411_v11 = vrot.slane %v1350_v62, 2 }
 0x72e   : > { %v1346_v5 = vpop.permute.xlu1 %1345 }
 0x72f   : > { %v1353_v6 = vsel %vm881_vm2, %v1352_v4, %v1346_v5  ;;  %1373 = vrot.lane.b32.xlu0 %v1371_v0, %s1806_s27 }
 0x730   : > { %v1372_v7 = vrot.slane %v1353_v6, 6  ;;  %v1392_v9 = vrot.slane %v1353_v6, 4  ;;  %v1412_v14 = vrot.slane %v1353_v6, 2 }
 0x732   : > { %1375 = vrot.lane.b32.xlu1 %v1372_v7, %s1806_s27  ;;  %s2322_s27 = smov 123  }
 0x733   : > { %1393 = vrot.lane.b32.xlu0 %v1391_v8, %s2321_s22 }
 0x736   : > { %1395 = vrot.lane.b32.xlu1 %v1392_v9, %s2321_s22  ;;  %s1740_s22 = scalar_lea.vmem %s1528_s13, 16 }
 0x737   : > { %v2228_v17 = vpop.permute.xlu0 %1433  ;;  %1413 = vrot.lane.b32.xlu0 %v1411_v11, %s1810_s19  ;;  %p1741_p11 = scmp.ne.s32.totalorder %s1528_s13, %s1740_s22 }
 0x738   : > { %v1436_v12 = vmul.f32 %v2228_v17, %v1350_v62  ;;  %v1437_v13 = vmul.f32 %v2228_v17, %v1353_v6 }
 0x739   : > { %p1742_p12 = pnand %p1741_p11, %p1926_p5 }
 0x73a   : > { %v1439_v15 = vsel %vm1438_vm1, %v1436_v12, 0.0  ;;  %v1447_v16 = vsel %vm1446_vm6, %v1437_v13, 0.0  ;;  %1415 = vrot.lane.b32.xlu1 %v1412_v14, %s1810_s19  ;;  %s1828_s19 = smov 124  }
 0x73b   : > { %v1440_v18 = vrot.slane %v1439_v15, 4  ;;  %v1448_v19 = vrot.slane %v1447_v16, 4  ;;  %1464 = vrot.lane.b32.xlu0 %v1371_v0, %s2322_s27  ;;  %v1359_v28 = vpop.permute.xlu1 %1358  ;;  %p1743_p13 = pneg %p1742_p12 }
 0x73c   : > { %v1361_v29 = vmul.f32 %v1359_v28, %v1350_v62 }
 0x73d   : > { %v1441_v3 = vadd.f32 %v1440_v18, %v1439_v15  ;;  %v1449_v20 = vadd.f32 %v1448_v19, %v1447_v16 }
 0x73e   : > { %1466 = vrot.lane.b32.xlu1 %v1372_v7, %s2322_s27  ;;  %v1362_v31 = vsel %vm692_vm10, %v1361_v29, 0.0  ;;  %s1829_s27 = smov [#allocation3]  }
 0x73f   : > { %1483 = vrot.lane.b32.xlu0 %v1391_v8, %s2323_s28  ;;  %v1442_v2 = vrot.slane %v1441_v3, 2  ;;  %v1450_v21 = vrot.slane %v1449_v20, 2  ;;  %v1363_v33 = vrot.slane %v1362_v31, 4 }
 0x741   : > { %v1443_v22 = vadd.f32 %v1442_v2, %v1441_v3  ;;  %v1451_v23 = vadd.f32 %v1450_v21, %v1449_v20  ;;  %v1364_v37 = vadd.f32 %v1363_v33, %v1362_v31 }
 0x742   : > { %1485 = vrot.lane.b32.xlu1 %v1392_v9, %s2323_s28  ;;  %s1744_s28 = sshll.u32 %s1829_s27, 4  ;;  %s1745_s28 = int_to_ptr.vmem [resolvable:$false] %s1744_s28 }
 0x743   : > { %v1444_v24 = vrot.slane %v1443_v22, 1  ;;  %v1452_v25 = vrot.slane %v1451_v23, 1  ;;  %v1365_v45 = vrot.slane %v1364_v37, 2  ;;  %s1746_s9 = scalar_lea.vmem %s1745_s28, 32  ;;  %p1747_p0 = scmp.lt.s32.totalorder %s1528_s13, %s1745_s28 }
 0x744   : > { %p1748_p1 = scmp.lt.s32.totalorder %s1746_s9, %s1740_s22 }
 0x745   : > { %v1445_v59 = vadd.f32 %v1444_v24, %v1443_v22  ;;  %v1453_v26 = vadd.f32 %v1452_v25, %v1451_v23  ;;  %v1366_v55 = vadd.f32 %v1365_v45, %v1364_v37  ;;  %v1507_v23 = vlaneseq }
 0x746   : > { %p1749_p2 = por %p1748_p1, %p1747_p0 }
 0x747   : > { %1456 = vrot.lane.b32.xlu0 %v1445_v59, %s1828_s19  ;;  %1458 = vrot.lane.b32.xlu1 %v1453_v26, %s1828_s19  ;;  %v1367_v11 = vrot.slane %v1366_v55, 1 }
 0x748   : > { %p1750_p3 = pnand %p1749_p2, %p1743_p13 }
 0x749   : > { %v1368_v2 = vadd.f32 %v1367_v11, %v1366_v55 }
 0x74b   : > { %1504 = vperm.xlu0 %1735, %v1501_v27  }
 0x7a1   : > { %v1374_v30 = vpop.permute.xlu0 %1373 }
 0x7a4   : > { %v1376_v32 = vpop.permute.xlu1 %1375 }
 0x7a5   : > { %v1377_v10 = vsel %vm708_vm11, %v1374_v30, %v1376_v32  ;;  %v1394_v34 = vpop.permute.xlu0 %1393  ;;  %vm1468_vm11 = vcmask 1006592  }
 0x7a6   : > { %v1379_v35 = vmul.f32 %v1377_v10, %v1359_v28 }
 0x7a8   : > { %v1381_v36 = vrot.slane %v1379_v35, 2  ;;  %v1396_v1 = vpop.permute.xlu1 %1395 }
 0x7a9   : > { %v1397_v38 = vsel %vm729_vm12, %v1394_v34, %v1396_v1  ;;  %v1414_v39 = vpop.permute.xlu0 %1413  ;;  %vm2325_vm12 = vcmask 998400   ;;  %v1508_v34 = vshrl.u32 %v1507_v23, 7 }
 0x7aa   : > { %v1383_v40 = vsel %vm692_vm10, %v1381_v36, 0.0  ;;  %v1399_v41 = vmul.f32 %v1397_v38, %v1359_v28 }
 0x7ab   : > { %v1384_v42 = vrot.slane %v1383_v40, 4  ;;  %v1509_v38 = vsub.s32 0, %v1508_v34 }
 0x7ac   : > { %v1401_v43 = vrot.slane %v1399_v41, 4  ;;  %v1416_v44 = vpop.permute.xlu1 %1415 }
 0x7ad   : > { %v1385_v46 = vadd.f32 %v1384_v42, %v1383_v40  ;;  %v1417_v47 = vsel %vm2324_vm14, %v1414_v39, %v1416_v44  ;;  %v1465_v50 = vpop.permute.xlu0 %1464 }
 0x7ae   : > { %v1403_v48 = vsel %vm692_vm10, %v1401_v43, 0.0  ;;  %v1419_v49 = vmul.f32 %v1417_v47, %v1359_v28 }
 0x7af   : > { %v1386_v51 = vrot.slane %v1385_v46, 2  ;;  %v1404_v52 = vrot.slane %v1403_v48, 4 }
 0x7b0   : > { %v1421_v53 = vrot.slane %v1419_v49, 6  ;;  %v1467_v54 = vpop.permute.xlu1 %1466 }
 0x7b1   : > { %v1387_v56 = vadd.f32 %v1386_v51, %v1385_v46  ;;  %v1405_v57 = vadd.f32 %v1404_v52, %v1403_v48  ;;  %v1469_v58 = vsel %vm1468_vm11, %v1465_v50, %v1467_v54  ;;  %v1484_v5 = vpop.permute.xlu0 %1483 }
 0x7b2   : > { %v1423_v60 = vsel %vm692_vm10, %v1421_v53, 0.0  ;;  %v1471_v61 = vmul.f32 %v1469_v58, %v2228_v17 }
 0x7b3   : > { %v1388_v62 = vrot.slane %v1387_v56, 1  ;;  %v1406_v63 = vrot.slane %v1405_v57, 2  ;;  %v1424_v0 = vrot.slane %v1423_v60, 4 }
 0x7b4   : > { %v1473_v4 = vrot.slane %v1471_v61, 2  ;;  %v1486_v6 = vpop.permute.xlu1 %1485 }
 0x7b5   : > { %v1407_v7 = vadd.f32 %v1406_v63, %v1405_v57  ;;  %v1425_v8 = vadd.f32 %v1424_v0, %v1423_v60  ;;  %v1487_v9 = vsel %vm2325_vm12, %v1484_v5, %v1486_v6  ;;  %v1389_v14 = vadd.f32 %v1388_v62, %v1387_v56 }
 0x7b6   : > { %v1475_v12 = vsel %vm692_vm10, %v1473_v4, 0.0  ;;  %v1489_v13 = vmul.f32 %v1487_v9, %v2228_v17 }
 0x7b7   : > { %v1408_v15 = vrot.slane %v1407_v7, 1  ;;  %v1426_v16 = vrot.slane %v1425_v8, 2  ;;  %v1476_v18 = vrot.slane %v1475_v12, 4  ;;  %v1390_v59 = vadd.f32 %v1389_v14, %v1368_v2 }
 0x7b8   : > { %v1491_v19 = vrot.slane %v1489_v13, 4 }
 0x7b9   : > { %v1427_v3 = vadd.f32 %v1426_v16, %v1425_v8  ;;  %v1477_v20 = vadd.f32 %v1476_v18, %v1475_v12  ;;  %v1409_v21 = vadd.f32 %v1408_v15, %v1407_v7  ;;  %v1457_v17 = vpop.permute.xlu0 %1456  ;;  %v1459_v31 = vpop.permute.xlu1 %1458 }
 0x7ba   : > { %v1493_v22 = vsel %vm692_vm10, %v1491_v19, 0.0  ;;  %v1461_v35 = vsel %vm1460_vm15, %v1457_v17, %v1459_v31 }
 0x7bb   : > { %v1478_v24 = vrot.slane %v1477_v20, 2  ;;  %v1494_v25 = vrot.slane %v1493_v22, 4  ;;  %v1428_v26 = vrot.slane %v1427_v3, 1  ;;  %v1410_v29 = vadd.f32 %v1409_v21, %v1390_v59 }
 0x7bd   : > { %v1479_v27 = vadd.f32 %v1478_v24, %v1477_v20  ;;  %v1495_v28 = vadd.f32 %v1494_v25, %v1493_v22  ;;  %v1429_v30 = vadd.f32 %v1428_v26, %v1427_v3 }
 0x7bf   : > { %v1496_v32 = vrot.slane %v1495_v28, 2  ;;  %v1430_v33 = vadd.f32 %v1429_v30, %v1410_v29  ;;  %v1480_v10 = vrot.slane %v1479_v27, 1 }
 0x7c1   : > { %v1497_v36 = vadd.f32 %v1496_v32, %v1495_v28  ;;  %v1481_v1 = vadd.f32 %v1480_v10, %v1479_v27  ;;  %v1463_v37 = vadd.f32 %v1461_v35, %v1430_v33 }
 0x7c3   : > { %v1498_v39 = vrot.slane %v1497_v36, 1  ;;  %v1482_v40 = vadd.f32 %v1481_v1, %v1463_v37 }
 0x7c5   : > { %v1499_v41 = vadd.f32 %v1498_v39, %v1497_v36 }
 0x7c6   : > { %v1505_v42 = vpop.permute.xlu0 %1504 }
 0x7c7   : > { %v1500_v43 = vadd.f32 %v1499_v41, %v1482_v40  ;;  %v1510_v44 = vrot.slane %v1505_v42, %v1509_v38 }
 0x7c9   : > { %v1511_v45 = vadd.f32 %v1510_v44, %v1500_v43 }
 0x7cb   : > { %1738 = vtanh.f32 %v1511_v45 }
 0x7d8   : > { %v1739_v46 = vpop.eup %1738 }
 0x7d9   : > { %1513 = vst [vmem:[%s351_s26] sm:$0x1] %v1739_v46 }
 0x7da   : > { %1753 = shalt.err (!%p1750_p3)
}
 0x7db   : > { %s1754_s19 = scalar_lea.hbm %s2255_s14, 16  ;;  %s1758_s26 = scalar_lea.hbm %s2300_s10, 32 }
 0x7dc   : > { %p1755_p4 = scmp.ne.s32.totalorder %s2255_s14, %s1754_s19  ;;  %p1759_p9 = scmp.lt.s32.totalorder %s2255_s14, %s2300_s10 }
 0x7dd   : > { %p1760_p10 = scmp.lt.s32.totalorder %s1758_s26, %s1754_s19 }
 0x7de   : > { %p1756_p7 = pnand %p1755_p4, %p1926_p5 }
 0x7df   : > { %p1761_p11 = por %p1760_p10, %p1759_p9 }
 0x7e0   : > { %p1757_p8 = pneg %p1756_p7 }
 0x7e2   : > { %p1762_p12 = pnand %p1761_p11, %p1757_p8 }
 0x7e4   : > { %1765 = shalt.err (!%p1762_p12)
}
 0x7e5   : > { %1657 = dma.vmem_to_hbm [thread:$0]  (%p1926_p5), %s1528_s13, 16, %s2255_s14, %s1515_s21  }
 0x7e6 PF: > { %p1663_p13 = scmp.ge.s32.totalorder %s1800_s18, 2  ;;  %s1539_s22 = sand.u32 1, %s1788_s15  }
 0x7e7   : > { %s1540_s27 = scalar_lea.sflag [#allocation4], %s1539_s22 }
 0x7e8   : > { %p1660_p0 = pnand %p1663_p13, %p1930_p6 }
 0x7ea   : > { %p1661_p1 = pneg %p1660_p0 }
 0x7ec   : > { %1783 = dma.done.wait (%p1661_p1), %s1540_s27, 16  }
 0x7ed   : > { %1785 = vsyncadd (%p1661_p1), %s1540_s27, 4294967280  ;;  %p22_p2 = scmp.ge.s32.totalorder %s1913_s20, 4   ;;  %s2326_s15 = smov %s1792_s16 }
 0x7ee   : > { %s2327_s16 = smov %s1796_s17  ;;  %s2328_s17 = smov %s1924_s23 }
 0x7ef   : > { %s2329_s18 = smov %s1913_s20  ;;  %24 = sbr.rel (!%p22_p2) target bundleno = 6 (0x6), region = 104 }
 0x7f4   :  { %1544 = vsyncpa [#allocation4], 1 }
 0x7f5   :  { %1546 = vsyncpa [#allocation4 + $0x1], 1 }

</bundles_post_ra>
